<compile_context>
chip_gen: v5e
topology: v5e:2x2
jax: 0.10.0
libtpu: 0.0.40
codegen_flags: <defaults>
</compile_context>

<pallas_src>
import numpy as np
import jax
import jax.numpy as jnp
from jax.experimental import pallas as pl
from jax.experimental.pallas import tpu as pltpu

LRELU_SLOPE = 0.2
IN_EPS = 1e-5

CHANNELS = 3
BATCH = 2
IMG = 32          # strides 2,2,2,1,1 -> 4x4 patch map
KSIZE = 3
K0_PAD = 128      # layer-0 im2col K (3*3*3 = 27) padded lane-dense

# (cin, cout, kernel, stride, pad, use_instance_norm, use_leakyrelu)
LAYER_CFG = [
    (CHANNELS, 64,  3, 2, 1, False, True),
    (64,       128, 3, 2, 1, True,  True),
    (128,      256, 3, 2, 1, True,  True),
    (256,      512, 3, 1, 1, True,  True),
    (512,      1,   3, 1, 1, False, False),
]


def _spatial_sizes(img=IMG):
    sizes = [img]
    for (_, _, k, s, p, _, _) in LAYER_CFG:
        sizes.append((sizes[-1] + 2 * p - k) // s + 1)
    return sizes                                   # [32, 16, 8, 4, 4, 4]


SIZES = _spatial_sizes()


def _make_selection(hi, wi, ho, wo, stride, pad=1, k=KSIZE):
    """S[t, mo, mi] = 1 iff output row mo reads input row mi for tap t."""
    s = np.zeros((k * k, ho * wo, hi * wi), np.float32)
    for dy in range(k):
        for dx in range(k):
            t = dy * k + dx
            for yo in range(ho):
                yi = stride * yo + dy - pad
                if yi < 0 or yi >= hi:
                    continue
                for xo in range(wo):
                    xi = stride * xo + dx - pad
                    if 0 <= xi < wi:
                        s[t, yo * wo + xo, yi * wi + xi] = 1.0
    return s


# Host-side constants (exact 0/1 values -> exact in bf16).
SELECT = [None] + [
    _make_selection(SIZES[l], SIZES[l], SIZES[l + 1], SIZES[l + 1],
                    LAYER_CFG[l][3])
    for l in range(1, 5)
]


# ----------------------------------------------------------------------------
# fused whole-network Pallas kernel (one grid step == one sample)
# ----------------------------------------------------------------------------
def _fused_kernel(p0_ref, w0_ref, b0_ref,
                  s1_ref, w1_ref, b1_ref,
                  s2_ref, w2_ref, b2_ref,
                  s3_ref, w3_ref, b3_ref,
                  s4_ref, w4_ref, b4_ref,
                  o_ref):
    f32 = jnp.float32
    bf16 = jnp.bfloat16

    def lrelu(x):
        return jnp.where(x >= 0, x, LRELU_SLOPE * x)

    # ---- layer 0: im2col matmul (patches prebuilt in JAX), no norm --------
    a = jnp.dot(p0_ref[0], w0_ref[...], preferred_element_type=f32)
    a = lrelu(a + b0_ref[...]).astype(bf16)                       # (256, 64)

    def conv_in_lrelu(a_bf16, s_ref, w_ref, b_ref):
        # conv(A) = sum_t (S_t @ A) @ W_t ; gather and contraction on the MXU.
        mo = s_ref.shape[1]
        cout = w_ref.shape[2]
        acc = jnp.zeros((mo, cout), f32)
        for t in range(KSIZE * KSIZE):
            p = jnp.dot(s_ref[t], a_bf16, preferred_element_type=f32)
            acc = acc + jnp.dot(p.astype(bf16), w_ref[t],
                                preferred_element_type=f32)
        acc = acc + b_ref[...]
        # InstanceNorm2d (affine=False): per-channel stats over this sample's
        # spatial rows, biased variance, all in f32.
        mean = jnp.mean(acc, axis=0, keepdims=True)
        d = acc - mean
        var = jnp.mean(d * d, axis=0, keepdims=True)
        acc = d * jax.lax.rsqrt(var + IN_EPS)
        return lrelu(acc).astype(bf16)

    a = conv_in_lrelu(a, s1_ref, w1_ref, b1_ref)                  # (64, 128)
    a = conv_in_lrelu(a, s2_ref, w2_ref, b2_ref)                  # (16, 256)
    a = conv_in_lrelu(a, s3_ref, w3_ref, b3_ref)                  # (16, 512)

    # ---- layer 4: 512 -> 1, no norm / activation.  cout == 1, so keep it
    # on the VPU (multiply + lane reduce) and emit only the valid channel. --
    mo = s4_ref.shape[1]
    y = jnp.zeros((mo, 1), f32)
    for t in range(KSIZE * KSIZE):
        p = jnp.dot(s4_ref[t], a, preferred_element_type=f32)     # (16, 512)
        y = y + jnp.sum(p * w4_ref[t].astype(f32), axis=1, keepdims=True)
    o_ref[0] = (y + b4_ref[...]).astype(o_ref.dtype)


# ----------------------------------------------------------------------------
# plain-JAX glue: layer-0 im2col only (cin=3, negligible)
# ----------------------------------------------------------------------------
def im2col(x, k, stride, pad):
    n, h, w, c = x.shape
    xp = jnp.pad(x, ((0, 0), (pad, pad), (pad, pad), (0, 0)))
    ho = (h + 2 * pad - k) // stride + 1
    wo = (w + 2 * pad - k) // stride + 1
    cols = []
    for dy in range(k):
        for dx in range(k):
            cols.append(xp[:, dy:dy + stride * ho:stride,
                           dx:dx + stride * wo:stride, :])
    patches = jnp.concatenate(cols, axis=-1)       # (N, Ho, Wo, k*k*C)
    return patches.reshape(n, ho * wo, k * k * c)


# ----------------------------------------------------------------------------
# full forward pass (takes NCHW, returns NCHW like the PyTorch module)
# ----------------------------------------------------------------------------
def context_encoder_forward(x_nchw, params):
    n = x_nchw.shape[0]
    x = jnp.transpose(x_nchw, (0, 2, 3, 1))        # NCHW -> NHWC

    # --- layer-0 operands: tiny JAX im2col, K padded lane-dense to 128 -----
    k0 = KSIZE * KSIZE * CHANNELS
    patches0 = im2col(x, KSIZE, LAYER_CFG[0][3], 1)          # (N, 256, 27)
    m0 = patches0.shape[1]
    patches0 = jnp.pad(patches0, ((0, 0), (0, 0), (0, K0_PAD - k0)))
    patches0 = patches0.astype(jnp.bfloat16)
    w0 = jnp.pad(params["w0"], ((0, K0_PAD - k0), (0, 0))).astype(jnp.bfloat16)
    b0 = params["b0"].reshape(1, -1).astype(jnp.float32)

    operands = [patches0, w0, b0]
    in_specs = [
        pl.BlockSpec((1, m0, K0_PAD), lambda i: (i, 0, 0)),
        pl.BlockSpec(w0.shape, lambda i: (0, 0)),
        pl.BlockSpec(b0.shape, lambda i: (0, 0)),
    ]

    # --- layers 1..4: per-tap weights + 0/1 selection matrices -------------
    # (grid-invariant; constant index_map keeps them VMEM-resident)
    for l in range(1, 5):
        cin, cout = LAYER_CFG[l][0], LAYER_CFG[l][1]
        sel = jnp.asarray(SELECT[l], jnp.bfloat16)            # (9, Mo, Mi)
        w = params[f"w{l}"].reshape(KSIZE * KSIZE, cin, cout)
        if l == 4:
            w = jnp.transpose(w, (0, 2, 1))                   # (9, 1, 512)
        w = w.astype(jnp.bfloat16)
        b = params[f"b{l}"].reshape(1, -1).astype(jnp.float32)
        operands += [sel, w, b]
        in_specs += [
            pl.BlockSpec(sel.shape, lambda i: (0, 0, 0)),
            pl.BlockSpec(w.shape, lambda i: (0, 0, 0)),
            pl.BlockSpec(b.shape, lambda i: (0, 0)),
        ]

    m_out = SIZES[-1] * SIZES[-1]                             # 16
    out_shape = jax.ShapeDtypeStruct((n, m_out, 1), jnp.float32)
    out_spec = pl.BlockSpec((1, m_out, 1), lambda i: (i, 0, 0))

    # advisory cost estimate (keeps XLA from mis-scheduling the custom call)
    flops = 2 * n * m0 * K0_PAD * LAYER_CFG[0][1]
    for l in range(1, 5):
        cin, cout = LAYER_CFG[l][0], LAYER_CFG[l][1]
        mi, mo = SIZES[l] ** 2, SIZES[l + 1] ** 2
        flops += 2 * n * KSIZE * KSIZE * (mo * mi * cin + mo * cin * cout)
    bytes_accessed = sum(op.size * op.dtype.itemsize for op in operands)
    bytes_accessed += n * m_out * 4

    out = pl.pallas_call(
        _fused_kernel,
        out_shape=out_shape,
        grid_spec=pl.GridSpec(grid=(n,), in_specs=in_specs,
                              out_specs=out_spec),
        compiler_params=pltpu.CompilerParams(
            dimension_semantics=("parallel",),
            vmem_limit_bytes=32 * 1024 * 1024),
        cost_estimate=pl.CostEstimate(
            flops=flops,
            transcendentals=n * (128 + 256 + 512),
            bytes_accessed=bytes_accessed),
    )(*operands)

    out = out.reshape(n, SIZES[-1], SIZES[-1], 1)
    return jnp.transpose(out, (0, 3, 1, 2))        # NHWC -> NCHW


# ----------------------------------------------------------------------------
# pure-JAX f32 reference (lax.conv, NCHW) for correctness check
# ----------------------------------------------------------------------------
def reference_forward(x_nchw, params):
    x = x_nchw
    for i, (cin, cout, k, s, p, use_norm, act) in enumerate(LAYER_CFG):
        w = params[f"w{i}"].reshape(k, k, cin, cout).transpose(3, 2, 0, 1)
        x = jax.lax.conv_general_dilated(
            x, w, (s, s), [(p, p), (p, p)],
            dimension_numbers=("NCHW", "OIHW", "NCHW"),
            precision=jax.lax.Precision.HIGHEST)
        x = x + params[f"b{i}"].reshape(1, cout, 1, 1)
        if use_norm:
            mean = x.mean(axis=(2, 3), keepdims=True)
            var = ((x - mean) ** 2).mean(axis=(2, 3), keepdims=True)
            x = (x - mean) * jax.lax.rsqrt(var + IN_EPS)
        if act:
            x = jnp.where(x >= 0, x, LRELU_SLOPE * x)
    return x


# ----------------------------------------------------------------------------
# deterministic synthetic parameters (no checkpoint load)
# ----------------------------------------------------------------------------
def init_params(key):
    params = {}
    for i, (cin, cout, k, s, p, use_norm, act) in enumerate(LAYER_CFG):
        key, k1, k2 = jax.random.split(key, 3)
        fan_in = k * k * cin
        params[f"w{i}"] = (jax.random.normal(k1, (fan_in, cout), jnp.float32)
                           / jnp.sqrt(float(fan_in)))
        params[f"b{i}"] = 0.01 * jax.random.normal(k2, (cout,), jnp.float32)
    return params


if __name__ == "__main__":
    key = jax.random.PRNGKey(0)
    pkey, xkey = jax.random.split(key)
    params = init_params(pkey)
    x = jax.random.normal(xkey, (BATCH, CHANNELS, IMG, IMG), jnp.float32)

    fwd = jax.jit(context_encoder_forward)
    out = jax.block_until_ready(fwd(x, params))
    assert out.shape == (BATCH, 1, IMG // 8, IMG // 8), out.shape

    ref = jax.block_until_ready(jax.jit(reference_forward)(x, params))
    err = float(jnp.max(jnp.abs(out - ref)))
    scale = float(jnp.max(jnp.abs(ref)))
    # bf16 MXU operands with f32 accumulation; tolerance absorbs the cast.
    assert err <= 5e-2 * max(scale, 1.0) + 2e-2, f"mismatch: max|diff|={err}"

    print("KERNEL_OK")
</pallas_src>

<mosaic_0001>
module attributes {stable_mosaic.version = 11 : i64} {
  func.func @_fused_kernel(%arg0: i32, %arg1: memref<1x256x128xbf16, #tpu.memory_space<vmem>>, %arg2: memref<128x64xbf16, #tpu.memory_space<vmem>>, %arg3: memref<1x64xf32, #tpu.memory_space<vmem>>, %arg4: memref<9x64x256xbf16, #tpu.memory_space<vmem>>, %arg5: memref<9x64x128xbf16, #tpu.memory_space<vmem>>, %arg6: memref<1x128xf32, #tpu.memory_space<vmem>>, %arg7: memref<9x16x64xbf16, #tpu.memory_space<vmem>>, %arg8: memref<9x128x256xbf16, #tpu.memory_space<vmem>>, %arg9: memref<1x256xf32, #tpu.memory_space<vmem>>, %arg10: memref<9x16x16xbf16, #tpu.memory_space<vmem>>, %arg11: memref<9x256x512xbf16, #tpu.memory_space<vmem>>, %arg12: memref<1x512xf32, #tpu.memory_space<vmem>>, %arg13: memref<9x16x16xbf16, #tpu.memory_space<vmem>>, %arg14: memref<9x1x512xbf16, #tpu.memory_space<vmem>>, %arg15: memref<1x1xf32, #tpu.memory_space<vmem>>, %arg16: memref<1x16x1xf32, #tpu.memory_space<vmem>>) attributes {dimension_semantics = [#tpu.dimension_semantics<parallel>], iteration_bounds = array<i64: 2>, scalar_prefetch = 0 : i64, scratch_operands = 0 : i64, tpu.core_type = #tpu.core_type<tc>, window_params = [{transform_indices = @transform_0, window_bounds = array<i64: 1, 256, 128>}, {pipeline_mode = #tpu.pipeline_mode<synchronous>, transform_indices = @transform_1, window_bounds = array<i64: 128, 64>}, {pipeline_mode = #tpu.pipeline_mode<synchronous>, transform_indices = @transform_2, window_bounds = array<i64: 1, 64>}, {pipeline_mode = #tpu.pipeline_mode<synchronous>, transform_indices = @transform_3, window_bounds = array<i64: 9, 64, 256>}, {pipeline_mode = #tpu.pipeline_mode<synchronous>, transform_indices = @transform_4, window_bounds = array<i64: 9, 64, 128>}, {pipeline_mode = #tpu.pipeline_mode<synchronous>, transform_indices = @transform_5, window_bounds = array<i64: 1, 128>}, {pipeline_mode = #tpu.pipeline_mode<synchronous>, transform_indices = @transform_6, window_bounds = array<i64: 9, 16, 64>}, {pipeline_mode = #tpu.pipeline_mode<synchronous>, transform_indices = @transform_7, window_bounds = array<i64: 9, 128, 256>}, {pipeline_mode = #tpu.pipeline_mode<synchronous>, transform_indices = @transform_8, window_bounds = array<i64: 1, 256>}, {pipeline_mode = #tpu.pipeline_mode<synchronous>, transform_indices = @transform_9, window_bounds = array<i64: 9, 16, 16>}, {pipeline_mode = #tpu.pipeline_mode<synchronous>, transform_indices = @transform_10, window_bounds = array<i64: 9, 256, 512>}, {pipeline_mode = #tpu.pipeline_mode<synchronous>, transform_indices = @transform_11, window_bounds = array<i64: 1, 512>}, {pipeline_mode = #tpu.pipeline_mode<synchronous>, transform_indices = @transform_12, window_bounds = array<i64: 9, 16, 16>}, {pipeline_mode = #tpu.pipeline_mode<synchronous>, transform_indices = @transform_13, window_bounds = array<i64: 9, 1, 512>}, {pipeline_mode = #tpu.pipeline_mode<synchronous>, transform_indices = @transform_14, window_bounds = array<i64: 1, 1>}, {transform_indices = @transform_15, window_bounds = array<i64: 1, 16, 1>}]} {
    %c0 = arith.constant 0 : index
    %c0_0 = arith.constant 0 : index
    %c0_1 = arith.constant 0 : index
    %0 = vector.load %arg1[%c0, %c0_0, %c0_1] : memref<1x256x128xbf16, #tpu.memory_space<vmem>>, vector<1x256x128xbf16>
    %1 = vector.shape_cast %0 : vector<1x256x128xbf16> to vector<256x128xbf16>
    %c0_2 = arith.constant 0 : index
    %c0_3 = arith.constant 0 : index
    %2 = vector.load %arg2[%c0_2, %c0_3] : memref<128x64xbf16, #tpu.memory_space<vmem>>, vector<128x64xbf16>
    %cst = arith.constant dense<0.000000e+00> : vector<256x64xf32>
    %3 = tpu.matmul %1, %2, %cst {dimension_numbers = #tpu.dot_dimension_numbers<[1], [0], [0], [1], [0, 0, 1, 1], [], []>} : vector<256x128xbf16>, vector<128x64xbf16>, vector<256x64xf32> -> vector<256x64xf32>
    %c0_4 = arith.constant 0 : index
    %c0_5 = arith.constant 0 : index
    %4 = vector.load %arg3[%c0_4, %c0_5] : memref<1x64xf32, #tpu.memory_space<vmem>>, vector<1x64xf32>
    %5 = vector.broadcast %4 : vector<1x64xf32> to vector<256x64xf32>
    %6 = arith.addf %3, %5 : vector<256x64xf32>
    %cst_6 = arith.constant 0.000000e+00 : f32
    %7 = vector.broadcast %cst_6 : f32 to vector<256x64xf32>
    %8 = arith.cmpf oge, %6, %7 : vector<256x64xf32>
    %cst_7 = arith.constant 2.000000e-01 : f32
    %9 = vector.broadcast %cst_7 : f32 to vector<256x64xf32>
    %10 = arith.mulf %9, %6 : vector<256x64xf32>
    %11 = arith.select %8, %6, %10 : vector<256x64xi1>, vector<256x64xf32>
    %12 = arith.truncf %11 : vector<256x64xf32> to vector<256x64xbf16>
    %cst_8 = arith.constant 0.000000e+00 : f32
    %13 = vector.broadcast %cst_8 : f32 to vector<64x128xf32>
    %c0_9 = arith.constant 0 : index
    %c0_10 = arith.constant 0 : index
    %c0_11 = arith.constant 0 : index
    %14 = vector.load %arg4[%c0_9, %c0_10, %c0_11] : memref<9x64x256xbf16, #tpu.memory_space<vmem>>, vector<1x64x256xbf16>
    %15 = vector.shape_cast %14 : vector<1x64x256xbf16> to vector<64x256xbf16>
    %cst_12 = arith.constant dense<0.000000e+00> : vector<64x64xf32>
    %16 = tpu.matmul %15, %12, %cst_12 {dimension_numbers = #tpu.dot_dimension_numbers<[1], [0], [0], [1], [0, 0, 1, 1], [], []>} : vector<64x256xbf16>, vector<256x64xbf16>, vector<64x64xf32> -> vector<64x64xf32>
    %17 = arith.truncf %16 : vector<64x64xf32> to vector<64x64xbf16>
    %c0_13 = arith.constant 0 : index
    %c0_14 = arith.constant 0 : index
    %c0_15 = arith.constant 0 : index
    %18 = vector.load %arg5[%c0_13, %c0_14, %c0_15] : memref<9x64x128xbf16, #tpu.memory_space<vmem>>, vector<1x64x128xbf16>
    %19 = vector.shape_cast %18 : vector<1x64x128xbf16> to vector<64x128xbf16>
    %cst_16 = arith.constant dense<0.000000e+00> : vector<64x128xf32>
    %20 = tpu.matmul %17, %19, %cst_16 {dimension_numbers = #tpu.dot_dimension_numbers<[1], [0], [0], [1], [0, 0, 1, 1], [], []>} : vector<64x64xbf16>, vector<64x128xbf16>, vector<64x128xf32> -> vector<64x128xf32>
    %21 = arith.addf %13, %20 : vector<64x128xf32>
    %c1 = arith.constant 1 : index
    %c0_17 = arith.constant 0 : index
    %c0_18 = arith.constant 0 : index
    %22 = vector.load %arg4[%c1, %c0_17, %c0_18] : memref<9x64x256xbf16, #tpu.memory_space<vmem>>, vector<1x64x256xbf16>
    %23 = vector.shape_cast %22 : vector<1x64x256xbf16> to vector<64x256xbf16>
    %cst_19 = arith.constant dense<0.000000e+00> : vector<64x64xf32>
    %24 = tpu.matmul %23, %12, %cst_19 {dimension_numbers = #tpu.dot_dimension_numbers<[1], [0], [0], [1], [0, 0, 1, 1], [], []>} : vector<64x256xbf16>, vector<256x64xbf16>, vector<64x64xf32> -> vector<64x64xf32>
    %25 = arith.truncf %24 : vector<64x64xf32> to vector<64x64xbf16>
    %c1_20 = arith.constant 1 : index
    %c0_21 = arith.constant 0 : index
    %c0_22 = arith.constant 0 : index
    %26 = vector.load %arg5[%c1_20, %c0_21, %c0_22] : memref<9x64x128xbf16, #tpu.memory_space<vmem>>, vector<1x64x128xbf16>
    %27 = vector.shape_cast %26 : vector<1x64x128xbf16> to vector<64x128xbf16>
    %cst_23 = arith.constant dense<0.000000e+00> : vector<64x128xf32>
    %28 = tpu.matmul %25, %27, %cst_23 {dimension_numbers = #tpu.dot_dimension_numbers<[1], [0], [0], [1], [0, 0, 1, 1], [], []>} : vector<64x64xbf16>, vector<64x128xbf16>, vector<64x128xf32> -> vector<64x128xf32>
    %29 = arith.addf %21, %28 : vector<64x128xf32>
    %c2 = arith.constant 2 : index
    %c0_24 = arith.constant 0 : index
    %c0_25 = arith.constant 0 : index
    %30 = vector.load %arg4[%c2, %c0_24, %c0_25] : memref<9x64x256xbf16, #tpu.memory_space<vmem>>, vector<1x64x256xbf16>
    %31 = vector.shape_cast %30 : vector<1x64x256xbf16> to vector<64x256xbf16>
    %cst_26 = arith.constant dense<0.000000e+00> : vector<64x64xf32>
    %32 = tpu.matmul %31, %12, %cst_26 {dimension_numbers = #tpu.dot_dimension_numbers<[1], [0], [0], [1], [0, 0, 1, 1], [], []>} : vector<64x256xbf16>, vector<256x64xbf16>, vector<64x64xf32> -> vector<64x64xf32>
    %33 = arith.truncf %32 : vector<64x64xf32> to vector<64x64xbf16>
    %c2_27 = arith.constant 2 : index
    %c0_28 = arith.constant 0 : index
    %c0_29 = arith.constant 0 : index
    %34 = vector.load %arg5[%c2_27, %c0_28, %c0_29] : memref<9x64x128xbf16, #tpu.memory_space<vmem>>, vector<1x64x128xbf16>
    %35 = vector.shape_cast %34 : vector<1x64x128xbf16> to vector<64x128xbf16>
    %cst_30 = arith.constant dense<0.000000e+00> : vector<64x128xf32>
    %36 = tpu.matmul %33, %35, %cst_30 {dimension_numbers = #tpu.dot_dimension_numbers<[1], [0], [0], [1], [0, 0, 1, 1], [], []>} : vector<64x64xbf16>, vector<64x128xbf16>, vector<64x128xf32> -> vector<64x128xf32>
    %37 = arith.addf %29, %36 : vector<64x128xf32>
    %c3 = arith.constant 3 : index
    %c0_31 = arith.constant 0 : index
    %c0_32 = arith.constant 0 : index
    %38 = vector.load %arg4[%c3, %c0_31, %c0_32] : memref<9x64x256xbf16, #tpu.memory_space<vmem>>, vector<1x64x256xbf16>
    %39 = vector.shape_cast %38 : vector<1x64x256xbf16> to vector<64x256xbf16>
    %cst_33 = arith.constant dense<0.000000e+00> : vector<64x64xf32>
    %40 = tpu.matmul %39, %12, %cst_33 {dimension_numbers = #tpu.dot_dimension_numbers<[1], [0], [0], [1], [0, 0, 1, 1], [], []>} : vector<64x256xbf16>, vector<256x64xbf16>, vector<64x64xf32> -> vector<64x64xf32>
    %41 = arith.truncf %40 : vector<64x64xf32> to vector<64x64xbf16>
    %c3_34 = arith.constant 3 : index
    %c0_35 = arith.constant 0 : index
    %c0_36 = arith.constant 0 : index
    %42 = vector.load %arg5[%c3_34, %c0_35, %c0_36] : memref<9x64x128xbf16, #tpu.memory_space<vmem>>, vector<1x64x128xbf16>
    %43 = vector.shape_cast %42 : vector<1x64x128xbf16> to vector<64x128xbf16>
    %cst_37 = arith.constant dense<0.000000e+00> : vector<64x128xf32>
    %44 = tpu.matmul %41, %43, %cst_37 {dimension_numbers = #tpu.dot_dimension_numbers<[1], [0], [0], [1], [0, 0, 1, 1], [], []>} : vector<64x64xbf16>, vector<64x128xbf16>, vector<64x128xf32> -> vector<64x128xf32>
    %45 = arith.addf %37, %44 : vector<64x128xf32>
    %c4 = arith.constant 4 : index
    %c0_38 = arith.constant 0 : index
    %c0_39 = arith.constant 0 : index
    %46 = vector.load %arg4[%c4, %c0_38, %c0_39] : memref<9x64x256xbf16, #tpu.memory_space<vmem>>, vector<1x64x256xbf16>
    %47 = vector.shape_cast %46 : vector<1x64x256xbf16> to vector<64x256xbf16>
    %cst_40 = arith.constant dense<0.000000e+00> : vector<64x64xf32>
    %48 = tpu.matmul %47, %12, %cst_40 {dimension_numbers = #tpu.dot_dimension_numbers<[1], [0], [0], [1], [0, 0, 1, 1], [], []>} : vector<64x256xbf16>, vector<256x64xbf16>, vector<64x64xf32> -> vector<64x64xf32>
    %49 = arith.truncf %48 : vector<64x64xf32> to vector<64x64xbf16>
    %c4_41 = arith.constant 4 : index
    %c0_42 = arith.constant 0 : index
    %c0_43 = arith.constant 0 : index
    %50 = vector.load %arg5[%c4_41, %c0_42, %c0_43] : memref<9x64x128xbf16, #tpu.memory_space<vmem>>, vector<1x64x128xbf16>
    %51 = vector.shape_cast %50 : vector<1x64x128xbf16> to vector<64x128xbf16>
    %cst_44 = arith.constant dense<0.000000e+00> : vector<64x128xf32>
    %52 = tpu.matmul %49, %51, %cst_44 {dimension_numbers = #tpu.dot_dimension_numbers<[1], [0], [0], [1], [0, 0, 1, 1], [], []>} : vector<64x64xbf16>, vector<64x128xbf16>, vector<64x128xf32> -> vector<64x128xf32>
    %53 = arith.addf %45, %52 : vector<64x128xf32>
    %c5 = arith.constant 5 : index
    %c0_45 = arith.constant 0 : index
    %c0_46 = arith.constant 0 : index
    %54 = vector.load %arg4[%c5, %c0_45, %c0_46] : memref<9x64x256xbf16, #tpu.memory_space<vmem>>, vector<1x64x256xbf16>
    %55 = vector.shape_cast %54 : vector<1x64x256xbf16> to vector<64x256xbf16>
    %cst_47 = arith.constant dense<0.000000e+00> : vector<64x64xf32>
    %56 = tpu.matmul %55, %12, %cst_47 {dimension_numbers = #tpu.dot_dimension_numbers<[1], [0], [0], [1], [0, 0, 1, 1], [], []>} : vector<64x256xbf16>, vector<256x64xbf16>, vector<64x64xf32> -> vector<64x64xf32>
    %57 = arith.truncf %56 : vector<64x64xf32> to vector<64x64xbf16>
    %c5_48 = arith.constant 5 : index
    %c0_49 = arith.constant 0 : index
    %c0_50 = arith.constant 0 : index
    %58 = vector.load %arg5[%c5_48, %c0_49, %c0_50] : memref<9x64x128xbf16, #tpu.memory_space<vmem>>, vector<1x64x128xbf16>
    %59 = vector.shape_cast %58 : vector<1x64x128xbf16> to vector<64x128xbf16>
    %cst_51 = arith.constant dense<0.000000e+00> : vector<64x128xf32>
    %60 = tpu.matmul %57, %59, %cst_51 {dimension_numbers = #tpu.dot_dimension_numbers<[1], [0], [0], [1], [0, 0, 1, 1], [], []>} : vector<64x64xbf16>, vector<64x128xbf16>, vector<64x128xf32> -> vector<64x128xf32>
    %61 = arith.addf %53, %60 : vector<64x128xf32>
    %c6 = arith.constant 6 : index
    %c0_52 = arith.constant 0 : index
    %c0_53 = arith.constant 0 : index
    %62 = vector.load %arg4[%c6, %c0_52, %c0_53] : memref<9x64x256xbf16, #tpu.memory_space<vmem>>, vector<1x64x256xbf16>
    %63 = vector.shape_cast %62 : vector<1x64x256xbf16> to vector<64x256xbf16>
    %cst_54 = arith.constant dense<0.000000e+00> : vector<64x64xf32>
    %64 = tpu.matmul %63, %12, %cst_54 {dimension_numbers = #tpu.dot_dimension_numbers<[1], [0], [0], [1], [0, 0, 1, 1], [], []>} : vector<64x256xbf16>, vector<256x64xbf16>, vector<64x64xf32> -> vector<64x64xf32>
    %65 = arith.truncf %64 : vector<64x64xf32> to vector<64x64xbf16>
    %c6_55 = arith.constant 6 : index
    %c0_56 = arith.constant 0 : index
    %c0_57 = arith.constant 0 : index
    %66 = vector.load %arg5[%c6_55, %c0_56, %c0_57] : memref<9x64x128xbf16, #tpu.memory_space<vmem>>, vector<1x64x128xbf16>
    %67 = vector.shape_cast %66 : vector<1x64x128xbf16> to vector<64x128xbf16>
    %cst_58 = arith.constant dense<0.000000e+00> : vector<64x128xf32>
    %68 = tpu.matmul %65, %67, %cst_58 {dimension_numbers = #tpu.dot_dimension_numbers<[1], [0], [0], [1], [0, 0, 1, 1], [], []>} : vector<64x64xbf16>, vector<64x128xbf16>, vector<64x128xf32> -> vector<64x128xf32>
    %69 = arith.addf %61, %68 : vector<64x128xf32>
    %c7 = arith.constant 7 : index
    %c0_59 = arith.constant 0 : index
    %c0_60 = arith.constant 0 : index
    %70 = vector.load %arg4[%c7, %c0_59, %c0_60] : memref<9x64x256xbf16, #tpu.memory_space<vmem>>, vector<1x64x256xbf16>
    %71 = vector.shape_cast %70 : vector<1x64x256xbf16> to vector<64x256xbf16>
    %cst_61 = arith.constant dense<0.000000e+00> : vector<64x64xf32>
    %72 = tpu.matmul %71, %12, %cst_61 {dimension_numbers = #tpu.dot_dimension_numbers<[1], [0], [0], [1], [0, 0, 1, 1], [], []>} : vector<64x256xbf16>, vector<256x64xbf16>, vector<64x64xf32> -> vector<64x64xf32>
    %73 = arith.truncf %72 : vector<64x64xf32> to vector<64x64xbf16>
    %c7_62 = arith.constant 7 : index
    %c0_63 = arith.constant 0 : index
    %c0_64 = arith.constant 0 : index
    %74 = vector.load %arg5[%c7_62, %c0_63, %c0_64] : memref<9x64x128xbf16, #tpu.memory_space<vmem>>, vector<1x64x128xbf16>
    %75 = vector.shape_cast %74 : vector<1x64x128xbf16> to vector<64x128xbf16>
    %cst_65 = arith.constant dense<0.000000e+00> : vector<64x128xf32>
    %76 = tpu.matmul %73, %75, %cst_65 {dimension_numbers = #tpu.dot_dimension_numbers<[1], [0], [0], [1], [0, 0, 1, 1], [], []>} : vector<64x64xbf16>, vector<64x128xbf16>, vector<64x128xf32> -> vector<64x128xf32>
    %77 = arith.addf %69, %76 : vector<64x128xf32>
    %c8 = arith.constant 8 : index
    %c0_66 = arith.constant 0 : index
    %c0_67 = arith.constant 0 : index
    %78 = vector.load %arg4[%c8, %c0_66, %c0_67] : memref<9x64x256xbf16, #tpu.memory_space<vmem>>, vector<1x64x256xbf16>
    %79 = vector.shape_cast %78 : vector<1x64x256xbf16> to vector<64x256xbf16>
    %cst_68 = arith.constant dense<0.000000e+00> : vector<64x64xf32>
    %80 = tpu.matmul %79, %12, %cst_68 {dimension_numbers = #tpu.dot_dimension_numbers<[1], [0], [0], [1], [0, 0, 1, 1], [], []>} : vector<64x256xbf16>, vector<256x64xbf16>, vector<64x64xf32> -> vector<64x64xf32>
    %81 = arith.truncf %80 : vector<64x64xf32> to vector<64x64xbf16>
    %c8_69 = arith.constant 8 : index
    %c0_70 = arith.constant 0 : index
    %c0_71 = arith.constant 0 : index
    %82 = vector.load %arg5[%c8_69, %c0_70, %c0_71] : memref<9x64x128xbf16, #tpu.memory_space<vmem>>, vector<1x64x128xbf16>
    %83 = vector.shape_cast %82 : vector<1x64x128xbf16> to vector<64x128xbf16>
    %cst_72 = arith.constant dense<0.000000e+00> : vector<64x128xf32>
    %84 = tpu.matmul %81, %83, %cst_72 {dimension_numbers = #tpu.dot_dimension_numbers<[1], [0], [0], [1], [0, 0, 1, 1], [], []>} : vector<64x64xbf16>, vector<64x128xbf16>, vector<64x128xf32> -> vector<64x128xf32>
    %85 = arith.addf %77, %84 : vector<64x128xf32>
    %c0_73 = arith.constant 0 : index
    %c0_74 = arith.constant 0 : index
    %86 = vector.load %arg6[%c0_73, %c0_74] : memref<1x128xf32, #tpu.memory_space<vmem>>, vector<1x128xf32>
    %87 = vector.broadcast %86 : vector<1x128xf32> to vector<64x128xf32>
    %88 = arith.addf %85, %87 : vector<64x128xf32>
    %cst_75 = arith.constant dense<0.000000e+00> : vector<128xf32>
    %89 = vector.multi_reduction <add>, %88, %cst_75 [0] : vector<64x128xf32> to vector<128xf32>
    %90 = vector.shape_cast %89 : vector<128xf32> to vector<1x128xf32>
    %cst_76 = arith.constant 6.400000e+01 : f32
    %91 = vector.broadcast %cst_76 : f32 to vector<1x128xf32>
    %92 = arith.divf %90, %91 : vector<1x128xf32>
    %93 = vector.broadcast %92 : vector<1x128xf32> to vector<64x128xf32>
    %94 = arith.subf %88, %93 : vector<64x128xf32>
    %95 = arith.mulf %94, %94 : vector<64x128xf32>
    %cst_77 = arith.constant dense<0.000000e+00> : vector<128xf32>
    %96 = vector.multi_reduction <add>, %95, %cst_77 [0] : vector<64x128xf32> to vector<128xf32>
    %97 = vector.shape_cast %96 : vector<128xf32> to vector<1x128xf32>
    %cst_78 = arith.constant 6.400000e+01 : f32
    %98 = vector.broadcast %cst_78 : f32 to vector<1x128xf32>
    %99 = arith.divf %97, %98 : vector<1x128xf32>
    %cst_79 = arith.constant 9.99999974E-6 : f32
    %100 = vector.broadcast %cst_79 : f32 to vector<1x128xf32>
    %101 = arith.addf %99, %100 : vector<1x128xf32>
    %102 = math.rsqrt %101 : vector<1x128xf32>
    %103 = vector.broadcast %102 : vector<1x128xf32> to vector<64x128xf32>
    %104 = arith.mulf %94, %103 : vector<64x128xf32>
    %cst_80 = arith.constant 0.000000e+00 : f32
    %105 = vector.broadcast %cst_80 : f32 to vector<64x128xf32>
    %106 = arith.cmpf oge, %104, %105 : vector<64x128xf32>
    %cst_81 = arith.constant 2.000000e-01 : f32
    %107 = vector.broadcast %cst_81 : f32 to vector<64x128xf32>
    %108 = arith.mulf %107, %104 : vector<64x128xf32>
    %109 = arith.select %106, %104, %108 : vector<64x128xi1>, vector<64x128xf32>
    %110 = arith.truncf %109 : vector<64x128xf32> to vector<64x128xbf16>
    %cst_82 = arith.constant 0.000000e+00 : f32
    %111 = vector.broadcast %cst_82 : f32 to vector<16x256xf32>
    %c0_83 = arith.constant 0 : index
    %c0_84 = arith.constant 0 : index
    %c0_85 = arith.constant 0 : index
    %112 = vector.load %arg7[%c0_83, %c0_84, %c0_85] : memref<9x16x64xbf16, #tpu.memory_space<vmem>>, vector<1x16x64xbf16>
    %113 = vector.shape_cast %112 : vector<1x16x64xbf16> to vector<16x64xbf16>
    %cst_86 = arith.constant dense<0.000000e+00> : vector<16x128xf32>
    %114 = tpu.matmul %113, %110, %cst_86 {dimension_numbers = #tpu.dot_dimension_numbers<[1], [0], [0], [1], [0, 0, 1, 1], [], []>} : vector<16x64xbf16>, vector<64x128xbf16>, vector<16x128xf32> -> vector<16x128xf32>
    %115 = arith.truncf %114 : vector<16x128xf32> to vector<16x128xbf16>
    %c0_87 = arith.constant 0 : index
    %c0_88 = arith.constant 0 : index
    %c0_89 = arith.constant 0 : index
    %116 = vector.load %arg8[%c0_87, %c0_88, %c0_89] : memref<9x128x256xbf16, #tpu.memory_space<vmem>>, vector<1x128x256xbf16>
    %117 = vector.shape_cast %116 : vector<1x128x256xbf16> to vector<128x256xbf16>
    %cst_90 = arith.constant dense<0.000000e+00> : vector<16x256xf32>
    %118 = tpu.matmul %115, %117, %cst_90 {dimension_numbers = #tpu.dot_dimension_numbers<[1], [0], [0], [1], [0, 0, 1, 1], [], []>} : vector<16x128xbf16>, vector<128x256xbf16>, vector<16x256xf32> -> vector<16x256xf32>
    %119 = arith.addf %111, %118 : vector<16x256xf32>
    %c1_91 = arith.constant 1 : index
    %c0_92 = arith.constant 0 : index
    %c0_93 = arith.constant 0 : index
    %120 = vector.load %arg7[%c1_91, %c0_92, %c0_93] : memref<9x16x64xbf16, #tpu.memory_space<vmem>>, vector<1x16x64xbf16>
    %121 = vector.shape_cast %120 : vector<1x16x64xbf16> to vector<16x64xbf16>
    %cst_94 = arith.constant dense<0.000000e+00> : vector<16x128xf32>
    %122 = tpu.matmul %121, %110, %cst_94 {dimension_numbers = #tpu.dot_dimension_numbers<[1], [0], [0], [1], [0, 0, 1, 1], [], []>} : vector<16x64xbf16>, vector<64x128xbf16>, vector<16x128xf32> -> vector<16x128xf32>
    %123 = arith.truncf %122 : vector<16x128xf32> to vector<16x128xbf16>
    %c1_95 = arith.constant 1 : index
    %c0_96 = arith.constant 0 : index
    %c0_97 = arith.constant 0 : index
    %124 = vector.load %arg8[%c1_95, %c0_96, %c0_97] : memref<9x128x256xbf16, #tpu.memory_space<vmem>>, vector<1x128x256xbf16>
    %125 = vector.shape_cast %124 : vector<1x128x256xbf16> to vector<128x256xbf16>
    %cst_98 = arith.constant dense<0.000000e+00> : vector<16x256xf32>
    %126 = tpu.matmul %123, %125, %cst_98 {dimension_numbers = #tpu.dot_dimension_numbers<[1], [0], [0], [1], [0, 0, 1, 1], [], []>} : vector<16x128xbf16>, vector<128x256xbf16>, vector<16x256xf32> -> vector<16x256xf32>
    %127 = arith.addf %119, %126 : vector<16x256xf32>
    %c2_99 = arith.constant 2 : index
    %c0_100 = arith.constant 0 : index
    %c0_101 = arith.constant 0 : index
    %128 = vector.load %arg7[%c2_99, %c0_100, %c0_101] : memref<9x16x64xbf16, #tpu.memory_space<vmem>>, vector<1x16x64xbf16>
    %129 = vector.shape_cast %128 : vector<1x16x64xbf16> to vector<16x64xbf16>
    %cst_102 = arith.constant dense<0.000000e+00> : vector<16x128xf32>
    %130 = tpu.matmul %129, %110, %cst_102 {dimension_numbers = #tpu.dot_dimension_numbers<[1], [0], [0], [1], [0, 0, 1, 1], [], []>} : vector<16x64xbf16>, vector<64x128xbf16>, vector<16x128xf32> -> vector<16x128xf32>
    %131 = arith.truncf %130 : vector<16x128xf32> to vector<16x128xbf16>
    %c2_103 = arith.constant 2 : index
    %c0_104 = arith.constant 0 : index
    %c0_105 = arith.constant 0 : index
    %132 = vector.load %arg8[%c2_103, %c0_104, %c0_105] : memref<9x128x256xbf16, #tpu.memory_space<vmem>>, vector<1x128x256xbf16>
    %133 = vector.shape_cast %132 : vector<1x128x256xbf16> to vector<128x256xbf16>
    %cst_106 = arith.constant dense<0.000000e+00> : vector<16x256xf32>
    %134 = tpu.matmul %131, %133, %cst_106 {dimension_numbers = #tpu.dot_dimension_numbers<[1], [0], [0], [1], [0, 0, 1, 1], [], []>} : vector<16x128xbf16>, vector<128x256xbf16>, vector<16x256xf32> -> vector<16x256xf32>
    %135 = arith.addf %127, %134 : vector<16x256xf32>
    %c3_107 = arith.constant 3 : index
    %c0_108 = arith.constant 0 : index
    %c0_109 = arith.constant 0 : index
    %136 = vector.load %arg7[%c3_107, %c0_108, %c0_109] : memref<9x16x64xbf16, #tpu.memory_space<vmem>>, vector<1x16x64xbf16>
    %137 = vector.shape_cast %136 : vector<1x16x64xbf16> to vector<16x64xbf16>
    %cst_110 = arith.constant dense<0.000000e+00> : vector<16x128xf32>
    %138 = tpu.matmul %137, %110, %cst_110 {dimension_numbers = #tpu.dot_dimension_numbers<[1], [0], [0], [1], [0, 0, 1, 1], [], []>} : vector<16x64xbf16>, vector<64x128xbf16>, vector<16x128xf32> -> vector<16x128xf32>
    %139 = arith.truncf %138 : vector<16x128xf32> to vector<16x128xbf16>
    %c3_111 = arith.constant 3 : index
    %c0_112 = arith.constant 0 : index
    %c0_113 = arith.constant 0 : index
    %140 = vector.load %arg8[%c3_111, %c0_112, %c0_113] : memref<9x128x256xbf16, #tpu.memory_space<vmem>>, vector<1x128x256xbf16>
    %141 = vector.shape_cast %140 : vector<1x128x256xbf16> to vector<128x256xbf16>
    %cst_114 = arith.constant dense<0.000000e+00> : vector<16x256xf32>
    %142 = tpu.matmul %139, %141, %cst_114 {dimension_numbers = #tpu.dot_dimension_numbers<[1], [0], [0], [1], [0, 0, 1, 1], [], []>} : vector<16x128xbf16>, vector<128x256xbf16>, vector<16x256xf32> -> vector<16x256xf32>
    %143 = arith.addf %135, %142 : vector<16x256xf32>
    %c4_115 = arith.constant 4 : index
    %c0_116 = arith.constant 0 : index
    %c0_117 = arith.constant 0 : index
    %144 = vector.load %arg7[%c4_115, %c0_116, %c0_117] : memref<9x16x64xbf16, #tpu.memory_space<vmem>>, vector<1x16x64xbf16>
    %145 = vector.shape_cast %144 : vector<1x16x64xbf16> to vector<16x64xbf16>
    %cst_118 = arith.constant dense<0.000000e+00> : vector<16x128xf32>
    %146 = tpu.matmul %145, %110, %cst_118 {dimension_numbers = #tpu.dot_dimension_numbers<[1], [0], [0], [1], [0, 0, 1, 1], [], []>} : vector<16x64xbf16>, vector<64x128xbf16>, vector<16x128xf32> -> vector<16x128xf32>
    %147 = arith.truncf %146 : vector<16x128xf32> to vector<16x128xbf16>
    %c4_119 = arith.constant 4 : index
    %c0_120 = arith.constant 0 : index
    %c0_121 = arith.constant 0 : index
    %148 = vector.load %arg8[%c4_119, %c0_120, %c0_121] : memref<9x128x256xbf16, #tpu.memory_space<vmem>>, vector<1x128x256xbf16>
    %149 = vector.shape_cast %148 : vector<1x128x256xbf16> to vector<128x256xbf16>
    %cst_122 = arith.constant dense<0.000000e+00> : vector<16x256xf32>
    %150 = tpu.matmul %147, %149, %cst_122 {dimension_numbers = #tpu.dot_dimension_numbers<[1], [0], [0], [1], [0, 0, 1, 1], [], []>} : vector<16x128xbf16>, vector<128x256xbf16>, vector<16x256xf32> -> vector<16x256xf32>
    %151 = arith.addf %143, %150 : vector<16x256xf32>
    %c5_123 = arith.constant 5 : index
    %c0_124 = arith.constant 0 : index
    %c0_125 = arith.constant 0 : index
    %152 = vector.load %arg7[%c5_123, %c0_124, %c0_125] : memref<9x16x64xbf16, #tpu.memory_space<vmem>>, vector<1x16x64xbf16>
    %153 = vector.shape_cast %152 : vector<1x16x64xbf16> to vector<16x64xbf16>
    %cst_126 = arith.constant dense<0.000000e+00> : vector<16x128xf32>
    %154 = tpu.matmul %153, %110, %cst_126 {dimension_numbers = #tpu.dot_dimension_numbers<[1], [0], [0], [1], [0, 0, 1, 1], [], []>} : vector<16x64xbf16>, vector<64x128xbf16>, vector<16x128xf32> -> vector<16x128xf32>
    %155 = arith.truncf %154 : vector<16x128xf32> to vector<16x128xbf16>
    %c5_127 = arith.constant 5 : index
    %c0_128 = arith.constant 0 : index
    %c0_129 = arith.constant 0 : index
    %156 = vector.load %arg8[%c5_127, %c0_128, %c0_129] : memref<9x128x256xbf16, #tpu.memory_space<vmem>>, vector<1x128x256xbf16>
    %157 = vector.shape_cast %156 : vector<1x128x256xbf16> to vector<128x256xbf16>
    %cst_130 = arith.constant dense<0.000000e+00> : vector<16x256xf32>
    %158 = tpu.matmul %155, %157, %cst_130 {dimension_numbers = #tpu.dot_dimension_numbers<[1], [0], [0], [1], [0, 0, 1, 1], [], []>} : vector<16x128xbf16>, vector<128x256xbf16>, vector<16x256xf32> -> vector<16x256xf32>
    %159 = arith.addf %151, %158 : vector<16x256xf32>
    %c6_131 = arith.constant 6 : index
    %c0_132 = arith.constant 0 : index
    %c0_133 = arith.constant 0 : index
    %160 = vector.load %arg7[%c6_131, %c0_132, %c0_133] : memref<9x16x64xbf16, #tpu.memory_space<vmem>>, vector<1x16x64xbf16>
    %161 = vector.shape_cast %160 : vector<1x16x64xbf16> to vector<16x64xbf16>
    %cst_134 = arith.constant dense<0.000000e+00> : vector<16x128xf32>
    %162 = tpu.matmul %161, %110, %cst_134 {dimension_numbers = #tpu.dot_dimension_numbers<[1], [0], [0], [1], [0, 0, 1, 1], [], []>} : vector<16x64xbf16>, vector<64x128xbf16>, vector<16x128xf32> -> vector<16x128xf32>
    %163 = arith.truncf %162 : vector<16x128xf32> to vector<16x128xbf16>
    %c6_135 = arith.constant 6 : index
    %c0_136 = arith.constant 0 : index
    %c0_137 = arith.constant 0 : index
    %164 = vector.load %arg8[%c6_135, %c0_136, %c0_137] : memref<9x128x256xbf16, #tpu.memory_space<vmem>>, vector<1x128x256xbf16>
    %165 = vector.shape_cast %164 : vector<1x128x256xbf16> to vector<128x256xbf16>
    %cst_138 = arith.constant dense<0.000000e+00> : vector<16x256xf32>
    %166 = tpu.matmul %163, %165, %cst_138 {dimension_numbers = #tpu.dot_dimension_numbers<[1], [0], [0], [1], [0, 0, 1, 1], [], []>} : vector<16x128xbf16>, vector<128x256xbf16>, vector<16x256xf32> -> vector<16x256xf32>
    %167 = arith.addf %159, %166 : vector<16x256xf32>
    %c7_139 = arith.constant 7 : index
    %c0_140 = arith.constant 0 : index
    %c0_141 = arith.constant 0 : index
    %168 = vector.load %arg7[%c7_139, %c0_140, %c0_141] : memref<9x16x64xbf16, #tpu.memory_space<vmem>>, vector<1x16x64xbf16>
    %169 = vector.shape_cast %168 : vector<1x16x64xbf16> to vector<16x64xbf16>
    %cst_142 = arith.constant dense<0.000000e+00> : vector<16x128xf32>
    %170 = tpu.matmul %169, %110, %cst_142 {dimension_numbers = #tpu.dot_dimension_numbers<[1], [0], [0], [1], [0, 0, 1, 1], [], []>} : vector<16x64xbf16>, vector<64x128xbf16>, vector<16x128xf32> -> vector<16x128xf32>
    %171 = arith.truncf %170 : vector<16x128xf32> to vector<16x128xbf16>
    %c7_143 = arith.constant 7 : index
    %c0_144 = arith.constant 0 : index
    %c0_145 = arith.constant 0 : index
    %172 = vector.load %arg8[%c7_143, %c0_144, %c0_145] : memref<9x128x256xbf16, #tpu.memory_space<vmem>>, vector<1x128x256xbf16>
    %173 = vector.shape_cast %172 : vector<1x128x256xbf16> to vector<128x256xbf16>
    %cst_146 = arith.constant dense<0.000000e+00> : vector<16x256xf32>
    %174 = tpu.matmul %171, %173, %cst_146 {dimension_numbers = #tpu.dot_dimension_numbers<[1], [0], [0], [1], [0, 0, 1, 1], [], []>} : vector<16x128xbf16>, vector<128x256xbf16>, vector<16x256xf32> -> vector<16x256xf32>
    %175 = arith.addf %167, %174 : vector<16x256xf32>
    %c8_147 = arith.constant 8 : index
    %c0_148 = arith.constant 0 : index
    %c0_149 = arith.constant 0 : index
    %176 = vector.load %arg7[%c8_147, %c0_148, %c0_149] : memref<9x16x64xbf16, #tpu.memory_space<vmem>>, vector<1x16x64xbf16>
    %177 = vector.shape_cast %176 : vector<1x16x64xbf16> to vector<16x64xbf16>
    %cst_150 = arith.constant dense<0.000000e+00> : vector<16x128xf32>
    %178 = tpu.matmul %177, %110, %cst_150 {dimension_numbers = #tpu.dot_dimension_numbers<[1], [0], [0], [1], [0, 0, 1, 1], [], []>} : vector<16x64xbf16>, vector<64x128xbf16>, vector<16x128xf32> -> vector<16x128xf32>
    %179 = arith.truncf %178 : vector<16x128xf32> to vector<16x128xbf16>
    %c8_151 = arith.constant 8 : index
    %c0_152 = arith.constant 0 : index
    %c0_153 = arith.constant 0 : index
    %180 = vector.load %arg8[%c8_151, %c0_152, %c0_153] : memref<9x128x256xbf16, #tpu.memory_space<vmem>>, vector<1x128x256xbf16>
    %181 = vector.shape_cast %180 : vector<1x128x256xbf16> to vector<128x256xbf16>
    %cst_154 = arith.constant dense<0.000000e+00> : vector<16x256xf32>
    %182 = tpu.matmul %179, %181, %cst_154 {dimension_numbers = #tpu.dot_dimension_numbers<[1], [0], [0], [1], [0, 0, 1, 1], [], []>} : vector<16x128xbf16>, vector<128x256xbf16>, vector<16x256xf32> -> vector<16x256xf32>
    %183 = arith.addf %175, %182 : vector<16x256xf32>
    %c0_155 = arith.constant 0 : index
    %c0_156 = arith.constant 0 : index
    %184 = vector.load %arg9[%c0_155, %c0_156] : memref<1x256xf32, #tpu.memory_space<vmem>>, vector<1x256xf32>
    %185 = vector.broadcast %184 : vector<1x256xf32> to vector<16x256xf32>
    %186 = arith.addf %183, %185 : vector<16x256xf32>
    %cst_157 = arith.constant dense<0.000000e+00> : vector<256xf32>
    %187 = vector.multi_reduction <add>, %186, %cst_157 [0] : vector<16x256xf32> to vector<256xf32>
    %188 = vector.shape_cast %187 : vector<256xf32> to vector<1x256xf32>
    %cst_158 = arith.constant 1.600000e+01 : f32
    %189 = vector.broadcast %cst_158 : f32 to vector<1x256xf32>
    %190 = arith.divf %188, %189 : vector<1x256xf32>
    %191 = vector.broadcast %190 : vector<1x256xf32> to vector<16x256xf32>
    %192 = arith.subf %186, %191 : vector<16x256xf32>
    %193 = arith.mulf %192, %192 : vector<16x256xf32>
    %cst_159 = arith.constant dense<0.000000e+00> : vector<256xf32>
    %194 = vector.multi_reduction <add>, %193, %cst_159 [0] : vector<16x256xf32> to vector<256xf32>
    %195 = vector.shape_cast %194 : vector<256xf32> to vector<1x256xf32>
    %cst_160 = arith.constant 1.600000e+01 : f32
    %196 = vector.broadcast %cst_160 : f32 to vector<1x256xf32>
    %197 = arith.divf %195, %196 : vector<1x256xf32>
    %cst_161 = arith.constant 9.99999974E-6 : f32
    %198 = vector.broadcast %cst_161 : f32 to vector<1x256xf32>
    %199 = arith.addf %197, %198 : vector<1x256xf32>
    %200 = math.rsqrt %199 : vector<1x256xf32>
    %201 = vector.broadcast %200 : vector<1x256xf32> to vector<16x256xf32>
    %202 = arith.mulf %192, %201 : vector<16x256xf32>
    %cst_162 = arith.constant 0.000000e+00 : f32
    %203 = vector.broadcast %cst_162 : f32 to vector<16x256xf32>
    %204 = arith.cmpf oge, %202, %203 : vector<16x256xf32>
    %cst_163 = arith.constant 2.000000e-01 : f32
    %205 = vector.broadcast %cst_163 : f32 to vector<16x256xf32>
    %206 = arith.mulf %205, %202 : vector<16x256xf32>
    %207 = arith.select %204, %202, %206 : vector<16x256xi1>, vector<16x256xf32>
    %208 = arith.truncf %207 : vector<16x256xf32> to vector<16x256xbf16>
    %cst_164 = arith.constant 0.000000e+00 : f32
    %209 = vector.broadcast %cst_164 : f32 to vector<16x512xf32>
    %c0_165 = arith.constant 0 : index
    %c0_166 = arith.constant 0 : index
    %c0_167 = arith.constant 0 : index
    %210 = vector.load %arg10[%c0_165, %c0_166, %c0_167] : memref<9x16x16xbf16, #tpu.memory_space<vmem>>, vector<1x16x16xbf16>
    %211 = vector.shape_cast %210 : vector<1x16x16xbf16> to vector<16x16xbf16>
    %cst_168 = arith.constant dense<0.000000e+00> : vector<16x256xf32>
    %212 = tpu.matmul %211, %208, %cst_168 {dimension_numbers = #tpu.dot_dimension_numbers<[1], [0], [0], [1], [0, 0, 1, 1], [], []>} : vector<16x16xbf16>, vector<16x256xbf16>, vector<16x256xf32> -> vector<16x256xf32>
    %213 = arith.truncf %212 : vector<16x256xf32> to vector<16x256xbf16>
    %c0_169 = arith.constant 0 : index
    %c0_170 = arith.constant 0 : index
    %c0_171 = arith.constant 0 : index
    %214 = vector.load %arg11[%c0_169, %c0_170, %c0_171] : memref<9x256x512xbf16, #tpu.memory_space<vmem>>, vector<1x256x512xbf16>
    %215 = vector.shape_cast %214 : vector<1x256x512xbf16> to vector<256x512xbf16>
    %cst_172 = arith.constant dense<0.000000e+00> : vector<16x512xf32>
    %216 = tpu.matmul %213, %215, %cst_172 {dimension_numbers = #tpu.dot_dimension_numbers<[1], [0], [0], [1], [0, 0, 1, 1], [], []>} : vector<16x256xbf16>, vector<256x512xbf16>, vector<16x512xf32> -> vector<16x512xf32>
    %217 = arith.addf %209, %216 : vector<16x512xf32>
    %c1_173 = arith.constant 1 : index
    %c0_174 = arith.constant 0 : index
    %c0_175 = arith.constant 0 : index
    %218 = vector.load %arg10[%c1_173, %c0_174, %c0_175] : memref<9x16x16xbf16, #tpu.memory_space<vmem>>, vector<1x16x16xbf16>
    %219 = vector.shape_cast %218 : vector<1x16x16xbf16> to vector<16x16xbf16>
    %cst_176 = arith.constant dense<0.000000e+00> : vector<16x256xf32>
    %220 = tpu.matmul %219, %208, %cst_176 {dimension_numbers = #tpu.dot_dimension_numbers<[1], [0], [0], [1], [0, 0, 1, 1], [], []>} : vector<16x16xbf16>, vector<16x256xbf16>, vector<16x256xf32> -> vector<16x256xf32>
    %221 = arith.truncf %220 : vector<16x256xf32> to vector<16x256xbf16>
    %c1_177 = arith.constant 1 : index
    %c0_178 = arith.constant 0 : index
    %c0_179 = arith.constant 0 : index
    %222 = vector.load %arg11[%c1_177, %c0_178, %c0_179] : memref<9x256x512xbf16, #tpu.memory_space<vmem>>, vector<1x256x512xbf16>
    %223 = vector.shape_cast %222 : vector<1x256x512xbf16> to vector<256x512xbf16>
    %cst_180 = arith.constant dense<0.000000e+00> : vector<16x512xf32>
    %224 = tpu.matmul %221, %223, %cst_180 {dimension_numbers = #tpu.dot_dimension_numbers<[1], [0], [0], [1], [0, 0, 1, 1], [], []>} : vector<16x256xbf16>, vector<256x512xbf16>, vector<16x512xf32> -> vector<16x512xf32>
    %225 = arith.addf %217, %224 : vector<16x512xf32>
    %c2_181 = arith.constant 2 : index
    %c0_182 = arith.constant 0 : index
    %c0_183 = arith.constant 0 : index
    %226 = vector.load %arg10[%c2_181, %c0_182, %c0_183] : memref<9x16x16xbf16, #tpu.memory_space<vmem>>, vector<1x16x16xbf16>
    %227 = vector.shape_cast %226 : vector<1x16x16xbf16> to vector<16x16xbf16>
    %cst_184 = arith.constant dense<0.000000e+00> : vector<16x256xf32>
    %228 = tpu.matmul %227, %208, %cst_184 {dimension_numbers = #tpu.dot_dimension_numbers<[1], [0], [0], [1], [0, 0, 1, 1], [], []>} : vector<16x16xbf16>, vector<16x256xbf16>, vector<16x256xf32> -> vector<16x256xf32>
    %229 = arith.truncf %228 : vector<16x256xf32> to vector<16x256xbf16>
    %c2_185 = arith.constant 2 : index
    %c0_186 = arith.constant 0 : index
    %c0_187 = arith.constant 0 : index
    %230 = vector.load %arg11[%c2_185, %c0_186, %c0_187] : memref<9x256x512xbf16, #tpu.memory_space<vmem>>, vector<1x256x512xbf16>
    %231 = vector.shape_cast %230 : vector<1x256x512xbf16> to vector<256x512xbf16>
    %cst_188 = arith.constant dense<0.000000e+00> : vector<16x512xf32>
    %232 = tpu.matmul %229, %231, %cst_188 {dimension_numbers = #tpu.dot_dimension_numbers<[1], [0], [0], [1], [0, 0, 1, 1], [], []>} : vector<16x256xbf16>, vector<256x512xbf16>, vector<16x512xf32> -> vector<16x512xf32>
    %233 = arith.addf %225, %232 : vector<16x512xf32>
    %c3_189 = arith.constant 3 : index
    %c0_190 = arith.constant 0 : index
    %c0_191 = arith.constant 0 : index
    %234 = vector.load %arg10[%c3_189, %c0_190, %c0_191] : memref<9x16x16xbf16, #tpu.memory_space<vmem>>, vector<1x16x16xbf16>
    %235 = vector.shape_cast %234 : vector<1x16x16xbf16> to vector<16x16xbf16>
    %cst_192 = arith.constant dense<0.000000e+00> : vector<16x256xf32>
    %236 = tpu.matmul %235, %208, %cst_192 {dimension_numbers = #tpu.dot_dimension_numbers<[1], [0], [0], [1], [0, 0, 1, 1], [], []>} : vector<16x16xbf16>, vector<16x256xbf16>, vector<16x256xf32> -> vector<16x256xf32>
    %237 = arith.truncf %236 : vector<16x256xf32> to vector<16x256xbf16>
    %c3_193 = arith.constant 3 : index
    %c0_194 = arith.constant 0 : index
    %c0_195 = arith.constant 0 : index
    %238 = vector.load %arg11[%c3_193, %c0_194, %c0_195] : memref<9x256x512xbf16, #tpu.memory_space<vmem>>, vector<1x256x512xbf16>
    %239 = vector.shape_cast %238 : vector<1x256x512xbf16> to vector<256x512xbf16>
    %cst_196 = arith.constant dense<0.000000e+00> : vector<16x512xf32>
    %240 = tpu.matmul %237, %239, %cst_196 {dimension_numbers = #tpu.dot_dimension_numbers<[1], [0], [0], [1], [0, 0, 1, 1], [], []>} : vector<16x256xbf16>, vector<256x512xbf16>, vector<16x512xf32> -> vector<16x512xf32>
    %241 = arith.addf %233, %240 : vector<16x512xf32>
    %c4_197 = arith.constant 4 : index
    %c0_198 = arith.constant 0 : index
    %c0_199 = arith.constant 0 : index
    %242 = vector.load %arg10[%c4_197, %c0_198, %c0_199] : memref<9x16x16xbf16, #tpu.memory_space<vmem>>, vector<1x16x16xbf16>
    %243 = vector.shape_cast %242 : vector<1x16x16xbf16> to vector<16x16xbf16>
    %cst_200 = arith.constant dense<0.000000e+00> : vector<16x256xf32>
    %244 = tpu.matmul %243, %208, %cst_200 {dimension_numbers = #tpu.dot_dimension_numbers<[1], [0], [0], [1], [0, 0, 1, 1], [], []>} : vector<16x16xbf16>, vector<16x256xbf16>, vector<16x256xf32> -> vector<16x256xf32>
    %245 = arith.truncf %244 : vector<16x256xf32> to vector<16x256xbf16>
    %c4_201 = arith.constant 4 : index
    %c0_202 = arith.constant 0 : index
    %c0_203 = arith.constant 0 : index
    %246 = vector.load %arg11[%c4_201, %c0_202, %c0_203] : memref<9x256x512xbf16, #tpu.memory_space<vmem>>, vector<1x256x512xbf16>
    %247 = vector.shape_cast %246 : vector<1x256x512xbf16> to vector<256x512xbf16>
    %cst_204 = arith.constant dense<0.000000e+00> : vector<16x512xf32>
    %248 = tpu.matmul %245, %247, %cst_204 {dimension_numbers = #tpu.dot_dimension_numbers<[1], [0], [0], [1], [0, 0, 1, 1], [], []>} : vector<16x256xbf16>, vector<256x512xbf16>, vector<16x512xf32> -> vector<16x512xf32>
    %249 = arith.addf %241, %248 : vector<16x512xf32>
    %c5_205 = arith.constant 5 : index
    %c0_206 = arith.constant 0 : index
    %c0_207 = arith.constant 0 : index
    %250 = vector.load %arg10[%c5_205, %c0_206, %c0_207] : memref<9x16x16xbf16, #tpu.memory_space<vmem>>, vector<1x16x16xbf16>
    %251 = vector.shape_cast %250 : vector<1x16x16xbf16> to vector<16x16xbf16>
    %cst_208 = arith.constant dense<0.000000e+00> : vector<16x256xf32>
    %252 = tpu.matmul %251, %208, %cst_208 {dimension_numbers = #tpu.dot_dimension_numbers<[1], [0], [0], [1], [0, 0, 1, 1], [], []>} : vector<16x16xbf16>, vector<16x256xbf16>, vector<16x256xf32> -> vector<16x256xf32>
    %253 = arith.truncf %252 : vector<16x256xf32> to vector<16x256xbf16>
    %c5_209 = arith.constant 5 : index
    %c0_210 = arith.constant 0 : index
    %c0_211 = arith.constant 0 : index
    %254 = vector.load %arg11[%c5_209, %c0_210, %c0_211] : memref<9x256x512xbf16, #tpu.memory_space<vmem>>, vector<1x256x512xbf16>
    %255 = vector.shape_cast %254 : vector<1x256x512xbf16> to vector<256x512xbf16>
    %cst_212 = arith.constant dense<0.000000e+00> : vector<16x512xf32>
    %256 = tpu.matmul %253, %255, %cst_212 {dimension_numbers = #tpu.dot_dimension_numbers<[1], [0], [0], [1], [0, 0, 1, 1], [], []>} : vector<16x256xbf16>, vector<256x512xbf16>, vector<16x512xf32> -> vector<16x512xf32>
    %257 = arith.addf %249, %256 : vector<16x512xf32>
    %c6_213 = arith.constant 6 : index
    %c0_214 = arith.constant 0 : index
    %c0_215 = arith.constant 0 : index
    %258 = vector.load %arg10[%c6_213, %c0_214, %c0_215] : memref<9x16x16xbf16, #tpu.memory_space<vmem>>, vector<1x16x16xbf16>
    %259 = vector.shape_cast %258 : vector<1x16x16xbf16> to vector<16x16xbf16>
    %cst_216 = arith.constant dense<0.000000e+00> : vector<16x256xf32>
    %260 = tpu.matmul %259, %208, %cst_216 {dimension_numbers = #tpu.dot_dimension_numbers<[1], [0], [0], [1], [0, 0, 1, 1], [], []>} : vector<16x16xbf16>, vector<16x256xbf16>, vector<16x256xf32> -> vector<16x256xf32>
    %261 = arith.truncf %260 : vector<16x256xf32> to vector<16x256xbf16>
    %c6_217 = arith.constant 6 : index
    %c0_218 = arith.constant 0 : index
    %c0_219 = arith.constant 0 : index
    %262 = vector.load %arg11[%c6_217, %c0_218, %c0_219] : memref<9x256x512xbf16, #tpu.memory_space<vmem>>, vector<1x256x512xbf16>
    %263 = vector.shape_cast %262 : vector<1x256x512xbf16> to vector<256x512xbf16>
    %cst_220 = arith.constant dense<0.000000e+00> : vector<16x512xf32>
    %264 = tpu.matmul %261, %263, %cst_220 {dimension_numbers = #tpu.dot_dimension_numbers<[1], [0], [0], [1], [0, 0, 1, 1], [], []>} : vector<16x256xbf16>, vector<256x512xbf16>, vector<16x512xf32> -> vector<16x512xf32>
    %265 = arith.addf %257, %264 : vector<16x512xf32>
    %c7_221 = arith.constant 7 : index
    %c0_222 = arith.constant 0 : index
    %c0_223 = arith.constant 0 : index
    %266 = vector.load %arg10[%c7_221, %c0_222, %c0_223] : memref<9x16x16xbf16, #tpu.memory_space<vmem>>, vector<1x16x16xbf16>
    %267 = vector.shape_cast %266 : vector<1x16x16xbf16> to vector<16x16xbf16>
    %cst_224 = arith.constant dense<0.000000e+00> : vector<16x256xf32>
    %268 = tpu.matmul %267, %208, %cst_224 {dimension_numbers = #tpu.dot_dimension_numbers<[1], [0], [0], [1], [0, 0, 1, 1], [], []>} : vector<16x16xbf16>, vector<16x256xbf16>, vector<16x256xf32> -> vector<16x256xf32>
    %269 = arith.truncf %268 : vector<16x256xf32> to vector<16x256xbf16>
    %c7_225 = arith.constant 7 : index
    %c0_226 = arith.constant 0 : index
    %c0_227 = arith.constant 0 : index
    %270 = vector.load %arg11[%c7_225, %c0_226, %c0_227] : memref<9x256x512xbf16, #tpu.memory_space<vmem>>, vector<1x256x512xbf16>
    %271 = vector.shape_cast %270 : vector<1x256x512xbf16> to vector<256x512xbf16>
    %cst_228 = arith.constant dense<0.000000e+00> : vector<16x512xf32>
    %272 = tpu.matmul %269, %271, %cst_228 {dimension_numbers = #tpu.dot_dimension_numbers<[1], [0], [0], [1], [0, 0, 1, 1], [], []>} : vector<16x256xbf16>, vector<256x512xbf16>, vector<16x512xf32> -> vector<16x512xf32>
    %273 = arith.addf %265, %272 : vector<16x512xf32>
    %c8_229 = arith.constant 8 : index
    %c0_230 = arith.constant 0 : index
    %c0_231 = arith.constant 0 : index
    %274 = vector.load %arg10[%c8_229, %c0_230, %c0_231] : memref<9x16x16xbf16, #tpu.memory_space<vmem>>, vector<1x16x16xbf16>
    %275 = vector.shape_cast %274 : vector<1x16x16xbf16> to vector<16x16xbf16>
    %cst_232 = arith.constant dense<0.000000e+00> : vector<16x256xf32>
    %276 = tpu.matmul %275, %208, %cst_232 {dimension_numbers = #tpu.dot_dimension_numbers<[1], [0], [0], [1], [0, 0, 1, 1], [], []>} : vector<16x16xbf16>, vector<16x256xbf16>, vector<16x256xf32> -> vector<16x256xf32>
    %277 = arith.truncf %276 : vector<16x256xf32> to vector<16x256xbf16>
    %c8_233 = arith.constant 8 : index
    %c0_234 = arith.constant 0 : index
    %c0_235 = arith.constant 0 : index
    %278 = vector.load %arg11[%c8_233, %c0_234, %c0_235] : memref<9x256x512xbf16, #tpu.memory_space<vmem>>, vector<1x256x512xbf16>
    %279 = vector.shape_cast %278 : vector<1x256x512xbf16> to vector<256x512xbf16>
    %cst_236 = arith.constant dense<0.000000e+00> : vector<16x512xf32>
    %280 = tpu.matmul %277, %279, %cst_236 {dimension_numbers = #tpu.dot_dimension_numbers<[1], [0], [0], [1], [0, 0, 1, 1], [], []>} : vector<16x256xbf16>, vector<256x512xbf16>, vector<16x512xf32> -> vector<16x512xf32>
    %281 = arith.addf %273, %280 : vector<16x512xf32>
    %c0_237 = arith.constant 0 : index
    %c0_238 = arith.constant 0 : index
    %282 = vector.load %arg12[%c0_237, %c0_238] : memref<1x512xf32, #tpu.memory_space<vmem>>, vector<1x512xf32>
    %283 = vector.broadcast %282 : vector<1x512xf32> to vector<16x512xf32>
    %284 = arith.addf %281, %283 : vector<16x512xf32>
    %cst_239 = arith.constant dense<0.000000e+00> : vector<512xf32>
    %285 = vector.multi_reduction <add>, %284, %cst_239 [0] : vector<16x512xf32> to vector<512xf32>
    %286 = vector.shape_cast %285 : vector<512xf32> to vector<1x512xf32>
    %cst_240 = arith.constant 1.600000e+01 : f32
    %287 = vector.broadcast %cst_240 : f32 to vector<1x512xf32>
    %288 = arith.divf %286, %287 : vector<1x512xf32>
    %289 = vector.broadcast %288 : vector<1x512xf32> to vector<16x512xf32>
    %290 = arith.subf %284, %289 : vector<16x512xf32>
    %291 = arith.mulf %290, %290 : vector<16x512xf32>
    %cst_241 = arith.constant dense<0.000000e+00> : vector<512xf32>
    %292 = vector.multi_reduction <add>, %291, %cst_241 [0] : vector<16x512xf32> to vector<512xf32>
    %293 = vector.shape_cast %292 : vector<512xf32> to vector<1x512xf32>
    %cst_242 = arith.constant 1.600000e+01 : f32
    %294 = vector.broadcast %cst_242 : f32 to vector<1x512xf32>
    %295 = arith.divf %293, %294 : vector<1x512xf32>
    %cst_243 = arith.constant 9.99999974E-6 : f32
    %296 = vector.broadcast %cst_243 : f32 to vector<1x512xf32>
    %297 = arith.addf %295, %296 : vector<1x512xf32>
    %298 = math.rsqrt %297 : vector<1x512xf32>
    %299 = vector.broadcast %298 : vector<1x512xf32> to vector<16x512xf32>
    %300 = arith.mulf %290, %299 : vector<16x512xf32>
    %cst_244 = arith.constant 0.000000e+00 : f32
    %301 = vector.broadcast %cst_244 : f32 to vector<16x512xf32>
    %302 = arith.cmpf oge, %300, %301 : vector<16x512xf32>
    %cst_245 = arith.constant 2.000000e-01 : f32
    %303 = vector.broadcast %cst_245 : f32 to vector<16x512xf32>
    %304 = arith.mulf %303, %300 : vector<16x512xf32>
    %305 = arith.select %302, %300, %304 : vector<16x512xi1>, vector<16x512xf32>
    %306 = arith.truncf %305 : vector<16x512xf32> to vector<16x512xbf16>
    %cst_246 = arith.constant 0.000000e+00 : f32
    %307 = vector.broadcast %cst_246 : f32 to vector<16x1xf32>
    %c0_247 = arith.constant 0 : index
    %c0_248 = arith.constant 0 : index
    %c0_249 = arith.constant 0 : index
    %308 = vector.load %arg13[%c0_247, %c0_248, %c0_249] : memref<9x16x16xbf16, #tpu.memory_space<vmem>>, vector<1x16x16xbf16>
    %309 = vector.shape_cast %308 : vector<1x16x16xbf16> to vector<16x16xbf16>
    %cst_250 = arith.constant dense<0.000000e+00> : vector<16x512xf32>
    %310 = tpu.matmul %309, %306, %cst_250 {dimension_numbers = #tpu.dot_dimension_numbers<[1], [0], [0], [1], [0, 0, 1, 1], [], []>} : vector<16x16xbf16>, vector<16x512xbf16>, vector<16x512xf32> -> vector<16x512xf32>
    %c0_251 = arith.constant 0 : index
    %c0_252 = arith.constant 0 : index
    %c0_253 = arith.constant 0 : index
    %311 = vector.load %arg14[%c0_251, %c0_252, %c0_253] : memref<9x1x512xbf16, #tpu.memory_space<vmem>>, vector<1x1x512xbf16>
    %312 = vector.shape_cast %311 : vector<1x1x512xbf16> to vector<1x512xbf16>
    %313 = arith.extf %312 : vector<1x512xbf16> to vector<1x512xf32>
    %314 = vector.broadcast %313 : vector<1x512xf32> to vector<16x512xf32>
    %315 = arith.mulf %310, %314 : vector<16x512xf32>
    %cst_254 = arith.constant dense<0.000000e+00> : vector<16xf32>
    %316 = vector.multi_reduction <add>, %315, %cst_254 [1] : vector<16x512xf32> to vector<16xf32>
    %317 = vector.shape_cast %316 : vector<16xf32> to vector<16x1xf32>
    %318 = arith.addf %307, %317 : vector<16x1xf32>
    %c1_255 = arith.constant 1 : index
    %c0_256 = arith.constant 0 : index
    %c0_257 = arith.constant 0 : index
    %319 = vector.load %arg13[%c1_255, %c0_256, %c0_257] : memref<9x16x16xbf16, #tpu.memory_space<vmem>>, vector<1x16x16xbf16>
    %320 = vector.shape_cast %319 : vector<1x16x16xbf16> to vector<16x16xbf16>
    %cst_258 = arith.constant dense<0.000000e+00> : vector<16x512xf32>
    %321 = tpu.matmul %320, %306, %cst_258 {dimension_numbers = #tpu.dot_dimension_numbers<[1], [0], [0], [1], [0, 0, 1, 1], [], []>} : vector<16x16xbf16>, vector<16x512xbf16>, vector<16x512xf32> -> vector<16x512xf32>
    %c1_259 = arith.constant 1 : index
    %c0_260 = arith.constant 0 : index
    %c0_261 = arith.constant 0 : index
    %322 = vector.load %arg14[%c1_259, %c0_260, %c0_261] : memref<9x1x512xbf16, #tpu.memory_space<vmem>>, vector<1x1x512xbf16>
    %323 = vector.shape_cast %322 : vector<1x1x512xbf16> to vector<1x512xbf16>
    %324 = arith.extf %323 : vector<1x512xbf16> to vector<1x512xf32>
    %325 = vector.broadcast %324 : vector<1x512xf32> to vector<16x512xf32>
    %326 = arith.mulf %321, %325 : vector<16x512xf32>
    %cst_262 = arith.constant dense<0.000000e+00> : vector<16xf32>
    %327 = vector.multi_reduction <add>, %326, %cst_262 [1] : vector<16x512xf32> to vector<16xf32>
    %328 = vector.shape_cast %327 : vector<16xf32> to vector<16x1xf32>
    %329 = arith.addf %318, %328 : vector<16x1xf32>
    %c2_263 = arith.constant 2 : index
    %c0_264 = arith.constant 0 : index
    %c0_265 = arith.constant 0 : index
    %330 = vector.load %arg13[%c2_263, %c0_264, %c0_265] : memref<9x16x16xbf16, #tpu.memory_space<vmem>>, vector<1x16x16xbf16>
    %331 = vector.shape_cast %330 : vector<1x16x16xbf16> to vector<16x16xbf16>
    %cst_266 = arith.constant dense<0.000000e+00> : vector<16x512xf32>
    %332 = tpu.matmul %331, %306, %cst_266 {dimension_numbers = #tpu.dot_dimension_numbers<[1], [0], [0], [1], [0, 0, 1, 1], [], []>} : vector<16x16xbf16>, vector<16x512xbf16>, vector<16x512xf32> -> vector<16x512xf32>
    %c2_267 = arith.constant 2 : index
    %c0_268 = arith.constant 0 : index
    %c0_269 = arith.constant 0 : index
    %333 = vector.load %arg14[%c2_267, %c0_268, %c0_269] : memref<9x1x512xbf16, #tpu.memory_space<vmem>>, vector<1x1x512xbf16>
    %334 = vector.shape_cast %333 : vector<1x1x512xbf16> to vector<1x512xbf16>
    %335 = arith.extf %334 : vector<1x512xbf16> to vector<1x512xf32>
    %336 = vector.broadcast %335 : vector<1x512xf32> to vector<16x512xf32>
    %337 = arith.mulf %332, %336 : vector<16x512xf32>
    %cst_270 = arith.constant dense<0.000000e+00> : vector<16xf32>
    %338 = vector.multi_reduction <add>, %337, %cst_270 [1] : vector<16x512xf32> to vector<16xf32>
    %339 = vector.shape_cast %338 : vector<16xf32> to vector<16x1xf32>
    %340 = arith.addf %329, %339 : vector<16x1xf32>
    %c3_271 = arith.constant 3 : index
    %c0_272 = arith.constant 0 : index
    %c0_273 = arith.constant 0 : index
    %341 = vector.load %arg13[%c3_271, %c0_272, %c0_273] : memref<9x16x16xbf16, #tpu.memory_space<vmem>>, vector<1x16x16xbf16>
    %342 = vector.shape_cast %341 : vector<1x16x16xbf16> to vector<16x16xbf16>
    %cst_274 = arith.constant dense<0.000000e+00> : vector<16x512xf32>
    %343 = tpu.matmul %342, %306, %cst_274 {dimension_numbers = #tpu.dot_dimension_numbers<[1], [0], [0], [1], [0, 0, 1, 1], [], []>} : vector<16x16xbf16>, vector<16x512xbf16>, vector<16x512xf32> -> vector<16x512xf32>
    %c3_275 = arith.constant 3 : index
    %c0_276 = arith.constant 0 : index
    %c0_277 = arith.constant 0 : index
    %344 = vector.load %arg14[%c3_275, %c0_276, %c0_277] : memref<9x1x512xbf16, #tpu.memory_space<vmem>>, vector<1x1x512xbf16>
    %345 = vector.shape_cast %344 : vector<1x1x512xbf16> to vector<1x512xbf16>
    %346 = arith.extf %345 : vector<1x512xbf16> to vector<1x512xf32>
    %347 = vector.broadcast %346 : vector<1x512xf32> to vector<16x512xf32>
    %348 = arith.mulf %343, %347 : vector<16x512xf32>
    %cst_278 = arith.constant dense<0.000000e+00> : vector<16xf32>
    %349 = vector.multi_reduction <add>, %348, %cst_278 [1] : vector<16x512xf32> to vector<16xf32>
    %350 = vector.shape_cast %349 : vector<16xf32> to vector<16x1xf32>
    %351 = arith.addf %340, %350 : vector<16x1xf32>
    %c4_279 = arith.constant 4 : index
    %c0_280 = arith.constant 0 : index
    %c0_281 = arith.constant 0 : index
    %352 = vector.load %arg13[%c4_279, %c0_280, %c0_281] : memref<9x16x16xbf16, #tpu.memory_space<vmem>>, vector<1x16x16xbf16>
    %353 = vector.shape_cast %352 : vector<1x16x16xbf16> to vector<16x16xbf16>
    %cst_282 = arith.constant dense<0.000000e+00> : vector<16x512xf32>
    %354 = tpu.matmul %353, %306, %cst_282 {dimension_numbers = #tpu.dot_dimension_numbers<[1], [0], [0], [1], [0, 0, 1, 1], [], []>} : vector<16x16xbf16>, vector<16x512xbf16>, vector<16x512xf32> -> vector<16x512xf32>
    %c4_283 = arith.constant 4 : index
    %c0_284 = arith.constant 0 : index
    %c0_285 = arith.constant 0 : index
    %355 = vector.load %arg14[%c4_283, %c0_284, %c0_285] : memref<9x1x512xbf16, #tpu.memory_space<vmem>>, vector<1x1x512xbf16>
    %356 = vector.shape_cast %355 : vector<1x1x512xbf16> to vector<1x512xbf16>
    %357 = arith.extf %356 : vector<1x512xbf16> to vector<1x512xf32>
    %358 = vector.broadcast %357 : vector<1x512xf32> to vector<16x512xf32>
    %359 = arith.mulf %354, %358 : vector<16x512xf32>
    %cst_286 = arith.constant dense<0.000000e+00> : vector<16xf32>
    %360 = vector.multi_reduction <add>, %359, %cst_286 [1] : vector<16x512xf32> to vector<16xf32>
    %361 = vector.shape_cast %360 : vector<16xf32> to vector<16x1xf32>
    %362 = arith.addf %351, %361 : vector<16x1xf32>
    %c5_287 = arith.constant 5 : index
    %c0_288 = arith.constant 0 : index
    %c0_289 = arith.constant 0 : index
    %363 = vector.load %arg13[%c5_287, %c0_288, %c0_289] : memref<9x16x16xbf16, #tpu.memory_space<vmem>>, vector<1x16x16xbf16>
    %364 = vector.shape_cast %363 : vector<1x16x16xbf16> to vector<16x16xbf16>
    %cst_290 = arith.constant dense<0.000000e+00> : vector<16x512xf32>
    %365 = tpu.matmul %364, %306, %cst_290 {dimension_numbers = #tpu.dot_dimension_numbers<[1], [0], [0], [1], [0, 0, 1, 1], [], []>} : vector<16x16xbf16>, vector<16x512xbf16>, vector<16x512xf32> -> vector<16x512xf32>
    %c5_291 = arith.constant 5 : index
    %c0_292 = arith.constant 0 : index
    %c0_293 = arith.constant 0 : index
    %366 = vector.load %arg14[%c5_291, %c0_292, %c0_293] : memref<9x1x512xbf16, #tpu.memory_space<vmem>>, vector<1x1x512xbf16>
    %367 = vector.shape_cast %366 : vector<1x1x512xbf16> to vector<1x512xbf16>
    %368 = arith.extf %367 : vector<1x512xbf16> to vector<1x512xf32>
    %369 = vector.broadcast %368 : vector<1x512xf32> to vector<16x512xf32>
    %370 = arith.mulf %365, %369 : vector<16x512xf32>
    %cst_294 = arith.constant dense<0.000000e+00> : vector<16xf32>
    %371 = vector.multi_reduction <add>, %370, %cst_294 [1] : vector<16x512xf32> to vector<16xf32>
    %372 = vector.shape_cast %371 : vector<16xf32> to vector<16x1xf32>
    %373 = arith.addf %362, %372 : vector<16x1xf32>
    %c6_295 = arith.constant 6 : index
    %c0_296 = arith.constant 0 : index
    %c0_297 = arith.constant 0 : index
    %374 = vector.load %arg13[%c6_295, %c0_296, %c0_297] : memref<9x16x16xbf16, #tpu.memory_space<vmem>>, vector<1x16x16xbf16>
    %375 = vector.shape_cast %374 : vector<1x16x16xbf16> to vector<16x16xbf16>
    %cst_298 = arith.constant dense<0.000000e+00> : vector<16x512xf32>
    %376 = tpu.matmul %375, %306, %cst_298 {dimension_numbers = #tpu.dot_dimension_numbers<[1], [0], [0], [1], [0, 0, 1, 1], [], []>} : vector<16x16xbf16>, vector<16x512xbf16>, vector<16x512xf32> -> vector<16x512xf32>
    %c6_299 = arith.constant 6 : index
    %c0_300 = arith.constant 0 : index
    %c0_301 = arith.constant 0 : index
    %377 = vector.load %arg14[%c6_299, %c0_300, %c0_301] : memref<9x1x512xbf16, #tpu.memory_space<vmem>>, vector<1x1x512xbf16>
    %378 = vector.shape_cast %377 : vector<1x1x512xbf16> to vector<1x512xbf16>
    %379 = arith.extf %378 : vector<1x512xbf16> to vector<1x512xf32>
    %380 = vector.broadcast %379 : vector<1x512xf32> to vector<16x512xf32>
    %381 = arith.mulf %376, %380 : vector<16x512xf32>
    %cst_302 = arith.constant dense<0.000000e+00> : vector<16xf32>
    %382 = vector.multi_reduction <add>, %381, %cst_302 [1] : vector<16x512xf32> to vector<16xf32>
    %383 = vector.shape_cast %382 : vector<16xf32> to vector<16x1xf32>
    %384 = arith.addf %373, %383 : vector<16x1xf32>
    %c7_303 = arith.constant 7 : index
    %c0_304 = arith.constant 0 : index
    %c0_305 = arith.constant 0 : index
    %385 = vector.load %arg13[%c7_303, %c0_304, %c0_305] : memref<9x16x16xbf16, #tpu.memory_space<vmem>>, vector<1x16x16xbf16>
    %386 = vector.shape_cast %385 : vector<1x16x16xbf16> to vector<16x16xbf16>
    %cst_306 = arith.constant dense<0.000000e+00> : vector<16x512xf32>
    %387 = tpu.matmul %386, %306, %cst_306 {dimension_numbers = #tpu.dot_dimension_numbers<[1], [0], [0], [1], [0, 0, 1, 1], [], []>} : vector<16x16xbf16>, vector<16x512xbf16>, vector<16x512xf32> -> vector<16x512xf32>
    %c7_307 = arith.constant 7 : index
    %c0_308 = arith.constant 0 : index
    %c0_309 = arith.constant 0 : index
    %388 = vector.load %arg14[%c7_307, %c0_308, %c0_309] : memref<9x1x512xbf16, #tpu.memory_space<vmem>>, vector<1x1x512xbf16>
    %389 = vector.shape_cast %388 : vector<1x1x512xbf16> to vector<1x512xbf16>
    %390 = arith.extf %389 : vector<1x512xbf16> to vector<1x512xf32>
    %391 = vector.broadcast %390 : vector<1x512xf32> to vector<16x512xf32>
    %392 = arith.mulf %387, %391 : vector<16x512xf32>
    %cst_310 = arith.constant dense<0.000000e+00> : vector<16xf32>
    %393 = vector.multi_reduction <add>, %392, %cst_310 [1] : vector<16x512xf32> to vector<16xf32>
    %394 = vector.shape_cast %393 : vector<16xf32> to vector<16x1xf32>
    %395 = arith.addf %384, %394 : vector<16x1xf32>
    %c8_311 = arith.constant 8 : index
    %c0_312 = arith.constant 0 : index
    %c0_313 = arith.constant 0 : index
    %396 = vector.load %arg13[%c8_311, %c0_312, %c0_313] : memref<9x16x16xbf16, #tpu.memory_space<vmem>>, vector<1x16x16xbf16>
    %397 = vector.shape_cast %396 : vector<1x16x16xbf16> to vector<16x16xbf16>
    %cst_314 = arith.constant dense<0.000000e+00> : vector<16x512xf32>
    %398 = tpu.matmul %397, %306, %cst_314 {dimension_numbers = #tpu.dot_dimension_numbers<[1], [0], [0], [1], [0, 0, 1, 1], [], []>} : vector<16x16xbf16>, vector<16x512xbf16>, vector<16x512xf32> -> vector<16x512xf32>
    %c8_315 = arith.constant 8 : index
    %c0_316 = arith.constant 0 : index
    %c0_317 = arith.constant 0 : index
    %399 = vector.load %arg14[%c8_315, %c0_316, %c0_317] : memref<9x1x512xbf16, #tpu.memory_space<vmem>>, vector<1x1x512xbf16>
    %400 = vector.shape_cast %399 : vector<1x1x512xbf16> to vector<1x512xbf16>
    %401 = arith.extf %400 : vector<1x512xbf16> to vector<1x512xf32>
    %402 = vector.broadcast %401 : vector<1x512xf32> to vector<16x512xf32>
    %403 = arith.mulf %398, %402 : vector<16x512xf32>
    %cst_318 = arith.constant dense<0.000000e+00> : vector<16xf32>
    %404 = vector.multi_reduction <add>, %403, %cst_318 [1] : vector<16x512xf32> to vector<16xf32>
    %405 = vector.shape_cast %404 : vector<16xf32> to vector<16x1xf32>
    %406 = arith.addf %395, %405 : vector<16x1xf32>
    %c0_319 = arith.constant 0 : index
    %c0_320 = arith.constant 0 : index
    %407 = vector.load %arg15[%c0_319, %c0_320] : memref<1x1xf32, #tpu.memory_space<vmem>>, vector<1x1xf32>
    %408 = vector.broadcast %407 : vector<1x1xf32> to vector<16x1xf32>
    %409 = arith.addf %406, %408 : vector<16x1xf32>
    %c0_321 = arith.constant 0 : index
    %c0_322 = arith.constant 0 : index
    %c0_323 = arith.constant 0 : index
    %410 = vector.load %arg16[%c0_321, %c0_322, %c0_323] : memref<1x16x1xf32, #tpu.memory_space<vmem>>, vector<1x16x1xf32>
    %411 = vector.shape_cast %410 : vector<1x16x1xf32> to vector<16x1xf32>
    %412 = vector.shape_cast %409 : vector<16x1xf32> to vector<1x16x1xf32>
    tpu.vector_store %arg16[%c0_321, %c0_322, %c0_323], %412 {strides = array<i32>} : memref<1x16x1xf32, #tpu.memory_space<vmem>>, vector<1x16x1xf32>,
    return
  }
  func.func @transform_0(%arg0: i32) -> (i32, i32, i32) {
    %c0_i32 = arith.constant 0 : i32
    %c0_i32_0 = arith.constant 0 : i32
    %c0_i32_1 = arith.constant 0 : i32
    return %arg0, %c0_i32, %c0_i32_0 : i32, i32, i32
  }
  func.func @transform_1(%arg0: i32) -> (i32, i32) {
    %c0_i32 = arith.constant 0 : i32
    %c0_i32_0 = arith.constant 0 : i32
    %c0_i32_1 = arith.constant 0 : i32
    return %c0_i32, %c0_i32_0 : i32, i32
  }
  func.func @transform_2(%arg0: i32) -> (i32, i32) {
    %c0_i32 = arith.constant 0 : i32
    %c0_i32_0 = arith.constant 0 : i32
    %c0_i32_1 = arith.constant 0 : i32
    return %c0_i32, %c0_i32_0 : i32, i32
  }
  func.func @transform_3(%arg0: i32) -> (i32, i32, i32) {
    %c0_i32 = arith.constant 0 : i32
    %c0_i32_0 = arith.constant 0 : i32
    %c0_i32_1 = arith.constant 0 : i32
    %c0_i32_2 = arith.constant 0 : i32
    return %c0_i32, %c0_i32_0, %c0_i32_1 : i32, i32, i32
  }
  func.func @transform_4(%arg0: i32) -> (i32, i32, i32) {
    %c0_i32 = arith.constant 0 : i32
    %c0_i32_0 = arith.constant 0 : i32
    %c0_i32_1 = arith.constant 0 : i32
    %c0_i32_2 = arith.constant 0 : i32
    return %c0_i32, %c0_i32_0, %c0_i32_1 : i32, i32, i32
  }
  func.func @transform_5(%arg0: i32) -> (i32, i32) {
    %c0_i32 = arith.constant 0 : i32
    %c0_i32_0 = arith.constant 0 : i32
    %c0_i32_1 = arith.constant 0 : i32
    return %c0_i32, %c0_i32_0 : i32, i32
  }
  func.func @transform_6(%arg0: i32) -> (i32, i32, i32) {
    %c0_i32 = arith.constant 0 : i32
    %c0_i32_0 = arith.constant 0 : i32
    %c0_i32_1 = arith.constant 0 : i32
    %c0_i32_2 = arith.constant 0 : i32
    return %c0_i32, %c0_i32_0, %c0_i32_1 : i32, i32, i32
  }
  func.func @transform_7(%arg0: i32) -> (i32, i32, i32) {
    %c0_i32 = arith.constant 0 : i32
    %c0_i32_0 = arith.constant 0 : i32
    %c0_i32_1 = arith.constant 0 : i32
    %c0_i32_2 = arith.constant 0 : i32
    return %c0_i32, %c0_i32_0, %c0_i32_1 : i32, i32, i32
  }
  func.func @transform_8(%arg0: i32) -> (i32, i32) {
    %c0_i32 = arith.constant 0 : i32
    %c0_i32_0 = arith.constant 0 : i32
    %c0_i32_1 = arith.constant 0 : i32
    return %c0_i32, %c0_i32_0 : i32, i32
  }
  func.func @transform_9(%arg0: i32) -> (i32, i32, i32) {
    %c0_i32 = arith.constant 0 : i32
    %c0_i32_0 = arith.constant 0 : i32
    %c0_i32_1 = arith.constant 0 : i32
    %c0_i32_2 = arith.constant 0 : i32
    return %c0_i32, %c0_i32_0, %c0_i32_1 : i32, i32, i32
  }
  func.func @transform_10(%arg0: i32) -> (i32, i32, i32) {
    %c0_i32 = arith.constant 0 : i32
    %c0_i32_0 = arith.constant 0 : i32
    %c0_i32_1 = arith.constant 0 : i32
    %c0_i32_2 = arith.constant 0 : i32
    return %c0_i32, %c0_i32_0, %c0_i32_1 : i32, i32, i32
  }
  func.func @transform_11(%arg0: i32) -> (i32, i32) {
    %c0_i32 = arith.constant 0 : i32
    %c0_i32_0 = arith.constant 0 : i32
    %c0_i32_1 = arith.constant 0 : i32
    return %c0_i32, %c0_i32_0 : i32, i32
  }
  func.func @transform_12(%arg0: i32) -> (i32, i32, i32) {
    %c0_i32 = arith.constant 0 : i32
    %c0_i32_0 = arith.constant 0 : i32
    %c0_i32_1 = arith.constant 0 : i32
    %c0_i32_2 = arith.constant 0 : i32
    return %c0_i32, %c0_i32_0, %c0_i32_1 : i32, i32, i32
  }
  func.func @transform_13(%arg0: i32) -> (i32, i32, i32) {
    %c0_i32 = arith.constant 0 : i32
    %c0_i32_0 = arith.constant 0 : i32
    %c0_i32_1 = arith.constant 0 : i32
    %c0_i32_2 = arith.constant 0 : i32
    return %c0_i32, %c0_i32_0, %c0_i32_1 : i32, i32, i32
  }
  func.func @transform_14(%arg0: i32) -> (i32, i32) {
    %c0_i32 = arith.constant 0 : i32
    %c0_i32_0 = arith.constant 0 : i32
    %c0_i32_1 = arith.constant 0 : i32
    return %c0_i32, %c0_i32_0 : i32, i32
  }
  func.func @transform_15(%arg0: i32) -> (i32, i32, i32) {
    %c0_i32 = arith.constant 0 : i32
    %c0_i32_0 = arith.constant 0 : i32
    %c0_i32_1 = arith.constant 0 : i32
    return %arg0, %c0_i32, %c0_i32_0 : i32, i32, i32
  }
}

</mosaic_0001>

<bundles_post_ra>
// kernel: context_encoder_forward.1
= control target key start
LH: loop header
LB: loop body
LE: loop exit
PB: predicated region body
PF: predicated region fallthrough
CT: control target
= control target key end

     0   :  { %s15726_s20 = smov 0   ;;  %s21892_s0 = inlined_call_operand.vmem [shape: bf16[2,256,128], index: 0, kind: input, shape index: {}]   ;;  %s21893_s1 = inlined_call_operand.vmem [shape: bf16[128,64], index: 1, kind: input, shape index: {}]   ;;  %s21894_s2 = inlined_call_operand.vmem [shape: f32[1,64], index: 2, kind: input, shape index: {}]   ;;  %s21895_s3 = inlined_call_operand.vmem [shape: bf16[9,64,256], index: 3, kind: input, shape index: {}]   ;;  %s21896_s4 = inlined_call_operand.vmem [shape: bf16[9,64,128], index: 4, kind: input, shape index: {}]   ;;  %s21897_s5 = inlined_call_operand.vmem [shape: f32[1,128], index: 5, kind: input, shape index: {}]   ;;  %s21898_s6 = inlined_call_operand.vmem [shape: bf16[9,16,64], index: 6, kind: input, shape index: {}]   ;;  %s21899_s7 = inlined_call_operand.vmem [shape: bf16[9,128,256], index: 7, kind: input, shape index: {}]   ;;  %s21900_s8 = inlined_call_operand.vmem [shape: f32[1,256], index: 8, kind: input, shape index: {}]   ;;  %s21901_s9 = inlined_call_operand.vmem [shape: bf16[9,16,16], index: 9, kind: input, shape index: {}, may-alias: {9,12}]   ;;  %s21902_s10 = inlined_call_operand.vmem [shape: bf16[9,256,512], index: 10, kind: input, shape index: {}]   ;;  %s21903_s11 = inlined_call_operand.vmem [shape: f32[1,512], index: 11, kind: input, shape index: {}]   ;;  %s21904_s12 = inlined_call_operand.vmem [shape: bf16[9,16,16], index: 12, kind: input, shape index: {}, may-alias: {9,12}]   ;;  %s21905_s13 = inlined_call_operand.vmem [shape: bf16[9,1,512], index: 13, kind: input, shape index: {}]   ;;  %s21906_s14 = inlined_call_operand.<no memory space> [shape: f32[1,1], index: 14, kind: input, shape index: {}]   ;;  %s21907_s15 = inlined_call_operand.vmem [shape: f32[2,16,1], index: 15, kind: output, shape index: {}]  }
   0x1   :  { %v20_v0 = vstv %s21906_s14 }
   0x2   :  { %21 = vst [vmem:[#allocation2] sm:$0x1] %v20_v0 }
   0x3 LB: > { %s10271_s21 = sadd.s32 4294967295, %s15639_s20   ;;  %p10275_p0 = scmp.ge.s32.totalorder %s15639_s20, 1  ;;  %s15639_s20 = sphi %s15726_s20, %s27_s20  }
   0x4   : > { %p439_p1 = scmp.lt.s32.totalorder %s15639_s20, 3 }
   0x6   : > { %p440_p2 = pnand %p10275_p0, %p439_p1 }
   0x8   : > { %443 = sbr.rel (%p440_p2) target bundleno = 4633 (0x1219), region = 80 }
   0xd   : > { %v14746_v1 = vld [vmem:[%s21893_s1 + $0x38] sm:$0xff]  ;;  %v14745_v2 = vld [vmem:[%s21893_s1 + $0x30] sm:$0xff]  ;;  %v14744_v3 = vld [vmem:[%s21893_s1 + $0x28] sm:$0xff]  ;;  %p487_p3 = scmp.lt.s32.totalorder %s10271_s21, 1 }
   0xe   : > { %694 = vmatpush.bf16.msra.mxu0 %v14746_v1  ;;  %v14743_v4 = vld [vmem:[%s21893_s1 + $0x20] sm:$0xff]  ;;  %v14742_v5 = vld [vmem:[%s21893_s1 + $0x18] sm:$0xff]  ;;  %v14741_v6 = vld [vmem:[%s21893_s1 + $0x10] sm:$0xff] }
   0xf   : > { %s21947_s21 = smov (!%p487_p3, %s10271_s21), 1  ;;  %v14740_v7 = vld [vmem:[%s21893_s1 + $0x8] sm:$0xff]  ;;  %v14739_v8 = vld [vmem:[%s21893_s1] sm:$0xff] }
  0x10   : > { %s14721_s22 = sshll.u32 %s21947_s21, 7  ;;  %v15778_v19 = vld [vmem:[%s21894_s2] ss:$0 sm:$0xff] }
  0x11   : > { %s15764_s26 = scalar_lea.vmem %s21892_s0, %s14721_s22  ;;  %s14722_s22 = sshll.u32 %s21947_s21, 4 }
  0x12   : > { %695 = vmatpush.bf16.msra.mxu0 %v14745_v2  ;;  %v14723_v9 = vld [vmem:[%s15764_s26] sm:$0xff]  ;;  %v14724_v10 = vld [vmem:[%s15764_s26 + $0x8] sm:$0xff]  ;;  %v14725_v11 = vld [vmem:[%s15764_s26 + $0x10] sm:$0xff]  ;;  %s496_s24 = scalar_lea.vmem %s21907_s15, %s14722_s22 }
  0x13   : > { %v14726_v12 = vld [vmem:[%s15764_s26 + $0x18] sm:$0xff]  ;;  %v14727_v13 = vld [vmem:[%s15764_s26 + $0x20] sm:$0xff]  ;;  %v14728_v14 = vld [vmem:[%s15764_s26 + $0x28] sm:$0xff] }
  0x14   : > { %v14729_v15 = vld [vmem:[%s15764_s26 + $0x30] sm:$0xff]  ;;  %v14730_v16 = vld [vmem:[%s15764_s26 + $0x38] sm:$0xff]  ;;  %v14731_v17 = vld [vmem:[%s15764_s26 + $0x40] sm:$0xff] }
  0x15   : > { %v14732_v28 = vld [vmem:[%s15764_s26 + $0x48] sm:$0xff]  ;;  %v14733_v38 = vld [vmem:[%s15764_s26 + $0x50] sm:$0xff]  ;;  %v14734_v48 = vld [vmem:[%s15764_s26 + $0x58] sm:$0xff] }
  0x16   : > { %696 = vmatpush.bf16.msra.mxu0 %v14744_v3  ;;  %v14735_v58 = vld [vmem:[%s15764_s26 + $0x60] sm:$0xff]  ;;  %v14736_v61 = vld [vmem:[%s15764_s26 + $0x68] sm:$0xff]  ;;  %v14737_v0 = vld [vmem:[%s15764_s26 + $0x70] sm:$0xff] }
  0x17   : > { %v14738_v3 = vld [vmem:[%s15764_s26 + $0x78] sm:$0xff] }
  0x1a   : > { %697 = vmatpush.bf16.msra.mxu0 %v14743_v4 }
  0x1e   : > { %698 = vmatpush.bf16.msra.mxu0 %v14742_v5 }
  0x22   : > { %699 = vmatpush.bf16.msra.mxu0 %v14741_v6 }
  0x26   : > { %700 = vmatpush.bf16.msra.mxu0 %v14740_v7 }
  0x2a   : > { %701 = vmatpush.bf16.msra.mxu0 %v14739_v8 }
  0x2d   : > { %702 = vmatmul.bf16.vlgmr.msra.gmra.mxu0 %v14723_v9 }
  0x3d   : > { %707 = vmatmul.bf16.gmra.mxu0 %v14724_v10 }
  0x4d   : > { %712 = vmatmul.bf16.gmra.mxu0 %v14725_v11 }
  0x5d   : > { %717 = vmatmul.bf16.gmra.mxu0 %v14726_v12 }
  0x6d   : > { %722 = vmatmul.bf16.gmra.mxu0 %v14727_v13 }
  0x7d   : > { %727 = vmatmul.bf16.gmra.mxu0 %v14728_v14 }
  0x8d   : > { %732 = vmatmul.bf16.gmra.mxu0 %v14729_v15 }
  0x9d   : > { %737 = vmatmul.bf16.gmra.mxu0 %v14730_v16 }
  0xaa   : > { %v703_v18 = vpop.f32.mrf.mxu0 }
  0xab   : > { %v704_v20 = vadd.f32 %v15778_v19, %v703_v18 }
  0xad   : > { %742 = vmatmul.bf16.gmra.mxu0 %v14731_v17  ;;  %v815_v22 = vmul.f32 0.2, %v704_v20  ;;  %vm783_vm0 = vcmp.ge.f32.partialorder %v704_v20, 0.0 }
  0xaf   : > { %v847_v25 = vsel %vm783_vm0, %v704_v20, %v815_v22 }
  0xb2   : > { %v705_v21 = vpop.f32.mrf.mxu0 }
  0xb3   : > { %v706_v23 = vadd.f32 %v15778_v19, %v705_v21 }
  0xb5   : > { %vm784_vm1 = vcmp.ge.f32.partialorder %v706_v23, 0.0  ;;  %v816_v24 = vmul.f32 0.2, %v706_v23 }
  0xb7   : > { %v848_v26 = vsel %vm784_vm1, %v706_v23, %v816_v24 }
  0xb8   : > { %v15782_v27 = vpack.c.bf16 %v848_v26, %v847_v25 }
  0xba   : > { %v708_v29 = vpop.f32.mrf.mxu0 }
  0xbb   : > { %v709_v30 = vadd.f32 %v15778_v19, %v708_v29 }
  0xbd   : > { %747 = vmatmul.bf16.gmra.mxu0 %v14732_v28  ;;  %v817_v32 = vmul.f32 0.2, %v709_v30  ;;  %vm785_vm2 = vcmp.ge.f32.partialorder %v709_v30, 0.0 }
  0xbf   : > { %v849_v35 = vsel %vm785_vm2, %v709_v30, %v817_v32 }
  0xc2   : > { %v710_v31 = vpop.f32.mrf.mxu0 }
  0xc3   : > { %v711_v33 = vadd.f32 %v15778_v19, %v710_v31 }
  0xc5   : > { %vm786_vm3 = vcmp.ge.f32.partialorder %v711_v33, 0.0  ;;  %v818_v34 = vmul.f32 0.2, %v711_v33 }
  0xc7   : > { %v850_v36 = vsel %vm786_vm3, %v711_v33, %v818_v34 }
  0xc8   : > { %v15787_v37 = vpack.c.bf16 %v850_v36, %v849_v35 }
  0xca   : > { %v713_v39 = vpop.f32.mrf.mxu0 }
  0xcb   : > { %v714_v40 = vadd.f32 %v15778_v19, %v713_v39 }
  0xcd   : > { %752 = vmatmul.bf16.gmra.mxu0 %v14733_v38  ;;  %v819_v42 = vmul.f32 0.2, %v714_v40  ;;  %vm787_vm4 = vcmp.ge.f32.partialorder %v714_v40, 0.0 }
  0xcf   : > { %v851_v45 = vsel %vm787_vm4, %v714_v40, %v819_v42 }
  0xd2   : > { %v715_v41 = vpop.f32.mrf.mxu0 }
  0xd3   : > { %v716_v43 = vadd.f32 %v15778_v19, %v715_v41 }
  0xd5   : > { %vm788_vm5 = vcmp.ge.f32.partialorder %v716_v43, 0.0  ;;  %v820_v44 = vmul.f32 0.2, %v716_v43 }
  0xd7   : > { %v852_v46 = vsel %vm788_vm5, %v716_v43, %v820_v44  ;;  %v10378_v44 = vld [vmem:[%s21895_s3] sm:$0xf] }
  0xd8   : > { %v15792_v47 = vpack.c.bf16 %v852_v46, %v851_v45  ;;  %v14748_v45 = vld [vmem:[%s21895_s3 + $0x4] sm:$0xf0] }
  0xd9   : > { %v10379_v46 = vor.u32 %v14748_v45, %v10378_v44 }
  0xda   : > { %v718_v49 = vpop.f32.mrf.mxu0 }
  0xdb   : > { %v719_v50 = vadd.f32 %v15778_v19, %v718_v49 }
  0xdd   : > { %757 = vmatmul.bf16.gmra.mxu0 %v14734_v48  ;;  %v821_v52 = vmul.f32 0.2, %v719_v50  ;;  %vm789_vm6 = vcmp.ge.f32.partialorder %v719_v50, 0.0 }
  0xdf   : > { %v853_v55 = vsel %vm789_vm6, %v719_v50, %v821_v52  ;;  %v10386_v50 = vld [vmem:[%s21895_s3 + $0x10] sm:$0xf] }
  0xe2   : > { %v720_v51 = vpop.f32.mrf.mxu0 }
  0xe3   : > { %v721_v53 = vadd.f32 %v15778_v19, %v720_v51  ;;  %v14750_v51 = vld [vmem:[%s21895_s3 + $0x14] sm:$0xf0] }
  0xe4   : > { %v10387_v52 = vor.u32 %v14750_v51, %v10386_v50  ;;  %v10426_v51 = vld [vmem:[%s21895_s3 + $0x50] sm:$0xf] }
  0xe5   : > { %vm790_vm7 = vcmp.ge.f32.partialorder %v721_v53, 0.0  ;;  %v822_v54 = vmul.f32 0.2, %v721_v53 }
  0xe7   : > { %v854_v56 = vsel %vm790_vm7, %v721_v53, %v822_v54  ;;  %v10642_v54 = vld [vmem:[%s21895_s3 + $0x100] sm:$0xf] }
  0xe8   : > { %v15797_v57 = vpack.c.bf16 %v854_v56, %v853_v55  ;;  %v14796_v55 = vld [vmem:[%s21895_s3 + $0x104] sm:$0xf0] }
  0xe9   : > { %v10643_v56 = vor.u32 %v14796_v55, %v10642_v54 }
  0xea   : > { %v723_v59 = vpop.f32.mrf.mxu0 }
  0xeb   : > { %v724_v24 = vadd.f32 %v15778_v19, %v723_v59  ;;  %v10394_v59 = vld [vmem:[%s21895_s3 + $0x20] sm:$0xf] }
  0xed   : > { %762 = vmatmul.bf16.gmra.mxu0 %v14735_v58  ;;  %v823_v31 = vmul.f32 0.2, %v724_v24  ;;  %vm791_vm15 = vcmp.ge.f32.partialorder %v724_v24, 0.0 }
  0xef   : > { %v855_v36 = vsel %vm791_vm15, %v724_v24, %v823_v31 }
  0xf2   : > { %v725_v60 = vpop.f32.mrf.mxu0 }
  0xf3   : > { %v726_v20 = vadd.f32 %v15778_v19, %v725_v60  ;;  %v14752_v60 = vld [vmem:[%s21895_s3 + $0x24] sm:$0xf0] }
  0xf5   : > { %v824_v29 = vmul.f32 0.2, %v726_v20  ;;  %vm792_vm14 = vcmp.ge.f32.partialorder %v726_v20, 0.0 }
  0xf7   : > { %v856_v34 = vsel %vm792_vm14, %v726_v20, %v824_v29  ;;  %v14802_v20 = vld [vmem:[%s21895_s3 + $0x134] sm:$0xf0] }
  0xf8   : > { %v15830_v38 = vpack.c.bf16 %v856_v34, %v855_v36 }
  0xfa   : > { %v728_v62 = vpop.f32.mrf.mxu0 }
  0xfb   : > { %v729_v14 = vadd.f32 %v15778_v19, %v728_v62 }
  0xfd   : > { %767 = vmatmul.bf16.gmra.mxu0 %v14736_v61  ;;  %v825_v25 = vmul.f32 0.2, %v729_v14  ;;  %vm793_vm13 = vcmp.ge.f32.partialorder %v729_v14, 0.0  ;;  %v10395_v61 = vor.u32 %v14752_v60, %v10394_v59 }
  0xff   : > { %v857_v32 = vsel %vm793_vm13, %v729_v14, %v825_v25 }
 0x102   : > { %v730_v63 = vpop.f32.mrf.mxu0 }
 0x103   : > { %v731_v11 = vadd.f32 %v15778_v19, %v730_v63  ;;  %v10650_v63 = vld [vmem:[%s21895_s3 + $0x110] sm:$0xf] }
 0x105   : > { %v826_v21 = vmul.f32 0.2, %v731_v11  ;;  %vm794_vm12 = vcmp.ge.f32.partialorder %v731_v11, 0.0 }
 0x107   : > { %v858_v30 = vsel %vm794_vm12, %v731_v11, %v826_v21  ;;  %v14760_v11 = vld [vmem:[%s21895_s3 + $0x44] sm:$0xf0] }
 0x108   : > { %v15823_v33 = vpack.c.bf16 %v858_v30, %v857_v32 }
 0x10a   : > { %v733_v1 = vpop.f32.mrf.mxu0 }
 0x10b   : > { %v734_v8 = vadd.f32 %v15778_v19, %v733_v1 }
 0x10d   : > { %772 = vmatmul.bf16.gmra.mxu0 %v14737_v0  ;;  %v827_v15 = vmul.f32 0.2, %v734_v8  ;;  %vm795_vm11 = vcmp.ge.f32.partialorder %v734_v8, 0.0  ;;  %v14798_v0 = vld [vmem:[%s21895_s3 + $0x114] sm:$0xf0] }
 0x10e   : > { %v10651_v1 = vor.u32 %v14798_v0, %v10650_v63 }
 0x10f   : > { %v859_v26 = vsel %vm795_vm11, %v734_v8, %v827_v15  ;;  %v14800_v8 = vld [vmem:[%s21895_s3 + $0x124] sm:$0xf0] }
 0x112   : > { %v735_v2 = vpop.f32.mrf.mxu0 }
 0x113   : > { %v736_v6 = vadd.f32 %v15778_v19, %v735_v2 }
 0x115   : > { %v828_v12 = vmul.f32 0.2, %v736_v6  ;;  %vm796_vm10 = vcmp.ge.f32.partialorder %v736_v6, 0.0 }
 0x117   : > { %v860_v22 = vsel %vm796_vm10, %v736_v6, %v828_v12 }
 0x118   : > { %v15818_v28 = vpack.c.bf16 %v860_v22, %v859_v26 }
 0x11a   : > { %v738_v4 = vpop.f32.mrf.mxu0 }
 0x11b   : > { %v739_v5 = vadd.f32 %v15778_v19, %v738_v4  ;;  %v14754_v4 = vld [vmem:[%s21895_s3 + $0x34] sm:$0xf0] }
 0x11d   : > { %777 = vmatmul.bf16.gmra.mxu0 %v14738_v3  ;;  %v829_v9 = vmul.f32 0.2, %v739_v5  ;;  %vm797_vm8 = vcmp.ge.f32.partialorder %v739_v5, 0.0  ;;  %v10402_v3 = vld [vmem:[%s21895_s3 + $0x30] sm:$0xf] }
 0x11f   : > { %v861_v16 = vsel %vm797_vm8, %v739_v5, %v829_v9  ;;  %v10403_v5 = vor.u32 %v14754_v4, %v10402_v3 }
 0x122   : > { %v740_v7 = vpop.f32.mrf.mxu0 }
 0x123   : > { %v741_v10 = vadd.f32 %v15778_v19, %v740_v7  ;;  %v10658_v7 = vld [vmem:[%s21895_s3 + $0x120] sm:$0xf] }
 0x124   : > { %v10659_v9 = vor.u32 %v14800_v8, %v10658_v7 }
 0x125   : > { %vm798_vm9 = vcmp.ge.f32.partialorder %v741_v10, 0.0  ;;  %v830_v13 = vmul.f32 0.2, %v741_v10 }
 0x127   : > { %v862_v17 = vsel %vm798_vm9, %v741_v10, %v830_v13  ;;  %v10418_v10 = vld [vmem:[%s21895_s3 + $0x40] sm:$0xf] }
 0x128   : > { %v15809_v18 = vpack.c.bf16 %v862_v17, %v861_v16  ;;  %v10419_v13 = vor.u32 %v14760_v11, %v10418_v10  ;;  %v10666_v17 = vld [vmem:[%s21895_s3 + $0x130] sm:$0xf] }
 0x129   : > { %v10667_v25 = vor.u32 %v14802_v20, %v10666_v17 }
 0x12a   : > { %v15812_v23 = vpop.f32.mrf.mxu0  ;;  %943 = vmatpush.bf16.msra.mxu1 %v15809_v18  ;;  %1062 = vmatpush.bf16.msra.mxu3 %v15809_v18 }
 0x12b   : > { %1699 = vmatpush.bf16.msrb.mxu0 %v15809_v18 }
 0x12e   : > { %944 = vmatpush.bf16.msra.mxu1 %v15818_v28  ;;  %1063 = vmatpush.bf16.msra.mxu3 %v15818_v28 }
 0x12f   : > { %1700 = vmatpush.bf16.msrb.mxu0 %v15818_v28 }
 0x132   : > { %v15825_v35 = vpop.f32.mrf.mxu0  ;;  %945 = vmatpush.bf16.msra.mxu1 %v15823_v33  ;;  %1064 = vmatpush.bf16.msra.mxu3 %v15823_v33 }
 0x133   : > { %1701 = vmatpush.bf16.msrb.mxu0 %v15823_v33 }
 0x136   : > { %946 = vmatpush.bf16.msra.mxu1 %v15830_v38  ;;  %1065 = vmatpush.bf16.msra.mxu3 %v15830_v38 }
 0x137   : > { %1702 = vmatpush.bf16.msrb.mxu0 %v15830_v38 }
 0x13a   : > { %v15835_v39 = vpop.f32.mrf.mxu0  ;;  %947 = vmatpush.bf16.msra.mxu1 %v15797_v57  ;;  %1066 = vmatpush.bf16.msra.mxu3 %v15797_v57 }
 0x13b   : > { %1703 = vmatpush.bf16.msrb.mxu0 %v15797_v57 }
 0x13e   : > { %948 = vmatpush.bf16.msra.mxu1 %v15792_v47  ;;  %1067 = vmatpush.bf16.msra.mxu3 %v15792_v47 }
 0x13f   : > { %1704 = vmatpush.bf16.msrb.mxu0 %v15792_v47 }
 0x142   : > { %v15843_v40 = vpop.f32.mrf.mxu0  ;;  %949 = vmatpush.bf16.msra.mxu1 %v15787_v37  ;;  %1068 = vmatpush.bf16.msra.mxu3 %v15787_v37 }
 0x143   : > { %1705 = vmatpush.bf16.msrb.mxu0 %v15787_v37 }
 0x146   : > { %950 = vmatpush.bf16.msra.mxu1 %v15782_v27  ;;  %1069 = vmatpush.bf16.msra.mxu3 %v15782_v27 }
 0x147   : > { %1706 = vmatpush.bf16.msrb.mxu0 %v15782_v27 }
 0x149   : > { %951 = vmatmul.bf16.vlgmr.msra.gmra.mxu1 %v10379_v46  ;;  %1070 = vmatmul.bf16.vlgmr.msra.gmra.mxu3 %v10419_v13  ;;  %v10434_v13 = vld [vmem:[%s21895_s3 + $0x60] sm:$0xf] }
 0x14a   : > { %v15851_v41 = vpop.f32.mrf.mxu0  ;;  %1707 = vmatmul.bf16.vlgmr.msrb.gmra.mxu0 %v10643_v56 }
 0x152   : > { %v15853_v42 = vpop.f32.mrf.mxu0 }
 0x159   : > { %956 = vmatmul.bf16.gmra.mxu1 %v10387_v52  ;;  %v14762_v52 = vld [vmem:[%s21895_s3 + $0x54] sm:$0xf0] }
 0x15a   : > { %v15855_v43 = vpop.f32.mrf.mxu0  ;;  %1712 = vmatmul.bf16.gmra.mxu0 %v10651_v1  ;;  %v10427_v54 = vor.u32 %v14762_v52, %v10426_v51 }
 0x15c   : > { %1075 = vmatmul.bf16.gmra.mxu3 %v10427_v54  ;;  %v14769_v54 = vld [vmem:[%s21896_s4 + $0x30] sm:$0xff] }
 0x162   : > { %v15863_v48 = vpop.f32.mrf.mxu0 }
 0x163   : > { %v761_v59 = vadd.f32 %v15778_v19, %v15863_v48  ;;  %v756_v48 = vadd.f32 %v15778_v19, %v15853_v42  ;;  %v751_v42 = vadd.f32 %v15778_v19, %v15843_v40  ;;  %v746_v40 = vadd.f32 %v15778_v19, %v15825_v35 }
 0x165   : > { %v838_v1 = vmul.f32 0.2, %v761_v59  ;;  %vm806_vm8 = vcmp.ge.f32.partialorder %v761_v59, 0.0  ;;  %vm804_vm10 = vcmp.ge.f32.partialorder %v756_v48, 0.0  ;;  %v834_v11 = vmul.f32 0.2, %v751_v42 }
 0x166   : > { %vm802_vm12 = vcmp.ge.f32.partialorder %v751_v42, 0.0  ;;  %v832_v20 = vmul.f32 0.2, %v746_v40  ;;  %vm800_vm14 = vcmp.ge.f32.partialorder %v746_v40, 0.0 }
 0x167   : > { %v870_v7 = vsel %vm806_vm8, %v761_v59, %v838_v1  ;;  %v14768_v59 = vld [vmem:[%s21896_s4 + $0x28] sm:$0xff]  ;;  %v14761_v1 = vld [vmem:[%s21895_s3 + $0x54] sm:$0xf] }
 0x169   : > { %961 = vmatmul.bf16.gmra.mxu1 %v10395_v61 }
 0x16a   : > { %v15865_v49 = vpop.f32.mrf.mxu0  ;;  %1717 = vmatmul.bf16.gmra.mxu0 %v10659_v9 }
 0x16b   : > { %v764_v55 = vadd.f32 %v15778_v19, %v15865_v49  ;;  %v759_v49 = vadd.f32 %v15778_v19, %v15855_v43  ;;  %v754_v43 = vadd.f32 %v15778_v19, %v15851_v41  ;;  %v749_v41 = vadd.f32 %v15778_v19, %v15835_v39  ;;  %v14764_v39 = vld [vmem:[%s21895_s3 + $0x64] sm:$0xf0] }
 0x16d   : > { %vm807_vm7 = vcmp.ge.f32.partialorder %v764_v55, 0.0  ;;  %v837_v3 = vmul.f32 0.2, %v759_v49  ;;  %vm805_vm9 = vcmp.ge.f32.partialorder %v759_v49, 0.0  ;;  %v835_v8 = vmul.f32 0.2, %v754_v43 }
 0x16e   : > { %vm803_vm11 = vcmp.ge.f32.partialorder %v754_v43, 0.0  ;;  %v833_v35 = vmul.f32 0.2, %v749_v41  ;;  %vm801_vm13 = vcmp.ge.f32.partialorder %v749_v41, 0.0 }
 0x16f   : > { %v869_v9 = vsel %vm805_vm9, %v759_v49, %v837_v3  ;;  %v14767_v49 = vld [vmem:[%s21896_s4 + $0x20] sm:$0xff] }
 0x170   : > { %v15962_v10 = vpack.c.bf16 %v870_v7, %v869_v9  ;;  %v10436_v7 = vld [vmem:[%s21895_s3 + $0x68] sm:$0xf0]  ;;  %v14753_v9 = vld [vmem:[%s21895_s3 + $0x34] sm:$0xf] }
 0x172   : > { %v765_v53 = vpop.f32.mrf.mxu0 }
 0x173   : > { %v766_v45 = vadd.f32 %v15778_v19, %v765_v53 }
 0x175   : > { %v840_v60 = vmul.f32 0.2, %v766_v45  ;;  %vm808_vm6 = vcmp.ge.f32.partialorder %v766_v45, 0.0 }
 0x179   : > { %966 = vmatmul.bf16.gmra.mxu1 %v10403_v5 }
 0x17a   : > { %v768_v58 = vpop.f32.mrf.mxu0  ;;  %1722 = vmatmul.bf16.gmra.mxu0 %v10667_v25  ;;  %v14747_v25 = vld [vmem:[%s21895_s3 + $0x4] sm:$0xf] }
 0x17b   : > { %v769_v31 = vadd.f32 %v15778_v19, %v768_v58 }
 0x17d   : > { %v841_v53 = vmul.f32 0.2, %v769_v31  ;;  %vm809_vm5 = vcmp.ge.f32.partialorder %v769_v31, 0.0 }
 0x17f   : > { %v873_v63 = vsel %vm809_vm5, %v769_v31, %v841_v53  ;;  %v10442_v53 = vld [vmem:[%s21895_s3 + $0x70] sm:$0xf] }
 0x182   : > { %v770_v62 = vpop.f32.mrf.mxu0 }
 0x183   : > { %v771_v26 = vadd.f32 %v15778_v19, %v770_v62  ;;  %v839_v62 = vmul.f32 0.2, %v764_v55 }
 0x185   : > { %v842_v46 = vmul.f32 0.2, %v771_v26  ;;  %vm810_vm4 = vcmp.ge.f32.partialorder %v771_v26, 0.0  ;;  %v871_v4 = vsel %vm807_vm7, %v764_v55, %v839_v62  ;;  %v14829_v55 = vld [vmem:[%s21896_s4 + $0xd0] sm:$0xff]  ;;  %v14827_v62 = vld [vmem:[%s21896_s4 + $0xc0] sm:$0xff] }
 0x187   : > { %v874_v61 = vsel %vm810_vm4, %v771_v26, %v842_v46  ;;  %v10380_v26 = vld [vmem:[%s21895_s3 + $0x8] sm:$0xf0]  ;;  %v14830_v46 = vld [vmem:[%s21896_s4 + $0xd8] sm:$0xff] }
 0x188   : > { %v15944_v0 = vpack.c.bf16 %v874_v61, %v873_v63  ;;  %v14828_v61 = vld [vmem:[%s21896_s4 + $0xc8] sm:$0xff]  ;;  %v14749_v63 = vld [vmem:[%s21895_s3 + $0x14] sm:$0xf] }
 0x18a   : > { %v773_v2 = vpop.f32.mrf.mxu0 }
 0x18b   : > { %v774_v21 = vadd.f32 %v15778_v19, %v773_v2  ;;  %v872_v2 = vsel %vm808_vm6, %v766_v45, %v840_v60 }
 0x18c   : > { %v15953_v5 = vpack.c.bf16 %v872_v2, %v871_v4  ;;  %v10428_v2 = vld [vmem:[%s21895_s3 + $0x58] sm:$0xf0]  ;;  %v14751_v4 = vld [vmem:[%s21895_s3 + $0x24] sm:$0xf] }
 0x18d   : > { %v843_v32 = vmul.f32 0.2, %v774_v21  ;;  %vm811_vm3 = vcmp.ge.f32.partialorder %v774_v21, 0.0  ;;  %v10431_v3 = vor.u32 %v14761_v1, %v10428_v2 }
 0x18f   : > { %v875_v56 = vsel %vm811_vm3, %v774_v21, %v843_v32  ;;  %v866_v21 = vsel %vm802_vm12, %v751_v42, %v834_v11  ;;  %v14770_v32 = vld [vmem:[%s21896_s4 + $0x38] sm:$0xff]  ;;  %v10396_v42 = vld [vmem:[%s21895_s3 + $0x28] sm:$0xf0]  ;;  %v14765_v11 = vld [vmem:[%s21895_s3 + $0x74] sm:$0xf] }
 0x192   : > { %v775_v6 = vpop.f32.mrf.mxu0 }
 0x193   : > { %v776_v15 = vadd.f32 %v15778_v19, %v775_v6  ;;  %v836_v6 = vmul.f32 0.2, %v756_v48 }
 0x195   : > { %v844_v29 = vmul.f32 0.2, %v776_v15  ;;  %vm812_vm2 = vcmp.ge.f32.partialorder %v776_v15, 0.0 }
 0x197   : > { %v876_v50 = vsel %vm812_vm2, %v776_v15, %v844_v29  ;;  %v744_v15 = vadd.f32 %v15778_v19, %v15812_v23  ;;  %v864_v23 = vsel %vm800_vm14, %v746_v40, %v832_v20  ;;  %v14759_v29 = vld [vmem:[%s21895_s3 + $0x44] sm:$0xf]  ;;  %v10404_v40 = vld [vmem:[%s21895_s3 + $0x38] sm:$0xf0] }
 0x198   : > { %v15935_v58 = vpack.c.bf16 %v876_v50, %v875_v56  ;;  %v10383_v50 = vor.u32 %v14747_v25, %v10380_v26  ;;  %v14766_v56 = vld [vmem:[%s21895_s3 + $0x74] sm:$0xf0] }
 0x199   : > { %vm799_vm15 = vcmp.ge.f32.partialorder %v744_v15, 0.0  ;;  %v10443_v60 = vor.u32 %v14766_v56, %v10442_v53 }
 0x19a   : > { %v778_v12 = vpop.f32.mrf.mxu0 }
 0x19b   : > { %v779_v14 = vadd.f32 %v15778_v19, %v778_v12  ;;  %v868_v12 = vsel %vm804_vm10, %v756_v48, %v836_v6  ;;  %v10388_v48 = vld [vmem:[%s21895_s3 + $0x18] sm:$0xf0]  ;;  %v14763_v6 = vld [vmem:[%s21895_s3 + $0x64] sm:$0xf] }
 0x19d   : > { %v845_v22 = vmul.f32 0.2, %v779_v14  ;;  %vm813_vm0 = vcmp.ge.f32.partialorder %v779_v14, 0.0 }
 0x19f   : > { %v877_v34 = vsel %vm813_vm0, %v779_v14, %v845_v22  ;;  %v10435_v14 = vor.u32 %v14764_v39, %v10434_v13  ;;  %v831_v22 = vmul.f32 0.2, %v744_v15  ;;  %v10407_v13 = vor.u32 %v14753_v9, %v10404_v40 }
 0x1a0   : > { %vm1157_vm0 = vcmask 523264  }
 0x1a1   : > { %1080 = vmatmul.bf16.gmra.mxu3 %v10435_v14  ;;  %v863_v31 = vsel %vm799_vm15, %v744_v15, %v831_v22  ;;  %v10514_v22 = vld [vmem:[%s21895_s3 + $0x90] sm:$0xf] }
 0x1a2   : > { %v780_v16 = vpop.f32.mrf.mxu0  ;;  %v16008_v45 = vpack.c.bf16 %v864_v23, %v863_v31 }
 0x1a3   : > { %v781_v24 = vadd.f32 %v15778_v19, %v780_v16  ;;  %v867_v16 = vsel %vm803_vm11, %v754_v43, %v835_v8  ;;  %v10391_v43 = vor.u32 %v14749_v63, %v10388_v48  ;;  %v10439_v8 = vor.u32 %v14763_v6, %v10436_v7  ;;  %v14786_v6 = vld [vmem:[%s21895_s3 + $0xd4] sm:$0xf0] }
 0x1a4   : > { %v15977_v17 = vpack.c.bf16 %v868_v12, %v867_v16  ;;  %v10444_v12 = vld [vmem:[%s21895_s3 + $0x78] sm:$0xf0]  ;;  %v14772_v16 = vld [vmem:[%s21895_s3 + $0x84] sm:$0xf0] }
 0x1a5   : > { %vm814_vm1 = vcmp.ge.f32.partialorder %v781_v24, 0.0  ;;  %v846_v30 = vmul.f32 0.2, %v781_v24  ;;  %v10447_v39 = vor.u32 %v14765_v11, %v10444_v12 }
 0x1a7   : > { %v878_v36 = vsel %vm814_vm1, %v781_v24, %v846_v30  ;;  %v865_v24 = vsel %vm801_vm13, %v749_v41, %v833_v35  ;;  %v10420_v30 = vld [vmem:[%s21895_s3 + $0x48] sm:$0xf0]  ;;  %v10399_v41 = vor.u32 %v14751_v4, %v10396_v42  ;;  %v10506_v35 = vld [vmem:[%s21895_s3 + $0x80] sm:$0xf]  ;;  %v10582_v42 = vld [vmem:[%s21895_s3 + $0xd0] sm:$0xf] }
 0x1a8   : > { %v15921_v44 = vpack.c.bf16 %v878_v36, %v877_v34  ;;  %v15982_v19 = vpack.c.bf16 %v866_v21, %v865_v24  ;;  %v14807_v34 = vld [vmem:[%s21895_s3 + $0x144] sm:$0xf]  ;;  %v10712_v36 = vld [vmem:[%s21895_s3 + $0x148] sm:$0xf0]  ;;  %v10423_v51 = vor.u32 %v14759_v29, %v10420_v30  ;;  %v10507_v20 = vor.u32 %v14772_v16, %v10506_v35  ;;  %v14774_v24 = vld [vmem:[%s21895_s3 + $0x94] sm:$0xf0] }
 0x1a9   : > { %v10715_v52 = vor.u32 %v14807_v34, %v10712_v36  ;;  %v10515_v25 = vor.u32 %v14774_v24, %v10514_v22  ;;  %v10522_v29 = vld [vmem:[%s21895_s3 + $0xa0] sm:$0xf]  ;;  %v14776_v30 = vld [vmem:[%s21895_s3 + $0xa4] sm:$0xf0]  ;;  %v14758_v34 = vld [vmem:[%s21896_s4 + $0x18] sm:$0xff]  ;;  %v10583_v40 = vor.u32 %v14786_v6, %v10582_v42 }
 0x1aa   : > { %972 = vmatpush.bf16.msra.mxu2 %v15921_v44  ;;  %1091 = vmatpush.bf16.msrb.mxu1 %v15921_v44  ;;  %v10523_v31 = vor.u32 %v14776_v30, %v10522_v29  ;;  %v14757_v36 = vld [vmem:[%s21896_s4 + $0x10] sm:$0xff]  ;;  %v10590_v22 = vld [vmem:[%s21895_s3 + $0xe0] sm:$0xf]  ;;  %v14788_v24 = vld [vmem:[%s21895_s3 + $0xe4] sm:$0xf0] }
 0x1ab   : > { %1921 = vmatpush.bf16.msra.mxu0 %v15921_v44  ;;  %1239 = vmatpush.bf16.msrb.mxu3 %v14758_v34  ;;  %v14817_v35 = vld [vmem:[%s21896_s4 + $0xb0] sm:$0xff]  ;;  %v14816_v29 = vld [vmem:[%s21896_s4 + $0xa8] sm:$0xff]  ;;  %v10591_v34 = vor.u32 %v14788_v24, %v10590_v22  ;;  %v14806_v22 = vld [vmem:[%s21896_s4 + $0x98] sm:$0xff] }
 0x1ae   : > { %973 = vmatpush.bf16.msra.mxu2 %v15935_v58  ;;  %1092 = vmatpush.bf16.msrb.mxu1 %v15935_v58 }
 0x1af   : > { %1922 = vmatpush.bf16.msra.mxu0 %v15935_v58  ;;  %1240 = vmatpush.bf16.msrb.mxu3 %v14757_v36 }
 0x1b1   : > { %1085 = vmatmul.bf16.gmra.mxu3 %v10443_v60  ;;  %v10574_v60 = vld [vmem:[%s21895_s3 + $0xc0] sm:$0xf] }
 0x1b2   : > { %974 = vmatpush.bf16.msra.mxu2 %v15944_v0  ;;  %1093 = vmatpush.bf16.msrb.mxu1 %v15944_v0 }
 0x1b3   : > { %1923 = vmatpush.bf16.msra.mxu0 %v15944_v0 }
 0x1b6   : > { %975 = vmatpush.bf16.msra.mxu2 %v15953_v5  ;;  %1094 = vmatpush.bf16.msrb.mxu1 %v15953_v5 }
 0x1b7   : > { %1924 = vmatpush.bf16.msra.mxu0 %v15953_v5 }
 0x1ba   : > { %976 = vmatpush.bf16.msra.mxu2 %v15962_v10  ;;  %1095 = vmatpush.bf16.msrb.mxu1 %v15962_v10 }
 0x1bb   : > { %1925 = vmatpush.bf16.msra.mxu0 %v15962_v10 }
 0x1be   : > { %977 = vmatpush.bf16.msra.mxu2 %v15977_v17  ;;  %1096 = vmatpush.bf16.msrb.mxu1 %v15977_v17 }
 0x1bf   : > { %1926 = vmatpush.bf16.msra.mxu0 %v15977_v17 }
 0x1c2   : > { %978 = vmatpush.bf16.msra.mxu2 %v15982_v19  ;;  %1097 = vmatpush.bf16.msrb.mxu1 %v15982_v19 }
 0x1c3   : > { %1927 = vmatpush.bf16.msra.mxu0 %v15982_v19 }
 0x1c6   : > { %979 = vmatpush.bf16.msra.mxu2 %v16008_v45  ;;  %1098 = vmatpush.bf16.msrb.mxu1 %v16008_v45  ;;  %v16105_v14 = vpop.f32.mrf.mxu1 }
 0x1c7   : > { %1928 = vmatpush.bf16.msra.mxu0 %v16008_v45 }
 0x1c9   : > { %980 = vmatmul.bf16.vlgmr.msra.gmra.mxu2 %v10383_v50  ;;  %1099 = vmatmul.bf16.vlgmr.msrb.gmra.mxu1 %v10423_v51  ;;  %v10530_v51 = vld [vmem:[%s21895_s3 + $0xb0] sm:$0xf] }
 0x1ca   : > { %1174 = vmatpush.bf16.msrb.mxu2 %v14770_v32  ;;  %1313 = vmatpush.bf16.msra.mxu1 %v15809_v18 }
 0x1cb   : > { %2196 = vmatpush.bf16.msrb.mxu0 %v14830_v46  ;;  %v14756_v46 = vld [vmem:[%s21896_s4 + $0x8] sm:$0xff] }
 0x1cc   : > { %1929 = vmatmul.bf16.vlgmr.msra.gmra.mxu0 %v10715_v52  ;;  %v14778_v52 = vld [vmem:[%s21895_s3 + $0xb4] sm:$0xf0]  ;;  %1241 = vmatpush.bf16.msrb.mxu3 %v14756_v46  ;;  %v1071_v53 = vpop.f32.mrf.mxu3 }
 0x1ce   : > { %1175 = vmatpush.bf16.msrb.mxu2 %v14769_v54  ;;  %1314 = vmatpush.bf16.msra.mxu1 %v15818_v28  ;;  %v954_v15 = vpop.f32.mrf.mxu1  ;;  %v10531_v54 = vor.u32 %v14778_v52, %v10530_v51  ;;  %v14815_v51 = vld [vmem:[%s21896_s4 + $0xa0] sm:$0xff] }
 0x1cf   : > { %2197 = vmatpush.bf16.msrb.mxu0 %v14829_v55  ;;  %v14755_v55 = vld [vmem:[%s21896_s4] sm:$0xff] }
 0x1d0   : > { %1242 = vmatpush.bf16.msrb.mxu3 %v14755_v55 }
 0x1d2   : > { %1176 = vmatpush.bf16.msrb.mxu2 %v14768_v59  ;;  %1315 = vmatpush.bf16.msra.mxu1 %v15823_v33 }
 0x1d3   : > { %2198 = vmatpush.bf16.msrb.mxu0 %v14828_v61  ;;  %v14784_v61 = vld [vmem:[%s21895_s3 + $0xc4] sm:$0xf0] }
 0x1d4   : > { %v1073_v59 = vpop.f32.mrf.mxu3 }
 0x1d6   : > { %1177 = vmatpush.bf16.msrb.mxu2 %v14767_v49  ;;  %1316 = vmatpush.bf16.msra.mxu1 %v15830_v38  ;;  %v16117_v21 = vpop.f32.mrf.mxu1 }
 0x1d7   : > { %2199 = vmatpush.bf16.msrb.mxu0 %v14827_v62  ;;  %v10575_v62 = vor.u32 %v14784_v61, %v10574_v60  ;;  %v14790_v60 = vld [vmem:[%s21895_s3 + $0xf4] sm:$0xf0] }
 0x1d9   : > { %985 = vmatmul.bf16.gmra.mxu2 %v10391_v43  ;;  %1104 = vmatmul.bf16.gmra.mxu1 %v10431_v3 }
 0x1da   : > { %1342 = vmatpush.bf16.msra.mxu2 %v15921_v44  ;;  %1317 = vmatpush.bf16.msra.mxu1 %v15797_v57 }
 0x1db   : > { %2471 = vmatpush.bf16.msra.mxu0 %v15809_v18 }
 0x1de   : > { %1343 = vmatpush.bf16.msra.mxu2 %v15935_v58  ;;  %1318 = vmatpush.bf16.msra.mxu1 %v15792_v47  ;;  %v16127_v23 = vpop.f32.mrf.mxu1 }
 0x1df   : > { %2472 = vmatpush.bf16.msra.mxu0 %v15818_v28  ;;  %v1076_v48 = vpop.f32.mrf.mxu3 }
 0x1e2   : > { %1344 = vmatpush.bf16.msra.mxu2 %v15944_v0  ;;  %1319 = vmatpush.bf16.msra.mxu1 %v15787_v37 }
 0x1e3   : > { %2473 = vmatpush.bf16.msra.mxu0 %v15823_v33 }
 0x1e6   : > { %1345 = vmatpush.bf16.msra.mxu2 %v15953_v5  ;;  %1320 = vmatpush.bf16.msra.mxu1 %v15782_v27  ;;  %v16132_v26 = vpop.f32.mrf.mxu1 }
 0x1e7   : > { %2474 = vmatpush.bf16.msra.mxu0 %v15830_v38  ;;  %v1078_v11 = vpop.f32.mrf.mxu3 }
 0x1e9   : > { %990 = vmatmul.bf16.gmra.mxu2 %v10399_v41  ;;  %1109 = vmatmul.bf16.gmra.mxu1 %v10439_v8 }
 0x1ea   : > { %1346 = vmatpush.bf16.msra.mxu2 %v15962_v10  ;;  %1506 = vmatpush.bf16.msrb.mxu1 %v15809_v18 }
 0x1eb   : > { %2475 = vmatpush.bf16.msra.mxu0 %v15797_v57 }
 0x1ee   : > { %1347 = vmatpush.bf16.msra.mxu2 %v15977_v17  ;;  %1507 = vmatpush.bf16.msrb.mxu1 %v15818_v28  ;;  %v16142_v32 = vpop.f32.mrf.mxu1 }
 0x1ef   : > { %2476 = vmatpush.bf16.msra.mxu0 %v15792_v47 }
 0x1f2   : > { %1348 = vmatpush.bf16.msra.mxu2 %v15982_v19  ;;  %1508 = vmatpush.bf16.msrb.mxu1 %v15823_v33 }
 0x1f3   : > { %2477 = vmatpush.bf16.msra.mxu0 %v15787_v37 }
 0x1f6   : > { %1349 = vmatpush.bf16.msra.mxu2 %v16008_v45  ;;  %1509 = vmatpush.bf16.msrb.mxu1 %v15830_v38  ;;  %v16153_v50 = vpop.f32.mrf.mxu1 }
 0x1f7   : > { %2478 = vmatpush.bf16.msra.mxu0 %v15782_v27 }
 0x1f9   : > { %995 = vmatmul.bf16.gmra.mxu2 %v10407_v13  ;;  %1114 = vmatmul.bf16.gmra.mxu1 %v10447_v39  ;;  %v14818_v13 = vld [vmem:[%s21896_s4 + $0xb8] sm:$0xff] }
 0x1fa   : > { %1510 = vmatpush.bf16.msrb.mxu1 %v15797_v57 }
 0x1fe   : > { %1511 = vmatpush.bf16.msrb.mxu1 %v15792_v47  ;;  %v16164_v56 = vpop.f32.mrf.mxu1 }
 0x202   : > { %1512 = vmatpush.bf16.msrb.mxu1 %v15787_v37 }
 0x206   : > { %1513 = vmatpush.bf16.msrb.mxu1 %v15782_v27 }
 0x209   : > { %1321 = vmatmul.bf16.vlgmr.msra.gmra.mxu1 %v10507_v20 }
 0x20a   : > { %1728 = vmatpush.bf16.msra.mxu1 %v15921_v44 }
 0x20e   : > { %1729 = vmatpush.bf16.msra.mxu1 %v15935_v58 }
 0x212   : > { %1730 = vmatpush.bf16.msra.mxu1 %v15944_v0 }
 0x216   : > { %1731 = vmatpush.bf16.msra.mxu1 %v15953_v5 }
 0x219   : > { %1326 = vmatmul.bf16.gmra.mxu1 %v10515_v25 }
 0x21a   : > { %1732 = vmatpush.bf16.msra.mxu1 %v15962_v10 }
 0x21e   : > { %1733 = vmatpush.bf16.msra.mxu1 %v15977_v17 }
 0x222   : > { %1734 = vmatpush.bf16.msra.mxu1 %v15982_v19 }
 0x224   : > { %v1081_v16 = vpop.f32.mrf.mxu3 }
 0x226   : > { %1735 = vmatpush.bf16.msra.mxu1 %v16008_v45 }
 0x229   : > { %1331 = vmatmul.bf16.gmra.mxu1 %v10523_v31 }
 0x22c   : > { %v1083_v52 = vpop.f32.mrf.mxu3 }
 0x239   : > { %1336 = vmatmul.bf16.gmra.mxu1 %v10531_v54 }
 0x246   : > { %v1100_v49 = vpop.f32.mrf.mxu1 }
 0x247   : > { %v1101_v2 = vadd.f32 %v1100_v49, %v1071_v53 }
 0x249   : > { %1514 = vmatmul.bf16.vlgmr.msrb.gmra.mxu1 %v10575_v62  ;;  %v1086_v62 = vpop.f32.mrf.mxu3 }
 0x24a   : > { %2003 = vmatpush.bf16.msrb.mxu1 %v14818_v13  ;;  %v14771_v13 = vld [vmem:[%s21895_s3 + $0x84] sm:$0xf] }
 0x24c   : > { %v981_v63 = vpop.f32.mrf.mxu2 }
 0x24d   : > { %v982_v7 = vadd.f32 %v981_v63, %v16105_v14 }
 0x24e   : > { %v1102_v1 = vpop.f32.mrf.mxu1  ;;  %2004 = vmatpush.bf16.msrb.mxu1 %v14817_v35  ;;  %v10516_v35 = vld [vmem:[%s21895_s3 + $0x98] sm:$0xf0] }
 0x24f   : > { %v1103_v43 = vadd.f32 %v1102_v1, %v1073_v59  ;;  %v10598_v59 = vld [vmem:[%s21895_s3 + $0xf0] sm:$0xf] }
 0x251   : > { %v1120_v3 = vpack.c.bf16 %v1103_v43, %v1101_v2 }
 0x252   : > { %2005 = vmatpush.bf16.msrb.mxu1 %v14816_v29  ;;  %v14775_v29 = vld [vmem:[%s21895_s3 + $0xa4] sm:$0xf] }
 0x253   : > { %10472 = vmatmul.msk.bf16.vlgmr.msrb.gmra.mxu2 %vm1157_vm0, %v1120_v3  ;;  %v1088_v3 = vpop.f32.mrf.mxu3 }
 0x254   : > { %1535 = vmatpush.bf16.msrb.mxu2 %v15921_v44  ;;  %v983_v4 = vpop.f32.mrf.mxu2 }
 0x255   : > { %v984_v41 = vadd.f32 %v983_v4, %v954_v15 }
 0x256   : > { %v1105_v9 = vpop.f32.mrf.mxu1  ;;  %2006 = vmatpush.bf16.msrb.mxu1 %v14815_v51 }
 0x257   : > { %v1001_v8 = vpack.c.bf16 %v984_v41, %v982_v7  ;;  %v1106_v14 = vadd.f32 %v1105_v9, %v1076_v48  ;;  %v10599_v48 = vor.u32 %v14790_v60, %v10598_v59  ;;  %v14795_v41 = vld [vmem:[%s21895_s3 + $0x104] sm:$0xf]  ;;  %v10652_v59 = vld [vmem:[%s21895_s3 + $0x118] sm:$0xf0] }
 0x258   : > { %1536 = vmatpush.bf16.msrb.mxu2 %v15935_v58 }
 0x259   : > { %10492 = vmatmul.msk.bf16.vlgmr.msrb.gmra.mxu3 %vm1157_vm0, %v1001_v8  ;;  %1519 = vmatmul.bf16.gmra.mxu1 %v10583_v40 }
 0x25c   : > { %1537 = vmatpush.bf16.msrb.mxu2 %v15944_v0  ;;  %v986_v12 = vpop.f32.mrf.mxu2 }
 0x25d   : > { %v987_v30 = vadd.f32 %v986_v12, %v16117_v21 }
 0x25e   : > { %v1107_v39 = vpop.f32.mrf.mxu1 }
 0x25f   : > { %v1108_v15 = vadd.f32 %v1107_v39, %v1078_v11  ;;  %v10508_v39 = vld [vmem:[%s21895_s3 + $0x88] sm:$0xf0] }
 0x260   : > { %1538 = vmatpush.bf16.msrb.mxu2 %v15953_v5 }
 0x261   : > { %v1121_v20 = vpack.c.bf16 %v1108_v15, %v1106_v14  ;;  %v14773_v15 = vld [vmem:[%s21895_s3 + $0x94] sm:$0xf] }
 0x263   : > { %10473 = vmatmul.msk.bf16.gmra.mxu2 %vm1157_vm0, %v1121_v20  ;;  %v10519_v20 = vor.u32 %v14773_v15, %v10516_v35 }
 0x264   : > { %1539 = vmatpush.bf16.msrb.mxu2 %v15962_v10  ;;  %v988_v25 = vpop.f32.mrf.mxu2 }
 0x265   : > { %v989_v31 = vadd.f32 %v988_v25, %v16127_v23  ;;  %v14805_v25 = vld [vmem:[%s21896_s4 + $0x90] sm:$0xff] }
 0x266   : > { %v1110_v46 = vpop.f32.mrf.mxu1 }
 0x267   : > { %v1002_v36 = vpack.c.bf16 %v989_v31, %v987_v30  ;;  %v1111_v23 = vadd.f32 %v1110_v46, %v1081_v16  ;;  %v10524_v30 = vld [vmem:[%s21895_s3 + $0xa8] sm:$0xf0]  ;;  %v14803_v46 = vld [vmem:[%s21896_s4 + $0x80] sm:$0xff] }
 0x268   : > { %1540 = vmatpush.bf16.msrb.mxu2 %v15977_v17  ;;  %v14804_v31 = vld [vmem:[%s21896_s4 + $0x88] sm:$0xff] }
 0x269   : > { %10493 = vmatmul.msk.bf16.gmra.mxu3 %vm1157_vm0, %v1002_v36  ;;  %1524 = vmatmul.bf16.gmra.mxu1 %v10591_v34  ;;  %v10527_v36 = vor.u32 %v14775_v29, %v10524_v30 }
 0x26c   : > { %1541 = vmatpush.bf16.msrb.mxu2 %v15982_v19  ;;  %v991_v21 = vpop.f32.mrf.mxu2 }
 0x26d   : > { %v992_v49 = vadd.f32 %v991_v21, %v16132_v26  ;;  %v10644_v26 = vld [vmem:[%s21895_s3 + $0x108] sm:$0xf0]  ;;  %v10532_v21 = vld [vmem:[%s21895_s3 + $0xb8] sm:$0xf0] }
 0x26e   : > { %v1112_v54 = vpop.f32.mrf.mxu1  ;;  %v10647_v40 = vor.u32 %v14795_v41, %v10644_v26  ;;  %v10584_v41 = vld [vmem:[%s21895_s3 + $0xd8] sm:$0xf0] }
 0x26f   : > { %v1113_v55 = vadd.f32 %v1112_v54, %v1083_v52  ;;  %v14777_v52 = vld [vmem:[%s21895_s3 + $0xb4] sm:$0xf] }
 0x270   : > { %1542 = vmatpush.bf16.msrb.mxu2 %v16008_v45 }
 0x271   : > { %v1122_v53 = vpack.c.bf16 %v1113_v55, %v1111_v23  ;;  %v10535_v23 = vor.u32 %v14777_v52, %v10532_v21  ;;  %v14779_v52 = vld [vmem:[%s21896_s4 + $0x40] sm:$0xff]  ;;  %v14794_v21 = vld [vmem:[%s21896_s4 + $0x78] sm:$0xff] }
 0x273   : > { %10474 = vmatmul.msk.bf16.gmra.mxu2 %vm1157_vm0, %v1122_v53  ;;  %v14797_v53 = vld [vmem:[%s21895_s3 + $0x114] sm:$0xf] }
 0x274   : > { %v993_v61 = vpop.f32.mrf.mxu2  ;;  %v10655_v60 = vor.u32 %v14797_v53, %v10652_v59  ;;  %v14793_v59 = vld [vmem:[%s21896_s4 + $0x70] sm:$0xff] }
 0x275   : > { %v994_v63 = vadd.f32 %v993_v61, %v16142_v32  ;;  %v14783_v61 = vld [vmem:[%s21895_s3 + $0xc4] sm:$0xf] }
 0x276   : > { %v1115_v2 = vpop.f32.mrf.mxu1 }
 0x277   : > { %v1003_v1 = vpack.c.bf16 %v994_v63, %v992_v49  ;;  %v1116_v42 = vadd.f32 %v1115_v2, %v1086_v62  ;;  %v10576_v49 = vld [vmem:[%s21895_s3 + $0xc8] sm:$0xf0]  ;;  %v14799_v2 = vld [vmem:[%s21895_s3 + $0x124] sm:$0xf] }
 0x278   : > { %v10579_v63 = vor.u32 %v14783_v61, %v10576_v49  ;;  %v14789_v49 = vld [vmem:[%s21895_s3 + $0xf4] sm:$0xf] }
 0x279   : > { %10494 = vmatmul.msk.bf16.gmra.mxu3 %vm1157_vm0, %v1003_v1  ;;  %1529 = vmatmul.bf16.gmra.mxu1 %v10599_v48 }
 0x27c   : > { %v996_v43 = vpop.f32.mrf.mxu2 }
 0x27d   : > { %v997_v8 = vadd.f32 %v996_v43, %v16153_v50  ;;  %v10660_v43 = vld [vmem:[%s21895_s3 + $0x128] sm:$0xf0] }
 0x27e   : > { %v1117_v4 = vpop.f32.mrf.mxu1 }
 0x27f   : > { %v1118_v6 = vadd.f32 %v1117_v4, %v1088_v3  ;;  %v10663_v3 = vor.u32 %v14799_v2, %v10660_v43 }
 0x281   : > { %v1123_v7 = vpack.c.bf16 %v1118_v6, %v1116_v42 }
 0x283   : > { %10475 = vmatmul.msk.bf16.gmra.mxu2 %vm1157_vm0, %v1123_v7  ;;  %v14785_v7 = vld [vmem:[%s21895_s3 + $0xd4] sm:$0xf] }
 0x284   : > { %v998_v32 = vpop.f32.mrf.mxu2 }
 0x285   : > { %v999_v9 = vadd.f32 %v998_v32, %v16164_v56  ;;  %v10511_v56 = vor.u32 %v14771_v13, %v10508_v39  ;;  %v10587_v32 = vor.u32 %v14785_v7, %v10584_v41  ;;  %v14801_v13 = vld [vmem:[%s21895_s3 + $0x134] sm:$0xf]  ;;  %v10668_v39 = vld [vmem:[%s21895_s3 + $0x138] sm:$0xf0]  ;;  %v1708_v7 = vpop.f32.mrf.mxu0 }
 0x286   : > { %v16230_v12 = vpop.f32.mrf.mxu1 }
 0x287   : > { %v1004_v11 = vpack.c.bf16 %v999_v9, %v997_v8 }
 0x289   : > { %10495 = vmatmul.msk.bf16.gmra.mxu3 %vm1157_vm0, %v1004_v11  ;;  %1736 = vmatmul.bf16.vlgmr.msra.gmra.mxu1 %v10647_v40  ;;  %v14782_v11 = vld [vmem:[%s21896_s4 + $0x58] sm:$0xff] }
 0x28a   : > { %2278 = vmatpush.bf16.msra.mxu1 %v15809_v18  ;;  %1424 = vmatpush.bf16.msra.mxu3 %v14782_v11 }
 0x28e   : > { %2279 = vmatpush.bf16.msra.mxu1 %v15818_v28  ;;  %v16241_v50 = vpop.f32.mrf.mxu1 }
 0x292   : > { %2280 = vmatpush.bf16.msra.mxu1 %v15823_v33 }
 0x293   : > { %1350 = vmatmul.bf16.vlgmr.msra.gmra.mxu2 %v10511_v56  ;;  %v10671_v56 = vor.u32 %v14801_v13, %v10668_v39  ;;  %v1710_v39 = vpop.f32.mrf.mxu0 }
 0x294   : > { %1810 = vmatpush.bf16.msra.mxu2 %v14806_v22  ;;  %v10592_v22 = vld [vmem:[%s21895_s3 + $0xe8] sm:$0xf0] }
 0x296   : > { %2281 = vmatpush.bf16.msra.mxu1 %v15830_v38  ;;  %v16245_v14 = vpop.f32.mrf.mxu1 }
 0x298   : > { %1811 = vmatpush.bf16.msra.mxu2 %v14805_v25  ;;  %v14781_v25 = vld [vmem:[%s21896_s4 + $0x50] sm:$0xff] }
 0x299   : > { %1741 = vmatmul.bf16.gmra.mxu1 %v10655_v60  ;;  %1425 = vmatpush.bf16.msra.mxu3 %v14781_v25 }
 0x29a   : > { %2282 = vmatpush.bf16.msra.mxu1 %v15797_v57 }
 0x29c   : > { %1812 = vmatpush.bf16.msra.mxu2 %v14804_v31 }
 0x29e   : > { %2283 = vmatpush.bf16.msra.mxu1 %v15792_v47  ;;  %v16255_v16 = vpop.f32.mrf.mxu1 }
 0x2a0   : > { %1813 = vmatpush.bf16.msra.mxu2 %v14803_v46 }
 0x2a2   : > { %2284 = vmatpush.bf16.msra.mxu1 %v15787_v37 }
 0x2a3   : > { %1355 = vmatmul.bf16.gmra.mxu2 %v10519_v20  ;;  %v14787_v20 = vld [vmem:[%s21895_s3 + $0xe4] sm:$0xf] }
 0x2a4   : > { %v10595_v31 = vor.u32 %v14787_v20, %v10592_v22 }
 0x2a6   : > { %2285 = vmatpush.bf16.msra.mxu1 %v15782_v27  ;;  %v16262_v24 = vpop.f32.mrf.mxu1 }
 0x2a9   : > { %1746 = vmatmul.bf16.gmra.mxu1 %v10663_v3 }
 0x2ae   : > { %v16276_v34 = vpop.f32.mrf.mxu1 }
 0x2b3   : > { %1360 = vmatmul.bf16.gmra.mxu2 %v10527_v36  ;;  %v14780_v36 = vld [vmem:[%s21896_s4 + $0x48] sm:$0xff] }
 0x2b4   : > { %1426 = vmatpush.bf16.msra.mxu3 %v14780_v36 }
 0x2b6   : > { %v16281_v51 = vpop.f32.mrf.mxu1 }
 0x2b8   : > { %1427 = vmatpush.bf16.msra.mxu3 %v14779_v52 }
 0x2b9   : > { %1751 = vmatmul.bf16.gmra.mxu1 %v10671_v56 }
 0x2bc   : > { %1617 = vmatpush.bf16.msrb.mxu3 %v14794_v21 }
 0x2be   : > { %v16289_v54 = vpop.f32.mrf.mxu1 }
 0x2c0   : > { %1618 = vmatpush.bf16.msrb.mxu3 %v14793_v59 }
 0x2c3   : > { %1365 = vmatmul.bf16.gmra.mxu2 %v10535_v23 }
 0x2c6   : > { %v16291_v55 = vpop.f32.mrf.mxu1 }
 0x2ce   : > { %v16305_v62 = vpop.f32.mrf.mxu1 }
 0x2d3   : > { %1543 = vmatmul.bf16.vlgmr.msrb.gmra.mxu2 %v10579_v63  ;;  %v10600_v63 = vld [vmem:[%s21895_s3 + $0xf8] sm:$0xf0] }
 0x2d4   : > { %2085 = vmatpush.bf16.msrb.mxu2 %v15809_v18  ;;  %v10603_v3 = vor.u32 %v14789_v49, %v10600_v63  ;;  %v1713_v63 = vpop.f32.mrf.mxu0 }
 0x2d6   : > { %v1179_v48 = vpop.f32.mrf.mxu2  ;;  %v16308_v1 = vpop.f32.mrf.mxu1 }
 0x2d8   : > { %2086 = vmatpush.bf16.msrb.mxu2 %v15818_v28 }
 0x2dc   : > { %v1244_v4 = vpop.f32.mrf.mxu3  ;;  %2087 = vmatpush.bf16.msrb.mxu2 %v15823_v33 }
 0x2dd   : > { %v16317_v42 = vadd.f32 %v1244_v4, %v1179_v48  ;;  %v14792_v48 = vld [vmem:[%s21896_s4 + $0x68] sm:$0xff]  ;;  %v14791_v4 = vld [vmem:[%s21896_s4 + $0x60] sm:$0xff] }
 0x2de   : > { %v16320_v6 = vpop.f32.mrf.mxu2  ;;  %v16328_v26 = vpop.f32.mrf.mxu1  ;;  %1619 = vmatpush.bf16.msrb.mxu3 %v14792_v48 }
 0x2e0   : > { %2088 = vmatpush.bf16.msrb.mxu2 %v15830_v38 }
 0x2e2   : > { %1620 = vmatpush.bf16.msrb.mxu3 %v14791_v4 }
 0x2e3   : > { %1548 = vmatmul.bf16.gmra.mxu2 %v10587_v32 }
 0x2e4   : > { %v16331_v8 = vpop.f32.mrf.mxu3  ;;  %2089 = vmatpush.bf16.msrb.mxu2 %v15797_v57 }
 0x2e6   : > { %v1184_v9 = vpop.f32.mrf.mxu2  ;;  %v16334_v40 = vpop.f32.mrf.mxu1 }
 0x2e8   : > { %2090 = vmatpush.bf16.msrb.mxu2 %v15792_v47 }
 0x2ec   : > { %v1249_v15 = vpop.f32.mrf.mxu3  ;;  %2091 = vmatpush.bf16.msrb.mxu2 %v15787_v37 }
 0x2ed   : > { %v16347_v35 = vadd.f32 %v1249_v15, %v1184_v9 }
 0x2ee   : > { %v16358_v29 = vpop.f32.mrf.mxu2  ;;  %v16360_v30 = vpop.f32.mrf.mxu1 }
 0x2f0   : > { %2092 = vmatpush.bf16.msrb.mxu2 %v15782_v27 }
 0x2f3   : > { %1553 = vmatmul.bf16.gmra.mxu2 %v10595_v31 }
 0x2f4   : > { %v16366_v46 = vpop.f32.mrf.mxu3 }
 0x2f6   : > { %v1189_v23 = vpop.f32.mrf.mxu2  ;;  %v16374_v53 = vpop.f32.mrf.mxu1 }
 0x2fc   : > { %v1254_v60 = vpop.f32.mrf.mxu3 }
 0x2fd   : > { %v16379_v61 = vadd.f32 %v1254_v60, %v1189_v23 }
 0x2fe   : > { %v16390_v2 = vpop.f32.mrf.mxu2  ;;  %v16392_v43 = vpop.f32.mrf.mxu1 }
 0x303   : > { %1558 = vmatmul.bf16.gmra.mxu2 %v10603_v3 }
 0x304   : > { %v16397_v41 = vpop.f32.mrf.mxu3 }
 0x306   : > { %v1194_v32 = vpop.f32.mrf.mxu2  ;;  %v1737_v9 = vpop.f32.mrf.mxu1 }
 0x307   : > { %v1738_v56 = vadd.f32 %v1737_v9, %v1708_v7  ;;  %v1715_v7 = vpop.f32.mrf.mxu0 }
 0x30c   : > { %v1259_v11 = vpop.f32.mrf.mxu3 }
 0x30d   : > { %v16399_v13 = vadd.f32 %v1259_v11, %v1194_v32 }
 0x30e   : > { %v16401_v15 = vpop.f32.mrf.mxu2  ;;  %v1739_v20 = vpop.f32.mrf.mxu1 }
 0x30f   : > { %v1740_v22 = vadd.f32 %v1739_v20, %v1710_v39  ;;  %v1718_v9 = vpop.f32.mrf.mxu0 }
 0x311   : > { %v1757_v25 = vpack.c.bf16 %v1740_v22, %v1738_v56 }
 0x313   : > { %10696 = vmatmul.msk.bf16.vlgmr.msra.gmra.mxu2 %vm1157_vm0, %v1757_v25 }
 0x314   : > { %2307 = vmatpush.bf16.msra.mxu2 %v15921_v44 }
 0x316   : > { %v1351_v31 = vpop.f32.mrf.mxu2  ;;  %v1742_v48 = vpop.f32.mrf.mxu1 }
 0x317   : > { %v1352_v52 = vadd.f32 %v1351_v31, %v16230_v12  ;;  %v1743_v4 = vadd.f32 %v1742_v48, %v1713_v63  ;;  %v1720_v22 = vpop.f32.mrf.mxu0 }
 0x318   : > { %2308 = vmatpush.bf16.msra.mxu2 %v15935_v58 }
 0x31c   : > { %2309 = vmatpush.bf16.msra.mxu2 %v15944_v0 }
 0x31e   : > { %v1353_v36 = vpop.f32.mrf.mxu2  ;;  %v1744_v32 = vpop.f32.mrf.mxu1 }
 0x31f   : > { %v1354_v21 = vadd.f32 %v1353_v36, %v16241_v50 }
 0x320   : > { %2310 = vmatpush.bf16.msra.mxu2 %v15953_v5 }
 0x321   : > { %v1371_v23 = vpack.c.bf16 %v1354_v21, %v1352_v52  ;;  %v1723_v21 = vpop.f32.mrf.mxu0 }
 0x323   : > { %10560 = vmatmul.msk.bf16.vlgmr.msra.gmra.mxu3 %vm1157_vm0, %v1371_v23 }
 0x324   : > { %1892 = vmatpush.bf16.msra.mxu3 %v15809_v18  ;;  %2311 = vmatpush.bf16.msra.mxu2 %v15962_v10 }
 0x326   : > { %v1356_v59 = vpop.f32.mrf.mxu2  ;;  %v1747_v11 = vpop.f32.mrf.mxu1 }
 0x327   : > { %v1357_v50 = vadd.f32 %v1356_v59, %v16245_v14  ;;  %v1748_v20 = vadd.f32 %v1747_v11, %v1718_v9  ;;  %v10718_v9 = vld [vmem:[%s21895_s3 + $0x150] sm:$0xf]  ;;  %v14810_v11 = vld [vmem:[%s21895_s3 + $0x154] sm:$0xf0] }
 0x328   : > { %1893 = vmatpush.bf16.msra.mxu3 %v15818_v28  ;;  %2312 = vmatpush.bf16.msra.mxu2 %v15977_v17 }
 0x32c   : > { %1894 = vmatpush.bf16.msra.mxu3 %v15823_v33  ;;  %2313 = vmatpush.bf16.msra.mxu2 %v15982_v19 }
 0x32e   : > { %v1358_v12 = vpop.f32.mrf.mxu2  ;;  %v1749_v25 = vpop.f32.mrf.mxu1 }
 0x32f   : > { %v1359_v60 = vadd.f32 %v1358_v12, %v16255_v16  ;;  %v1750_v31 = vadd.f32 %v1749_v25, %v1720_v22 }
 0x330   : > { %1895 = vmatpush.bf16.msra.mxu3 %v15830_v38  ;;  %2314 = vmatpush.bf16.msra.mxu2 %v16008_v45 }
 0x331   : > { %v1372_v18 = vpack.c.bf16 %v1359_v60, %v1357_v50  ;;  %v1759_v36 = vpack.c.bf16 %v1750_v31, %v1748_v20  ;;  %v1725_v60 = vpop.f32.mrf.mxu0  ;;  %v10719_v20 = vor.u32 %v14810_v11, %v10718_v9 }
 0x333   : > { %10561 = vmatmul.msk.bf16.gmra.mxu3 %vm1157_vm0, %v1372_v18 }
 0x334   : > { %1896 = vmatpush.bf16.msra.mxu3 %v15797_v57 }
 0x336   : > { %v1361_v28 = vpop.f32.mrf.mxu2  ;;  %v1752_v23 = vpop.f32.mrf.mxu1 }
 0x337   : > { %v1362_v49 = vadd.f32 %v1361_v28, %v16262_v24  ;;  %v1745_v24 = vadd.f32 %v1744_v32, %v1715_v7  ;;  %v1753_v12 = vadd.f32 %v1752_v23, %v1723_v21  ;;  %v14811_v7 = vld [vmem:[%s21895_s3 + $0x164] sm:$0xf]  ;;  %v10728_v32 = vld [vmem:[%s21895_s3 + $0x168] sm:$0xf0]  ;;  %v14812_v21 = vld [vmem:[%s21895_s3 + $0x164] sm:$0xf0] }
 0x338   : > { %1897 = vmatpush.bf16.msra.mxu3 %v15792_v47 }
 0x33c   : > { %1898 = vmatpush.bf16.msra.mxu3 %v15787_v37 }
 0x33e   : > { %v1363_v33 = vpop.f32.mrf.mxu2  ;;  %v1754_v18 = vpop.f32.mrf.mxu1 }
 0x33f   : > { %v1364_v14 = vadd.f32 %v1363_v33, %v16276_v34  ;;  %v1758_v34 = vpack.c.bf16 %v1745_v24, %v1743_v4  ;;  %v1755_v28 = vadd.f32 %v1754_v18, %v1725_v60  ;;  %v10710_v4 = vld [vmem:[%s21895_s3 + $0x140] sm:$0xf]  ;;  %v10731_v24 = vor.u32 %v14811_v7, %v10728_v32  ;;  %v10734_v60 = vld [vmem:[%s21895_s3 + $0x170] sm:$0xf]  ;;  %v14814_v18 = vld [vmem:[%s21895_s3 + $0x174] sm:$0xf0] }
 0x340   : > { %1899 = vmatpush.bf16.msra.mxu3 %v15782_v27  ;;  %v10788_v7 = vld [vmem:[%s21895_s3 + $0x198] sm:$0xf0] }
 0x341   : > { %v1373_v38 = vpack.c.bf16 %v1364_v14, %v1362_v49  ;;  %10697 = vmatmul.msk.bf16.gmra.mxu2 %vm1157_vm0, %v1758_v34  ;;  %v1760_v33 = vpack.c.bf16 %v1755_v28, %v1753_v12  ;;  %v14822_v12 = vld [vmem:[%s21895_s3 + $0x194] sm:$0xf0] }
 0x343   : > { %10562 = vmatmul.msk.bf16.gmra.mxu3 %vm1157_vm0, %v1373_v38 }
 0x346   : > { %v1366_v16 = vpop.f32.mrf.mxu2 }
 0x347   : > { %v1367_v57 = vadd.f32 %v1366_v16, %v16281_v51 }
 0x34e   : > { %v1368_v3 = vpop.f32.mrf.mxu2 }
 0x34f   : > { %v1369_v47 = vadd.f32 %v1368_v3, %v16289_v54 }
 0x351   : > { %v1374_v37 = vpack.c.bf16 %v1369_v47, %v1367_v57  ;;  %10698 = vmatmul.msk.bf16.gmra.mxu2 %vm1157_vm0, %v1759_v36  ;;  %v14809_v57 = vld [vmem:[%s21895_s3 + $0x154] sm:$0xf] }
 0x353   : > { %10563 = vmatmul.msk.bf16.gmra.mxu3 %vm1157_vm0, %v1374_v37 }
 0x356   : > { %v1544_v27 = vpop.f32.mrf.mxu2 }
 0x357   : > { %v1545_v56 = vadd.f32 %v1544_v27, %v16291_v55 }
 0x35e   : > { %v1546_v39 = vpop.f32.mrf.mxu2 }
 0x35f   : > { %v1547_v51 = vadd.f32 %v1546_v39, %v16305_v62  ;;  %v1247_v39 = vadd.f32 %v16331_v8, %v16320_v6  ;;  %v10778_v6 = vld [vmem:[%s21895_s3 + $0x180] sm:$0xf]  ;;  %v14820_v8 = vld [vmem:[%s21895_s3 + $0x184] sm:$0xf0] }
 0x360   : > { %v10779_v36 = vor.u32 %v14820_v8, %v10778_v6 }
 0x361   : > { %v1564_v54 = vpack.c.bf16 %v1547_v51, %v1545_v56  ;;  %10699 = vmatmul.msk.bf16.gmra.mxu2 %vm1157_vm0, %v1760_v33 }
 0x363   : > { %10628 = vmatmul.msk.bf16.vlgmr.msrb.gmra.mxu3 %vm1157_vm0, %v1564_v54  ;;  %v14813_v54 = vld [vmem:[%s21895_s3 + $0x174] sm:$0xf] }
 0x364   : > { %2114 = vmatpush.bf16.msrb.mxu3 %v15921_v44 }
 0x366   : > { %v1549_v52 = vpop.f32.mrf.mxu2 }
 0x367   : > { %v1550_v62 = vadd.f32 %v1549_v52, %v16308_v1  ;;  %v10726_v52 = vld [vmem:[%s21895_s3 + $0x160] sm:$0xf] }
 0x368   : > { %2115 = vmatpush.bf16.msrb.mxu3 %v15935_v58 }
 0x36c   : > { %2116 = vmatpush.bf16.msrb.mxu3 %v15944_v0 }
 0x36e   : > { %v1551_v55 = vpop.f32.mrf.mxu2 }
 0x36f   : > { %v1552_v59 = vadd.f32 %v1551_v55, %v16328_v26 }
 0x370   : > { %2117 = vmatpush.bf16.msrb.mxu3 %v15953_v5 }
 0x371   : > { %v1565_v50 = vpack.c.bf16 %v1552_v59, %v1550_v62  ;;  %2093 = vmatmul.bf16.vlgmr.msrb.gmra.mxu2 %v10779_v36  ;;  %v10786_v59 = vld [vmem:[%s21895_s3 + $0x190] sm:$0xf]  ;;  %v14825_v36 = vld [vmem:[%s21895_s3 + $0x1b4] sm:$0xf] }
 0x373   : > { %10629 = vmatmul.msk.bf16.gmra.mxu3 %vm1157_vm0, %v1565_v50  ;;  %v10787_v50 = vor.u32 %v14822_v12, %v10786_v59 }
 0x374   : > { %2118 = vmatpush.bf16.msrb.mxu3 %v15962_v10 }
 0x376   : > { %v1554_v49 = vpop.f32.mrf.mxu2 }
 0x377   : > { %v1555_v26 = vadd.f32 %v1554_v49, %v16334_v40  ;;  %v10720_v40 = vld [vmem:[%s21895_s3 + $0x158] sm:$0xf0] }
 0x378   : > { %2119 = vmatpush.bf16.msrb.mxu3 %v15977_v17 }
 0x37c   : > { %2120 = vmatpush.bf16.msrb.mxu3 %v15982_v19 }
 0x37e   : > { %v1556_v1 = vpop.f32.mrf.mxu2 }
 0x37f   : > { %v1557_v14 = vadd.f32 %v1556_v1, %v16360_v30  ;;  %v10723_v30 = vor.u32 %v14809_v57, %v10720_v40  ;;  %v10794_v1 = vld [vmem:[%s21895_s3 + $0x1a0] sm:$0xf] }
 0x380   : > { %2121 = vmatpush.bf16.msrb.mxu3 %v16008_v45 }
 0x381   : > { %v1566_v38 = vpack.c.bf16 %v1557_v14, %v1555_v26  ;;  %1934 = vmatmul.bf16.gmra.mxu0 %v10723_v30  ;;  %2098 = vmatmul.bf16.gmra.mxu2 %v10787_v50  ;;  %v14824_v26 = vld [vmem:[%s21895_s3 + $0x1a4] sm:$0xf0] }
 0x383   : > { %10630 = vmatmul.msk.bf16.gmra.mxu3 %vm1157_vm0, %v1566_v38  ;;  %v10795_v38 = vor.u32 %v14824_v26, %v10794_v1 }
 0x386   : > { %v1559_v16 = vpop.f32.mrf.mxu2 }
 0x387   : > { %v1560_v48 = vadd.f32 %v1559_v16, %v16374_v53  ;;  %v14808_v53 = vld [vmem:[%s21895_s3 + $0x144] sm:$0xf0]  ;;  %v14819_v16 = vld [vmem:[%s21895_s3 + $0x184] sm:$0xf] }
 0x388   : > { %v10711_v37 = vor.u32 %v14808_v53, %v10710_v4  ;;  %v14826_v4 = vld [vmem:[%s21895_s3 + $0x1b4] sm:$0xf0] }
 0x38e   : > { %v1561_v63 = vpop.f32.mrf.mxu2 }
 0x38f   : > { %v1562_v3 = vadd.f32 %v1561_v63, %v16392_v43  ;;  %v16467_v43 = vpop.f32.mrf.mxu3  ;;  %v10780_v63 = vld [vmem:[%s21895_s3 + $0x188] sm:$0xf0] }
 0x391   : > { %v1567_v47 = vpack.c.bf16 %v1562_v3, %v1560_v48  ;;  %1939 = vmatmul.bf16.gmra.mxu0 %v10731_v24  ;;  %2103 = vmatmul.bf16.gmra.mxu2 %v10795_v38  ;;  %v10783_v48 = vor.u32 %v14819_v16, %v10780_v63 }
 0x393   : > { %10631 = vmatmul.msk.bf16.gmra.mxu3 %vm1157_vm0, %v1567_v47  ;;  %v10802_v47 = vld [vmem:[%s21895_s3 + $0x1b0] sm:$0xf] }
 0x394   : > { %v10803_v53 = vor.u32 %v14826_v4, %v10802_v47 }
 0x396   : > { %v1815_v14 = vpop.f32.mrf.mxu2 }
 0x39e   : > { %v16537_v3 = vpop.f32.mrf.mxu2 }
 0x3a1   : > { %2108 = vmatmul.bf16.gmra.mxu2 %v10803_v53 }
 0x3a3   : > { %1900 = vmatmul.bf16.vlgmr.msra.gmra.mxu3 %v10711_v37  ;;  %v14821_v37 = vld [vmem:[%s21895_s3 + $0x194] sm:$0xf] }
 0x3a6   : > { %v1429_v34 = vpop.f32.mrf.mxu3 }
 0x3a7   : > { %v1449_v27 = vadd.f32 %v1429_v34, %v16317_v42  ;;  %v10736_v42 = vld [vmem:[%s21895_s3 + $0x178] sm:$0xf0]  ;;  %v10791_v34 = vor.u32 %v14821_v37, %v10788_v7 }
 0x3a8   : > { %v10739_v22 = vor.u32 %v14813_v54, %v10736_v42 }
 0x3aa   : > { %1944 = vmatmul.bf16.gmra.mxu0 %v10739_v22 }
 0x3ae   : > { %v1431_v56 = vpop.f32.mrf.mxu3 }
 0x3af   : > { %v16484_v51 = vadd.f32 %v1431_v56, %v1247_v39  ;;  %v14823_v56 = vld [vmem:[%s21895_s3 + $0x1a4] sm:$0xf] }
 0x3b3   : > { %1905 = vmatmul.bf16.gmra.mxu3 %v10719_v20  ;;  %v10796_v20 = vld [vmem:[%s21895_s3 + $0x1a8] sm:$0xf0] }
 0x3b4   : > { %v10799_v42 = vor.u32 %v14823_v56, %v10796_v20 }
 0x3b6   : > { %v1434_v25 = vpop.f32.mrf.mxu3 }
 0x3b7   : > { %v1451_v31 = vadd.f32 %v1434_v25, %v16347_v35  ;;  %v10727_v35 = vor.u32 %v14812_v21, %v10726_v52  ;;  %v10804_v52 = vld [vmem:[%s21895_s3 + $0x1b8] sm:$0xf0] }
 0x3be   : > { %v16505_v23 = vpop.f32.mrf.mxu3 }
 0x3c3   : > { %1910 = vmatmul.bf16.gmra.mxu3 %v10727_v35  ;;  %v10807_v35 = vor.u32 %v14825_v36, %v10804_v52  ;;  %v14835_v52 = vld [vmem:[%s21895_s3 + $0x1e4] sm:$0xf] }
 0x3c4   : > { %v1820_v24 = vpop.f32.mrf.mxu2 }
 0x3c6   : > { %v1439_v55 = vpop.f32.mrf.mxu3 }
 0x3c7   : > { %v1453_v62 = vadd.f32 %v1439_v55, %v16379_v61  ;;  %v10735_v61 = vor.u32 %v14814_v18, %v10734_v60 }
 0x3cc   : > { %v16555_v11 = vpop.f32.mrf.mxu2 }
 0x3ce   : > { %v16520_v28 = vpop.f32.mrf.mxu3 }
 0x3d3   : > { %1915 = vmatmul.bf16.gmra.mxu3 %v10735_v61 }
 0x3d4   : > { %v1825_v22 = vpop.f32.mrf.mxu2 }
 0x3d6   : > { %v1444_v33 = vpop.f32.mrf.mxu3 }
 0x3d7   : > { %v1455_v49 = vadd.f32 %v1444_v33, %v16399_v13 }
 0x3dc   : > { %v16569_v8 = vpop.f32.mrf.mxu2 }
 0x3de   : > { %v16535_v13 = vpop.f32.mrf.mxu3 }
 0x3e3   : > { %2122 = vmatmul.bf16.vlgmr.msrb.gmra.mxu3 %v10783_v48 }
 0x3e4   : > { %v1830_v59 = vpop.f32.mrf.mxu2 }
 0x3e6   : > { %v1622_v57 = vpop.f32.mrf.mxu3 }
 0x3e7   : > { %v1642_v40 = vadd.f32 %v1622_v57, %v1449_v27 }
 0x3e9   : > { %v16539_v30 = vadd.f32 %v1815_v14, %v1642_v40 }
 0x3ee   : > { %v16553_v32 = vpop.f32.mrf.mxu3 }
 0x3f3   : > { %2127 = vmatmul.bf16.gmra.mxu3 %v10791_v34 }
 0x3f6   : > { %v1627_v27 = vpop.f32.mrf.mxu3 }
 0x3f7   : > { %v1644_v9 = vadd.f32 %v1627_v27, %v1451_v31 }
 0x3f9   : > { %v16557_v39 = vadd.f32 %v1820_v24, %v1644_v9 }
 0x3fe   : > { %v16565_v54 = vpop.f32.mrf.mxu3 }
 0x403   : > { %2132 = vmatmul.bf16.gmra.mxu3 %v10799_v42 }
 0x406   : > { %v1632_v25 = vpop.f32.mrf.mxu3 }
 0x407   : > { %v1646_v6 = vadd.f32 %v1632_v25, %v1453_v62  ;;  %v1930_v62 = vpop.f32.mrf.mxu0 }
 0x409   : > { %v16567_v31 = vadd.f32 %v1825_v22, %v1646_v6 }
 0x40e   : > { %v16577_v21 = vpop.f32.mrf.mxu3 }
 0x40f   : > { %v1932_v18 = vpop.f32.mrf.mxu0 }
 0x413   : > { %2137 = vmatmul.bf16.gmra.mxu3 %v10807_v35  ;;  %v10864_v35 = vld [vmem:[%s21895_s3 + $0x1e8] sm:$0xf0] }
 0x416   : > { %v1637_v55 = vpop.f32.mrf.mxu3 }
 0x417   : > { %v1648_v12 = vadd.f32 %v1637_v55, %v1455_v49  ;;  %v1935_v33 = vpop.f32.mrf.mxu0  ;;  %v10867_v55 = vor.u32 %v14835_v52, %v10864_v35  ;;  %v10914_v35 = vld [vmem:[%s21895_s3 + $0x200] sm:$0xf] }
 0x419   : > { %v16579_v50 = vadd.f32 %v1830_v59, %v1648_v12  ;;  %v10846_v12 = vld [vmem:[%s21895_s3 + $0x1c0] sm:$0xf] }
 0x41e   : > { %v16581_v60 = vpop.f32.mrf.mxu3 }
 0x41f   : > { %v1937_v63 = vpop.f32.mrf.mxu0 }
 0x426   : > { %v1901_v61 = vpop.f32.mrf.mxu3 }
 0x427   : > { %v1931_v26 = vadd.f32 %v1930_v62, %v1901_v61  ;;  %v1940_v40 = vpop.f32.mrf.mxu0  ;;  %v14832_v62 = vld [vmem:[%s21895_s3 + $0x1c4] sm:$0xf0] }
 0x42e   : > { %v1903_v1 = vpop.f32.mrf.mxu3 }
 0x42f   : > { %v1933_v14 = vadd.f32 %v1932_v18, %v1903_v1  ;;  %v1942_v53 = vpop.f32.mrf.mxu0  ;;  %v10847_v1 = vor.u32 %v14832_v62, %v10846_v12  ;;  %v10916_v12 = vld [vmem:[%s21895_s3 + $0x208] sm:$0xf0] }
 0x431   : > { %v1950_v38 = vpack.c.bf16 %v1933_v14, %v1931_v26 }
 0x433   : > { %10764 = vmatmul.msk.bf16.vlgmr.msrb.gmra.mxu1 %vm1157_vm0, %v1950_v38 }
 0x434   : > { %2500 = vmatpush.bf16.msrb.mxu1 %v15921_v44  ;;  %v14831_v44 = vld [vmem:[%s21895_s3 + $0x1c4] sm:$0xf] }
 0x436   : > { %v1906_v16 = vpop.f32.mrf.mxu3 }
 0x437   : > { %v1936_v48 = vadd.f32 %v1935_v33, %v1906_v16  ;;  %v1945_v34 = vpop.f32.mrf.mxu0  ;;  %v14837_v16 = vld [vmem:[%s21895_s3 + $0x1f4] sm:$0xf] }
 0x438   : > { %2501 = vmatpush.bf16.msrb.mxu1 %v15935_v58  ;;  %v10848_v58 = vld [vmem:[%s21895_s3 + $0x1c8] sm:$0xf0] }
 0x43c   : > { %2502 = vmatpush.bf16.msrb.mxu1 %v15944_v0  ;;  %v10851_v0 = vor.u32 %v14831_v44, %v10848_v58 }
 0x43e   : > { %v1908_v49 = vpop.f32.mrf.mxu3  ;;  %2315 = vmatmul.bf16.vlgmr.msra.gmra.mxu2 %v10851_v0 }
 0x43f   : > { %v1938_v57 = vadd.f32 %v1937_v63, %v1908_v49  ;;  %v1947_v20 = vpop.f32.mrf.mxu0  ;;  %v10872_v63 = vld [vmem:[%s21895_s3 + $0x1f8] sm:$0xf0] }
 0x440   : > { %2503 = vmatpush.bf16.msrb.mxu1 %v15953_v5  ;;  %v10875_v49 = vor.u32 %v14837_v16, %v10872_v63 }
 0x441   : > { %v1951_v47 = vpack.c.bf16 %v1938_v57, %v1936_v48  ;;  %v10854_v48 = vld [vmem:[%s21895_s3 + $0x1d0] sm:$0xf]  ;;  %v14834_v57 = vld [vmem:[%s21895_s3 + $0x1d4] sm:$0xf0] }
 0x442   : > { %v10855_v44 = vor.u32 %v14834_v57, %v10854_v48 }
 0x443   : > { %10765 = vmatmul.msk.bf16.gmra.mxu1 %vm1157_vm0, %v1951_v47 }
 0x444   : > { %2504 = vmatpush.bf16.msrb.mxu1 %v15962_v10  ;;  %v16598_v10 = vpop.f32.mrf.mxu2 }
 0x446   : > { %v1911_v4 = vpop.f32.mrf.mxu3 }
 0x447   : > { %v1941_v37 = vadd.f32 %v1940_v40, %v1911_v4 }
 0x448   : > { %2505 = vmatpush.bf16.msrb.mxu1 %v15977_v17  ;;  %v14833_v17 = vld [vmem:[%s21895_s3 + $0x1d4] sm:$0xf] }
 0x44c   : > { %2506 = vmatpush.bf16.msrb.mxu1 %v15982_v19  ;;  %v10856_v19 = vld [vmem:[%s21895_s3 + $0x1d8] sm:$0xf0]  ;;  %v2094_v9 = vpop.f32.mrf.mxu2 }
 0x44d   : > { %v10859_v56 = vor.u32 %v14833_v17, %v10856_v19 }
 0x44e   : > { %v1913_v5 = vpop.f32.mrf.mxu3 }
 0x44f   : > { %v1943_v7 = vadd.f32 %v1942_v53, %v1913_v5  ;;  %2320 = vmatmul.bf16.gmra.mxu2 %v10859_v56 }
 0x450   : > { %2507 = vmatpush.bf16.msrb.mxu1 %v16008_v45 }
 0x451   : > { %v1952_v24 = vpack.c.bf16 %v1943_v7, %v1941_v37  ;;  %v10862_v37 = vld [vmem:[%s21895_s3 + $0x1e0] sm:$0xf]  ;;  %v14836_v7 = vld [vmem:[%s21895_s3 + $0x1e4] sm:$0xf0] }
 0x452   : > { %v10863_v17 = vor.u32 %v14836_v7, %v10862_v37  ;;  %v14841_v37 = vld [vmem:[%s21896_s4 + $0xf0] sm:$0xff]  ;;  %v14840_v7 = vld [vmem:[%s21896_s4 + $0xe8] sm:$0xff] }
 0x453   : > { %10766 = vmatmul.msk.bf16.gmra.mxu1 %vm1157_vm0, %v1952_v24 }
 0x454   : > { %v2096_v6 = vpop.f32.mrf.mxu2 }
 0x456   : > { %v1916_v27 = vpop.f32.mrf.mxu3 }
 0x457   : > { %v1946_v22 = vadd.f32 %v1945_v34, %v1916_v27 }
 0x45c   : > { %v2099_v59 = vpop.f32.mrf.mxu2 }
 0x45e   : > { %v1918_v42 = vpop.f32.mrf.mxu3 }
 0x45f   : > { %v1948_v45 = vadd.f32 %v1947_v20, %v1918_v42  ;;  %2325 = vmatmul.bf16.gmra.mxu2 %v10867_v55  ;;  %v10870_v20 = vld [vmem:[%s21895_s3 + $0x1f0] sm:$0xf]  ;;  %v14838_v42 = vld [vmem:[%s21895_s3 + $0x1f4] sm:$0xf0]  ;;  %v14844_v55 = vld [vmem:[%s21895_s3 + $0x204] sm:$0xf0] }
 0x460   : > { %v10915_v62 = vor.u32 %v14844_v55, %v10914_v35 }
 0x461   : > { %v1953_v25 = vpack.c.bf16 %v1948_v45, %v1946_v22 }
 0x463   : > { %10767 = vmatmul.msk.bf16.gmra.mxu1 %vm1157_vm0, %v1953_v25 }
 0x464   : > { %v2101_v14 = vpop.f32.mrf.mxu2 }
 0x466   : > { %v2123_v36 = vpop.f32.mrf.mxu3 }
 0x467   : > { %v2124_v61 = vadd.f32 %v2123_v36, %v2094_v9  ;;  %v10871_v36 = vor.u32 %v14838_v42, %v10870_v20 }
 0x46c   : > { %v2104_v58 = vpop.f32.mrf.mxu2 }
 0x46e   : > { %v2125_v18 = vpop.f32.mrf.mxu3 }
 0x46f   : > { %v2126_v33 = vadd.f32 %v2125_v18, %v2096_v6  ;;  %2330 = vmatmul.bf16.gmra.mxu2 %v10875_v49 }
 0x471   : > { %v2143_v26 = vpack.c.bf16 %v2126_v33, %v2124_v61 }
 0x473   : > { %10832 = vmatmul.msk.bf16.vlgmr.msrb.gmra.mxu0 %vm1157_vm0, %v2143_v26  ;;  %2286 = vmatmul.bf16.vlgmr.msra.gmra.mxu1 %v10847_v1  ;;  %v10922_v26 = vld [vmem:[%s21895_s3 + $0x210] sm:$0xf] }
 0x474   : > { %v2106_v5 = vpop.f32.mrf.mxu2 }
 0x476   : > { %v2128_v38 = vpop.f32.mrf.mxu3 }
 0x477   : > { %v2129_v47 = vadd.f32 %v2128_v38, %v2099_v59  ;;  %v14843_v59 = vld [vmem:[%s21895_s3 + $0x204] sm:$0xf]  ;;  %v14845_v38 = vld [vmem:[%s21895_s3 + $0x214] sm:$0xf] }
 0x478   : > { %v10919_v18 = vor.u32 %v14843_v59, %v10916_v12 }
 0x47c   : > { %v2109_v9 = vpop.f32.mrf.mxu2 }
 0x47e   : > { %v2130_v40 = vpop.f32.mrf.mxu3 }
 0x47f   : > { %v2131_v4 = vadd.f32 %v2130_v40, %v2101_v14  ;;  %v14846_v14 = vld [vmem:[%s21895_s3 + $0x214] sm:$0xf0] }
 0x480   : > { %v10923_v16 = vor.u32 %v14846_v14, %v10922_v26  ;;  %v14842_v40 = vld [vmem:[%s21896_s4 + $0xf8] sm:$0xff] }
 0x481   : > { %v2144_v0 = vpack.c.bf16 %v2131_v4, %v2129_v47  ;;  %v10930_v47 = vld [vmem:[%s21895_s3 + $0x220] sm:$0xf]  ;;  %2389 = vmatpush.bf16.msra.mxu3 %v14842_v40  ;;  %v14848_v4 = vld [vmem:[%s21895_s3 + $0x224] sm:$0xf0]  ;;  %v14854_v40 = vld [vmem:[%s21896_s4 + $0x118] sm:$0xff] }
 0x482   : > { %2582 = vmatpush.bf16.msrb.mxu2 %v14854_v40 }
 0x483   : > { %10833 = vmatmul.msk.bf16.gmra.mxu0 %vm1157_vm0, %v2144_v0  ;;  %2291 = vmatmul.bf16.gmra.mxu1 %v10855_v44  ;;  %v10932_v44 = vld [vmem:[%s21895_s3 + $0x228] sm:$0xf0] }
 0x484   : > { %v2111_v22 = vpop.f32.mrf.mxu2 }
 0x485   : > { %2390 = vmatpush.bf16.msra.mxu3 %v14841_v37 }
 0x486   : > { %v2133_v53 = vpop.f32.mrf.mxu3 }
 0x487   : > { %v2134_v34 = vadd.f32 %v2133_v53, %v2104_v58  ;;  %v10931_v58 = vor.u32 %v14848_v4, %v10930_v47 }
 0x489   : > { %2391 = vmatpush.bf16.msra.mxu3 %v14840_v7 }
 0x48e   : > { %v2135_v24 = vpop.f32.mrf.mxu3 }
 0x48f   : > { %v2136_v27 = vadd.f32 %v2135_v24, %v2106_v5 }
 0x491   : > { %v2145_v19 = vpack.c.bf16 %v2136_v27, %v2134_v34  ;;  %v14839_v34 = vld [vmem:[%s21896_s4 + $0xe0] sm:$0xff]  ;;  %v14850_v27 = vld [vmem:[%s21895_s3 + $0x234] sm:$0xf0] }
 0x492   : > { %2392 = vmatpush.bf16.msra.mxu3 %v14839_v34 }
 0x493   : > { %10834 = vmatmul.msk.bf16.gmra.mxu0 %vm1157_vm0, %v2145_v19  ;;  %2296 = vmatmul.bf16.gmra.mxu1 %v10863_v17  ;;  %v14849_v17 = vld [vmem:[%s21895_s3 + $0x234] sm:$0xf]  ;;  %v10940_v19 = vld [vmem:[%s21895_s3 + $0x238] sm:$0xf0] }
 0x496   : > { %v2138_v56 = vpop.f32.mrf.mxu3 }
 0x497   : > { %v2139_v25 = vadd.f32 %v2138_v56, %v2109_v9  ;;  %v10943_v56 = vor.u32 %v14849_v17, %v10940_v19 }
 0x49e   : > { %v2140_v45 = vpop.f32.mrf.mxu3 }
 0x49f   : > { %v2141_v6 = vadd.f32 %v2140_v45, %v2111_v22 }
 0x4a1   : > { %v2146_v52 = vpack.c.bf16 %v2141_v6, %v2139_v25 }
 0x4a3   : > { %10835 = vmatmul.msk.bf16.gmra.mxu0 %vm1157_vm0, %v2146_v52  ;;  %2301 = vmatmul.bf16.gmra.mxu1 %v10871_v36 }
 0x4b0   : > { %v2008_v61 = vpop.f32.mrf.mxu1 }
 0x4b1   : > { %v2028_v33 = vadd.f32 %v2008_v61, %v16539_v30  ;;  %v10924_v30 = vld [vmem:[%s21895_s3 + $0x218] sm:$0xf0] }
 0x4b2   : > { %v10927_v63 = vor.u32 %v14845_v38, %v10924_v30 }
 0x4b3   : > { %2479 = vmatmul.bf16.vlgmr.msra.gmra.mxu0 %v10915_v62  ;;  %2508 = vmatmul.bf16.vlgmr.msrb.gmra.mxu1 %v10919_v18 }
 0x4b8   : > { %v16662_v1 = vpop.f32.mrf.mxu1 }
 0x4c0   : > { %v2013_v49 = vpop.f32.mrf.mxu1 }
 0x4c1   : > { %v2030_v48 = vadd.f32 %v2013_v49, %v16557_v39  ;;  %v14847_v39 = vld [vmem:[%s21895_s3 + $0x224] sm:$0xf]  ;;  %v2316_v20 = vpop.f32.mrf.mxu2 }
 0x4c2   : > { %v10935_v0 = vor.u32 %v14847_v39, %v10932_v44 }
 0x4c3   : > { %2484 = vmatmul.bf16.gmra.mxu0 %v10923_v16  ;;  %2513 = vmatmul.bf16.gmra.mxu1 %v10927_v63 }
 0x4c8   : > { %v16677_v57 = vpop.f32.mrf.mxu1 }
 0x4c9   : > { %v2318_v25 = vpop.f32.mrf.mxu2 }
 0x4d0   : > { %v2018_v53 = vpop.f32.mrf.mxu1 }
 0x4d1   : > { %v2032_v5 = vadd.f32 %v2018_v53, %v16567_v31  ;;  %v10938_v31 = vld [vmem:[%s21895_s3 + $0x230] sm:$0xf] }
 0x4d2   : > { %v10939_v9 = vor.u32 %v14850_v27, %v10938_v31  ;;  %v2321_v35 = vpop.f32.mrf.mxu2 }
 0x4d3   : > { %2489 = vmatmul.bf16.gmra.mxu0 %v10931_v58  ;;  %2518 = vmatmul.bf16.gmra.mxu1 %v10935_v0  ;;  %v14852_v58 = vld [vmem:[%s21896_s4 + $0x108] sm:$0xff] }
 0x4d8   : > { %v16701_v24 = vpop.f32.mrf.mxu1 }
 0x4da   : > { %v2323_v61 = vpop.f32.mrf.mxu2 }
 0x4e0   : > { %v2023_v42 = vpop.f32.mrf.mxu1 }
 0x4e1   : > { %v2034_v22 = vadd.f32 %v2023_v42, %v16579_v50 }
 0x4e2   : > { %v2326_v38 = vpop.f32.mrf.mxu2 }
 0x4e3   : > { %2494 = vmatmul.bf16.gmra.mxu0 %v10939_v9  ;;  %2523 = vmatmul.bf16.gmra.mxu1 %v10943_v56 }
 0x4e8   : > { %v16719_v45 = vpop.f32.mrf.mxu1 }
 0x4ea   : > { %v2328_v44 = vpop.f32.mrf.mxu2 }
 0x4f0   : > { %v2201_v6 = vpop.f32.mrf.mxu0  ;;  %v2287_v36 = vpop.f32.mrf.mxu1 }
 0x4f1   : > { %v16721_v52 = vadd.f32 %v2201_v6, %v2028_v33  ;;  %v2317_v12 = vadd.f32 %v2316_v20, %v2287_v36 }
 0x4f2   : > { %v2331_v31 = vpop.f32.mrf.mxu2 }
 0x4f8   : > { %v16723_v55 = vpop.f32.mrf.mxu0  ;;  %v2289_v59 = vpop.f32.mrf.mxu1 }
 0x4f9   : > { %v2319_v62 = vadd.f32 %v2318_v25, %v2289_v59 }
 0x4fa   : > { %v2333_v9 = vpop.f32.mrf.mxu2 }
 0x4fb   : > { %v2336_v18 = vpack.c.bf16 %v2319_v62, %v2317_v12 }
 0x4fd   : > { %10900 = vmatmul.msk.bf16.vlgmr.msra.gmra.mxu3 %vm1157_vm0, %v2336_v18 }
 0x500   : > { %v2206_v50 = vpop.f32.mrf.mxu0  ;;  %v2292_v26 = vpop.f32.mrf.mxu1 }
 0x501   : > { %v16726_v14 = vadd.f32 %v2206_v50, %v2030_v48  ;;  %v2322_v33 = vadd.f32 %v2321_v35, %v2292_v26  ;;  %v14853_v48 = vld [vmem:[%s21896_s4 + $0x110] sm:$0xff] }
 0x502   : > { %2583 = vmatpush.bf16.msrb.mxu2 %v14853_v48 }
 0x506   : > { %2584 = vmatpush.bf16.msrb.mxu2 %v14852_v58 }
 0x508   : > { %v16728_v30 = vpop.f32.mrf.mxu0  ;;  %v2294_v16 = vpop.f32.mrf.mxu1 }
 0x509   : > { %v2324_v63 = vadd.f32 %v2323_v61, %v2294_v16 }
 0x50b   : > { %v2337_v49 = vpack.c.bf16 %v2324_v63, %v2322_v33 }
 0x50d   : > { %10901 = vmatmul.msk.bf16.gmra.mxu3 %vm1157_vm0, %v2337_v49 }
 0x510   : > { %v2211_v47 = vpop.f32.mrf.mxu0  ;;  %v2297_v4 = vpop.f32.mrf.mxu1 }
 0x511   : > { %v16734_v39 = vadd.f32 %v2211_v47, %v2032_v5  ;;  %v2327_v37 = vadd.f32 %v2326_v38, %v2297_v4  ;;  %v14851_v5 = vld [vmem:[%s21896_s4 + $0x100] sm:$0xff] }
 0x512   : > { %2585 = vmatpush.bf16.msrb.mxu2 %v14851_v5 }
 0x518   : > { %v16742_v0 = vpop.f32.mrf.mxu0  ;;  %v2299_v53 = vpop.f32.mrf.mxu1 }
 0x519   : > { %v2329_v7 = vadd.f32 %v2328_v44, %v2299_v53 }
 0x51b   : > { %v2338_v34 = vpack.c.bf16 %v2329_v7, %v2327_v37 }
 0x51d   : > { %10902 = vmatmul.msk.bf16.gmra.mxu3 %vm1157_vm0, %v2338_v34 }
 0x520   : > { %v2216_v27 = vpop.f32.mrf.mxu0  ;;  %v2302_v17 = vpop.f32.mrf.mxu1 }
 0x521   : > { %v16748_v19 = vadd.f32 %v2216_v27, %v2034_v22  ;;  %v2332_v42 = vadd.f32 %v2331_v31, %v2302_v17 }
 0x528   : > { %v16750_v56 = vpop.f32.mrf.mxu0  ;;  %v2304_v20 = vpop.f32.mrf.mxu1 }
 0x529   : > { %v2334_v25 = vadd.f32 %v2333_v9, %v2304_v20  ;;  %v1643_v20 = vadd.f32 %v16553_v32, %v16484_v51  ;;  %v1252_v51 = vadd.f32 %v16366_v46, %v16358_v29 }
 0x52b   : > { %v2339_v6 = vpack.c.bf16 %v2334_v25, %v2332_v42  ;;  %v1836_v25 = vadd.f32 %v16537_v3, %v1643_v20  ;;  %v1452_v3 = vadd.f32 %v16505_v23, %v1252_v51 }
 0x52d   : > { %10903 = vmatmul.msk.bf16.gmra.mxu3 %vm1157_vm0, %v2339_v6 }
 0x530   : > { %v2480_v36 = vpop.f32.mrf.mxu0  ;;  %v2509_v35 = vpop.f32.mrf.mxu1 }
 0x531   : > { %v2510_v62 = vadd.f32 %v2509_v35, %v2480_v36  ;;  %v2029_v36 = vadd.f32 %v16662_v1, %v1836_v25 }
 0x533   : > { %v2222_v35 = vadd.f32 %v16723_v55, %v2029_v36 }
 0x538   : > { %v2482_v59 = vpop.f32.mrf.mxu0  ;;  %v2511_v12 = vpop.f32.mrf.mxu1 }
 0x539   : > { %v2512_v18 = vadd.f32 %v2511_v12, %v2482_v59 }
 0x53b   : > { %v2529_v61 = vpack.c.bf16 %v2512_v18, %v2510_v62  ;;  %v15613_v18 = vld [vmem:[%s21897_s5] ss:$0 sm:$0xff] }
 0x53d   : > { %10968 = vmatmul.msk.bf16.vlgmr.msrb.gmra.mxu2 %vm1157_vm0, %v2529_v61 }
 0x540   : > { %v2485_v22 = vpop.f32.mrf.mxu0  ;;  %v2514_v50 = vpop.f32.mrf.mxu1 }
 0x541   : > { %v2515_v16 = vadd.f32 %v2514_v50, %v2485_v22 }
 0x548   : > { %v2487_v26 = vpop.f32.mrf.mxu0  ;;  %v2516_v38 = vpop.f32.mrf.mxu1 }
 0x549   : > { %v2517_v33 = vadd.f32 %v2516_v38, %v2487_v26 }
 0x54b   : > { %v2530_v63 = vpack.c.bf16 %v2517_v33, %v2515_v16 }
 0x54d   : > { %10969 = vmatmul.msk.bf16.gmra.mxu2 %vm1157_vm0, %v2530_v63 }
 0x550   : > { %v2490_v49 = vpop.f32.mrf.mxu0  ;;  %v2519_v40 = vpop.f32.mrf.mxu1 }
 0x551   : > { %v2520_v48 = vadd.f32 %v2519_v40, %v2490_v49 }
 0x558   : > { %v2492_v47 = vpop.f32.mrf.mxu0  ;;  %v2521_v4 = vpop.f32.mrf.mxu1 }
 0x559   : > { %v2522_v44 = vadd.f32 %v2521_v4, %v2492_v47 }
 0x55b   : > { %v2531_v58 = vpack.c.bf16 %v2522_v44, %v2520_v48 }
 0x55d   : > { %10970 = vmatmul.msk.bf16.gmra.mxu2 %vm1157_vm0, %v2531_v58 }
 0x560   : > { %v2495_v53 = vpop.f32.mrf.mxu0  ;;  %v2524_v37 = vpop.f32.mrf.mxu1 }
 0x561   : > { %v2525_v34 = vadd.f32 %v2524_v37, %v2495_v53 }
 0x568   : > { %v2497_v7 = vpop.f32.mrf.mxu0  ;;  %v2526_v5 = vpop.f32.mrf.mxu1 }
 0x569   : > { %v2527_v31 = vadd.f32 %v2526_v5, %v2497_v7 }
 0x56b   : > { %v2532_v27 = vpack.c.bf16 %v2527_v31, %v2525_v34 }
 0x56d   : > { %10971 = vmatmul.msk.bf16.gmra.mxu2 %vm1157_vm0, %v2532_v27 }
 0x580   : > { %v2394_v17 = vpop.f32.mrf.mxu3 }
 0x581   : > { %v2414_v59 = vadd.f32 %v2394_v17, %v16721_v52  ;;  %v1645_v52 = vadd.f32 %v16565_v54, %v1452_v3  ;;  %v1257_v54 = vadd.f32 %v16397_v41, %v16390_v2 }
 0x583   : > { %v1838_v16 = vadd.f32 %v16555_v11, %v1645_v52  ;;  %v1454_v48 = vadd.f32 %v16520_v28, %v1257_v54  ;;  %v1262_v28 = vadd.f32 %v16467_v43, %v16401_v15  ;;  %v14868_v54 = vld [vmem:[%s21899_s7 + $0x64] sm:$0xf] }
 0x585   : > { %v2031_v29 = vadd.f32 %v16677_v57, %v1838_v16  ;;  %v1647_v44 = vadd.f32 %v16577_v21, %v1454_v48 }
 0x587   : > { %v2224_v23 = vadd.f32 %v16728_v30, %v2031_v29  ;;  %v1840_v30 = vadd.f32 %v16569_v8, %v1647_v44 }
 0x588   : > { %v2396_v9 = vpop.f32.mrf.mxu3 }
 0x589   : > { %v2415_v12 = vadd.f32 %v2396_v9, %v2222_v35  ;;  %v2033_v7 = vadd.f32 %v16701_v24, %v1840_v30  ;;  %v15641_v24 = vmov 64.0   ;;  %v11108_v30 = vld [vmem:[%s21899_s7 + $0x58] sm:$0xf0] }
 0x58a   : > { %15615 = vrcp.f32 %v15641_v24 }
 0x58b   : > { %v2226_v34 = vadd.f32 %v16742_v0, %v2033_v7 }
 0x590   : > { %v2399_v6 = vpop.f32.mrf.mxu3  ;;  %v15616_v43 = vpop.eup %15615 }
 0x591   : > { %v2416_v26 = vadd.f32 %v2399_v6, %v16726_v14  ;;  %vm2645_vm1 = vweird.f32 %v15616_v43 }
 0x598   : > { %v2401_v55 = vpop.f32.mrf.mxu3 }
 0x599   : > { %v2417_v40 = vadd.f32 %v2401_v55, %v2224_v23 }
 0x5a0   : > { %v2404_v49 = vpop.f32.mrf.mxu3 }
 0x5a1   : > { %v2418_v58 = vadd.f32 %v2404_v49, %v16734_v39  ;;  %v1456_v39 = vadd.f32 %v16535_v13, %v1262_v28 }
 0x5a3   : > { %v1649_v9 = vadd.f32 %v16581_v60, %v1456_v39  ;;  %v2641_v60 = vmul.f32 64.0, %v15616_v43 }
 0x5a5   : > { %v1842_v0 = vadd.f32 %v16598_v10, %v1649_v9  ;;  %v14862_v9 = vld [vmem:[%s21899_s7 + $0x34] sm:$0xf] }
 0x5a7   : > { %v2035_v6 = vadd.f32 %v16719_v45, %v1842_v0  ;;  %v14860_v0 = vld [vmem:[%s21899_s7 + $0x24] sm:$0xf] }
 0x5a8   : > { %v2406_v57 = vpop.f32.mrf.mxu3 }
 0x5a9   : > { %v2419_v41 = vadd.f32 %v2406_v57, %v2226_v34  ;;  %v2228_v35 = vadd.f32 %v16750_v56, %v2035_v6 }
 0x5b0   : > { %v2409_v27 = vpop.f32.mrf.mxu3 }
 0x5b1   : > { %v2420_v20 = vadd.f32 %v2409_v27, %v16748_v19  ;;  %v2642_v19 = vsub.f32 1.0, %v2641_v60  ;;  %v14856_v60 = vld [vmem:[%s21899_s7 + $0x4] sm:$0xf] }
 0x5b3   : > { %v2643_v3 = vmul.f32 %v15616_v43, %v2642_v19 }
 0x5b5   : > { %v2644_v52 = vadd.f32 %v15616_v43, %v2643_v3 }
 0x5b8   : > { %v2411_v15 = vpop.f32.mrf.mxu3 }
 0x5c0   : > { %v2587_v42 = vpop.f32.mrf.mxu2 }
 0x5c1   : > { %v2607_v62 = vadd.f32 %v2587_v42, %v2414_v59  ;;  %v2421_v59 = vadd.f32 %v2411_v15, %v2228_v35  ;;  %v11076_v35 = vld [vmem:[%s21899_s7 + $0x18] sm:$0xf0] }
 0x5c3   : > { %v16769_v22 = vadd.f32 %v15613_v18, %v2607_v62 }
 0x5c8   : > { %v2589_v61 = vpop.f32.mrf.mxu2 }
 0x5c9   : > { %v2608_v32 = vadd.f32 %v2589_v61, %v2415_v12 }
 0x5cb   : > { %v16771_v1 = vadd.f32 %v15613_v18, %v2608_v32 }
 0x5cd   : > { %v2627_v50 = vadd.f32 %v16771_v1, %v16769_v22 }
 0x5d0   : > { %v2592_v38 = vpop.f32.mrf.mxu2 }
 0x5d1   : > { %v2609_v33 = vadd.f32 %v2592_v38, %v2416_v26  ;;  %v2646_v26 = vsel %vm2645_vm1, %v15616_v43, %v2644_v52  ;;  %v14858_v43 = vld [vmem:[%s21899_s7 + $0x14] sm:$0xf] }
 0x5d3   : > { %v2621_v46 = vadd.f32 %v15613_v18, %v2609_v33 }
 0x5d5   : > { %v2628_v63 = vadd.f32 %v2627_v50, %v2621_v46 }
 0x5d8   : > { %v2594_v47 = vpop.f32.mrf.mxu2 }
 0x5d9   : > { %v2610_v4 = vadd.f32 %v2594_v47, %v2417_v40 }
 0x5db   : > { %v2622_v14 = vadd.f32 %v15613_v18, %v2610_v4  ;;  %v11116_v4 = vld [vmem:[%s21899_s7 + $0x68] sm:$0xf0] }
 0x5dc   : > { %v11119_v57 = vor.u32 %v14868_v54, %v11116_v4 }
 0x5dd   : > { %v2629_v11 = vadd.f32 %v2628_v63, %v2622_v14 }
 0x5e0   : > { %v2597_v53 = vpop.f32.mrf.mxu2 }
 0x5e1   : > { %v2611_v37 = vadd.f32 %v2597_v53, %v2418_v58  ;;  %v14866_v53 = vld [vmem:[%s21899_s7 + $0x54] sm:$0xf] }
 0x5e3   : > { %v2623_v5 = vadd.f32 %v15613_v18, %v2611_v37 }
 0x5e5   : > { %v2630_v2 = vadd.f32 %v2629_v11, %v2623_v5 }
 0x5e8   : > { %v2599_v31 = vpop.f32.mrf.mxu2 }
 0x5e9   : > { %v2612_v21 = vadd.f32 %v2599_v31, %v2419_v41  ;;  %v14864_v41 = vld [vmem:[%s21899_s7 + $0x44] sm:$0xf]  ;;  %v11100_v31 = vld [vmem:[%s21899_s7 + $0x48] sm:$0xf0] }
 0x5eb   : > { %v2624_v17 = vadd.f32 %v15613_v18, %v2612_v21 }
 0x5ed   : > { %v2631_v8 = vadd.f32 %v2630_v2, %v2624_v17  ;;  %v11111_v2 = vor.u32 %v14866_v53, %v11108_v30 }
 0x5f0   : > { %v2602_v42 = vpop.f32.mrf.mxu2 }
 0x5f1   : > { %v2613_v25 = vadd.f32 %v2602_v42, %v2420_v20 }
 0x5f3   : > { %v2625_v36 = vadd.f32 %v15613_v18, %v2613_v25  ;;  %v11084_v25 = vld [vmem:[%s21899_s7 + $0x28] sm:$0xf0] }
 0x5f4   : > { %v11087_v15 = vor.u32 %v14860_v0, %v11084_v25  ;;  %v11026_v25 = vld [vmem:[%s21899_s7 + $0xb0] sm:$0xf] }
 0x5f5   : > { %v2632_v13 = vadd.f32 %v2631_v8, %v2625_v36  ;;  %v11092_v8 = vld [vmem:[%s21899_s7 + $0x38] sm:$0xf0] }
 0x5f6   : > { %v11095_v42 = vor.u32 %v14862_v9, %v11092_v8  ;;  %v11042_v9 = vld [vmem:[%s21899_s7 + $0xd0] sm:$0xf]  ;;  %v14884_v8 = vld [vmem:[%s21899_s7 + $0xd4] sm:$0xf0] }
 0x5f8   : > { %v2604_v12 = vpop.f32.mrf.mxu2 }
 0x5f9   : > { %v2614_v62 = vadd.f32 %v2604_v12, %v2421_v59  ;;  %v11079_v12 = vor.u32 %v14858_v43, %v11076_v35  ;;  %v14885_v43 = vld [vmem:[%s21899_s7 + $0xe4] sm:$0xf] }
 0x5fb   : > { %v2626_v61 = vadd.f32 %v15613_v18, %v2614_v62  ;;  %v11068_v62 = vld [vmem:[%s21899_s7 + $0x8] sm:$0xf0] }
 0x5fd   : > { %v2633_v51 = vadd.f32 %v2632_v13, %v2626_v61 }
 0x5ff   : > { %v2634_v32 = vrot.slane %v2633_v51, 4 }
 0x601   : > { %v2635_v55 = vadd.f32 %v2634_v32, %v2633_v51  ;;  %v11071_v51 = vor.u32 %v14856_v60, %v11068_v62  ;;  %v14878_v60 = vld [vmem:[%s21899_s7 + $0xa4] sm:$0xf0] }
 0x603   : > { %v2636_v10 = vrot.slane %v2635_v55, 2 }
 0x605   : > { %v2637_v50 = vadd.f32 %v2636_v10, %v2635_v55 }
 0x607   : > { %v2638_v45 = vrot.slane %v2637_v50, 1 }
 0x609   : > { %v2639_v38 = vadd.f32 %v2638_v45, %v2637_v50 }
 0x60b   : > { %v2647_v16 = vmul.f32 %v2646_v26, %v2639_v38 }
 0x60d   : > { %v16797_v56 = vsub.f32 %v16769_v22, %v2647_v16  ;;  %v16800_v33 = vsub.f32 %v16771_v1, %v2647_v16  ;;  %v16802_v18 = vsub.f32 %v2621_v46, %v2647_v16  ;;  %v16804_v29 = vsub.f32 %v2622_v14, %v2647_v16  ;;  %v14870_v22 = vld [vmem:[%s21899_s7 + $0x74] sm:$0xf]  ;;  %v11124_v1 = vld [vmem:[%s21899_s7 + $0x78] sm:$0xf0] }
 0x60e   : > { %v16806_v23 = vsub.f32 %v2623_v5, %v2647_v16  ;;  %v16808_v63 = vsub.f32 %v2624_v17, %v2647_v16  ;;  %v16810_v49 = vsub.f32 %v2625_v36, %v2647_v16  ;;  %v16812_v40 = vsub.f32 %v2626_v61, %v2647_v16 }
 0x60f   : > { %v2656_v46 = vmul.f32 %v16797_v56, %v16797_v56  ;;  %v2657_v47 = vmul.f32 %v16800_v33, %v16800_v33  ;;  %v2658_v48 = vmul.f32 %v16802_v18, %v16802_v18  ;;  %v11127_v44 = vor.u32 %v14870_v22, %v11124_v1 }
 0x610   : > { %v2659_v11 = vmul.f32 %v16804_v29, %v16804_v29  ;;  %v2660_v37 = vmul.f32 %v16806_v23, %v16806_v23  ;;  %v2661_v5 = vmul.f32 %v16808_v63, %v16808_v63  ;;  %v2662_v28 = vmul.f32 %v16810_v49, %v16810_v49 }
 0x611   : > { %v2664_v14 = vadd.f32 %v2657_v47, %v2656_v46  ;;  %3011 = vmatpush.bf16.msra.mxu2 %v11127_v44  ;;  %v2663_v27 = vmul.f32 %v16812_v40, %v16812_v40  ;;  %v11103_v17 = vor.u32 %v14864_v41, %v11100_v31  ;;  %v11058_v41 = vld [vmem:[%s21899_s7 + $0xf0] sm:$0xf]  ;;  %v14888_v31 = vld [vmem:[%s21899_s7 + $0xf4] sm:$0xf0] }
 0x613   : > { %v2665_v58 = vadd.f32 %v2664_v14, %v2658_v48 }
 0x615   : > { %v2666_v7 = vadd.f32 %v2665_v58, %v2659_v11  ;;  %3012 = vmatpush.bf16.msra.mxu2 %v11119_v57 }
 0x617   : > { %v2667_v34 = vadd.f32 %v2666_v7, %v2660_v37 }
 0x619   : > { %v2668_v21 = vadd.f32 %v2667_v34, %v2661_v5  ;;  %3013 = vmatpush.bf16.msra.mxu2 %v11111_v2  ;;  %v14855_v2 = vld [vmem:[%s21898_s6] sm:$0xff] }
 0x61b   : > { %v2669_v39 = vadd.f32 %v2668_v21, %v2662_v28  ;;  %v11059_v28 = vor.u32 %v14888_v31, %v11058_v41  ;;  %v11050_v21 = vld [vmem:[%s21899_s7 + $0xe0] sm:$0xf] }
 0x61c   : > { %v11098_v31 = vld [vmem:[%s21899_s7 + $0x40] sm:$0xf] }
 0x61d   : > { %v2670_v20 = vadd.f32 %v2669_v39, %v2663_v27  ;;  %3014 = vmatpush.bf16.msra.mxu2 %v11103_v17  ;;  %v14886_v27 = vld [vmem:[%s21899_s7 + $0xe4] sm:$0xf0] }
 0x61e   : > { %v11051_v39 = vor.u32 %v14886_v27, %v11050_v21  ;;  %v14872_v17 = vld [vmem:[%s21898_s6 + $0x8] sm:$0xff]  ;;  %v11090_v27 = vld [vmem:[%s21899_s7 + $0x30] sm:$0xf] }
 0x61f   : > { %v2671_v24 = vrot.slane %v2670_v20, 4 }
 0x621   : > { %v2672_v6 = vadd.f32 %v2671_v24, %v2670_v20  ;;  %3015 = vmatpush.bf16.msra.mxu2 %v11095_v42  ;;  %v11043_v20 = vor.u32 %v14884_v8, %v11042_v9  ;;  %v11034_v24 = vld [vmem:[%s21899_s7 + $0xc0] sm:$0xf]  ;;  %v14882_v42 = vld [vmem:[%s21899_s7 + $0xc4] sm:$0xf0] }
 0x622   : > { %v11035_v0 = vor.u32 %v14882_v42, %v11034_v24  ;;  %v11082_v9 = vld [vmem:[%s21899_s7 + $0x20] sm:$0xf]  ;;  %v14861_v8 = vld [vmem:[%s21899_s7 + $0x24] sm:$0xf0] }
 0x623   : > { %v2673_v36 = vrot.slane %v2672_v6, 2  ;;  %v11201_v24 = vld [vmem:[%s21899_s7 + $0x160] sm:$0xf]  ;;  %v14903_v42 = vld [vmem:[%s21899_s7 + $0x164] sm:$0xf0] }
 0x625   : > { %v2674_v13 = vadd.f32 %v2673_v36, %v2672_v6  ;;  %3016 = vmatpush.bf16.msra.mxu2 %v11087_v15  ;;  %v14880_v6 = vld [vmem:[%s21899_s7 + $0xb4] sm:$0xf0]  ;;  %v14887_v36 = vld [vmem:[%s21899_s7 + $0xf4] sm:$0xf]  ;;  %v11060_v15 = vld [vmem:[%s21899_s7 + $0xf8] sm:$0xf0] }
 0x626   : > { %v11063_v35 = vor.u32 %v14887_v36, %v11060_v15  ;;  %v11074_v36 = vld [vmem:[%s21899_s7 + $0x10] sm:$0xf]  ;;  %v14859_v15 = vld [vmem:[%s21899_s7 + $0x14] sm:$0xf0] }
 0x627   : > { %v2675_v59 = vrot.slane %v2674_v13, 1 }
 0x628   : > { %2903 = vmatpush.bf16.msrb.mxu0 %v11063_v35  ;;  %v11075_v35 = vor.u32 %v14859_v15, %v11074_v36  ;;  %v11250_v36 = vld [vmem:[%s21899_s7 + $0x198] sm:$0xf0] }
 0x629   : > { %v2676_v61 = vadd.f32 %v2675_v59, %v2674_v13  ;;  %3017 = vmatpush.bf16.msra.mxu2 %v11079_v12  ;;  %v11052_v13 = vld [vmem:[%s21899_s7 + $0xe8] sm:$0xf0]  ;;  %v11018_v59 = vld [vmem:[%s21899_s7 + $0xa0] sm:$0xf]  ;;  %v11027_v12 = vor.u32 %v14880_v6, %v11026_v25  ;;  %v11193_v25 = vld [vmem:[%s21899_s7 + $0x150] sm:$0xf] }
 0x62a   : > { %v11055_v62 = vor.u32 %v14885_v43, %v11052_v13  ;;  %v14901_v6 = vld [vmem:[%s21899_s7 + $0x154] sm:$0xf0]  ;;  %v11066_v13 = vld [vmem:[%s21899_s7] sm:$0xf] }
 0x62b   : > { %v2677_v19 = vmul.f32 %v2676_v61, %v2646_v26  ;;  %v11122_v61 = vld [vmem:[%s21899_s7 + $0x70] sm:$0xf]  ;;  %v11194_v43 = vor.u32 %v14901_v6, %v11193_v25  ;;  %v14909_v6 = vld [vmem:[%s21899_s7 + $0x194] sm:$0xf] }
 0x62c   : > { %2904 = vmatpush.bf16.msrb.mxu0 %v11055_v62  ;;  %v14899_v62 = vld [vmem:[%s21899_s7 + $0x144] sm:$0xf0]  ;;  %v11253_v15 = vor.u32 %v14909_v6, %v11250_v36  ;;  %v11264_v36 = vld [vmem:[%s21899_s7 + $0x1b0] sm:$0xf] }
 0x62d   : > { %v2678_v32 = vadd.f32 1e-05, %v2677_v19  ;;  %3018 = vmatpush.bf16.msra.mxu2 %v11071_v51  ;;  %v14871_v19 = vld [vmem:[%s21899_s7 + $0x74] sm:$0xf0]  ;;  %v14883_v51 = vld [vmem:[%s21899_s7 + $0xd4] sm:$0xf] }
 0x62f   : > { %15617 = vrsqrt.f32 %v2678_v32  ;;  %vm2685_vm3 = vweird.f32 %v2678_v32 }
 0x635   : > { %v15618_v3 = vpop.eup %15617 }
 0x636   : > { %v2680_v55 = vmul.f32 %v15618_v3, %v2678_v32  ;;  %vm2686_vm2 = vweird.f32 %v15618_v3  ;;  %v11044_v32 = vld [vmem:[%s21899_s7 + $0xd8] sm:$0xf0] }
 0x637   : > { %vm2687_vm4 = vmor %vm2685_vm3, %vm2686_vm2 }
 0x638   : > { %v2681_v10 = vmul.f32 %v15618_v3, %v2680_v55  ;;  %v11114_v55 = vld [vmem:[%s21899_s7 + $0x60] sm:$0xf] }
 0x63a   : > { %v2682_v52 = vmul.f32 0.5, %v2681_v10  ;;  %v14869_v10 = vld [vmem:[%s21899_s7 + $0x64] sm:$0xf0] }
 0x63c   : > { %v2683_v50 = vsub.f32 1.5, %v2682_v52  ;;  %v11115_v52 = vor.u32 %v14869_v10, %v11114_v55  ;;  %v14895_v55 = vld [vmem:[%s21899_s7 + $0x124] sm:$0xf0] }
 0x63e   : > { %v2684_v45 = vmul.f32 %v15618_v3, %v2683_v50  ;;  %v11019_v50 = vor.u32 %v14878_v60, %v11018_v59  ;;  %v14857_v59 = vld [vmem:[%s21899_s7 + $0x4] sm:$0xf0]  ;;  %v11185_v60 = vld [vmem:[%s21899_s7 + $0x140] sm:$0xf] }
 0x640   : > { %v2688_v38 = vsel %vm2687_vm4, %v15618_v3, %v2684_v45  ;;  %v11123_v3 = vor.u32 %v14871_v19, %v11122_v61  ;;  %v11010_v45 = vld [vmem:[%s21899_s7 + $0x90] sm:$0xf]  ;;  %v11186_v61 = vor.u32 %v14899_v62, %v11185_v60 }
 0x641   : > { %v2689_v16 = vmul.f32 %v2688_v38, %v16797_v56  ;;  %v2690_v22 = vmul.f32 %v2688_v38, %v16800_v33  ;;  %v2691_v26 = vmul.f32 %v2688_v38, %v16802_v18  ;;  %v2692_v1 = vmul.f32 %v2688_v38, %v16804_v29  ;;  %v11177_v19 = vld [vmem:[%s21899_s7 + $0x130] sm:$0xf] }
 0x642   : > { %v2693_v46 = vmul.f32 %v2688_v38, %v16806_v23  ;;  %v2694_v47 = vmul.f32 %v2688_v38, %v16808_v63  ;;  %v2695_v54 = vmul.f32 %v2688_v38, %v16810_v49  ;;  %v2696_v4 = vmul.f32 %v2688_v38, %v16812_v40  ;;  %2997 = vmatpush.bf16.msra.mxu1 %v11123_v3  ;;  %v11169_v3 = vld [vmem:[%s21899_s7 + $0x120] sm:$0xf]  ;;  %v14889_v60 = vld [vmem:[%s21898_s6 + $0x10] sm:$0xff] }
 0x643   : > { %vm2697_vm5 = vcmp.ge.f32.partialorder %v2689_v16, 0.0  ;;  %vm2698_vm6 = vcmp.ge.f32.partialorder %v2690_v22, 0.0  ;;  %vm2699_vm7 = vcmp.ge.f32.partialorder %v2691_v26, 0.0  ;;  %vm2700_vm8 = vcmp.ge.f32.partialorder %v2692_v1, 0.0 }
 0x644   : > { %vm2701_vm9 = vcmp.ge.f32.partialorder %v2693_v46, 0.0  ;;  %vm2702_vm10 = vcmp.ge.f32.partialorder %v2694_v47, 0.0  ;;  %vm2703_vm11 = vcmp.ge.f32.partialorder %v2695_v54, 0.0  ;;  %vm2704_vm12 = vcmp.ge.f32.partialorder %v2696_v4, 0.0 }
 0x645   : > { %v2705_v56 = vmul.f32 0.2, %v2689_v16  ;;  %v2706_v33 = vmul.f32 0.2, %v2690_v22  ;;  %v2707_v18 = vmul.f32 0.2, %v2691_v26  ;;  %v11047_v38 = vor.u32 %v14883_v51, %v11044_v32 }
 0x646   : > { %v2708_v29 = vmul.f32 0.2, %v2692_v1  ;;  %v2709_v48 = vmul.f32 0.2, %v2693_v46  ;;  %v2710_v23 = vmul.f32 0.2, %v2694_v47  ;;  %2998 = vmatpush.bf16.msra.mxu1 %v11115_v52  ;;  %v11170_v10 = vor.u32 %v14895_v55, %v11169_v3 }
 0x647   : > { %v2711_v14 = vmul.f32 0.2, %v2695_v54  ;;  %v2712_v63 = vmul.f32 0.2, %v2696_v4  ;;  %v2713_v49 = vsel %vm2697_vm5, %v2689_v16, %v2705_v56  ;;  %v2714_v40 = vsel %vm2698_vm6, %v2690_v22, %v2706_v33  ;;  %v11106_v16 = vld [vmem:[%s21899_s7 + $0x50] sm:$0xf]  ;;  %2905 = vmatpush.bf16.msrb.mxu0 %v11047_v38 }
 0x648   : > { %v2715_v44 = vsel %vm2699_vm7, %v2691_v26, %v2707_v18  ;;  %v2716_v11 = vsel %vm2700_vm8, %v2692_v1, %v2708_v29  ;;  %v2717_v58 = vsel %vm2701_vm9, %v2693_v46, %v2709_v48  ;;  %v2718_v57 = vsel %vm2702_vm10, %v2694_v47, %v2710_v23  ;;  %v14867_v22 = vld [vmem:[%s21899_s7 + $0x54] sm:$0xf0]  ;;  %v14881_v1 = vld [vmem:[%s21899_s7 + $0xc4] sm:$0xf]  ;;  %v11036_v46 = vld [vmem:[%s21899_s7 + $0xc8] sm:$0xf0] }
 0x649   : > { %v2719_v53 = vsel %vm2703_vm11, %v2695_v54, %v2711_v14  ;;  %v2720_v30 = vsel %vm2704_vm12, %v2696_v4, %v2712_v63  ;;  %v16894_v37 = vpack.c.bf16 %v2714_v40, %v2713_v49  ;;  %v16896_v7 = vpack.c.bf16 %v2716_v11, %v2715_v44  ;;  %v14876_v26 = vld [vmem:[%s21899_s7 + $0x94] sm:$0xf0]  ;;  %v11002_v4 = vld [vmem:[%s21899_s7 + $0x80] sm:$0xf]  ;;  %v14874_v33 = vld [vmem:[%s21899_s7 + $0x84] sm:$0xf0] }
 0x64a   : > { %v16898_v5 = vpack.c.bf16 %v2718_v57, %v2717_v58  ;;  %v16900_v34 = vpack.c.bf16 %v2720_v30, %v2719_v53  ;;  %v11107_v47 = vor.u32 %v14867_v22, %v11106_v16  ;;  %v11011_v54 = vor.u32 %v14876_v26, %v11010_v45  ;;  %v14879_v18 = vld [vmem:[%s21899_s7 + $0xb4] sm:$0xf]  ;;  %v11028_v29 = vld [vmem:[%s21899_s7 + $0xb8] sm:$0xf0]  ;;  %v14877_v14 = vld [vmem:[%s21899_s7 + $0xa4] sm:$0xf] }
 0x64b   : > { %v11039_v56 = vor.u32 %v14881_v1, %v11036_v46  ;;  %v11003_v48 = vor.u32 %v14874_v33, %v11002_v4  ;;  %v11031_v23 = vor.u32 %v14879_v18, %v11028_v29  ;;  %v11020_v63 = vld [vmem:[%s21899_s7 + $0xa8] sm:$0xf0]  ;;  %v14875_v40 = vld [vmem:[%s21899_s7 + $0x94] sm:$0xf]  ;;  %v11012_v44 = vld [vmem:[%s21899_s7 + $0x98] sm:$0xf0] }
 0x64c   : > { %2739 = vmatpush.bf16.msrb.mxu3 %v16900_v34  ;;  %3195 = vmatpush.bf16.msrb.mxu2 %v16900_v34  ;;  %v11023_v49 = vor.u32 %v14877_v14, %v11020_v63  ;;  %v11015_v11 = vor.u32 %v14875_v40, %v11012_v44  ;;  %v14873_v58 = vld [vmem:[%s21899_s7 + $0x84] sm:$0xf]  ;;  %v11004_v57 = vld [vmem:[%s21899_s7 + $0x88] sm:$0xf0]  ;;  %v11209_v53 = vld [vmem:[%s21899_s7 + $0x170] sm:$0xf] }
 0x64d   : > { %2999 = vmatpush.bf16.msra.mxu1 %v11107_v47  ;;  %2906 = vmatpush.bf16.msrb.mxu0 %v11039_v56  ;;  %v14905_v30 = vld [vmem:[%s21899_s7 + $0x174] sm:$0xf0]  ;;  %v11161_v52 = vld [vmem:[%s21899_s7 + $0x110] sm:$0xf]  ;;  %v11153_v38 = vld [vmem:[%s21899_s7 + $0x100] sm:$0xf] }
 0x64e   : > { %v11210_v41 = vor.u32 %v14905_v30, %v11209_v53  ;;  %v14897_v51 = vld [vmem:[%s21899_s7 + $0x134] sm:$0xf0]  ;;  %v14891_v16 = vld [vmem:[%s21899_s7 + $0x104] sm:$0xf0]  ;;  %v14921_v47 = vld [vmem:[%s21899_s7 + $0x1f4] sm:$0xf] }
 0x64f   : > { %v11178_v32 = vor.u32 %v14897_v51, %v11177_v19  ;;  %v11154_v22 = vor.u32 %v14891_v16, %v11153_v38  ;;  %v14919_v4 = vld [vmem:[%s21899_s7 + $0x1e4] sm:$0xf]  ;;  %v11290_v33 = vld [vmem:[%s21899_s7 + $0x1e8] sm:$0xf0]  ;;  %v14904_v18 = vld [vmem:[%s21899_s7 + $0x174] sm:$0xf] }
 0x650   : > { %2740 = vmatpush.bf16.msrb.mxu3 %v16898_v5  ;;  %3196 = vmatpush.bf16.msrb.mxu2 %v16898_v5  ;;  %v11293_v29 = vor.u32 %v14919_v4, %v11290_v33  ;;  %v11282_v14 = vld [vmem:[%s21899_s7 + $0x1d8] sm:$0xf0]  ;;  %v11203_v40 = vld [vmem:[%s21899_s7 + $0x168] sm:$0xf0]  ;;  %v14915_v30 = vld [vmem:[%s21899_s7 + $0x1c4] sm:$0xf] }
 0x651   : > { %2907 = vmatpush.bf16.msrb.mxu0 %v11031_v23  ;;  %v11211_v23 = vld [vmem:[%s21899_s7 + $0x178] sm:$0xf0]  ;;  %v14954_v3 = vld [vmem:[%s21899_s7 + $0x2e4] sm:$0xf0]  ;;  %v14894_v55 = vld [vmem:[%s21899_s7 + $0x124] sm:$0xf] }
 0x652   : > { %v11214_v63 = vor.u32 %v14904_v18, %v11211_v23  ;;  %v11195_v53 = vld [vmem:[%s21899_s7 + $0x158] sm:$0xf0]  ;;  %v11446_v4 = vld [vmem:[%s21899_s7 + $0x2c0] sm:$0xf]  ;;  %v14890_v23 = vld [vmem:[%s21899_s7 + $0x104] sm:$0xf] }
 0x653   : > { %v11179_v19 = vld [vmem:[%s21899_s7 + $0x138] sm:$0xf0]  ;;  %v11288_v18 = vld [vmem:[%s21899_s7 + $0x1e0] sm:$0xf]  ;;  %vm4214_vm6 = vcmask 130048  }
 0x654   : > { %2741 = vmatpush.bf16.msrb.mxu3 %v16896_v7  ;;  %3197 = vmatpush.bf16.msrb.mxu2 %v16896_v7 }
 0x655   : > { %2908 = vmatpush.bf16.msrb.mxu0 %v11023_v49  ;;  %v14902_v49 = vld [vmem:[%s21899_s7 + $0x164] sm:$0xf] }
 0x658   : > { %2742 = vmatpush.bf16.msrb.mxu3 %v16894_v37  ;;  %3198 = vmatpush.bf16.msrb.mxu2 %v16894_v37 }
 0x659   : > { %2909 = vmatpush.bf16.msrb.mxu0 %v11015_v11  ;;  %v11206_v11 = vor.u32 %v14902_v49, %v11203_v40  ;;  %v14939_v40 = vld [vmem:[%s21899_s7 + $0x274] sm:$0xf0] }
 0x65b   : > { %10976 = vmatmul.msk.bf16.vlgmr.msrb.gmra.mxu3 %vm1157_vm0, %v14855_v2  ;;  %v11007_v2 = vor.u32 %v14873_v58, %v11004_v57  ;;  %v14900_v57 = vld [vmem:[%s21899_s7 + $0x154] sm:$0xf] }
 0x65c   : > { %2781 = vmatpush.bf16.msra.mxu3 %v16900_v34 }
 0x65d   : > { %2910 = vmatpush.bf16.msrb.mxu0 %v11007_v2  ;;  %v11274_v2 = vld [vmem:[%s21899_s7 + $0x1c8] sm:$0xf0] }
 0x660   : > { %2782 = vmatpush.bf16.msra.mxu3 %v16898_v5 }
 0x661   : > { %3148 = vmatpush.bf16.msra.mxu0 %v11210_v41  ;;  %v11198_v41 = vor.u32 %v14900_v57, %v11195_v53  ;;  %v11280_v53 = vld [vmem:[%s21899_s7 + $0x1d0] sm:$0xf] }
 0x664   : > { %2783 = vmatpush.bf16.msra.mxu3 %v16896_v7 }
 0x668   : > { %2784 = vmatpush.bf16.msra.mxu3 %v16894_v37 }
 0x66b   : > { %10983 = vmatmul.msk.bf16.vlgmr.msra.gmra.mxu3 %vm1157_vm0, %v14872_v17 }
 0x66c   : > { %2889 = vmatpush.bf16.msrb.mxu3 %v11059_v28  ;;  %v14865_v28 = vld [vmem:[%s21899_s7 + $0x44] sm:$0xf0] }
 0x66d   : > { %v11099_v21 = vor.u32 %v14865_v28, %v11098_v31  ;;  %v11277_v31 = vor.u32 %v14915_v30, %v11274_v2  ;;  %v14898_v28 = vld [vmem:[%s21899_s7 + $0x144] sm:$0xf]  ;;  %v14918_v30 = vld [vmem:[%s21899_s7 + $0x1d4] sm:$0xf0] }
 0x66e   : > { %v11281_v2 = vor.u32 %v14918_v30, %v11280_v53 }
 0x66f   : > { %3000 = vmatpush.bf16.msra.mxu1 %v11099_v21  ;;  %v11187_v21 = vld [vmem:[%s21899_s7 + $0x148] sm:$0xf0] }
 0x670   : > { %2890 = vmatpush.bf16.msrb.mxu3 %v11051_v39  ;;  %v14863_v39 = vld [vmem:[%s21899_s7 + $0x34] sm:$0xf0] }
 0x671   : > { %v11091_v17 = vor.u32 %v14863_v39, %v11090_v27  ;;  %v14913_v27 = vld [vmem:[%s21899_s7 + $0x1b4] sm:$0xf]  ;;  %v11266_v39 = vld [vmem:[%s21899_s7 + $0x1b8] sm:$0xf0] }
 0x673   : > { %3001 = vmatpush.bf16.msra.mxu1 %v11091_v17 }
 0x674   : > { %2891 = vmatpush.bf16.msrb.mxu3 %v11043_v20  ;;  %v11083_v20 = vor.u32 %v14861_v8, %v11082_v9  ;;  %v14906_v9 = vld [vmem:[%s21898_s6 + $0x18] sm:$0xff] }
 0x677   : > { %3002 = vmatpush.bf16.msra.mxu1 %v11083_v20  ;;  %v11190_v20 = vor.u32 %v14898_v28, %v11187_v21  ;;  %v11430_v28 = vld [vmem:[%s21899_s7 + $0x2a0] sm:$0xf] }
 0x678   : > { %2892 = vmatpush.bf16.msrb.mxu3 %v11035_v0  ;;  %v11202_v0 = vor.u32 %v14903_v42, %v11201_v24  ;;  %v11269_v24 = vor.u32 %v14913_v27, %v11266_v39  ;;  %v14911_v42 = vld [vmem:[%s21899_s7 + $0x1a4] sm:$0xf]  ;;  %v14946_v27 = vld [vmem:[%s21899_s7 + $0x2a4] sm:$0xf0] }
 0x679   : > { %v11431_v39 = vor.u32 %v14946_v27, %v11430_v28 }
 0x67a   : > { %3149 = vmatpush.bf16.msra.mxu0 %v11202_v0  ;;  %v11258_v0 = vld [vmem:[%s21899_s7 + $0x1a8] sm:$0xf0] }
 0x67b   : > { %3003 = vmatpush.bf16.msra.mxu1 %v11075_v35  ;;  %v11261_v25 = vor.u32 %v14911_v42, %v11258_v0  ;;  %v11242_v35 = vld [vmem:[%s21899_s7 + $0x188] sm:$0xf0]  ;;  %v11422_v42 = vld [vmem:[%s21899_s7 + $0x290] sm:$0xf] }
 0x67c   : > { %2893 = vmatpush.bf16.msrb.mxu3 %v11027_v12  ;;  %v11067_v12 = vor.u32 %v14857_v59, %v11066_v13  ;;  %v11470_v13 = vld [vmem:[%s21899_s7 + $0x2f0] sm:$0xf]  ;;  %v14956_v59 = vld [vmem:[%s21899_s7 + $0x2f4] sm:$0xf0] }
 0x67d   : > { %v11471_v62 = vor.u32 %v14956_v59, %v11470_v13  ;;  %v14933_v13 = vld [vmem:[%s21899_s7 + $0x244] sm:$0xf0]  ;;  %v11414_v59 = vld [vmem:[%s21899_s7 + $0x280] sm:$0xf] }
 0x67e   : > { %3150 = vmatpush.bf16.msra.mxu0 %v11194_v43  ;;  %v14907_v43 = vld [vmem:[%s21899_s7 + $0x184] sm:$0xf] }
 0x67f   : > { %3004 = vmatpush.bf16.msra.mxu1 %v11067_v12  ;;  %v11245_v12 = vor.u32 %v14907_v43, %v11242_v35  ;;  %v11359_v35 = vld [vmem:[%s21899_s7 + $0x240] sm:$0xf] }
 0x680   : > { %2894 = vmatpush.bf16.msrb.mxu3 %v11019_v50  ;;  %v14893_v50 = vld [vmem:[%s21899_s7 + $0x114] sm:$0xf0] }
 0x681   : > { %v11162_v45 = vor.u32 %v14893_v50, %v11161_v52  ;;  %v11171_v52 = vld [vmem:[%s21899_s7 + $0x128] sm:$0xf0]  ;;  %v11454_v50 = vld [vmem:[%s21899_s7 + $0x2d0] sm:$0xf] }
 0x682   : > { %3151 = vmatpush.bf16.msra.mxu0 %v11186_v61  ;;  %v14896_v61 = vld [vmem:[%s21899_s7 + $0x134] sm:$0xf]  ;;  %v11174_v38 = vor.u32 %v14894_v55, %v11171_v52  ;;  %v14910_v52 = vld [vmem:[%s21899_s7 + $0x194] sm:$0xf0] }
 0x683   : > { %3162 = vmatpush.bf16.msrb.mxu1 %v11214_v63  ;;  %v11182_v51 = vor.u32 %v14896_v61, %v11179_v19  ;;  %v11383_v63 = vld [vmem:[%s21899_s7 + $0x270] sm:$0xf]  ;;  %v11256_v61 = vld [vmem:[%s21899_s7 + $0x1a0] sm:$0xf]  ;;  %v14912_v19 = vld [vmem:[%s21899_s7 + $0x1a4] sm:$0xf0] }
 0x684   : > { %2895 = vmatpush.bf16.msrb.mxu3 %v11011_v54  ;;  %v11298_v54 = vld [vmem:[%s21899_s7 + $0x1f8] sm:$0xf0] }
 0x685   : > { %v11301_v56 = vor.u32 %v14921_v47, %v11298_v54  ;;  %v11163_v47 = vld [vmem:[%s21899_s7 + $0x118] sm:$0xf0] }
 0x686   : > { %3152 = vmatpush.bf16.msra.mxu0 %v11178_v32  ;;  %v11462_v32 = vld [vmem:[%s21899_s7 + $0x2e0] sm:$0xf] }
 0x687   : > { %3163 = vmatpush.bf16.msrb.mxu1 %v11206_v11  ;;  %v14948_v11 = vld [vmem:[%s21899_s7 + $0x2b4] sm:$0xf0] }
 0x688   : > { %2896 = vmatpush.bf16.msrb.mxu3 %v11003_v48  ;;  %v14917_v48 = vld [vmem:[%s21899_s7 + $0x1d4] sm:$0xf] }
 0x689   : > { %v11285_v58 = vor.u32 %v14917_v48, %v11282_v14  ;;  %v11155_v14 = vld [vmem:[%s21899_s7 + $0x108] sm:$0xf0] }
 0x68a   : > { %3153 = vmatpush.bf16.msra.mxu0 %v11170_v10  ;;  %v11463_v10 = vor.u32 %v14954_v3, %v11462_v32  ;;  %v11158_v49 = vor.u32 %v14890_v23, %v11155_v14  ;;  %v11351_v32 = vld [vmem:[%s21899_s7 + $0x230] sm:$0xf]  ;;  %v14931_v3 = vld [vmem:[%s21899_s7 + $0x234] sm:$0xf0] }
 0x68b   : > { %3164 = vmatpush.bf16.msrb.mxu1 %v11198_v41  ;;  %v11375_v41 = vld [vmem:[%s21899_s7 + $0x260] sm:$0xf]  ;;  %v11352_v55 = vor.u32 %v14931_v3, %v11351_v32 }
 0x68c   : > { %3040 = vmatpush.bf16.msra.mxu3 %v16900_v34  ;;  %v11549_v3 = vld [vmem:[%s21899_s7 + $0x360] sm:$0xf] }
 0x68e   : > { %3154 = vmatpush.bf16.msra.mxu0 %v11162_v45  ;;  %v14952_v45 = vld [vmem:[%s21899_s7 + $0x2d4] sm:$0xf0] }
 0x68f   : > { %3165 = vmatpush.bf16.msrb.mxu1 %v11190_v20  ;;  %v11455_v16 = vor.u32 %v14952_v45, %v11454_v50  ;;  %v11367_v20 = vld [vmem:[%s21899_s7 + $0x250] sm:$0xf] }
 0x690   : > { %3041 = vmatpush.bf16.msra.mxu3 %v16898_v5 }
 0x692   : > { %3155 = vmatpush.bf16.msra.mxu0 %v11154_v22  ;;  %v11296_v22 = vld [vmem:[%s21899_s7 + $0x1f0] sm:$0xf] }
 0x693   : > { %3166 = vmatpush.bf16.msrb.mxu1 %v11182_v51  ;;  %v11257_v51 = vor.u32 %v14912_v19, %v11256_v61  ;;  %v14973_v61 = vld [vmem:[%s21899_s7 + $0x374] sm:$0xf0] }
 0x694   : > { %3042 = vmatpush.bf16.msra.mxu3 %v16896_v7 }
 0x697   : > { %3167 = vmatpush.bf16.msrb.mxu1 %v11174_v38  ;;  %v11343_v38 = vld [vmem:[%s21899_s7 + $0x220] sm:$0xf] }
 0x698   : > { %3043 = vmatpush.bf16.msra.mxu3 %v16894_v37 }
 0x6de   : > { %v2744_v26 = vpop.f32.mrf.mxu3 }
 0x6e6   : > { %v2746_v1 = vpop.f32.mrf.mxu3 }
 0x6e7   : > { %v2749_v46 = vpack.c.bf16 %v2746_v1, %v2744_v26  ;;  %v14922_v26 = vld [vmem:[%s21899_s7 + $0x1f4] sm:$0xf0] }
 0x6e8   : > { %v11297_v1 = vor.u32 %v14922_v26, %v11296_v22  ;;  %v11240_v26 = vld [vmem:[%s21899_s7 + $0x180] sm:$0xf] }
 0x6e9   : > { %3019 = vmatmul.bf16.vlgmr.msra.gmra.mxu2 %v2749_v46  ;;  %3005 = vmatmul.bf16.vlgmr.msra.gmra.mxu1 %v2749_v46  ;;  %v14892_v46 = vld [vmem:[%s21899_s7 + $0x114] sm:$0xf] }
 0x6ea   : > { %3317 = vmatpush.bf16.msra.mxu2 %v11301_v56  ;;  %v11166_v54 = vor.u32 %v14892_v46, %v11163_v47  ;;  %v14950_v56 = vld [vmem:[%s21899_s7 + $0x2c4] sm:$0xf0]  ;;  %v11335_v47 = vld [vmem:[%s21899_s7 + $0x210] sm:$0xf] }
 0x6eb   : > { %v11447_v33 = vor.u32 %v14950_v56, %v11446_v4 }
 0x6ec   : > { %3168 = vmatpush.bf16.msrb.mxu1 %v11166_v54  ;;  %v14927_v54 = vld [vmem:[%s21899_s7 + $0x214] sm:$0xf0] }
 0x6ed   : > { %v11336_v4 = vor.u32 %v14927_v54, %v11335_v47  ;;  %v14965_v54 = vld [vmem:[%s21899_s7 + $0x334] sm:$0xf0] }
 0x6ee   : > { %v2786_v44 = vpop.f32.mrf.mxu3  ;;  %3318 = vmatpush.bf16.msra.mxu2 %v11293_v29  ;;  %v14920_v29 = vld [vmem:[%s21899_s7 + $0x1e4] sm:$0xf0] }
 0x6ef   : > { %v11289_v48 = vor.u32 %v14920_v29, %v11288_v18  ;;  %v14925_v18 = vld [vmem:[%s21899_s7 + $0x204] sm:$0xf0] }
 0x6f0   : > { %3169 = vmatpush.bf16.msrb.mxu1 %v11158_v49 }
 0x6f2   : > { %3319 = vmatpush.bf16.msra.mxu2 %v11285_v58  ;;  %v11384_v58 = vor.u32 %v14939_v40, %v11383_v63 }
 0x6f4   : > { %3458 = vmatpush.bf16.msra.mxu1 %v11384_v58 }
 0x6f6   : > { %v2788_v17 = vpop.f32.mrf.mxu3  ;;  %3320 = vmatpush.bf16.msra.mxu2 %v11277_v31  ;;  %v14937_v31 = vld [vmem:[%s21899_s7 + $0x264] sm:$0xf0] }
 0x6f7   : > { %v2791_v8 = vpack.c.bf16 %v2788_v17, %v2786_v44  ;;  %v11438_v44 = vld [vmem:[%s21899_s7 + $0x2b0] sm:$0xf]  ;;  %v11376_v21 = vor.u32 %v14937_v31, %v11375_v41  ;;  %v11272_v17 = vld [vmem:[%s21899_s7 + $0x1c0] sm:$0xf]  ;;  %v11385_v41 = vld [vmem:[%s21899_s7 + $0x278] sm:$0xf0] }
 0x6f8   : > { %v11439_v57 = vor.u32 %v14948_v11, %v11438_v44  ;;  %v14936_v31 = vld [vmem:[%s21899_s7 + $0x264] sm:$0xf] }
 0x6f9   : > { %2897 = vmatmul.bf16.vlgmr.msrb.gmra.mxu3 %v2791_v8  ;;  %2911 = vmatmul.bf16.vlgmr.msrb.gmra.mxu0 %v2791_v8 }
 0x6fa   : > { %11221 = vmatmul.msk.bf16.vlgmr.msrb.gmra.mxu2 %vm1157_vm0, %v14906_v9  ;;  %3350 = vmatpush.bf16.msrb.mxu0 %v16900_v34  ;;  %v14916_v9 = vld [vmem:[%s21899_s7 + $0x1c4] sm:$0xf0] }
 0x6fb   : > { %3321 = vmatpush.bf16.msra.mxu2 %v11269_v24  ;;  %3303 = vmatpush.bf16.msrb.mxu3 %v11297_v1  ;;  %v11273_v8 = vor.u32 %v14916_v9, %v11272_v17  ;;  %v14935_v24 = vld [vmem:[%s21899_s7 + $0x254] sm:$0xf0]  ;;  %v14908_v1 = vld [vmem:[%s21899_s7 + $0x184] sm:$0xf0]  ;;  %v11369_v17 = vld [vmem:[%s21899_s7 + $0x258] sm:$0xf0] }
 0x6fc   : > { %3459 = vmatpush.bf16.msra.mxu1 %v11376_v21  ;;  %v11368_v0 = vor.u32 %v14935_v24, %v11367_v20  ;;  %v11241_v46 = vor.u32 %v14908_v1, %v11240_v26  ;;  %v11377_v21 = vld [vmem:[%s21899_s7 + $0x268] sm:$0xf0]  ;;  %v14955_v26 = vld [vmem:[%s21899_s7 + $0x2f4] sm:$0xf]  ;;  %v11472_v1 = vld [vmem:[%s21899_s7 + $0x2f8] sm:$0xf0] }
 0x6fd   : > { %v11380_v27 = vor.u32 %v14936_v31, %v11377_v21  ;;  %v11361_v20 = vld [vmem:[%s21899_s7 + $0x248] sm:$0xf0]  ;;  %v11475_v47 = vor.u32 %v14955_v26, %v11472_v1  ;;  %v11543_v26 = vld [vmem:[%s21899_s7 + $0x358] sm:$0xf0] }
 0x6fe   : > { %3351 = vmatpush.bf16.msrb.mxu0 %v16898_v5 }
 0x6ff   : > { %3322 = vmatpush.bf16.msra.mxu2 %v11261_v25  ;;  %3304 = vmatpush.bf16.msrb.mxu3 %v11289_v48  ;;  %v14944_v25 = vld [vmem:[%s21899_s7 + $0x294] sm:$0xf0] }
 0x700   : > { %v11423_v6 = vor.u32 %v14944_v25, %v11422_v42  ;;  %3460 = vmatpush.bf16.msra.mxu1 %v11368_v0  ;;  %v14923_v42 = vld [vmem:[%s21898_s6 + $0x20] sm:$0xff]  ;;  %v14930_v0 = vld [vmem:[%s21899_s7 + $0x234] sm:$0xf]  ;;  %v11353_v25 = vld [vmem:[%s21899_s7 + $0x238] sm:$0xf0] }
 0x702   : > { %3352 = vmatpush.bf16.msrb.mxu0 %v16896_v7 }
 0x703   : > { %3323 = vmatpush.bf16.msra.mxu2 %v11253_v15  ;;  %3305 = vmatpush.bf16.msrb.mxu3 %v11281_v2  ;;  %v14914_v15 = vld [vmem:[%s21899_s7 + $0x1b4] sm:$0xf0]  ;;  %v14938_v2 = vld [vmem:[%s21899_s7 + $0x274] sm:$0xf] }
 0x704   : > { %v11265_v43 = vor.u32 %v14914_v15, %v11264_v36  ;;  %v11388_v28 = vor.u32 %v14938_v2, %v11385_v41  ;;  %v14928_v36 = vld [vmem:[%s21899_s7 + $0x224] sm:$0xf]  ;;  %v11345_v15 = vld [vmem:[%s21899_s7 + $0x228] sm:$0xf0] }
 0x705   : > { %v14949_v2 = vld [vmem:[%s21899_s7 + $0x2c4] sm:$0xf]  ;;  %v11448_v41 = vld [vmem:[%s21899_s7 + $0x2c8] sm:$0xf0] }
 0x706   : > { %3353 = vmatpush.bf16.msrb.mxu0 %v16894_v37  ;;  %v11451_v21 = vor.u32 %v14949_v2, %v11448_v41 }
 0x707   : > { %3324 = vmatpush.bf16.msra.mxu2 %v11245_v12  ;;  %3306 = vmatpush.bf16.msrb.mxu3 %v11273_v8  ;;  %v11360_v12 = vor.u32 %v14933_v13, %v11359_v35  ;;  %v14932_v8 = vld [vmem:[%s21899_s7 + $0x244] sm:$0xf]  ;;  %v14926_v35 = vld [vmem:[%s21899_s7 + $0x214] sm:$0xf]  ;;  %v11337_v13 = vld [vmem:[%s21899_s7 + $0x218] sm:$0xf0] }
 0x708   : > { %v11364_v24 = vor.u32 %v14932_v8, %v11361_v20  ;;  %v11440_v8 = vld [vmem:[%s21899_s7 + $0x2b8] sm:$0xf0] }
 0x709   : > { %11134 = vmatmul.msk.bf16.vlgmr.msra.gmra.mxu3 %vm1157_vm0, %v14889_v60  ;;  %v14942_v60 = vld [vmem:[%s21899_s7 + $0x284] sm:$0xf0]  ;;  %3461 = vmatpush.bf16.msra.mxu1 %v11360_v12  ;;  %v14924_v12 = vld [vmem:[%s21899_s7 + $0x204] sm:$0xf] }
 0x70b   : > { %3613 = vmatpush.bf16.msrb.mxu2 %v11471_v62  ;;  %3307 = vmatpush.bf16.msrb.mxu3 %v11265_v43  ;;  %v11415_v62 = vor.u32 %v14942_v60, %v11414_v59  ;;  %v11348_v43 = vor.u32 %v14928_v36, %v11345_v15  ;;  %v11340_v59 = vor.u32 %v14926_v35, %v11337_v13  ;;  %v11329_v60 = vld [vmem:[%s21899_s7 + $0x208] sm:$0xf0] }
 0x70c   : > { %v11332_v19 = vor.u32 %v14924_v12, %v11329_v60  ;;  %v14943_v12 = vld [vmem:[%s21899_s7 + $0x294] sm:$0xf]  ;;  %v11424_v60 = vld [vmem:[%s21899_s7 + $0x298] sm:$0xf0] }
 0x70d   : > { %3462 = vmatpush.bf16.msra.mxu1 %v11352_v55  ;;  %v14971_v55 = vld [vmem:[%s21899_s7 + $0x364] sm:$0xf0] }
 0x70f   : > { %3614 = vmatpush.bf16.msrb.mxu2 %v11463_v10  ;;  %3308 = vmatpush.bf16.msrb.mxu3 %v11257_v51  ;;  %v11248_v10 = vld [vmem:[%s21899_s7 + $0x190] sm:$0xf]  ;;  %v14940_v51 = vld [vmem:[%s21898_s6 + $0x28] sm:$0xff] }
 0x710   : > { %v11249_v45 = vor.u32 %v14910_v52, %v11248_v10  ;;  %v11550_v10 = vor.u32 %v14971_v55, %v11549_v3  ;;  %v11541_v52 = vld [vmem:[%s21899_s7 + $0x350] sm:$0xf]  ;;  %v14972_v55 = vld [vmem:[%s21899_s7 + $0x374] sm:$0xf] }
 0x713   : > { %3615 = vmatpush.bf16.msrb.mxu2 %v11455_v16  ;;  %v14929_v16 = vld [vmem:[%s21899_s7 + $0x224] sm:$0xf0]  ;;  %3309 = vmatpush.bf16.msrb.mxu3 %v11249_v45 }
 0x714   : > { %v11344_v22 = vor.u32 %v14929_v16, %v11343_v38  ;;  %v11533_v38 = vld [vmem:[%s21899_s7 + $0x340] sm:$0xf]  ;;  %v14967_v16 = vld [vmem:[%s21899_s7 + $0x344] sm:$0xf0] }
 0x716   : > { %3463 = vmatpush.bf16.msra.mxu1 %v11344_v22  ;;  %v11534_v22 = vor.u32 %v14967_v16, %v11533_v38  ;;  %v14957_v38 = vld [vmem:[%s21898_s6 + $0x30] sm:$0xff] }
 0x717   : > { %3616 = vmatpush.bf16.msrb.mxu2 %v11447_v33  ;;  %3310 = vmatpush.bf16.msrb.mxu3 %v11241_v46  ;;  %v11327_v33 = vld [vmem:[%s21899_s7 + $0x200] sm:$0xf]  ;;  %v11525_v46 = vld [vmem:[%s21899_s7 + $0x330] sm:$0xf] }
 0x718   : > { %v11328_v48 = vor.u32 %v14925_v18, %v11327_v33  ;;  %v14953_v33 = vld [vmem:[%s21899_s7 + $0x2e4] sm:$0xf]  ;;  %v11464_v18 = vld [vmem:[%s21899_s7 + $0x2e8] sm:$0xf0] }
 0x71a   : > { %3464 = vmatpush.bf16.msra.mxu1 %v11336_v4  ;;  %v11526_v4 = vor.u32 %v14965_v54, %v11525_v46  ;;  %v14966_v46 = vld [vmem:[%s21899_s7 + $0x344] sm:$0xf] }
 0x71b   : > { %3617 = vmatpush.bf16.msrb.mxu2 %v11439_v57  ;;  %3472 = vmatpush.bf16.msra.mxu3 %v11388_v28 }
 0x71e   : > { %3465 = vmatpush.bf16.msra.mxu1 %v11328_v48  ;;  %v11517_v48 = vld [vmem:[%s21899_s7 + $0x320] sm:$0xf] }
 0x71f   : > { %3618 = vmatpush.bf16.msrb.mxu2 %v11431_v39  ;;  %v14934_v39 = vld [vmem:[%s21899_s7 + $0x254] sm:$0xf]  ;;  %3473 = vmatpush.bf16.msra.mxu3 %v11380_v27  ;;  %v11501_v27 = vld [vmem:[%s21899_s7 + $0x300] sm:$0xf] }
 0x720   : > { %v11372_v9 = vor.u32 %v14934_v39, %v11369_v17  ;;  %v14959_v39 = vld [vmem:[%s21899_s7 + $0x304] sm:$0xf0] }
 0x721   : > { %v11502_v17 = vor.u32 %v14959_v39, %v11501_v27  ;;  %v14988_v27 = vld [vmem:[%s21899_s7 + $0x3e4] sm:$0xf0]  ;;  %v14987_v39 = vld [vmem:[%s21899_s7 + $0x3e4] sm:$0xf] }
 0x723   : > { %3619 = vmatpush.bf16.msrb.mxu2 %v11423_v6  ;;  %3474 = vmatpush.bf16.msra.mxu3 %v11372_v9  ;;  %v11356_v6 = vor.u32 %v14930_v0, %v11353_v25  ;;  %v14947_v9 = vld [vmem:[%s21899_s7 + $0x2b4] sm:$0xf]  ;;  %v14945_v0 = vld [vmem:[%s21899_s7 + $0x2a4] sm:$0xf]  ;;  %v11432_v25 = vld [vmem:[%s21899_s7 + $0x2a8] sm:$0xf0] }
 0x724   : > { %v11443_v20 = vor.u32 %v14947_v9, %v11440_v8  ;;  %v11435_v15 = vor.u32 %v14945_v0, %v11432_v25  ;;  %v11638_v9 = vld [vmem:[%s21899_s7 + $0x3e8] sm:$0xf0]  ;;  %v11628_v25 = vld [vmem:[%s21899_s7 + $0x3d0] sm:$0xf] }
 0x725   : > { %v11641_v8 = vor.u32 %v14987_v39, %v11638_v9  ;;  %v11731_v9 = vld [vmem:[%s21899_s7 + $0x470] sm:$0xf] }
 0x727   : > { %3620 = vmatpush.bf16.msrb.mxu2 %v11415_v62  ;;  %3475 = vmatpush.bf16.msra.mxu3 %v11364_v24  ;;  %v11557_v62 = vld [vmem:[%s21899_s7 + $0x370] sm:$0xf] }
 0x728   : > { %v11558_v32 = vor.u32 %v14973_v61, %v11557_v62  ;;  %v11427_v62 = vor.u32 %v14943_v12, %v11424_v60  ;;  %v11620_v12 = vld [vmem:[%s21899_s7 + $0x3c0] sm:$0xf]  ;;  %v14984_v60 = vld [vmem:[%s21899_s7 + $0x3c4] sm:$0xf0] }
 0x72b   : > { %3476 = vmatpush.bf16.msra.mxu3 %v11356_v6 }
 0x72f   : > { %3477 = vmatpush.bf16.msra.mxu3 %v11348_v43 }
 0x733   : > { %3478 = vmatpush.bf16.msra.mxu3 %v11340_v59 }
 0x737   : > { %3479 = vmatpush.bf16.msra.mxu3 %v11332_v19 }
 0x766   : > { %v3006_v14 = vpop.f32.mrf.mxu1 }
 0x76c   : > { %v3020_v50 = vpop.f32.mrf.mxu2 }
 0x76e   : > { %v17512_v31 = vpop.f32.mrf.mxu1 }
 0x774   : > { %v17364_v56 = vpop.f32.mrf.mxu2 }
 0x776   : > { %v2912_v29 = vpop.f32.mrf.mxu0 }
 0x777   : > { %v17372_v23 = vadd.f32 %v3020_v50, %v2912_v29  ;;  %v14969_v50 = vld [vmem:[%s21899_s7 + $0x354] sm:$0xf0]  ;;  %v11467_v29 = vor.u32 %v14953_v33, %v11464_v18  ;;  %v11527_v33 = vld [vmem:[%s21899_s7 + $0x338] sm:$0xf0] }
 0x778   : > { %v11542_v45 = vor.u32 %v14969_v50, %v11541_v52 }
 0x77c   : > { %v2898_v63 = vpop.f32.mrf.mxu3 }
 0x77d   : > { %v17374_v49 = vadd.f32 %v3006_v14, %v2898_v63  ;;  %v3200_v40 = vpop.f32.mrf.mxu2  ;;  %v14963_v14 = vld [vmem:[%s21899_s7 + $0x324] sm:$0xf0]  ;;  %v14951_v63 = vld [vmem:[%s21899_s7 + $0x2d4] sm:$0xf] }
 0x77e   : > { %v17514_v28 = vpop.f32.mrf.mxu0 }
 0x784   : > { %v17376_v44 = vpop.f32.mrf.mxu3 }
 0x785   : > { %v3202_v11 = vpop.f32.mrf.mxu2 }
 0x786   : > { %v3205_v58 = vpack.c.bf16 %v3202_v11, %v3200_v40  ;;  %v11518_v40 = vor.u32 %v14963_v14, %v11517_v48  ;;  %v11456_v11 = vld [vmem:[%s21899_s7 + $0x2d8] sm:$0xf0]  ;;  %v11519_v48 = vld [vmem:[%s21899_s7 + $0x328] sm:$0xf0] }
 0x788   : > { %3325 = vmatmul.bf16.vlgmr.msra.gmra.mxu2 %v3205_v58  ;;  %3311 = vmatmul.bf16.vlgmr.msrb.gmra.mxu3 %v3205_v58  ;;  %v11509_v58 = vld [vmem:[%s21899_s7 + $0x310] sm:$0xf] }
 0x789   : > { %3815 = vmatpush.bf16.msra.mxu2 %v16900_v34  ;;  %3768 = vmatpush.bf16.msrb.mxu3 %v11558_v32 }
 0x78c   : > { %v3045_v57 = vpop.f32.mrf.mxu3 }
 0x78d   : > { %3816 = vmatpush.bf16.msra.mxu2 %v16898_v5  ;;  %3769 = vmatpush.bf16.msrb.mxu3 %v11550_v10  ;;  %v11559_v10 = vld [vmem:[%s21899_s7 + $0x378] sm:$0xf0] }
 0x78e   : > { %v11562_v52 = vor.u32 %v14972_v55, %v11559_v10  ;;  %v14981_v55 = vld [vmem:[%s21899_s7 + $0x3b4] sm:$0xf] }
 0x791   : > { %3817 = vmatpush.bf16.msra.mxu2 %v16896_v7  ;;  %3770 = vmatpush.bf16.msrb.mxu3 %v11542_v45 }
 0x794   : > { %v3047_v53 = vpop.f32.mrf.mxu3 }
 0x795   : > { %3818 = vmatpush.bf16.msra.mxu2 %v16894_v37  ;;  %v3050_v30 = vpack.c.bf16 %v3047_v53, %v3045_v57  ;;  %3771 = vmatpush.bf16.msrb.mxu3 %v11534_v22  ;;  %v14961_v57 = vld [vmem:[%s21899_s7 + $0x314] sm:$0xf0]  ;;  %v11459_v53 = vor.u32 %v14951_v63, %v11456_v11  ;;  %v14968_v22 = vld [vmem:[%s21899_s7 + $0x354] sm:$0xf]  ;;  %v11644_v63 = vld [vmem:[%s21899_s7 + $0x3f0] sm:$0xf] }
 0x796   : > { %v11546_v1 = vor.u32 %v14968_v22, %v11543_v26  ;;  %v14989_v11 = vld [vmem:[%s21899_s7 + $0x3f4] sm:$0xf]  ;;  %v11596_v22 = vld [vmem:[%s21899_s7 + $0x390] sm:$0xf]  ;;  %v14978_v26 = vld [vmem:[%s21899_s7 + $0x394] sm:$0xf0] }
 0x797   : > { %3156 = vmatmul.bf16.vlgmr.msra.gmra.mxu0 %v3050_v30  ;;  %3170 = vmatmul.bf16.vlgmr.msrb.gmra.mxu1 %v3050_v30  ;;  %v11510_v30 = vor.u32 %v14961_v57, %v11509_v58  ;;  %v11646_v57 = vld [vmem:[%s21899_s7 + $0x3f8] sm:$0xf0] }
 0x798   : > { %3505 = vmatpush.bf16.msra.mxu0 %v16900_v34  ;;  %3660 = vmatpush.bf16.msrb.mxu1 %v16900_v34  ;;  %v11649_v2 = vor.u32 %v14989_v11, %v11646_v57 }
 0x799   : > { %3772 = vmatpush.bf16.msrb.mxu3 %v11526_v4  ;;  %v14964_v4 = vld [vmem:[%s21899_s7 + $0x334] sm:$0xf] }
 0x79a   : > { %v11530_v18 = vor.u32 %v14964_v4, %v11527_v33  ;;  %v11597_v33 = vor.u32 %v14978_v26, %v11596_v22  ;;  %v14997_v22 = vld [vmem:[%s21899_s7 + $0x424] sm:$0xf0]  ;;  %v14996_v26 = vld [vmem:[%s21899_s7 + $0x424] sm:$0xf] }
 0x79c   : > { %3506 = vmatpush.bf16.msra.mxu0 %v16898_v5  ;;  %3661 = vmatpush.bf16.msrb.mxu1 %v16898_v5 }
 0x79d   : > { %3773 = vmatpush.bf16.msrb.mxu3 %v11518_v40  ;;  %v14990_v40 = vld [vmem:[%s21899_s7 + $0x3f4] sm:$0xf0] }
 0x79e   : > { %v11645_v58 = vor.u32 %v14990_v40, %v11644_v63  ;;  %v11590_v40 = vld [vmem:[%s21899_s7 + $0x388] sm:$0xf0] }
 0x7a0   : > { %3507 = vmatpush.bf16.msra.mxu0 %v16896_v7  ;;  %3662 = vmatpush.bf16.msrb.mxu1 %v16896_v7 }
 0x7a1   : > { %3774 = vmatpush.bf16.msrb.mxu3 %v11510_v30  ;;  %v11511_v30 = vld [vmem:[%s21899_s7 + $0x318] sm:$0xf0] }
 0x7a4   : > { %3508 = vmatpush.bf16.msra.mxu0 %v16894_v37  ;;  %3663 = vmatpush.bf16.msrb.mxu1 %v16894_v37 }
 0x7a5   : > { %3775 = vmatpush.bf16.msrb.mxu3 %v11502_v17 }
 0x7a7   : > { %11308 = vmatmul.msk.bf16.vlgmr.msrb.gmra.mxu0 %vm1157_vm0, %v14923_v42 }
 0x7a8   : > { %3627 = vmatpush.bf16.msrb.mxu0 %v11475_v47  ;;  %v11535_v47 = vld [vmem:[%s21899_s7 + $0x348] sm:$0xf0] }
 0x7a9   : > { %v11538_v54 = vor.u32 %v14966_v46, %v11535_v47  ;;  %v14977_v47 = vld [vmem:[%s21899_s7 + $0x394] sm:$0xf] }
 0x7ac   : > { %3628 = vmatpush.bf16.msrb.mxu0 %v11467_v29  ;;  %v14962_v29 = vld [vmem:[%s21899_s7 + $0x324] sm:$0xf] }
 0x7ad   : > { %v11522_v14 = vor.u32 %v14962_v29, %v11519_v48  ;;  %v14976_v29 = vld [vmem:[%s21899_s7 + $0x384] sm:$0xf0]  ;;  %v14975_v48 = vld [vmem:[%s21899_s7 + $0x384] sm:$0xf] }
 0x7ae   : > { %v11593_v11 = vor.u32 %v14975_v48, %v11590_v40  ;;  %v11685_v48 = vld [vmem:[%s21899_s7 + $0x418] sm:$0xf0]  ;;  %v11675_v40 = vld [vmem:[%s21899_s7 + $0x400] sm:$0xf] }
 0x7b0   : > { %3629 = vmatpush.bf16.msrb.mxu0 %v11459_v53  ;;  %v14960_v53 = vld [vmem:[%s21899_s7 + $0x314] sm:$0xf] }
 0x7b1   : > { %v11514_v41 = vor.u32 %v14960_v53, %v11511_v30 }
 0x7b4   : > { %3630 = vmatpush.bf16.msrb.mxu0 %v11451_v21  ;;  %v11636_v21 = vld [vmem:[%s21899_s7 + $0x3e0] sm:$0xf] }
 0x7b5   : > { %v11637_v17 = vor.u32 %v14988_v27, %v11636_v21  ;;  %v14991_v27 = vld [vmem:[%s21898_s6 + $0x40] sm:$0xff] }
 0x7b7   : > { %11395 = vmatmul.msk.bf16.vlgmr.msra.gmra.mxu0 %vm1157_vm0, %v14940_v51 }
 0x7b8   : > { %3631 = vmatpush.bf16.msrb.mxu0 %v11443_v20  ;;  %v14958_v20 = vld [vmem:[%s21899_s7 + $0x304] sm:$0xf] }
 0x7bc   : > { %3632 = vmatpush.bf16.msrb.mxu0 %v11435_v15 }
 0x7c0   : > { %3633 = vmatpush.bf16.msrb.mxu0 %v11427_v62  ;;  %v14983_v62 = vld [vmem:[%s21899_s7 + $0x3c4] sm:$0xf] }
 0x80b   : > { %v3312_v24 = vpop.f32.mrf.mxu3  ;;  %v3326_v42 = vpop.f32.mrf.mxu2 }
 0x814   : > { %v3157_v6 = vpop.f32.mrf.mxu0  ;;  %v3171_v36 = vpop.f32.mrf.mxu1 }
 0x815   : > { %v3176_v43 = vadd.f32 %v3157_v6, %v17374_v49  ;;  %v3177_v35 = vadd.f32 %v3171_v36, %v17372_v23  ;;  %v14941_v49 = vld [vmem:[%s21899_s7 + $0x284] sm:$0xf]  ;;  %v11416_v23 = vld [vmem:[%s21899_s7 + $0x288] sm:$0xf0]  ;;  %v14986_v6 = vld [vmem:[%s21899_s7 + $0x3d4] sm:$0xf0] }
 0x816   : > { %v11419_v19 = vor.u32 %v14941_v49, %v11416_v23  ;;  %v14985_v36 = vld [vmem:[%s21899_s7 + $0x3d4] sm:$0xf]  ;;  %v11629_v15 = vor.u32 %v14986_v6, %v11628_v25  ;;  %v17661_v49 = vpop.f32.mrf.mxu3  ;;  %v11621_v23 = vor.u32 %v14984_v60, %v11620_v12  ;;  %v11723_v6 = vld [vmem:[%s21899_s7 + $0x460] sm:$0xf]  ;;  %v11715_v60 = vld [vmem:[%s21899_s7 + $0x450] sm:$0xf] }
 0x817   : > { %v17536_v13 = vadd.f32 %v3312_v24, %v3176_v43  ;;  %v17538_v59 = vadd.f32 %v3326_v42, %v3177_v35  ;;  %v11503_v24 = vld [vmem:[%s21899_s7 + $0x308] sm:$0xf0]  ;;  %v11630_v43 = vld [vmem:[%s21899_s7 + $0x3d8] sm:$0xf0] }
 0x818   : > { %3634 = vmatpush.bf16.msrb.mxu0 %v11419_v19  ;;  %v11506_v0 = vor.u32 %v14958_v20, %v11503_v24  ;;  %v11633_v35 = vor.u32 %v14985_v36, %v11630_v43  ;;  %v11622_v19 = vld [vmem:[%s21899_s7 + $0x3c8] sm:$0xf0]  ;;  %v15006_v20 = vld [vmem:[%s21899_s7 + $0x474] sm:$0xf]  ;;  %v15005_v36 = vld [vmem:[%s21899_s7 + $0x464] sm:$0xf0] }
 0x819   : > { %v11724_v43 = vor.u32 %v15005_v36, %v11723_v6  ;;  %v3009_v36 = vadd.f32 %v17512_v31, %v17376_v44 }
 0x81c   : > { %v17552_v61 = vpop.f32.mrf.mxu0  ;;  %3923 = vmatpush.bf16.msra.mxu0 %v11645_v58  ;;  %v17638_v42 = vpop.f32.mrf.mxu1 }
 0x820   : > { %3924 = vmatpush.bf16.msra.mxu0 %v11637_v17 }
 0x824   : > { %v3355_v51 = vpop.f32.mrf.mxu0  ;;  %3925 = vmatpush.bf16.msra.mxu0 %v11629_v15  ;;  %v15004_v15 = vld [vmem:[%s21899_s7 + $0x464] sm:$0xf] }
 0x828   : > { %3926 = vmatpush.bf16.msra.mxu0 %v11621_v23  ;;  %v15002_v23 = vld [vmem:[%s21899_s7 + $0x454] sm:$0xf] }
 0x82c   : > { %v3357_v32 = vpop.f32.mrf.mxu0 }
 0x82d   : > { %v3360_v3 = vpack.c.bf16 %v3357_v32, %v3355_v51  ;;  %v11625_v51 = vor.u32 %v14983_v62, %v11622_v19  ;;  %v11612_v32 = vld [vmem:[%s21899_s7 + $0x3b0] sm:$0xf]  ;;  %v15003_v62 = vld [vmem:[%s21899_s7 + $0x454] sm:$0xf0] }
 0x82e   : > { %v11716_v19 = vor.u32 %v15003_v62, %v11715_v60 }
 0x82f   : > { %3466 = vmatmul.bf16.vlgmr.msra.gmra.mxu1 %v3360_v3  ;;  %3480 = vmatmul.bf16.vlgmr.msra.gmra.mxu3 %v3360_v3  ;;  %v14982_v3 = vld [vmem:[%s21899_s7 + $0x3b4] sm:$0xf0] }
 0x830   : > { %3970 = vmatpush.bf16.msra.mxu3 %v16900_v34  ;;  %3782 = vmatpush.bf16.msra.mxu1 %v11562_v52  ;;  %v14974_v34 = vld [vmem:[%s21898_s6 + $0x38] sm:$0xff]  ;;  %v11613_v52 = vor.u32 %v14982_v3, %v11612_v32  ;;  %v11707_v3 = vld [vmem:[%s21899_s7 + $0x440] sm:$0xf] }
 0x832   : > { %3927 = vmatpush.bf16.msra.mxu0 %v11613_v52 }
 0x834   : > { %3971 = vmatpush.bf16.msra.mxu3 %v16898_v5  ;;  %v3510_v50 = vpop.f32.mrf.mxu0 }
 0x838   : > { %3972 = vmatpush.bf16.msra.mxu3 %v16896_v7  ;;  %v11551_v7 = vld [vmem:[%s21899_s7 + $0x368] sm:$0xf0] }
 0x83c   : > { %3973 = vmatpush.bf16.msra.mxu3 %v16894_v37  ;;  %v3512_v45 = vpop.f32.mrf.mxu0  ;;  %v14970_v37 = vld [vmem:[%s21899_s7 + $0x364] sm:$0xf] }
 0x83d   : > { %v3515_v16 = vpack.c.bf16 %v3512_v45, %v3510_v50  ;;  %v11554_v5 = vor.u32 %v14970_v37, %v11551_v7  ;;  %v11614_v50 = vld [vmem:[%s21899_s7 + $0x3b8] sm:$0xf0]  ;;  %v14979_v37 = vld [vmem:[%s21899_s7 + $0x3a4] sm:$0xf] }
 0x83f   : > { %3621 = vmatmul.bf16.vlgmr.msrb.gmra.mxu2 %v3515_v16  ;;  %3635 = vmatmul.bf16.vlgmr.msrb.gmra.mxu0 %v3515_v16  ;;  %v11604_v16 = vld [vmem:[%s21899_s7 + $0x3a0] sm:$0xf] }
 0x840   : > { %11482 = vmatmul.msk.bf16.vlgmr.msrb.gmra.mxu1 %vm1157_vm0, %v14957_v38  ;;  %3937 = vmatpush.bf16.msrb.mxu2 %v11649_v2  ;;  %v11617_v38 = vor.u32 %v14981_v55, %v11614_v50  ;;  %v15001_v55 = vld [vmem:[%s21899_s7 + $0x444] sm:$0xf0]  ;;  %v11709_v50 = vld [vmem:[%s21899_s7 + $0x448] sm:$0xf0] }
 0x841   : > { %3783 = vmatpush.bf16.msra.mxu1 %v11554_v5  ;;  %v11708_v52 = vor.u32 %v15001_v55, %v11707_v3 }
 0x844   : > { %3938 = vmatpush.bf16.msrb.mxu2 %v11641_v8  ;;  %v15007_v8 = vld [vmem:[%s21899_s7 + $0x474] sm:$0xf0] }
 0x845   : > { %3784 = vmatpush.bf16.msra.mxu1 %v11546_v1  ;;  %v11732_v24 = vor.u32 %v15007_v8, %v11731_v9 }
 0x848   : > { %3939 = vmatpush.bf16.msrb.mxu2 %v11633_v35  ;;  %v11725_v35 = vld [vmem:[%s21899_s7 + $0x468] sm:$0xf0] }
 0x849   : > { %3785 = vmatpush.bf16.msra.mxu1 %v11538_v54  ;;  %v11598_v54 = vld [vmem:[%s21899_s7 + $0x398] sm:$0xf0]  ;;  %v11728_v12 = vor.u32 %v15004_v15, %v11725_v35  ;;  %v3023_v35 = vadd.f32 %v17364_v56, %v17514_v28 }
 0x84b   : > { %v3179_v60 = vadd.f32 %v17638_v42, %v3023_v35 }
 0x84c   : > { %3940 = vmatpush.bf16.msrb.mxu2 %v11625_v51  ;;  %v11717_v51 = vld [vmem:[%s21899_s7 + $0x458] sm:$0xf0] }
 0x84d   : > { %3786 = vmatpush.bf16.msra.mxu1 %v11530_v18  ;;  %v11601_v18 = vor.u32 %v14977_v47, %v11598_v54  ;;  %v11720_v32 = vor.u32 %v15002_v23, %v11717_v51  ;;  %v11693_v47 = vld [vmem:[%s21899_s7 + $0x428] sm:$0xf0] }
 0x84e   : > { %v11696_v54 = vor.u32 %v14996_v26, %v11693_v47 }
 0x84f   : > { %11569 = vmatmul.msk.bf16.vlgmr.msra.gmra.mxu2 %vm1157_vm0, %v14974_v34  ;;  %v14980_v34 = vld [vmem:[%s21899_s7 + $0x3a4] sm:$0xf0] }
 0x850   : > { %3941 = vmatpush.bf16.msrb.mxu2 %v11617_v38  ;;  %v11605_v5 = vor.u32 %v14980_v34, %v11604_v16  ;;  %v11699_v38 = vld [vmem:[%s21899_s7 + $0x430] sm:$0xf]  ;;  %v14999_v16 = vld [vmem:[%s21899_s7 + $0x434] sm:$0xf0]  ;;  %v14998_v34 = vld [vmem:[%s21899_s7 + $0x434] sm:$0xf] }
 0x851   : > { %3787 = vmatpush.bf16.msra.mxu1 %v11522_v14  ;;  %v17717_v14 = vpop.f32.mrf.mxu2 }
 0x852   : > { %3928 = vmatpush.bf16.msra.mxu0 %v11605_v5  ;;  %v3334_v44 = vadd.f32 %v17717_v14, %v3179_v60 }
 0x855   : > { %3788 = vmatpush.bf16.msra.mxu1 %v11514_v41 }
 0x856   : > { %3929 = vmatpush.bf16.msra.mxu0 %v11597_v33  ;;  %v11683_v33 = vld [vmem:[%s21899_s7 + $0x410] sm:$0xf] }
 0x859   : > { %3789 = vmatpush.bf16.msra.mxu1 %v11506_v0  ;;  %v11733_v0 = vld [vmem:[%s21899_s7 + $0x478] sm:$0xf0] }
 0x85a   : > { %v11736_v25 = vor.u32 %v15006_v20, %v11733_v0 }
 0x85d   : > { %4078 = vmatpush.bf16.msrb.mxu1 %v11732_v24 }
 0x861   : > { %4079 = vmatpush.bf16.msrb.mxu1 %v11724_v43  ;;  %v3178_v43 = vadd.f32 %v17552_v61, %v3009_v36  ;;  %v4110_v61 = vld [vmem:[%s21900_s8] sm:$0x3] }
 0x862   : > { %v4113_v26 = vperm.slane %v4110_v61, 1 }
 0x865   : > { %4080 = vmatpush.bf16.msrb.mxu1 %v11716_v19 }
 0x869   : > { %4081 = vmatpush.bf16.msrb.mxu1 %v11708_v52  ;;  %v4112_v52 = vperm.slane %v4110_v61, 0 }
 0x8ac   : > { %v3467_v10 = vpop.f32.mrf.mxu1 }
 0x8ad   : > { %v3486_v45 = vadd.f32 %v3467_v10, %v17536_v13  ;;  %v11606_v13 = vld [vmem:[%s21899_s7 + $0x3a8] sm:$0xf0]  ;;  %v15000_v10 = vld [vmem:[%s21899_s7 + $0x444] sm:$0xf] }
 0x8ae   : > { %v11609_v46 = vor.u32 %v14979_v37, %v11606_v13  ;;  %v11700_v37 = vor.u32 %v14999_v16, %v11699_v38  ;;  %v11691_v13 = vld [vmem:[%s21899_s7 + $0x420] sm:$0xf] }
 0x8b0   : > { %3942 = vmatpush.bf16.msrb.mxu2 %v11609_v46  ;;  %4082 = vmatpush.bf16.msrb.mxu1 %v11700_v37  ;;  %v11692_v46 = vor.u32 %v14997_v22, %v11691_v13 }
 0x8b2   : > { %v3481_v7 = vpop.f32.mrf.mxu3 }
 0x8b3   : > { %v17698_v1 = vadd.f32 %v3481_v7, %v17538_v59  ;;  %v11588_v59 = vld [vmem:[%s21899_s7 + $0x380] sm:$0xf]  ;;  %v11701_v7 = vld [vmem:[%s21899_s7 + $0x438] sm:$0xf0] }
 0x8b4   : > { %v17706_v4 = vpop.f32.mrf.mxu1  ;;  %3943 = vmatpush.bf16.msrb.mxu2 %v11601_v18  ;;  %v11589_v63 = vor.u32 %v14976_v29, %v11588_v59  ;;  %v11704_v5 = vor.u32 %v14998_v34, %v11701_v7  ;;  %v14995_v18 = vld [vmem:[%s21899_s7 + $0x414] sm:$0xf0]  ;;  %v14994_v59 = vld [vmem:[%s21899_s7 + $0x414] sm:$0xf]  ;;  %4083 = vmatpush.bf16.msrb.mxu1 %v11692_v46 }
 0x8b5   : > { %v11684_v29 = vor.u32 %v14995_v18, %v11683_v33 }
 0x8b6   : > { %3930 = vmatpush.bf16.msra.mxu0 %v11589_v63  ;;  %v11688_v63 = vor.u32 %v14994_v59, %v11685_v48 }
 0x8b8   : > { %3944 = vmatpush.bf16.msrb.mxu2 %v11593_v11  ;;  %4084 = vmatpush.bf16.msrb.mxu1 %v11684_v29  ;;  %v14993_v11 = vld [vmem:[%s21899_s7 + $0x404] sm:$0xf0] }
 0x8bc   : > { %v3636_v24 = vpop.f32.mrf.mxu0 }
 0x8bd   : > { %v3665_v58 = vpop.f32.mrf.mxu1  ;;  %v3642_v42 = vadd.f32 %v3636_v24, %v17698_v1 }
 0x8c2   : > { %v3622_v57 = vpop.f32.mrf.mxu2 }
 0x8c3   : > { %v17722_v53 = vadd.f32 %v3622_v57, %v3486_v45  ;;  %v11712_v45 = vor.u32 %v15000_v10, %v11709_v50  ;;  %v11676_v57 = vor.u32 %v14993_v11, %v11675_v40 }
 0x8c5   : > { %v3667_v30 = vpop.f32.mrf.mxu1  ;;  %4085 = vmatpush.bf16.msrb.mxu1 %v11676_v57 }
 0x8c6   : > { %v3670_v2 = vpack.c.bf16 %v3667_v30, %v3665_v58  ;;  %v14992_v58 = vld [vmem:[%s21899_s7 + $0x404] sm:$0xf]  ;;  %v11677_v30 = vld [vmem:[%s21899_s7 + $0x408] sm:$0xf0] }
 0x8c8   : > { %3776 = vmatmul.bf16.vlgmr.msrb.gmra.mxu3 %v3670_v2  ;;  %3790 = vmatmul.bf16.vlgmr.msra.gmra.mxu1 %v3670_v2  ;;  %v3483_v2 = vpop.f32.mrf.mxu3 }
 0x8c9   : > { %4092 = vmatpush.bf16.msrb.mxu3 %v11736_v25  ;;  %v3638_v25 = vpop.f32.mrf.mxu0 }
 0x8ca   : > { %v17724_v41 = vpop.f32.mrf.mxu2 }
 0x8cd   : > { %4093 = vmatpush.bf16.msrb.mxu3 %v11728_v12  ;;  %v15642_v12 = vmov 16.0  }
 0x8ce   : > { %15619 = vrcp.f32 %v15642_v12 }
 0x8d1   : > { %4094 = vmatpush.bf16.msrb.mxu3 %v11720_v32  ;;  %v3489_v32 = vadd.f32 %v3483_v2, %v3334_v44 }
 0x8d2   : > { %v3820_v21 = vpop.f32.mrf.mxu2 }
 0x8d4   : > { %v15620_v56 = vpop.eup %15619 }
 0x8d5   : > { %4095 = vmatpush.bf16.msrb.mxu3 %v11712_v45  ;;  %v4135_v50 = vmul.f32 16.0, %v15620_v56  ;;  %vm4139_vm13 = vweird.f32 %v15620_v56 }
 0x8d8   : > { %11656 = vmatmul.msk.bf16.vlgmr.msra.gmra.mxu3 %vm1157_vm0, %v14991_v27 }
 0x8d9   : > { %4096 = vmatpush.bf16.msrb.mxu3 %v11704_v5  ;;  %v4136_v5 = vsub.f32 1.0, %v4135_v50 }
 0x8da   : > { %v3822_v39 = vpop.f32.mrf.mxu2 }
 0x8db   : > { %v3825_v17 = vpack.c.bf16 %v3822_v39, %v3820_v21  ;;  %v11680_v21 = vor.u32 %v14992_v58, %v11677_v30  ;;  %v4137_v33 = vmul.f32 %v15620_v56, %v4136_v5  ;;  %v15132_v5 = vld [vmem:[%s21902_s10 + $0x3cc] sm:$0xf0] }
 0x8dd   : > { %3931 = vmatmul.bf16.vlgmr.msra.gmra.mxu0 %v3825_v17  ;;  %3945 = vmatmul.bf16.vlgmr.msrb.gmra.mxu2 %v3825_v17  ;;  %v4138_v40 = vadd.f32 %v15620_v56, %v4137_v33 }
 0x8de   : > { %4097 = vmatpush.bf16.msrb.mxu3 %v11696_v54 }
 0x8df   : > { %v17841_v2 = vsel %vm4139_vm13, %v15620_v56, %v4138_v40 }
 0x8e0   : > { %21910 = vst [vmem:[#allocation3_spill] sm:$0xff] %v17841_v2 }
 0x8e2   : > { %4098 = vmatpush.bf16.msrb.mxu3 %v11688_v63 }
 0x8e6   : > { %4099 = vmatpush.bf16.msrb.mxu3 %v11680_v21 }
 0x945   : > { %v3791_v0 = vpop.f32.mrf.mxu1 }
 0x946   : > { %v3797_v45 = vadd.f32 %v3791_v0, %v3642_v42 }
 0x94b   : > { %v3777_v27 = vpop.f32.mrf.mxu3 }
 0x94c   : > { %v3796_v39 = vadd.f32 %v3777_v27, %v17722_v53  ;;  %v3333_v53 = vadd.f32 %v17661_v49, %v3178_v43 }
 0x94d   : > { %v3793_v6 = vpop.f32.mrf.mxu1 }
 0x94e   : > { %v3488_v19 = vadd.f32 %v17706_v4, %v3333_v53 }
 0x950   : > { %v3643_v51 = vadd.f32 %v17724_v41, %v3488_v19  ;;  %v3644_v41 = vadd.f32 %v3638_v25, %v3489_v32 }
 0x952   : > { %v3799_v16 = vadd.f32 %v3793_v6, %v3644_v41 }
 0x953   : > { %v3779_v17 = vpop.f32.mrf.mxu3 }
 0x954   : > { %v3798_v28 = vadd.f32 %v3779_v17, %v3643_v51 }
 0x95a   : > { %v3932_v15 = vpop.f32.mrf.mxu0 }
 0x95b   : > { %v3975_v9 = vpop.f32.mrf.mxu3  ;;  %v3951_v49 = vadd.f32 %v3932_v15, %v3796_v39 }
 0x960   : > { %v3946_v62 = vpop.f32.mrf.mxu2 }
 0x961   : > { %v3952_v34 = vadd.f32 %v3946_v62, %v3797_v45 }
 0x962   : > { %v3934_v31 = vpop.f32.mrf.mxu0 }
 0x963   : > { %v3977_v8 = vpop.f32.mrf.mxu3  ;;  %v3953_v55 = vadd.f32 %v3934_v31, %v3798_v28 }
 0x964   : > { %v3980_v20 = vpack.c.bf16 %v3977_v8, %v3975_v9 }
 0x966   : > { %4086 = vmatmul.bf16.vlgmr.msrb.gmra.mxu1 %v3980_v20  ;;  %4100 = vmatmul.bf16.vlgmr.msrb.gmra.mxu3 %v3980_v20 }
 0x968   : > { %v3948_v38 = vpop.f32.mrf.mxu2 }
 0x969   : > { %v3954_v13 = vadd.f32 %v3948_v38, %v3799_v16  ;;  %v15136_v38 = vld [vmem:[%s21902_s10 + $0x3ec] sm:$0xf0] }
 0x9e3   : > { %v4087_v23 = vpop.f32.mrf.mxu1 }
 0x9e4   : > { %v4106_v10 = vadd.f32 %v4087_v23, %v3951_v49 }
 0x9e6   : > { %v4116_v37 = vadd.f32 %v4112_v52, %v4106_v10 }
 0x9e9   : > { %v4101_v3 = vpop.f32.mrf.mxu3 }
 0x9ea   : > { %v4107_v22 = vadd.f32 %v4101_v3, %v3952_v34 }
 0x9eb   : > { %v4089_v4 = vpop.f32.mrf.mxu1 }
 0x9ec   : > { %v4108_v14 = vadd.f32 %v4089_v4, %v3953_v55  ;;  %v4117_v18 = vadd.f32 %v4113_v26, %v4107_v22 }
 0x9ee   : > { %v4118_v7 = vadd.f32 %v4112_v52, %v4108_v14  ;;  %v12057_v14 = vld [vmem:[%s21902_s10 + $0x3e0] sm:$0xf] }
 0x9f0   : > { %v4120_v46 = vadd.f32 %v4118_v7, %v4116_v37 }
 0x9f1   : > { %v4103_v47 = vpop.f32.mrf.mxu3 }
 0x9f2   : > { %v4121_v1 = vrot.slane %v4120_v46, 4  ;;  %v4109_v54 = vadd.f32 %v4103_v47, %v3954_v13  ;;  %v15128_v47 = vld [vmem:[%s21902_s10 + $0x3ac] sm:$0xf0] }
 0x9f4   : > { %v4122_v59 = vadd.f32 %v4121_v1, %v4120_v46  ;;  %v4119_v29 = vadd.f32 %v4113_v26, %v4109_v54  ;;  %v12025_v46 = vld [vmem:[%s21902_s10 + $0x3a0] sm:$0xf] }
 0x9f6   : > { %v4123_v48 = vrot.slane %v4122_v59, 2  ;;  %v4127_v63 = vadd.f32 %v4119_v29, %v4117_v18 }
 0x9f8   : > { %v4124_v11 = vadd.f32 %v4123_v48, %v4122_v59  ;;  %v4128_v58 = vrot.slane %v4127_v63, 4  ;;  %v12009_v48 = vld [vmem:[%s21902_s10 + $0x380] sm:$0xf] }
 0x9fa   : > { %v4125_v57 = vrot.slane %v4124_v11, 1  ;;  %v4129_v30 = vadd.f32 %v4128_v58, %v4127_v63  ;;  %v15124_v63 = vld [vmem:[%s21902_s10 + $0x38c] sm:$0xf0] }
 0x9fc   : > { %v4126_v21 = vadd.f32 %v4125_v57, %v4124_v11  ;;  %v4130_v27 = vrot.slane %v4129_v30, 2 }
 0x9fe   : > { %v4141_v39 = vmul.f32 %v17841_v2, %v4126_v21  ;;  %v4131_v17 = vadd.f32 %v4130_v27, %v4129_v30  ;;  %v15102_v21 = vld [vmem:[%s21902_s10 + $0x2e4] sm:$0xf]  ;;  %v11931_v27 = vld [vmem:[%s21902_s10 + $0x2f0] sm:$0xf0] }
 0xa00   : > { %v4143_v9 = vsub.f32 %v4116_v37, %v4141_v39  ;;  %v4145_v8 = vsub.f32 %v4118_v7, %v4141_v39  ;;  %v4132_v20 = vrot.slane %v4131_v17, 1  ;;  %v12058_v37 = vor.u32 %v15136_v38, %v12057_v14  ;;  %v12041_v7 = vld [vmem:[%s21902_s10 + $0x3c0] sm:$0xf] }
 0xa01   : > { %v12042_v26 = vor.u32 %v15132_v5, %v12041_v7  ;;  %v11897_v38 = vld [vmem:[%s21902_s10 + $0x2a0] sm:$0xf]  ;;  %v15090_v7 = vld [vmem:[%s21902_s10 + $0x284] sm:$0xf]  ;;  %v11883_v5 = vld [vmem:[%s21902_s10 + $0x290] sm:$0xf0] }
 0xa02   : > { %v4147_v24 = vmul.f32 %v4143_v9, %v4143_v9  ;;  %v4149_v0 = vmul.f32 %v4145_v8, %v4145_v8  ;;  %v4133_v25 = vadd.f32 %v4132_v20, %v4131_v17  ;;  %4752 = vmatpush.bf16.msra.mxu3 %v12058_v37  ;;  %v12059_v20 = vld [vmem:[%s21902_s10 + $0x3f0] sm:$0xf0] }
 0xa04   : > { %v4151_v6 = vadd.f32 %v4149_v0, %v4147_v24  ;;  %v4142_v36 = vmul.f32 %v17841_v2, %v4133_v25  ;;  %v12010_v24 = vor.u32 %v15124_v63, %v12009_v48  ;;  %v11867_v48 = vld [vmem:[%s21902_s10 + $0x270] sm:$0xf0]  ;;  %v11945_v63 = vld [vmem:[%s21902_s10 + $0x300] sm:$0xf] }
 0xa06   : > { %v4152_v15 = vrot.slane %v4151_v6, 4  ;;  %v17845_v43 = vsub.f32 %v4117_v18, %v4142_v36  ;;  %v17847_v35 = vsub.f32 %v4119_v29, %v4142_v36  ;;  %4753 = vmatpush.bf16.msra.mxu3 %v12042_v26  ;;  %v12026_v29 = vor.u32 %v15128_v47, %v12025_v46  ;;  %v15104_v36 = vld [vmem:[%s21902_s10 + $0x2ec] sm:$0xf0]  ;;  %v15122_v47 = vld [vmem:[%s21902_s10 + $0x384] sm:$0xf] }
 0xa08   : > { %v4153_v53 = vadd.f32 %v4152_v15, %v4151_v6  ;;  %v4148_v12 = vmul.f32 %v17845_v43, %v17845_v43  ;;  %v4150_v60 = vmul.f32 %v17847_v35, %v17847_v35  ;;  %v11929_v6 = vld [vmem:[%s21902_s10 + $0x2e0] sm:$0xf]  ;;  %v15098_v15 = vld [vmem:[%s21902_s10 + $0x2c4] sm:$0xf] }
 0xa0a   : > { %v4154_v62 = vrot.slane %v4153_v53, 2  ;;  %v4158_v23 = vadd.f32 %v4150_v60, %v4148_v12  ;;  %4754 = vmatpush.bf16.msra.mxu3 %v12026_v29  ;;  %v15120_v12 = vld [vmem:[%s21902_s10 + $0x36c] sm:$0xf0]  ;;  %v15086_v29 = vld [vmem:[%s21902_s10 + $0x264] sm:$0xf] }
 0xa0c   : > { %v4155_v19 = vadd.f32 %v4154_v62, %v4153_v53  ;;  %v4159_v51 = vrot.slane %v4158_v23, 4  ;;  %v11934_v53 = vor.u32 %v15102_v21, %v11931_v27  ;;  %v11995_v21 = vld [vmem:[%s21902_s10 + $0x370] sm:$0xf0] }
 0xa0e   : > { %v4156_v44 = vrot.slane %v4155_v19, 1  ;;  %v4160_v31 = vadd.f32 %v4159_v51, %v4158_v23  ;;  %4755 = vmatpush.bf16.msra.mxu3 %v12010_v24  ;;  %v17922_v51 = vld [vmem:[%s21901_s9 + $0x8] sm:$0xff]  ;;  %v15082_v24 = vld [vmem:[%s21902_s10 + $0x244] sm:$0xf] }
 0xa10   : > { %v4157_v61 = vadd.f32 %v4156_v44, %v4155_v19  ;;  %v4161_v56 = vrot.slane %v4160_v31, 2 }
 0xa12   : > { %v4165_v28 = vmul.f32 %v4157_v61, %v17841_v2  ;;  %v4162_v49 = vadd.f32 %v4161_v56, %v4160_v31  ;;  %v15130_v31 = vld [vmem:[%s21902_s10 + $0x3c4] sm:$0xf]  ;;  %v12043_v61 = vld [vmem:[%s21902_s10 + $0x3d0] sm:$0xf0]  ;;  %v11930_v56 = vor.u32 %v15104_v36, %v11929_v6  ;;  %v12049_v36 = vld [vmem:[%s21902_s10 + $0x3c8] sm:$0xf] }
 0xa14   : > { %v4167_v32 = vadd.f32 1e-05, %v4165_v28  ;;  %v4163_v3 = vrot.slane %v4162_v49, 1 }
 0xa16   : > { %15621 = vrsqrt.f32 %v4167_v32  ;;  %v4164_v42 = vadd.f32 %v4163_v3, %v4162_v49  ;;  %vm4175_vm15 = vweird.f32 %v4167_v32  ;;  %v11913_v49 = vld [vmem:[%s21902_s10 + $0x2c0] sm:$0xf] }
 0xa18   : > { %v4166_v55 = vmul.f32 %v4164_v42, %v17841_v2 }
 0xa1a   : > { %v4168_v10 = vadd.f32 1e-05, %v4166_v55  ;;  %v15094_v55 = vld [vmem:[%s21902_s10 + $0x2a4] sm:$0xf] }
 0xa1c   : > { %v15622_v52 = vpop.eup %15621  ;;  %15623 = vrsqrt.f32 %v4168_v10  ;;  %vm4185_vm4 = vweird.f32 %v4168_v10 }
 0xa1d   : > { %v4170_v4 = vmul.f32 %v15622_v52, %v4167_v32  ;;  %vm4176_vm14 = vweird.f32 %v15622_v52  ;;  %v15100_v32 = vld [vmem:[%s21902_s10 + $0x2cc] sm:$0xf0] }
 0xa1e   : > { %vm4177_vm0 = vmor %vm4175_vm15, %vm4176_vm14  ;;  %v11914_v14 = vor.u32 %v15100_v32, %v11913_v49  ;;  %v11963_v49 = vld [vmem:[%s21902_s10 + $0x330] sm:$0xf0] }
 0xa1f   : > { %v4171_v50 = vmul.f32 %v15622_v52, %v4170_v4  ;;  %v15116_v4 = vld [vmem:[%s21902_s10 + $0x34c] sm:$0xf0] }
 0xa21   : > { %v4172_v41 = vmul.f32 0.5, %v4171_v50  ;;  %v12046_v50 = vor.u32 %v15130_v31, %v12043_v61  ;;  %v12033_v31 = vld [vmem:[%s21902_s10 + $0x3a8] sm:$0xf]  ;;  %v15129_v61 = vld [vmem:[%s21902_s10 + $0x3b4] sm:$0xf0] }
 0xa22   : > { %v15624_v45 = vpop.eup %15623 }
 0xa23   : > { %v4173_v16 = vsub.f32 1.5, %v4172_v41  ;;  %v4180_v34 = vmul.f32 %v15624_v45, %v4168_v10  ;;  %vm4186_vm1 = vweird.f32 %v15624_v45  ;;  %v11899_v10 = vld [vmem:[%s21902_s10 + $0x2b0] sm:$0xf0]  ;;  %v15126_v41 = vld [vmem:[%s21902_s10 + $0x3a4] sm:$0xf] }
 0xa24   : > { %vm4187_vm5 = vmor %vm4185_vm4, %vm4186_vm1 }
 0xa25   : > { %v4174_v13 = vmul.f32 %v15622_v52, %v4173_v16  ;;  %v4181_v22 = vmul.f32 %v15624_v45, %v4180_v34  ;;  %v15096_v16 = vld [vmem:[%s21902_s10 + $0x2ac] sm:$0xf0]  ;;  %v11902_v34 = vor.u32 %v15094_v55, %v11899_v10  ;;  %v15074_v10 = vld [vmem:[%s21902_s10 + $0x204] sm:$0xf] }
 0xa26   : > { %v11898_v46 = vor.u32 %v15096_v16, %v11897_v38  ;;  %v15080_v55 = vld [vmem:[%s21902_s10 + $0x22c] sm:$0xf0]  ;;  %v11947_v38 = vld [vmem:[%s21902_s10 + $0x310] sm:$0xf0]  ;;  %v15135_v16 = vld [vmem:[%s21902_s10 + $0x3ec] sm:$0xf] }
 0xa27   : > { %v4178_v1 = vsel %vm4177_vm0, %v15622_v52, %v4174_v13  ;;  %v4182_v54 = vmul.f32 0.5, %v4181_v22  ;;  %v11977_v52 = vld [vmem:[%s21902_s10 + $0x340] sm:$0xf]  ;;  %v15112_v22 = vld [vmem:[%s21902_s10 + $0x32c] sm:$0xf0] }
 0xa28   : > { %v4189_v33 = vmul.f32 %v4178_v1, %v4143_v9  ;;  %v4191_v18 = vmul.f32 %v4178_v1, %v4145_v8  ;;  %v15008_v9 = vld [vmem:[%s21901_s9] sm:$0xff]  ;;  %v11978_v37 = vor.u32 %v15116_v4, %v11977_v52  ;;  %v12011_v1 = vld [vmem:[%s21902_s10 + $0x390] sm:$0xf0]  ;;  %v12034_v4 = vor.u32 %v15129_v61, %v12033_v31  ;;  %v15115_v31 = vld [vmem:[%s21902_s10 + $0x34c] sm:$0xf] }
 0xa29   : > { %v4183_v59 = vsub.f32 1.5, %v4182_v54  ;;  %v15134_v8 = vld [vmem:[%s21902_s10 + $0x3e4] sm:$0xf]  ;;  %v11961_v13 = vld [vmem:[%s21902_s10 + $0x320] sm:$0xf] }
 0xa2a   : > { %vm4193_vm2 = vcmp.ge.f32.partialorder %v4189_v33, 0.0  ;;  %vm4195_vm3 = vcmp.ge.f32.partialorder %v4191_v18, 0.0  ;;  %v4197_v40 = vmul.f32 0.2, %v4189_v33  ;;  %v4199_v11 = vmul.f32 0.2, %v4191_v18 }
 0xa2b   : > { %v4184_v58 = vmul.f32 %v15624_v45, %v4183_v59  ;;  %v12062_v44 = vor.u32 %v15134_v8, %v12059_v20  ;;  %v11881_v54 = vld [vmem:[%s21902_s10 + $0x280] sm:$0xf]  ;;  %v15092_v59 = vld [vmem:[%s21902_s10 + $0x28c] sm:$0xf0]  ;;  %v11819_v52 = vld [vmem:[%s21902_s10 + $0x210] sm:$0xf0] }
 0xa2c   : > { %v4201_v57 = vsel %vm4193_vm2, %v4189_v33, %v4197_v40  ;;  %v4203_v30 = vsel %vm4195_vm3, %v4191_v18, %v4199_v11  ;;  %v11886_v33 = vor.u32 %v15090_v7, %v11883_v5  ;;  %v11962_v18 = vor.u32 %v15112_v22, %v11961_v13  ;;  %v15108_v40 = vld [vmem:[%s21902_s10 + $0x30c] sm:$0xf0]  ;;  %v12067_v7 = vld [vmem:[%s21902_s10 + $0x3f8] sm:$0xf0]  ;;  %v11817_v5 = vld [vmem:[%s21902_s10 + $0x200] sm:$0xf] }
 0xa2d   : > { %v17885_v39 = vpack.c.bf16 %v4203_v30, %v4201_v57  ;;  %v4188_v17 = vsel %vm4187_vm5, %v15624_v45, %v4184_v58  ;;  %v12027_v45 = vld [vmem:[%s21902_s10 + $0x3b0] sm:$0xf0]  ;;  %v12014_v11 = vor.u32 %v15122_v47, %v12011_v1  ;;  %v12065_v58 = vld [vmem:[%s21902_s10 + $0x3e8] sm:$0xf]  ;;  %v15137_v57 = vld [vmem:[%s21902_s10 + $0x3f4] sm:$0xf0]  ;;  %v11882_v27 = vor.u32 %v15092_v59, %v11881_v54 }
 0xa2e   : > { %v4190_v0 = vmul.f32 %v4188_v17, %v17845_v43  ;;  %v4192_v25 = vmul.f32 %v4188_v17, %v17847_v35  ;;  %v11915_v43 = vld [vmem:[%s21902_s10 + $0x2d0] sm:$0xf0]  ;;  %v11993_v35 = vld [vmem:[%s21902_s10 + $0x360] sm:$0xf]  ;;  %v12030_v26 = vor.u32 %v15126_v41, %v12027_v45  ;;  %v15118_v30 = vld [vmem:[%s21902_s10 + $0x364] sm:$0xf]  ;;  %v11946_v20 = vor.u32 %v15108_v40, %v11945_v63 }
 0xa2f   : > { %4225 = vmatpush.bf16.msrb.mxu0 %v17885_v39  ;;  %v11918_v3 = vor.u32 %v15098_v15, %v11915_v43  ;;  %v11994_v42 = vor.u32 %v15120_v12, %v11993_v35  ;;  %v11865_v17 = vld [vmem:[%s21902_s10 + $0x260] sm:$0xf]  ;;  %v15088_v8 = vld [vmem:[%s21902_s10 + $0x26c] sm:$0xf0]  ;;  %v11998_v6 = vor.u32 %v15118_v30, %v11995_v21  ;;  %v15133_v15 = vld [vmem:[%s21902_s10 + $0x3d4] sm:$0xf0]  ;;  %v12070_v1 = vor.u32 %v15135_v16, %v12067_v7 }
 0xa30   : > { %vm4194_vm7 = vcmp.ge.f32.partialorder %v4190_v0, 0.0  ;;  %vm4196_vm8 = vcmp.ge.f32.partialorder %v4192_v25, 0.0  ;;  %v4198_v60 = vmul.f32 0.2, %v4190_v0  ;;  %v4200_v62 = vmul.f32 0.2, %v4192_v25 }
 0xa31   : > { %4756 = vmatpush.bf16.msra.mxu3 %v11994_v42  ;;  %v11979_v43 = vld [vmem:[%s21902_s10 + $0x350] sm:$0xf0]  ;;  %v11866_v35 = vor.u32 %v15088_v8, %v11865_v17  ;;  %v11849_v12 = vld [vmem:[%s21902_s10 + $0x240] sm:$0xf]  ;;  %v11939_v41 = vld [vmem:[%s21902_s10 + $0x2f8] sm:$0xf0] }
 0xa32   : > { %v4202_v23 = vsel %vm4194_vm7, %v4190_v0, %v4198_v60  ;;  %v4204_v19 = vsel %vm4196_vm8, %v4192_v25, %v4200_v62  ;;  %11741 = vmatmul.msk.bf16.vlgmr.msrb.gmra.mxu0 %vm4214_vm6, %v15008_v9  ;;  %v11851_v0 = vld [vmem:[%s21902_s10 + $0x250] sm:$0xf0]  ;;  %v12066_v25 = vor.u32 %v15137_v57, %v12065_v58  ;;  %v15084_v62 = vld [vmem:[%s21902_s10 + $0x24c] sm:$0xf0]  ;;  %v12035_v63 = vld [vmem:[%s21902_s10 + $0x3b8] sm:$0xf0] }
 0xa33   : > { %4330 = vmatpush.bf16.msra.mxu0 %v17885_v39  ;;  %v17930_v28 = vpack.c.bf16 %v4204_v19, %v4202_v23  ;;  %v11854_v60 = vor.u32 %v15082_v24, %v11851_v0  ;;  %v15078_v23 = vld [vmem:[%s21902_s10 + $0x224] sm:$0xf]  ;;  %v11835_v19 = vld [vmem:[%s21902_s10 + $0x230] sm:$0xf0]  ;;  %v11850_v32 = vor.u32 %v15084_v62, %v11849_v12  ;;  %v15076_v13 = vld [vmem:[%s21902_s10 + $0x20c] sm:$0xf0] }
 0xa34   : > { %v11838_v42 = vor.u32 %v15078_v23, %v11835_v19  ;;  %v11818_v54 = vor.u32 %v15076_v13, %v11817_v5  ;;  %v15125_v58 = vld [vmem:[%s21902_s10 + $0x394] sm:$0xf0]  ;;  %v15123_v57 = vld [vmem:[%s21902_s10 + $0x38c] sm:$0xf]  ;;  %v12019_v21 = vld [vmem:[%s21902_s10 + $0x398] sm:$0xf0] }
 0xa35   : > { %4239 = vmatpush.bf16.msra.mxu2 %v17930_v28  ;;  %4344 = vmatpush.bf16.msra.mxu1 %v17930_v28  ;;  %v15101_v17 = vld [vmem:[%s21902_s10 + $0x2d4] sm:$0xf0]  ;;  %v12022_v8 = vor.u32 %v15123_v57, %v12019_v21  ;;  %v11923_v24 = vld [vmem:[%s21902_s10 + $0x2d8] sm:$0xf0]  ;;  %v12001_v0 = vld [vmem:[%s21902_s10 + $0x368] sm:$0xf] }
 0xa36   : > { %4757 = vmatpush.bf16.msra.mxu3 %v11978_v37  ;;  %v11822_v37 = vor.u32 %v15074_v10, %v11819_v52  ;;  %v15097_v12 = vld [vmem:[%s21902_s10 + $0x2b4] sm:$0xf0]  ;;  %v11907_v23 = vld [vmem:[%s21902_s10 + $0x2b8] sm:$0xf0]  ;;  %v11969_v52 = vld [vmem:[%s21902_s10 + $0x328] sm:$0xf] }
 0xa37   : > { %4766 = vmatpush.bf16.msrb.mxu0 %v11934_v53  ;;  %v15114_v53 = vld [vmem:[%s21902_s10 + $0x344] sm:$0xf]  ;;  %v11891_v10 = vld [vmem:[%s21902_s10 + $0x298] sm:$0xf0]  ;;  %v11873_v16 = vld [vmem:[%s21902_s10 + $0x268] sm:$0xf] }
 0xa38   : > { %11750 = vmatmul.msk.bf16.vlgmr.msra.gmra.mxu1 %vm4214_vm6, %v17922_v51  ;;  %11742 = vmatmul.msk.bf16.vlgmr.msra.gmra.mxu2 %vm4214_vm6, %v15008_v9  ;;  %v11870_v9 = vor.u32 %v15086_v29, %v11867_v48  ;;  %v15127_v48 = vld [vmem:[%s21902_s10 + $0x3ac] sm:$0xf]  ;;  %v11875_v5 = vld [vmem:[%s21902_s10 + $0x278] sm:$0xf0] }
 0xa39   : > { %4780 = vmatpush.bf16.msrb.mxu1 %v12062_v44  ;;  %4738 = vmatpush.bf16.msrb.mxu2 %v11930_v56  ;;  %v11982_v44 = vor.u32 %v15114_v53, %v11979_v43  ;;  %v15110_v56 = vld [vmem:[%s21902_s10 + $0x324] sm:$0xf]  ;;  %v12038_v40 = vor.u32 %v15127_v48, %v12035_v63  ;;  %v12003_v53 = vld [vmem:[%s21902_s10 + $0x378] sm:$0xf0] }
 0xa3a   : > { %4758 = vmatpush.bf16.msra.mxu3 %v11962_v18  ;;  %v11966_v45 = vor.u32 %v15110_v56, %v11963_v49  ;;  %v12051_v18 = vld [vmem:[%s21902_s10 + $0x3d8] sm:$0xf0]  ;;  %v11889_v49 = vld [vmem:[%s21902_s10 + $0x288] sm:$0xf] }
 0xa3b   : > { %4767 = vmatpush.bf16.msrb.mxu0 %v11918_v3  ;;  %v11833_v3 = vld [vmem:[%s21902_s10 + $0x220] sm:$0xf]  ;;  %v11987_v56 = vld [vmem:[%s21902_s10 + $0x358] sm:$0xf0] }
 0xa3c   : > { %v11859_v48 = vld [vmem:[%s21902_s10 + $0x258] sm:$0xf0] }
 0xa3d   : > { %4781 = vmatpush.bf16.msrb.mxu1 %v12046_v50  ;;  %4739 = vmatpush.bf16.msrb.mxu2 %v11914_v14  ;;  %v15103_v50 = vld [vmem:[%s21902_s10 + $0x2ec] sm:$0xf]  ;;  %v15106_v14 = vld [vmem:[%s21902_s10 + $0x304] sm:$0xf] }
 0xa3e   : > { %4759 = vmatpush.bf16.msra.mxu3 %v11946_v20  ;;  %v11942_v22 = vor.u32 %v15103_v50, %v11939_v41  ;;  %v11950_v47 = vor.u32 %v15106_v14, %v11947_v38  ;;  %v11971_v14 = vld [vmem:[%s21902_s10 + $0x338] sm:$0xf0] }
 0xa3f   : > { %4768 = vmatpush.bf16.msrb.mxu0 %v11902_v34  ;;  %v11834_v34 = vor.u32 %v15080_v55, %v11833_v3  ;;  %v15091_v3 = vld [vmem:[%s21902_s10 + $0x28c] sm:$0xf] }
 0xa40   : > { %v11894_v50 = vor.u32 %v15091_v3, %v11891_v10  ;;  %v15061_v3 = vld [vmem:[%s21902_s10 + $0x1a4] sm:$0xf]  ;;  %v15039_v10 = vld [vmem:[%s21902_s10 + $0xec] sm:$0xf0] }
 0xa41   : > { %4782 = vmatpush.bf16.msrb.mxu1 %v12030_v26  ;;  %4740 = vmatpush.bf16.msrb.mxu2 %v11898_v46  ;;  %v11937_v26 = vld [vmem:[%s21902_s10 + $0x2e8] sm:$0xf]  ;;  %v15105_v46 = vld [vmem:[%s21902_s10 + $0x2f4] sm:$0xf0] }
 0xa42   : > { %11749 = vmatmul.msk.bf16.vlgmr.msra.gmra.mxu0 %vm4214_vm6, %v17922_v51  ;;  %4808 = vmatpush.bf16.msrb.mxu3 %v12066_v25  ;;  %v12050_v51 = vor.u32 %v15133_v15, %v12049_v36  ;;  %v11938_v59 = vor.u32 %v15105_v46, %v11937_v26  ;;  %v15121_v25 = vld [vmem:[%s21902_s10 + $0x374] sm:$0xf0]  ;;  %v15119_v15 = vld [vmem:[%s21902_s10 + $0x36c] sm:$0xf] }
 0xa43   : > { %4769 = vmatpush.bf16.msrb.mxu0 %v11886_v33  ;;  %v15131_v33 = vld [vmem:[%s21902_s10 + $0x3cc] sm:$0xf]  ;;  %v12002_v36 = vor.u32 %v15121_v25, %v12001_v0  ;;  %v12006_v43 = vor.u32 %v15119_v15, %v12003_v53  ;;  %v15109_v26 = vld [vmem:[%s21902_s10 + $0x314] sm:$0xf0]  ;;  %v15071_v15 = vld [vmem:[%s21902_s10 + $0x1ec] sm:$0xf0] }
 0xa44   : > { %v12054_v29 = vor.u32 %v15131_v33, %v12051_v18  ;;  %v15107_v46 = vld [vmem:[%s21902_s10 + $0x30c] sm:$0xf]  ;;  %v15085_v33 = vld [vmem:[%s21902_s10 + $0x254] sm:$0xf0]  ;;  %v15069_v53 = vld [vmem:[%s21902_s10 + $0x1e4] sm:$0xf] }
 0xa45   : > { %4783 = vmatpush.bf16.msrb.mxu1 %v12014_v11  ;;  %4741 = vmatpush.bf16.msrb.mxu2 %v11882_v27  ;;  %v12017_v11 = vld [vmem:[%s21902_s10 + $0x388] sm:$0xf]  ;;  %v15083_v18 = vld [vmem:[%s21902_s10 + $0x24c] sm:$0xf] }
 0xa46   : > { %4809 = vmatpush.bf16.msrb.mxu3 %v12050_v51  ;;  %v12018_v30 = vor.u32 %v15125_v58, %v12017_v11  ;;  %v11921_v27 = vld [vmem:[%s21902_s10 + $0x2c8] sm:$0xf]  ;;  %v11862_v63 = vor.u32 %v15083_v18, %v11859_v48  ;;  %v15081_v11 = vld [vmem:[%s21902_s10 + $0x234] sm:$0xf0]  ;;  %v15079_v58 = vld [vmem:[%s21902_s10 + $0x22c] sm:$0xf] }
 0xa47   : > { %4770 = vmatpush.bf16.msrb.mxu0 %v11870_v9  ;;  %v15099_v9 = vld [vmem:[%s21902_s10 + $0x2cc] sm:$0xf]  ;;  %v11922_v20 = vor.u32 %v15101_v17, %v11921_v27  ;;  %v11985_v51 = vld [vmem:[%s21902_s10 + $0x348] sm:$0xf]  ;;  %v15077_v17 = vld [vmem:[%s21902_s10 + $0x214] sm:$0xf0] }
 0xa48   : > { %v11825_v27 = vld [vmem:[%s21902_s10 + $0x208] sm:$0xf]  ;;  %v15053_v18 = vld [vmem:[%s21902_s10 + $0x164] sm:$0xf] }
 0xa49   : > { %4784 = vmatpush.bf16.msrb.mxu1 %v11998_v6  ;;  %4742 = vmatpush.bf16.msrb.mxu2 %v11866_v35  ;;  %v11926_v6 = vor.u32 %v15099_v9, %v11923_v24  ;;  %v11905_v35 = vld [vmem:[%s21902_s10 + $0x2a8] sm:$0xf]  ;;  %v15075_v9 = vld [vmem:[%s21902_s10 + $0x20c] sm:$0xf] }
 0xa4a   : > { %4810 = vmatpush.bf16.msrb.mxu3 %v12034_v4  ;;  %v11906_v62 = vor.u32 %v15097_v12, %v11905_v35  ;;  %v15113_v4 = vld [vmem:[%s21902_s10 + $0x334] sm:$0xf0] }
 0xa4b   : > { %4771 = vmatpush.bf16.msrb.mxu0 %v11854_v60  ;;  %v15095_v60 = vld [vmem:[%s21902_s10 + $0x2ac] sm:$0xf]  ;;  %v11970_v41 = vor.u32 %v15113_v4, %v11969_v52  ;;  %v15037_v52 = vld [vmem:[%s21902_s10 + $0xe4] sm:$0xf]  ;;  %v12187_v4 = vld [vmem:[%s21902_s10 + $0xf0] sm:$0xf0] }
 0xa4c   : > { %v11910_v19 = vor.u32 %v15095_v60, %v11907_v23 }
 0xa4d   : > { %4785 = vmatpush.bf16.msrb.mxu1 %v11982_v44  ;;  %4743 = vmatpush.bf16.msrb.mxu2 %v11850_v32  ;;  %v15117_v44 = vld [vmem:[%s21902_s10 + $0x354] sm:$0xf0] }
 0xa4e   : > { %4811 = vmatpush.bf16.msrb.mxu3 %v12018_v30  ;;  %v11986_v61 = vor.u32 %v15117_v44, %v11985_v51  ;;  %v15093_v32 = vld [vmem:[%s21902_s10 + $0x294] sm:$0xf0]  ;;  %v11843_v30 = vld [vmem:[%s21902_s10 + $0x238] sm:$0xf0]  ;;  %v15065_v51 = vld [vmem:[%s21902_s10 + $0x1c4] sm:$0xf] }
 0xa4f   : > { %4772 = vmatpush.bf16.msrb.mxu0 %v11838_v42  ;;  %v11990_v42 = vor.u32 %v15115_v31, %v11987_v56  ;;  %v11890_v55 = vor.u32 %v15093_v32, %v11889_v49  ;;  %v11846_v21 = vor.u32 %v15079_v58, %v11843_v30  ;;  %v12299_v44 = vld [vmem:[%s21902_s10 + $0x1d0] sm:$0xf0]  ;;  %v12281_v49 = vld [vmem:[%s21902_s10 + $0x1a0] sm:$0xf]  ;;  %v15063_v32 = vld [vmem:[%s21902_s10 + $0x1ac] sm:$0xf0] }
 0xa50   : > { %v12302_v56 = vor.u32 %v15065_v51, %v12299_v44  ;;  %v12155_v58 = vld [vmem:[%s21902_s10 + $0xb0] sm:$0xf0]  ;;  %v12121_v44 = vld [vmem:[%s21902_s10 + $0x60] sm:$0xf] }
 0xa51   : > { %4786 = vmatpush.bf16.msrb.mxu1 %v11966_v45  ;;  %4744 = vmatpush.bf16.msrb.mxu2 %v11834_v34  ;;  %v15111_v45 = vld [vmem:[%s21902_s10 + $0x32c] sm:$0xf]  ;;  %v15089_v34 = vld [vmem:[%s21902_s10 + $0x274] sm:$0xf0] }
 0xa52   : > { %4812 = vmatpush.bf16.msrb.mxu3 %v12002_v36  ;;  %v11974_v38 = vor.u32 %v15111_v45, %v11971_v14  ;;  %v11874_v7 = vor.u32 %v15089_v34, %v11873_v16  ;;  %v12313_v36 = vld [vmem:[%s21902_s10 + $0x1e0] sm:$0xf]  ;;  %v15059_v14 = vld [vmem:[%s21902_s10 + $0x18c] sm:$0xf0]  ;;  %v12267_v16 = vld [vmem:[%s21902_s10 + $0x190] sm:$0xf0] }
 0xa53   : > { %4773 = vmatpush.bf16.msrb.mxu0 %v11822_v37  ;;  %v15087_v37 = vld [vmem:[%s21902_s10 + $0x26c] sm:$0xf]  ;;  %v12314_v12 = vor.u32 %v15071_v15, %v12313_v36  ;;  %v12265_v45 = vld [vmem:[%s21902_s10 + $0x180] sm:$0xf]  ;;  %v15027_v36 = vld [vmem:[%s21902_s10 + $0x8c] sm:$0xf0] }
 0xa54   : > { %v11878_v13 = vor.u32 %v15087_v37, %v11875_v5  ;;  %v12169_v5 = vld [vmem:[%s21902_s10 + $0xc0] sm:$0xf]  ;;  %v15025_v15 = vld [vmem:[%s21902_s10 + $0x84] sm:$0xf] }
 0xa55   : > { %4787 = vmatpush.bf16.msrb.mxu1 %v11950_v47  ;;  %4745 = vmatpush.bf16.msrb.mxu2 %v11818_v54  ;;  %v11857_v54 = vld [vmem:[%s21902_s10 + $0x248] sm:$0xf] }
 0xa56   : > { %4813 = vmatpush.bf16.msrb.mxu3 %v11986_v61 }
 0xa57   : > { %4822 = vmatpush.bf16.msra.mxu0 %v11942_v22  ;;  %v11953_v22 = vld [vmem:[%s21902_s10 + $0x308] sm:$0xf] }
 0xa58   : > { %v11954_v47 = vor.u32 %v15109_v26, %v11953_v22  ;;  %v15035_v22 = vld [vmem:[%s21902_s10 + $0xcc] sm:$0xf0]  ;;  %v15033_v26 = vld [vmem:[%s21902_s10 + $0xc4] sm:$0xf] }
 0xa59   : > { %4836 = vmatpush.bf16.msra.mxu1 %v12070_v1  ;;  %4794 = vmatpush.bf16.msra.mxu2 %v11938_v59  ;;  %v11955_v1 = vld [vmem:[%s21902_s10 + $0x318] sm:$0xf0] }
 0xa5a   : > { %4814 = vmatpush.bf16.msrb.mxu3 %v11970_v41  ;;  %v11958_v59 = vor.u32 %v15107_v46, %v11955_v1  ;;  %v12171_v46 = vld [vmem:[%s21902_s10 + $0xd0] sm:$0xf0] }
 0xa5b   : > { %4823 = vmatpush.bf16.msra.mxu0 %v11926_v6  ;;  %v12174_v48 = vor.u32 %v15033_v26, %v12171_v46 }
 0xa5d   : > { %4837 = vmatpush.bf16.msra.mxu1 %v12054_v29  ;;  %4795 = vmatpush.bf16.msra.mxu2 %v11922_v20  ;;  %v11858_v29 = vor.u32 %v15085_v33, %v11857_v54  ;;  %v11827_v20 = vld [vmem:[%s21902_s10 + $0x218] sm:$0xf0]  ;;  %v12249_v54 = vld [vmem:[%s21902_s10 + $0x160] sm:$0xf]  ;;  %v15055_v33 = vld [vmem:[%s21902_s10 + $0x16c] sm:$0xf0] }
 0xa5e   : > { %4815 = vmatpush.bf16.msrb.mxu3 %v11954_v47  ;;  %v11830_v24 = vor.u32 %v15075_v9, %v11827_v20  ;;  %v12266_v47 = vor.u32 %v15059_v14, %v12265_v45  ;;  %v12235_v9 = vld [vmem:[%s21902_s10 + $0x150] sm:$0xf0]  ;;  %v12105_v45 = vld [vmem:[%s21902_s10 + $0x40] sm:$0xf]  ;;  %v15070_v14 = vld [vmem:[%s21902_s10 + $0x1ec] sm:$0xf] }
 0xa5f   : > { %4824 = vmatpush.bf16.msra.mxu0 %v11910_v19  ;;  %v15067_v19 = vld [vmem:[%s21902_s10 + $0x1cc] sm:$0xf0] }
 0xa61   : > { %4838 = vmatpush.bf16.msra.mxu1 %v12038_v40  ;;  %4796 = vmatpush.bf16.msra.mxu2 %v11906_v62  ;;  %v11841_v40 = vld [vmem:[%s21902_s10 + $0x228] sm:$0xf]  ;;  %v12297_v62 = vld [vmem:[%s21902_s10 + $0x1c0] sm:$0xf] }
 0xa62   : > { %v11842_v57 = vor.u32 %v15081_v11, %v11841_v40  ;;  %v12298_v61 = vor.u32 %v15067_v19, %v12297_v62  ;;  %v15031_v40 = vld [vmem:[%s21902_s10 + $0xac] sm:$0xf0]  ;;  %v15029_v11 = vld [vmem:[%s21902_s10 + $0xa4] sm:$0xf] }
 0xa63   : > { %4825 = vmatpush.bf16.msra.mxu0 %v11894_v50  ;;  %v12282_v50 = vor.u32 %v15063_v32, %v12281_v49  ;;  %v12158_v20 = vor.u32 %v15029_v11, %v12155_v58  ;;  %v15045_v62 = vld [vmem:[%s21902_s10 + $0x124] sm:$0xf] }
 0xa65   : > { %4839 = vmatpush.bf16.msra.mxu1 %v12022_v8  ;;  %4797 = vmatpush.bf16.msra.mxu2 %v11890_v55  ;;  %v11826_v8 = vor.u32 %v15077_v17, %v11825_v27  ;;  %v12185_v55 = vld [vmem:[%s21902_s10 + $0xe0] sm:$0xf]  ;;  %v15051_v27 = vld [vmem:[%s21902_s10 + $0x14c] sm:$0xf0]  ;;  %v15049_v17 = vld [vmem:[%s21902_s10 + $0x144] sm:$0xf] }
 0xa66   : > { %v12186_v37 = vor.u32 %v15039_v10, %v12185_v55  ;;  %v15041_v55 = vld [vmem:[%s21902_s10 + $0x104] sm:$0xf]  ;;  %v12321_v10 = vld [vmem:[%s21902_s10 + $0x1e8] sm:$0xf] }
 0xa67   : > { %4826 = vmatpush.bf16.msra.mxu0 %v11878_v13 }
 0xa69   : > { %4840 = vmatpush.bf16.msra.mxu1 %v12006_v43  ;;  %4798 = vmatpush.bf16.msra.mxu2 %v11874_v7  ;;  %v12315_v43 = vld [vmem:[%s21902_s10 + $0x1f0] sm:$0xf0]  ;;  %v12190_v7 = vor.u32 %v15037_v52, %v12187_v4  ;;  %v15072_v52 = vld [vmem:[%s21902_s10 + $0x1f4] sm:$0xf0] }
 0xa6a   : > { %v12318_v60 = vor.u32 %v15069_v53, %v12315_v43  ;;  %v12139_v53 = vld [vmem:[%s21902_s10 + $0x90] sm:$0xf0]  ;;  %v12322_v26 = vor.u32 %v15072_v52, %v12321_v10  ;;  %v12257_v10 = vld [vmem:[%s21902_s10 + $0x168] sm:$0xf]  ;;  %v15056_v52 = vld [vmem:[%s21902_s10 + $0x174] sm:$0xf0] }
 0xa6b   : > { %4827 = vmatpush.bf16.msra.mxu0 %v11862_v63  ;;  %v12153_v63 = vld [vmem:[%s21902_s10 + $0xa0] sm:$0xf]  ;;  %v12142_v51 = vor.u32 %v15025_v15, %v12139_v53  ;;  %v12203_v4 = vld [vmem:[%s21902_s10 + $0x110] sm:$0xf0]  ;;  %v15040_v15 = vld [vmem:[%s21902_s10 + $0xf4] sm:$0xf0] }
 0xa6c   : > { %v15038_v53 = vld [vmem:[%s21902_s10 + $0xec] sm:$0xf] }
 0xa6d   : > { %4841 = vmatpush.bf16.msra.mxu1 %v11990_v42  ;;  %4799 = vmatpush.bf16.msra.mxu2 %v11858_v29  ;;  %v12283_v42 = vld [vmem:[%s21902_s10 + $0x1b0] sm:$0xf0]  ;;  %v12170_v29 = vor.u32 %v15035_v22, %v12169_v5  ;;  %v12206_v5 = vor.u32 %v15041_v55, %v12203_v4 }
 0xa6e   : > { %v12286_v41 = vor.u32 %v15061_v3, %v12283_v42  ;;  %v12201_v3 = vld [vmem:[%s21902_s10 + $0x100] sm:$0xf]  ;;  %v15043_v42 = vld [vmem:[%s21902_s10 + $0x10c] sm:$0xf0] }
 0xa6f   : > { %4828 = vmatpush.bf16.msra.mxu0 %v11846_v21  ;;  %v12233_v21 = vld [vmem:[%s21902_s10 + $0x140] sm:$0xf] }
 0xa70   : > { %v12234_v43 = vor.u32 %v15051_v27, %v12233_v21  ;;  %v15062_v21 = vld [vmem:[%s21902_s10 + $0x1ac] sm:$0xf] }
 0xa71   : > { %4842 = vmatpush.bf16.msra.mxu1 %v11974_v38  ;;  %4800 = vmatpush.bf16.msra.mxu2 %v11842_v57  ;;  %v15057_v38 = vld [vmem:[%s21902_s10 + $0x184] sm:$0xf]  ;;  %v12250_v57 = vor.u32 %v15055_v33, %v12249_v54 }
 0xa72   : > { %v12270_v1 = vor.u32 %v15057_v38, %v12267_v16  ;;  %v12323_v38 = vld [vmem:[%s21902_s10 + $0x1f8] sm:$0xf0]  ;;  %v15019_v16 = vld [vmem:[%s21902_s10 + $0x4c] sm:$0xf0] }
 0xa73   : > { %4829 = vmatpush.bf16.msra.mxu0 %v11830_v24  ;;  %v12137_v24 = vld [vmem:[%s21902_s10 + $0x80] sm:$0xf]  ;;  %v12326_v46 = vor.u32 %v15070_v14, %v12323_v38  ;;  %v12106_v54 = vor.u32 %v15019_v16, %v12105_v45  ;;  %v12161_v45 = vld [vmem:[%s21902_s10 + $0xa8] sm:$0xf]  ;;  %v15054_v14 = vld [vmem:[%s21902_s10 + $0x16c] sm:$0xf] }
 0xa74   : > { %v12138_v19 = vor.u32 %v15027_v36, %v12137_v24  ;;  %v15009_v24 = vld [vmem:[%s21902_s10 + $0x4] sm:$0xf]  ;;  %v12193_v36 = vld [vmem:[%s21902_s10 + $0xe8] sm:$0xf]  ;;  %v12259_v38 = vld [vmem:[%s21902_s10 + $0x178] sm:$0xf0] }
 0xa75   : > { %4843 = vmatpush.bf16.msra.mxu1 %v11958_v59  ;;  %4801 = vmatpush.bf16.msra.mxu2 %v11826_v8  ;;  %v12251_v59 = vld [vmem:[%s21902_s10 + $0x170] sm:$0xf0]  ;;  %v12154_v8 = vor.u32 %v15031_v40, %v12153_v63  ;;  %v12163_v16 = vld [vmem:[%s21902_s10 + $0xb8] sm:$0xf0] }
 0xa76   : > { %v12254_v30 = vor.u32 %v15053_v18, %v12251_v59  ;;  %v12089_v18 = vld [vmem:[%s21902_s10 + $0x20] sm:$0xf]  ;;  %v12307_v59 = vld [vmem:[%s21902_s10 + $0x1d8] sm:$0xf0]  ;;  %v12091_v63 = vld [vmem:[%s21902_s10 + $0x30] sm:$0xf0] }
 0xaaf   : > { %v18263_v0 = vpop.f32.mrf.mxu0 }
 0xab5   : > { %v4346_v25 = vpop.f32.mrf.mxu1 }
 0xab7   : > { %v18265_v6 = vpop.f32.mrf.mxu0 }
 0xab8   : > { %v18558_v4 = vpack.c.bf16 %v18265_v6, %v18263_v0  ;;  %v15032_v0 = vld [vmem:[%s21902_s10 + $0xb4] sm:$0xf0]  ;;  %v15030_v6 = vld [vmem:[%s21902_s10 + $0xac] sm:$0xf] }
 0xabd   : > { %v4348_v35 = vpop.f32.mrf.mxu1 }
 0xabe   : > { %v18282_v23 = vpack.c.bf16 %v4348_v35, %v4346_v25  ;;  %v18386_v25 = vpop.f32.mrf.mxu2  ;;  %v12238_v35 = vor.u32 %v15049_v17, %v12235_v9  ;;  %v12073_v9 = vld [vmem:[%s21902_s10] sm:$0xf] }
 0xabf   : > { %v4332_v31 = vpop.f32.mrf.mxu0 }
 0xac0   : > { %4760 = vmatmul.bf16.vlgmr.msra.gmra.mxu3 %v18282_v23  ;;  %4788 = vmatmul.bf16.vlgmr.msrb.gmra.mxu1 %v18282_v23 }
 0xac1   : > { %5184 = vmatpush.bf16.msra.mxu3 %v12314_v12  ;;  %5212 = vmatpush.bf16.msrb.mxu1 %v12318_v60  ;;  %v12217_v12 = vld [vmem:[%s21902_s10 + $0x120] sm:$0xf]  ;;  %v15047_v60 = vld [vmem:[%s21902_s10 + $0x12c] sm:$0xf0] }
 0xac2   : > { %v12218_v49 = vor.u32 %v15047_v60, %v12217_v12 }
 0xac5   : > { %5185 = vmatpush.bf16.msra.mxu3 %v12298_v61  ;;  %5213 = vmatpush.bf16.msrb.mxu1 %v12302_v56  ;;  %v15021_v61 = vld [vmem:[%s21902_s10 + $0x64] sm:$0xf]  ;;  %v12123_v56 = vld [vmem:[%s21902_s10 + $0x70] sm:$0xf0] }
 0xac6   : > { %v4243_v22 = vpop.f32.mrf.mxu2 }
 0xac7   : > { %v4334_v34 = vpop.f32.mrf.mxu0  ;;  %v18486_v40 = vpack.c.bf16 %v4243_v22, %v18386_v25  ;;  %v12075_v25 = vld [vmem:[%s21902_s10 + $0x10] sm:$0xf0]  ;;  %v12162_v22 = vor.u32 %v15032_v0, %v12161_v45  ;;  %v15201_v45 = vld [vmem:[%s21902_s10 + $0x5ec] sm:$0xf0] }
 0xac8   : > { %v18334_v13 = vpack.c.bf16 %v4334_v34, %v4332_v31  ;;  %v15023_v31 = vld [vmem:[%s21902_s10 + $0x6c] sm:$0xf0]  ;;  %v15017_v34 = vld [vmem:[%s21902_s10 + $0x44] sm:$0xf] }
 0xac9   : > { %5186 = vmatpush.bf16.msra.mxu3 %v12282_v50  ;;  %5214 = vmatpush.bf16.msrb.mxu1 %v12286_v41  ;;  %v12122_v50 = vor.u32 %v15023_v31, %v12121_v44  ;;  %v12126_v41 = vor.u32 %v15021_v61, %v12123_v56  ;;  %v12177_v31 = vld [vmem:[%s21902_s10 + $0xc8] sm:$0xf]  ;;  %v15058_v61 = vld [vmem:[%s21902_s10 + $0x18c] sm:$0xf]  ;;  %v12275_v56 = vld [vmem:[%s21902_s10 + $0x198] sm:$0xf0] }
 0xaca   : > { %4746 = vmatmul.bf16.vlgmr.msrb.gmra.mxu2 %v18334_v13  ;;  %4774 = vmatmul.bf16.vlgmr.msrb.gmra.mxu0 %v18334_v13  ;;  %v12278_v55 = vor.u32 %v15058_v61, %v12275_v56  ;;  %v15014_v61 = vld [vmem:[%s21902_s10 + $0x2c] sm:$0xf]  ;;  %v12099_v56 = vld [vmem:[%s21902_s10 + $0x38] sm:$0xf0] }
 0xacb   : > { %5170 = vmatpush.bf16.msrb.mxu2 %v12186_v37  ;;  %5198 = vmatpush.bf16.msrb.mxu0 %v12190_v7  ;;  %v12107_v37 = vld [vmem:[%s21902_s10 + $0x50] sm:$0xf0]  ;;  %v12202_v7 = vor.u32 %v15043_v42, %v12201_v3  ;;  %v12179_v3 = vld [vmem:[%s21902_s10 + $0xd8] sm:$0xf0] }
 0xacc   : > { %v12110_v33 = vor.u32 %v15017_v34, %v12107_v37  ;;  %v12258_v34 = vor.u32 %v15056_v52, %v12257_v10  ;;  %v12262_v37 = vor.u32 %v15054_v14, %v12259_v38  ;;  %v12083_v10 = vld [vmem:[%s21902_s10 + $0x18] sm:$0xf0]  ;;  %v15197_v38 = vld [vmem:[%s21902_s10 + $0x5cc] sm:$0xf0] }
 0xacd   : > { %5187 = vmatpush.bf16.msra.mxu3 %v12266_v47  ;;  %5215 = vmatpush.bf16.msrb.mxu1 %v12270_v1  ;;  %v12305_v47 = vld [vmem:[%s21902_s10 + $0x1c8] sm:$0xf]  ;;  %v15068_v1 = vld [vmem:[%s21902_s10 + $0x1d4] sm:$0xf0] }
 0xace   : > { %v12306_v11 = vor.u32 %v15068_v1, %v12305_v47  ;;  %v15050_v47 = vld [vmem:[%s21902_s10 + $0x14c] sm:$0xf]  ;;  %v12243_v1 = vld [vmem:[%s21902_s10 + $0x158] sm:$0xf0] }
 0xacf   : > { %5171 = vmatpush.bf16.msrb.mxu2 %v12170_v29  ;;  %5199 = vmatpush.bf16.msrb.mxu0 %v12174_v48  ;;  %v15015_v29 = vld [vmem:[%s21902_s10 + $0x2c] sm:$0xf0]  ;;  %v15013_v48 = vld [vmem:[%s21902_s10 + $0x24] sm:$0xf] }
 0xad0   : > { %4816 = vmatmul.bf16.vlgmr.msrb.gmra.mxu3 %v18282_v23  ;;  %4844 = vmatmul.bf16.vlgmr.msra.gmra.mxu1 %v18282_v23  ;;  %v12219_v23 = vld [vmem:[%s21902_s10 + $0x130] sm:$0xf0]  ;;  %v12090_v27 = vor.u32 %v15015_v29, %v12089_v18  ;;  %v12094_v17 = vor.u32 %v15013_v48, %v12091_v63  ;;  %v12147_v18 = vld [vmem:[%s21902_s10 + $0x98] sm:$0xf0]  ;;  %v12225_v29 = vld [vmem:[%s21902_s10 + $0x128] sm:$0xf] }
 0xad1   : > { %5188 = vmatpush.bf16.msra.mxu3 %v12250_v57  ;;  %5216 = vmatpush.bf16.msrb.mxu1 %v12254_v30  ;;  %v12222_v32 = vor.u32 %v15045_v62, %v12219_v23  ;;  %v12289_v57 = vld [vmem:[%s21902_s10 + $0x1a8] sm:$0xf]  ;;  %v15064_v30 = vld [vmem:[%s21902_s10 + $0x1b4] sm:$0xf0]  ;;  %v12078_v62 = vor.u32 %v15009_v24, %v12075_v25 }
 0xad2   : > { %v12273_v23 = vld [vmem:[%s21902_s10 + $0x188] sm:$0xf]  ;;  %v15048_v48 = vld [vmem:[%s21902_s10 + $0x134] sm:$0xf0] }
 0xad3   : > { %5172 = vmatpush.bf16.msrb.mxu2 %v12154_v8  ;;  %5200 = vmatpush.bf16.msrb.mxu0 %v12158_v20  ;;  %v15011_v8 = vld [vmem:[%s21902_s10 + $0xc] sm:$0xf0]  ;;  %v12291_v20 = vld [vmem:[%s21902_s10 + $0x1b8] sm:$0xf0]  ;;  %v15044_v24 = vld [vmem:[%s21902_s10 + $0x114] sm:$0xf0] }
 0xad4   : > { %v12294_v12 = vor.u32 %v15062_v21, %v12291_v20  ;;  %v12074_v60 = vor.u32 %v15011_v8, %v12073_v9  ;;  %v15024_v21 = vld [vmem:[%s21902_s10 + $0x74] sm:$0xf0]  ;;  %v12226_v9 = vor.u32 %v15048_v48, %v12225_v29  ;;  %v12209_v20 = vld [vmem:[%s21902_s10 + $0x108] sm:$0xf]  ;;  %v15165_v29 = vld [vmem:[%s21902_s10 + $0x4cc] sm:$0xf0] }
 0xad5   : > { %5189 = vmatpush.bf16.msra.mxu3 %v12234_v43  ;;  %5217 = vmatpush.bf16.msrb.mxu1 %v12238_v35  ;;  %v12195_v43 = vld [vmem:[%s21902_s10 + $0xf8] sm:$0xf0]  ;;  %v12290_v35 = vor.u32 %v15064_v30, %v12289_v57  ;;  %v15046_v57 = vld [vmem:[%s21902_s10 + $0x12c] sm:$0xf]  ;;  %v15199_v48 = vld [vmem:[%s21902_s10 + $0x5e4] sm:$0xf] }
 0xad6   : > { %v12198_v44 = vor.u32 %v15038_v53, %v12195_v43  ;;  %v12227_v30 = vld [vmem:[%s21902_s10 + $0x138] sm:$0xf0]  ;;  %v15042_v53 = vld [vmem:[%s21902_s10 + $0x10c] sm:$0xf] }
 0xad7   : > { %5173 = vmatpush.bf16.msrb.mxu2 %v12138_v19  ;;  %5201 = vmatpush.bf16.msrb.mxu0 %v12142_v51  ;;  %v15060_v19 = vld [vmem:[%s21902_s10 + $0x194] sm:$0xf0]  ;;  %v12194_v51 = vor.u32 %v15040_v15, %v12193_v36  ;;  %v12230_v8 = vor.u32 %v15046_v57, %v12227_v30  ;;  %v12113_v15 = vld [vmem:[%s21902_s10 + $0x48] sm:$0xf]  ;;  %v12211_v43 = vld [vmem:[%s21902_s10 + $0x118] sm:$0xf0] }
 0xad8   : > { %v12274_v42 = vor.u32 %v15060_v19, %v12273_v23  ;;  %v12214_v23 = vor.u32 %v15042_v53, %v12211_v43  ;;  %v12577_v30 = vld [vmem:[%s21902_s10 + $0x560] sm:$0xf]  ;;  %v15181_v53 = vld [vmem:[%s21902_s10 + $0x54c] sm:$0xf0] }
 0xad9   : > { %5190 = vmatpush.bf16.msra.mxu3 %v12218_v49  ;;  %5218 = vmatpush.bf16.msrb.mxu1 %v12222_v32  ;;  %v15036_v49 = vld [vmem:[%s21902_s10 + $0xd4] sm:$0xf0]  ;;  %v15034_v32 = vld [vmem:[%s21902_s10 + $0xcc] sm:$0xf] }
 0xada   : > { %4802 = vmatmul.bf16.vlgmr.msra.gmra.mxu2 %v18334_v13  ;;  %4830 = vmatmul.bf16.vlgmr.msra.gmra.mxu0 %v18334_v13  ;;  %v15066_v13 = vld [vmem:[%s21902_s10 + $0x1cc] sm:$0xf] }
 0xadb   : > { %5174 = vmatpush.bf16.msrb.mxu2 %v12122_v50  ;;  %5202 = vmatpush.bf16.msrb.mxu0 %v12126_v41  ;;  %v12310_v58 = vor.u32 %v15066_v13, %v12307_v59  ;;  %v12178_v50 = vor.u32 %v15036_v49, %v12177_v31  ;;  %v12182_v41 = vor.u32 %v15034_v32, %v12179_v3  ;;  %v15016_v31 = vld [vmem:[%s21902_s10 + $0x34] sm:$0xf0]  ;;  %v12081_v3 = vld [vmem:[%s21902_s10 + $0x8] sm:$0xf] }
 0xadc   : > { %v12246_v59 = vor.u32 %v15050_v47, %v12243_v1  ;;  %v12102_v32 = vor.u32 %v15014_v61, %v12099_v56  ;;  %v12593_v1 = vld [vmem:[%s21902_s10 + $0x580] sm:$0xf]  ;;  %v15177_v56 = vld [vmem:[%s21902_s10 + $0x52c] sm:$0xf0] }
 0xadd   : > { %5191 = vmatpush.bf16.msra.mxu3 %v12202_v7  ;;  %5219 = vmatpush.bf16.msrb.mxu1 %v12206_v5  ;;  %v12241_v7 = vld [vmem:[%s21902_s10 + $0x148] sm:$0xf]  ;;  %v15052_v5 = vld [vmem:[%s21902_s10 + $0x154] sm:$0xf0]  ;;  %v12545_v61 = vld [vmem:[%s21902_s10 + $0x520] sm:$0xf] }
 0xade   : > { %v12242_v13 = vor.u32 %v15052_v5, %v12241_v7 }
 0xadf   : > { %5175 = vmatpush.bf16.msrb.mxu2 %v12106_v54  ;;  %5203 = vmatpush.bf16.msrb.mxu0 %v12110_v33  ;;  %v15028_v54 = vld [vmem:[%s21902_s10 + $0x94] sm:$0xf0]  ;;  %v15026_v33 = vld [vmem:[%s21902_s10 + $0x8c] sm:$0xf] }
 0xae0   : > { %5192 = vmatmul.bf16.vlgmr.msra.gmra.mxu3 %v18486_v40  ;;  %5220 = vmatmul.bf16.vlgmr.msrb.gmra.mxu1 %v18486_v40 }
 0xae1   : > { %5240 = vmatpush.bf16.msrb.mxu3 %v12322_v26  ;;  %5268 = vmatpush.bf16.msra.mxu1 %v12326_v46  ;;  %v12166_v26 = vor.u32 %v15030_v6, %v12163_v16  ;;  %v12145_v46 = vld [vmem:[%s21902_s10 + $0x88] sm:$0xf] }
 0xae2   : > { %v12146_v63 = vor.u32 %v15028_v54, %v12145_v46  ;;  %v15169_v46 = vld [vmem:[%s21902_s10 + $0x4ec] sm:$0xf0] }
 0xae3   : > { %5176 = vmatpush.bf16.msrb.mxu2 %v12090_v27  ;;  %5204 = vmatpush.bf16.msrb.mxu0 %v12094_v17  ;;  %v15022_v27 = vld [vmem:[%s21902_s10 + $0x6c] sm:$0xf]  ;;  %v12131_v17 = vld [vmem:[%s21902_s10 + $0x78] sm:$0xf0]  ;;  %v15189_v54 = vld [vmem:[%s21902_s10 + $0x58c] sm:$0xf0] }
 0xae4   : > { %v12134_v36 = vor.u32 %v15022_v27, %v12131_v17 }
 0xae5   : > { %5241 = vmatpush.bf16.msrb.mxu3 %v12306_v11  ;;  %5269 = vmatpush.bf16.msra.mxu1 %v12310_v58  ;;  %v12150_v11 = vor.u32 %v15026_v33, %v12147_v18  ;;  %v12129_v58 = vld [vmem:[%s21902_s10 + $0x68] sm:$0xf]  ;;  %v12594_v33 = vor.u32 %v15189_v54, %v12593_v1  ;;  %v15149_v1 = vld [vmem:[%s21902_s10 + $0x44c] sm:$0xf0]  ;;  %v15183_v54 = vld [vmem:[%s21902_s10 + $0x564] sm:$0xf] }
 0xae6   : > { %v12130_v25 = vor.u32 %v15024_v21, %v12129_v58  ;;  %v12643_v58 = vld [vmem:[%s21902_s10 + $0x5f0] sm:$0xf0]  ;;  %v15185_v21 = vld [vmem:[%s21902_s10 + $0x56c] sm:$0xf0] }
 0xae7   : > { %5177 = vmatpush.bf16.msrb.mxu2 %v12074_v60  ;;  %5205 = vmatpush.bf16.msrb.mxu0 %v12078_v62  ;;  %v12115_v60 = vld [vmem:[%s21902_s10 + $0x58] sm:$0xf0]  ;;  %v12210_v62 = vor.u32 %v15044_v24, %v12209_v20  ;;  %v12646_v27 = vor.u32 %v15199_v48, %v12643_v58  ;;  %v12578_v17 = vor.u32 %v15185_v21, %v12577_v30  ;;  %v15195_v20 = vld [vmem:[%s21902_s10 + $0x5c4] sm:$0xf]  ;;  %v12633_v21 = vld [vmem:[%s21902_s10 + $0x5c8] sm:$0xf] }
 0xae8   : > { %v15159_v48 = vld [vmem:[%s21902_s10 + $0x4a4] sm:$0xf] }
 0xae9   : > { %5242 = vmatpush.bf16.msrb.mxu3 %v12290_v35  ;;  %5270 = vmatpush.bf16.msra.mxu1 %v12294_v12  ;;  %v15020_v35 = vld [vmem:[%s21902_s10 + $0x54] sm:$0xf0]  ;;  %v15018_v12 = vld [vmem:[%s21902_s10 + $0x4c] sm:$0xf] }
 0xaea   : > { %5178 = vmatmul.bf16.vlgmr.msrb.gmra.mxu2 %v18558_v4  ;;  %5206 = vmatmul.bf16.vlgmr.msrb.gmra.mxu0 %v18558_v4  ;;  %v12114_v19 = vor.u32 %v15020_v35, %v12113_v15  ;;  %v12561_v15 = vld [vmem:[%s21902_s10 + $0x540] sm:$0xf] }
 0xaeb   : > { %5226 = vmatpush.bf16.msra.mxu2 %v12194_v51  ;;  %5254 = vmatpush.bf16.msra.mxu0 %v12198_v44  ;;  %v12118_v51 = vor.u32 %v15018_v12, %v12115_v60  ;;  %v12097_v44 = vld [vmem:[%s21902_s10 + $0x28] sm:$0xf]  ;;  %v12562_v35 = vor.u32 %v15181_v53, %v12561_v15  ;;  %v12465_v60 = vld [vmem:[%s21902_s10 + $0x480] sm:$0xf] }
 0xaec   : > { %v12098_v49 = vor.u32 %v15016_v31, %v12097_v44 }
 0xaed   : > { %5243 = vmatpush.bf16.msrb.mxu3 %v12274_v42  ;;  %5271 = vmatpush.bf16.msra.mxu1 %v12278_v55  ;;  %v15012_v42 = vld [vmem:[%s21902_s10 + $0x14] sm:$0xf0]  ;;  %v15010_v55 = vld [vmem:[%s21902_s10 + $0xc] sm:$0xf] }
 0xaee   : > { %v12082_v52 = vor.u32 %v15012_v42, %v12081_v3  ;;  %v12546_v42 = vor.u32 %v15177_v56, %v12545_v61  ;;  %v15175_v61 = vld [vmem:[%s21902_s10 + $0x524] sm:$0xf] }
 0xaef   : > { %5227 = vmatpush.bf16.msra.mxu2 %v12178_v50  ;;  %5255 = vmatpush.bf16.msra.mxu0 %v12182_v41  ;;  %v12086_v50 = vor.u32 %v15010_v55, %v12083_v10  ;;  %v15138_v41 = vld [vmem:[%s21901_s9 + $0x10] sm:$0xff]  ;;  %v12449_v10 = vld [vmem:[%s21902_s10 + $0x460] sm:$0xf] }
 0xaf0   : > { %v12515_v55 = vld [vmem:[%s21902_s10 + $0x4f0] sm:$0xf0] }
 0xaf1   : > { %5244 = vmatpush.bf16.msrb.mxu3 %v12258_v34  ;;  %5272 = vmatpush.bf16.msra.mxu1 %v12262_v37  ;;  %v12609_v34 = vld [vmem:[%s21902_s10 + $0x5a0] sm:$0xf]  ;;  %v15193_v37 = vld [vmem:[%s21902_s10 + $0x5ac] sm:$0xf0] }
 0xaf3   : > { %5228 = vmatpush.bf16.msra.mxu2 %v12162_v22  ;;  %5256 = vmatpush.bf16.msra.mxu0 %v12166_v26  ;;  %v12610_v22 = vor.u32 %v15193_v37, %v12609_v34  ;;  %v12513_v26 = vld [vmem:[%s21902_s10 + $0x4e0] sm:$0xf]  ;;  %v12499_v34 = vld [vmem:[%s21902_s10 + $0x4d0] sm:$0xf0]  ;;  %v12649_v37 = vld [vmem:[%s21902_s10 + $0x5e8] sm:$0xf] }
 0xaf4   : > { %v12514_v47 = vor.u32 %v15169_v46, %v12513_v26 }
 0xaf5   : > { %5245 = vmatpush.bf16.msrb.mxu3 %v12242_v13  ;;  %5273 = vmatpush.bf16.msra.mxu1 %v12246_v59  ;;  %v12497_v59 = vld [vmem:[%s21902_s10 + $0x4c0] sm:$0xf] }
 0xaf7   : > { %5229 = vmatpush.bf16.msra.mxu2 %v12146_v63  ;;  %5257 = vmatpush.bf16.msra.mxu0 %v12150_v11  ;;  %v12498_v11 = vor.u32 %v15165_v29, %v12497_v59  ;;  %v12579_v59 = vld [vmem:[%s21902_s10 + $0x570] sm:$0xf0] }
 0xaf8   : > { %v12582_v58 = vor.u32 %v15183_v54, %v12579_v59  ;;  %v12651_v54 = vld [vmem:[%s21902_s10 + $0x5f8] sm:$0xf0]  ;;  %v12585_v59 = vld [vmem:[%s21902_s10 + $0x568] sm:$0xf] }
 0xaf9   : > { %5246 = vmatpush.bf16.msrb.mxu3 %v12226_v9  ;;  %5274 = vmatpush.bf16.msra.mxu1 %v12230_v8  ;;  %v12481_v9 = vld [vmem:[%s21902_s10 + $0x4a0] sm:$0xf]  ;;  %v15161_v8 = vld [vmem:[%s21902_s10 + $0x4ac] sm:$0xf0] }
 0xafb   : > { %5230 = vmatpush.bf16.msra.mxu2 %v12130_v25  ;;  %5258 = vmatpush.bf16.msra.mxu0 %v12134_v36  ;;  %v12482_v25 = vor.u32 %v15161_v8, %v12481_v9  ;;  %v12627_v36 = vld [vmem:[%s21902_s10 + $0x5d0] sm:$0xf0]  ;;  %v15145_v8 = vld [vmem:[%s21902_s10 + $0x42c] sm:$0xf0] }
 0xafc   : > { %v12630_v43 = vor.u32 %v15195_v20, %v12627_v36  ;;  %v15179_v20 = vld [vmem:[%s21902_s10 + $0x544] sm:$0xf] }
 0xafd   : > { %5247 = vmatpush.bf16.msrb.mxu3 %v12210_v62  ;;  %5275 = vmatpush.bf16.msra.mxu1 %v12214_v23  ;;  %v15157_v62 = vld [vmem:[%s21902_s10 + $0x48c] sm:$0xf0]  ;;  %v15191_v23 = vld [vmem:[%s21902_s10 + $0x5a4] sm:$0xf] }
 0xaff   : > { %5231 = vmatpush.bf16.msra.mxu2 %v12114_v19  ;;  %5259 = vmatpush.bf16.msra.mxu0 %v12118_v51  ;;  %v12466_v19 = vor.u32 %v15157_v62, %v12465_v60  ;;  %v12611_v51 = vld [vmem:[%s21902_s10 + $0x5b0] sm:$0xf0]  ;;  %v12617_v62 = vld [vmem:[%s21902_s10 + $0x5a8] sm:$0xf] }
 0xb00   : > { %5248 = vmatmul.bf16.vlgmr.msrb.gmra.mxu3 %v18486_v40  ;;  %5276 = vmatmul.bf16.vlgmr.msra.gmra.mxu1 %v18486_v40  ;;  %v12641_v40 = vld [vmem:[%s21902_s10 + $0x5e0] sm:$0xf] }
 0xb01   : > { %5314 = vmatpush.bf16.msra.mxu3 %v17930_v28  ;;  %v12642_v14 = vor.u32 %v15201_v45, %v12641_v40  ;;  %v15187_v40 = vld [vmem:[%s21902_s10 + $0x584] sm:$0xf]  ;;  %v12595_v45 = vld [vmem:[%s21902_s10 + $0x590] sm:$0xf0] }
 0xb03   : > { %5232 = vmatpush.bf16.msra.mxu2 %v12098_v49  ;;  %5260 = vmatpush.bf16.msra.mxu0 %v12102_v32  ;;  %v15167_v49 = vld [vmem:[%s21902_s10 + $0x4e4] sm:$0xf]  ;;  %v12614_v32 = vor.u32 %v15191_v23, %v12611_v51  ;;  %v15194_v23 = vld [vmem:[%s21902_s10 + $0x5b4] sm:$0xf0] }
 0xb04   : > { %5722 = vmatpush.bf16.msrb.mxu1 %v12642_v14  ;;  %v12598_v14 = vor.u32 %v15187_v40, %v12595_v45  ;;  %v12618_v51 = vor.u32 %v15194_v23, %v12617_v62 }
 0xb05   : > { %5750 = vmatpush.bf16.msrb.mxu3 %v12646_v27  ;;  %v15198_v27 = vld [vmem:[%s21902_s10 + $0x5d4] sm:$0xf0] }
 0xb06   : > { %v12634_v9 = vor.u32 %v15198_v27, %v12633_v21 }
 0xb07   : > { %5233 = vmatpush.bf16.msra.mxu2 %v12082_v52  ;;  %5261 = vmatpush.bf16.msra.mxu0 %v12086_v50  ;;  %v15153_v52 = vld [vmem:[%s21902_s10 + $0x46c] sm:$0xf0]  ;;  %v12518_v50 = vor.u32 %v15167_v49, %v12515_v55  ;;  %v12547_v55 = vld [vmem:[%s21902_s10 + $0x530] sm:$0xf0] }
 0xb09   : > { %5751 = vmatpush.bf16.msrb.mxu3 %v12630_v43  ;;  %v15155_v43 = vld [vmem:[%s21902_s10 + $0x484] sm:$0xf] }
 0xb0a   : > { %5234 = vmatmul.bf16.vlgmr.msra.gmra.mxu2 %v18558_v4  ;;  %5262 = vmatmul.bf16.vlgmr.msra.gmra.mxu0 %v18558_v4  ;;  %v12625_v4 = vld [vmem:[%s21902_s10 + $0x5c0] sm:$0xf] }
 0xb0b   : > { %5300 = vmatpush.bf16.msrb.mxu2 %v17885_v39  ;;  %v12626_v0 = vor.u32 %v15197_v38, %v12625_v4  ;;  %5708 = vmatpush.bf16.msrb.mxu0 %v12514_v47  ;;  %v12529_v4 = vld [vmem:[%s21902_s10 + $0x500] sm:$0xf]  ;;  %v15173_v38 = vld [vmem:[%s21902_s10 + $0x50c] sm:$0xf0] }
 0xb0c   : > { %v12433_v47 = vld [vmem:[%s21902_s10 + $0x440] sm:$0xf] }
 0xb0d   : > { %5723 = vmatpush.bf16.msrb.mxu1 %v12626_v0  ;;  %5752 = vmatpush.bf16.msrb.mxu3 %v12614_v32  ;;  %v15163_v0 = vld [vmem:[%s21902_s10 + $0x4c4] sm:$0xf]  ;;  %v12521_v32 = vld [vmem:[%s21902_s10 + $0x4e8] sm:$0xf] }
 0xb0e   : > { %v12502_v26 = vor.u32 %v15163_v0, %v12499_v34 }
 0xb0f   : > { %5709 = vmatpush.bf16.msrb.mxu0 %v12498_v11  ;;  %5736 = vmatpush.bf16.msra.mxu2 %v12518_v50  ;;  %v12483_v11 = vld [vmem:[%s21902_s10 + $0x4b0] sm:$0xf0] }
 0xb10   : > { %12334 = vmatmul.msk.bf16.vlgmr.msra.gmra.mxu3 %vm4214_vm6, %v15138_v41  ;;  %v12486_v30 = vor.u32 %v15159_v48, %v12483_v11  ;;  %v12451_v50 = vld [vmem:[%s21902_s10 + $0x470] sm:$0xf0]  ;;  %v15186_v48 = vld [vmem:[%s21902_s10 + $0x574] sm:$0xf0] }
 0xb11   : > { %5724 = vmatpush.bf16.msrb.mxu1 %v12610_v22  ;;  %5753 = vmatpush.bf16.msrb.mxu3 %v12598_v14  ;;  %v12601_v14 = vld [vmem:[%s21902_s10 + $0x588] sm:$0xf] }
 0xb13   : > { %5710 = vmatpush.bf16.msrb.mxu0 %v12482_v25  ;;  %5737 = vmatpush.bf16.msra.mxu2 %v12502_v26  ;;  %v12563_v25 = vld [vmem:[%s21902_s10 + $0x550] sm:$0xf0] }
 0xb14   : > { %v12566_v53 = vor.u32 %v15179_v20, %v12563_v25  ;;  %v12419_v25 = vld [vmem:[%s21902_s10 + $0x430] sm:$0xf0] }
 0xb15   : > { %5725 = vmatpush.bf16.msrb.mxu1 %v12594_v33  ;;  %5754 = vmatpush.bf16.msrb.mxu3 %v12582_v58 }
 0xb17   : > { %5711 = vmatpush.bf16.msrb.mxu0 %v12466_v19  ;;  %5738 = vmatpush.bf16.msra.mxu2 %v12486_v30  ;;  %v12586_v30 = vor.u32 %v15186_v48, %v12585_v59  ;;  %v15184_v59 = vld [vmem:[%s21902_s10 + $0x56c] sm:$0xf] }
 0xb19   : > { %5726 = vmatpush.bf16.msrb.mxu1 %v12578_v17  ;;  %v12417_v17 = vld [vmem:[%s21902_s10 + $0x420] sm:$0xf]  ;;  %5755 = vmatpush.bf16.msrb.mxu3 %v12566_v53 }
 0xb1a   : > { %12333 = vmatmul.msk.bf16.vlgmr.msrb.gmra.mxu2 %vm4214_vm6, %v15138_v41  ;;  %v12450_v41 = vor.u32 %v15153_v52, %v12449_v10  ;;  %v12418_v15 = vor.u32 %v15145_v8, %v12417_v17  ;;  %v15151_v52 = vld [vmem:[%s21902_s10 + $0x464] sm:$0xf]  ;;  %v12489_v17 = vld [vmem:[%s21902_s10 + $0x4a8] sm:$0xf]  ;;  %v15196_v8 = vld [vmem:[%s21902_s10 + $0x5cc] sm:$0xf] }
 0xb1b   : > { %v12454_v45 = vor.u32 %v15151_v52, %v12451_v50  ;;  %v15178_v52 = vld [vmem:[%s21902_s10 + $0x534] sm:$0xf0]  ;;  %v15168_v50 = vld [vmem:[%s21902_s10 + $0x4ec] sm:$0xf] }
 0xb1c   : > { %5712 = vmatpush.bf16.msrb.mxu0 %v12450_v41  ;;  %v12550_v41 = vor.u32 %v15175_v61, %v12547_v55 }
 0xb1d   : > { %5727 = vmatpush.bf16.msrb.mxu1 %v12562_v35  ;;  %v12467_v35 = vld [vmem:[%s21902_s10 + $0x490] sm:$0xf0] }
 0xb1e   : > { %v12470_v60 = vor.u32 %v15155_v43, %v12467_v35  ;;  %5756 = vmatpush.bf16.msrb.mxu3 %v12550_v41  ;;  %v12569_v35 = vld [vmem:[%s21902_s10 + $0x548] sm:$0xf] }
 0xb20   : > { %5739 = vmatpush.bf16.msra.mxu2 %v12470_v60  ;;  %v15182_v60 = vld [vmem:[%s21902_s10 + $0x554] sm:$0xf0] }
 0xb21   : > { %5728 = vmatpush.bf16.msrb.mxu1 %v12546_v42  ;;  %v15170_v42 = vld [vmem:[%s21902_s10 + $0x4f4] sm:$0xf0]  ;;  %v12570_v23 = vor.u32 %v15182_v60, %v12569_v35  ;;  %v15156_v60 = vld [vmem:[%s21902_s10 + $0x48c] sm:$0xf] }
 0xb22   : > { %v12522_v10 = vor.u32 %v15170_v42, %v12521_v32  ;;  %v12403_v32 = vld [vmem:[%s21902_s10 + $0x410] sm:$0xf0]  ;;  %v12619_v42 = vld [vmem:[%s21902_s10 + $0x5b8] sm:$0xf0] }
 0xb24   : > { %5740 = vmatpush.bf16.msra.mxu2 %v12454_v45  ;;  %v12523_v45 = vld [vmem:[%s21902_s10 + $0x4f8] sm:$0xf0] }
 0xb3d   : > { %v4789_v6 = vpop.f32.mrf.mxu1 }
 0xb43   : > { %v4761_v7 = vpop.f32.mrf.mxu3 }
 0xb45   : > { %v18719_v18 = vpop.f32.mrf.mxu1 }
 0xb47   : > { %v4775_v16 = vpop.f32.mrf.mxu0 }
 0xb48   : > { %v18705_v5 = vadd.f32 %v4789_v6, %v4775_v16  ;;  %v12530_v16 = vor.u32 %v15173_v38, %v12529_v4  ;;  %v15190_v4 = vld [vmem:[%s21902_s10 + $0x594] sm:$0xf0] }
 0xb49   : > { %v12602_v0 = vor.u32 %v15190_v4, %v12601_v14  ;;  %v12526_v14 = vor.u32 %v15168_v50, %v12523_v45  ;;  %v12457_v4 = vld [vmem:[%s21902_s10 + $0x468] sm:$0xf]  ;;  %v15148_v45 = vld [vmem:[%s21902_s10 + $0x44c] sm:$0xf] }
 0xb4a   : > { %5729 = vmatpush.bf16.msrb.mxu1 %v12530_v16  ;;  %v12531_v16 = vld [vmem:[%s21902_s10 + $0x510] sm:$0xf0] }
 0xb4b   : > { %v18752_v24 = vpop.f32.mrf.mxu3 }
 0xb4d   : > { %v4747_v13 = vpop.f32.mrf.mxu2  ;;  %v4845_v44 = vpop.f32.mrf.mxu1 }
 0xb4e   : > { %v18730_v63 = vadd.f32 %v4761_v7, %v4747_v13  ;;  %v15202_v7 = vld [vmem:[%s21902_s10 + $0x5f4] sm:$0xf0]  ;;  %v12434_v13 = vor.u32 %v15149_v1, %v12433_v47  ;;  %v15147_v47 = vld [vmem:[%s21902_s10 + $0x444] sm:$0xf]  ;;  %v12435_v1 = vld [vmem:[%s21902_s10 + $0x450] sm:$0xf0] }
 0xb4f   : > { %v18735_v57 = vpop.f32.mrf.mxu0  ;;  %v12650_v46 = vor.u32 %v15202_v7, %v12649_v37  ;;  %v12505_v37 = vld [vmem:[%s21902_s10 + $0x4c8] sm:$0xf] }
 0xb50   : > { %5713 = vmatpush.bf16.msrb.mxu0 %v12434_v13  ;;  %v12438_v13 = vor.u32 %v15147_v47, %v12435_v1  ;;  %v12507_v47 = vld [vmem:[%s21902_s10 + $0x4d8] sm:$0xf0] }
 0xb51   : > { %5778 = vmatpush.bf16.msra.mxu1 %v12650_v46 }
 0xb52   : > { %5741 = vmatpush.bf16.msra.mxu2 %v12438_v13  ;;  %v15150_v13 = vld [vmem:[%s21902_s10 + $0x454] sm:$0xf0] }
 0xb53   : > { %v4817_v6 = vpop.f32.mrf.mxu3 }
 0xb54   : > { %5714 = vmatpush.bf16.msrb.mxu0 %v12418_v15  ;;  %v12635_v15 = vld [vmem:[%s21902_s10 + $0x5d8] sm:$0xf0] }
 0xb55   : > { %v18763_v12 = vpop.f32.mrf.mxu2  ;;  %v18861_v36 = vpop.f32.mrf.mxu1  ;;  %5779 = vmatpush.bf16.msra.mxu1 %v12634_v9  ;;  %v15162_v9 = vld [vmem:[%s21902_s10 + $0x4b4] sm:$0xf0]  ;;  %v12638_v62 = vor.u32 %v15196_v8, %v12635_v15  ;;  %v12571_v15 = vld [vmem:[%s21902_s10 + $0x558] sm:$0xf0] }
 0xb56   : > { %v12490_v20 = vor.u32 %v15162_v9, %v12489_v17  ;;  %v12425_v17 = vld [vmem:[%s21902_s10 + $0x428] sm:$0xf]  ;;  %v15146_v8 = vld [vmem:[%s21902_s10 + $0x434] sm:$0xf0] }
 0xb57   : > { %v4831_v31 = vpop.f32.mrf.mxu0 }
 0xb58   : > { %v18786_v3 = vadd.f32 %v4845_v44, %v4831_v31  ;;  %v12401_v44 = vld [vmem:[%s21902_s10 + $0x400] sm:$0xf]  ;;  %v15141_v31 = vld [vmem:[%s21902_s10 + $0x40c] sm:$0xf0] }
 0xb59   : > { %v12402_v49 = vor.u32 %v15141_v31, %v12401_v44  ;;  %5780 = vmatpush.bf16.msra.mxu1 %v12618_v51  ;;  %v12473_v51 = vld [vmem:[%s21902_s10 + $0x488] sm:$0xf]  ;;  %v15158_v44 = vld [vmem:[%s21902_s10 + $0x494] sm:$0xf0]  ;;  %v15192_v31 = vld [vmem:[%s21902_s10 + $0x5ac] sm:$0xf] }
 0xb5a   : > { %v12474_v61 = vor.u32 %v15158_v44, %v12473_v51  ;;  %v12622_v41 = vor.u32 %v15192_v31, %v12619_v42  ;;  %v12409_v44 = vld [vmem:[%s21902_s10 + $0x408] sm:$0xf]  ;;  %v15142_v31 = vld [vmem:[%s21902_s10 + $0x414] sm:$0xf0] }
 0xb5b   : > { %v18886_v56 = vpop.f32.mrf.mxu3  ;;  %5715 = vmatpush.bf16.msrb.mxu0 %v12402_v49  ;;  %v15139_v49 = vld [vmem:[%s21902_s10 + $0x404] sm:$0xf] }
 0xb5c   : > { %v12406_v55 = vor.u32 %v15139_v49, %v12403_v32  ;;  %v12410_v49 = vor.u32 %v15142_v31, %v12409_v44  ;;  %v12555_v32 = vld [vmem:[%s21902_s10 + $0x538] sm:$0xf0]  ;;  %v12937_v44 = vld [vmem:[%s21902_s10 + $0x7a0] sm:$0xf]  ;;  %v15258_v31 = vld [vmem:[%s21902_s10 + $0x7ac] sm:$0xf0] }
 0xb5d   : > { %v4803_v22 = vpop.f32.mrf.mxu2  ;;  %v5221_v34 = vpop.f32.mrf.mxu1  ;;  %5781 = vmatpush.bf16.msra.mxu1 %v12602_v0  ;;  %v15188_v0 = vld [vmem:[%s21902_s10 + $0x58c] sm:$0xf] }
 0xb5e   : > { %v18830_v33 = vadd.f32 %v4817_v6, %v4803_v22  ;;  %v15171_v6 = vld [vmem:[%s21902_s10 + $0x504] sm:$0xf]  ;;  %v15200_v22 = vld [vmem:[%s21902_s10 + $0x5ec] sm:$0xf] }
 0xb5f   : > { %v18835_v29 = vpop.f32.mrf.mxu0  ;;  %5764 = vmatpush.bf16.msra.mxu0 %v12522_v10  ;;  %v12534_v7 = vor.u32 %v15171_v6, %v12531_v16  ;;  %v12654_v11 = vor.u32 %v15200_v22, %v12651_v54  ;;  %v12553_v10 = vld [vmem:[%s21902_s10 + $0x528] sm:$0xf]  ;;  %v12603_v16 = vld [vmem:[%s21902_s10 + $0x598] sm:$0xf0] }
 0xb60   : > { %v12606_v22 = vor.u32 %v15188_v0, %v12603_v16  ;;  %v12441_v54 = vld [vmem:[%s21902_s10 + $0x448] sm:$0xf] }
 0xb61   : > { %5757 = vmatpush.bf16.msrb.mxu3 %v12534_v7  ;;  %5782 = vmatpush.bf16.msra.mxu1 %v12586_v30  ;;  %v15164_v7 = vld [vmem:[%s21902_s10 + $0x4cc] sm:$0xf]  ;;  %v12442_v48 = vor.u32 %v15150_v13, %v12441_v54 }
 0xb62   : > { %v12510_v1 = vor.u32 %v15164_v7, %v12507_v47  ;;  %v15160_v30 = vld [vmem:[%s21902_s10 + $0x4ac] sm:$0xf] }
 0xb63   : > { %v5193_v27 = vpop.f32.mrf.mxu3  ;;  %v15144_v7 = vld [vmem:[%s21902_s10 + $0x42c] sm:$0xf] }
 0xb65   : > { %v18875_v19 = vpop.f32.mrf.mxu2  ;;  %5806 = vmatpush.bf16.msra.mxu3 %v12654_v11  ;;  %5783 = vmatpush.bf16.msra.mxu1 %v12570_v23  ;;  %v12587_v11 = vld [vmem:[%s21902_s10 + $0x578] sm:$0xf0] }
 0xb67   : > { %v5207_v40 = vpop.f32.mrf.mxu0 }
 0xb68   : > { %v5208_v38 = vadd.f32 %v5207_v40, %v18705_v5  ;;  %v15166_v5 = vld [vmem:[%s21902_s10 + $0x4d4] sm:$0xf0]  ;;  %v12554_v40 = vor.u32 %v15178_v52, %v12553_v10  ;;  %v12459_v10 = vld [vmem:[%s21902_s10 + $0x478] sm:$0xf0] }
 0xb69   : > { %v12506_v46 = vor.u32 %v15166_v5, %v12505_v37  ;;  %5807 = vmatpush.bf16.msra.mxu3 %v12638_v62  ;;  %v12537_v37 = vld [vmem:[%s21902_s10 + $0x508] sm:$0xf]  ;;  %v15174_v5 = vld [vmem:[%s21902_s10 + $0x514] sm:$0xf0]  ;;  %v12475_v62 = vld [vmem:[%s21902_s10 + $0x498] sm:$0xf0] }
 0xb6a   : > { %v18925_v26 = vadd.f32 %v5221_v34, %v5208_v38  ;;  %v15154_v38 = vld [vmem:[%s21902_s10 + $0x474] sm:$0xf0]  ;;  %5784 = vmatpush.bf16.msra.mxu1 %v12554_v40  ;;  %v12478_v23 = vor.u32 %v15156_v60, %v12475_v62  ;;  %v12825_v62 = vld [vmem:[%s21902_s10 + $0x6c0] sm:$0xf] }
 0xb6b   : > { %5765 = vmatpush.bf16.msra.mxu0 %v12506_v46  ;;  %v12458_v6 = vor.u32 %v15154_v38, %v12457_v4  ;;  %v19011_v34 = vpop.f32.mrf.mxu3  ;;  %v12538_v46 = vor.u32 %v15174_v5, %v12537_v37  ;;  %v15172_v4 = vld [vmem:[%s21902_s10 + $0x50c] sm:$0xf] }
 0xb6d   : > { %v5179_v58 = vpop.f32.mrf.mxu2  ;;  %5808 = vmatpush.bf16.msra.mxu3 %v12622_v41 }
 0xb6e   : > { %v5180_v21 = vadd.f32 %v5179_v58, %v18730_v63  ;;  %v15143_v63 = vld [vmem:[%s21902_s10 + $0x424] sm:$0xf]  ;;  %5785 = vmatpush.bf16.msra.mxu1 %v12538_v46 }
 0xb6f   : > { %v12422_v43 = vor.u32 %v15143_v63, %v12419_v25  ;;  %5766 = vmatpush.bf16.msra.mxu0 %v12490_v20  ;;  %v19037_v58 = vpop.f32.mrf.mxu0  ;;  %v19051_v20 = vpop.f32.mrf.mxu1  ;;  %v12426_v63 = vor.u32 %v15146_v8, %v12425_v17  ;;  %v15180_v25 = vld [vmem:[%s21902_s10 + $0x54c] sm:$0xf]  ;;  %v12969_v17 = vld [vmem:[%s21902_s10 + $0x7e0] sm:$0xf] }
 0xb70   : > { %v18961_v53 = vadd.f32 %v5193_v27, %v5180_v21  ;;  %v12491_v21 = vld [vmem:[%s21902_s10 + $0x4b8] sm:$0xf0]  ;;  %v12590_v27 = vor.u32 %v15184_v59, %v12587_v11  ;;  %v12953_v8 = vld [vmem:[%s21902_s10 + $0x7c0] sm:$0xf] }
 0xb71   : > { %5742 = vmatpush.bf16.msra.mxu2 %v12422_v43  ;;  %5809 = vmatpush.bf16.msra.mxu3 %v12606_v22  ;;  %v12494_v9 = vor.u32 %v15160_v30, %v12491_v21  ;;  %v12574_v43 = vor.u32 %v15180_v25, %v12571_v15  ;;  %v12427_v22 = vld [vmem:[%s21902_s10 + $0x438] sm:$0xf0]  ;;  %v15262_v25 = vld [vmem:[%s21902_s10 + $0x7cc] sm:$0xf0]  ;;  %v12841_v15 = vld [vmem:[%s21902_s10 + $0x6e0] sm:$0xf] }
 0xb72   : > { %v12430_v46 = vor.u32 %v15144_v7, %v12427_v22  ;;  %v12955_v7 = vld [vmem:[%s21902_s10 + $0x7d0] sm:$0xf0] }
 0xb73   : > { %5767 = vmatpush.bf16.msra.mxu0 %v12474_v61  ;;  %v15176_v61 = vld [vmem:[%s21902_s10 + $0x52c] sm:$0xf] }
 0xb74   : > { %v12558_v52 = vor.u32 %v15176_v61, %v12555_v32  ;;  %v12921_v32 = vld [vmem:[%s21902_s10 + $0x780] sm:$0xf] }
 0xb75   : > { %5743 = vmatpush.bf16.msra.mxu2 %v12406_v55  ;;  %5810 = vmatpush.bf16.msra.mxu3 %v12590_v27  ;;  %v19065_v51 = vpop.f32.mrf.mxu2  ;;  %v15152_v55 = vld [vmem:[%s21902_s10 + $0x46c] sm:$0xf] }
 0xb76   : > { %v12462_v41 = vor.u32 %v15152_v55, %v12459_v10  ;;  %v15203_v10 = vld [vmem:[%s21901_s9 + $0x18] sm:$0xff] }
 0xb77   : > { %5768 = vmatpush.bf16.msra.mxu0 %v12458_v6 }
 0xb79   : > { %5792 = vmatpush.bf16.msrb.mxu2 %v12526_v14  ;;  %5811 = vmatpush.bf16.msra.mxu3 %v12574_v43  ;;  %v12443_v14 = vld [vmem:[%s21902_s10 + $0x458] sm:$0xf0]  ;;  %v15234_v43 = vld [vmem:[%s21902_s10 + $0x6ec] sm:$0xf0] }
 0xb7a   : > { %v12446_v6 = vor.u32 %v15148_v45, %v12443_v14  ;;  %v12842_v60 = vor.u32 %v15234_v43, %v12841_v15  ;;  %v15250_v45 = vld [vmem:[%s21902_s10 + $0x76c] sm:$0xf0]  ;;  %v15252_v15 = vld [vmem:[%s21902_s10 + $0x784] sm:$0xf] }
 0xb7b   : > { %5769 = vmatpush.bf16.msra.mxu0 %v12442_v48 }
 0xb7d   : > { %5793 = vmatpush.bf16.msrb.mxu2 %v12510_v1  ;;  %v5277_v40 = vpop.f32.mrf.mxu1  ;;  %5812 = vmatpush.bf16.msra.mxu3 %v12558_v52  ;;  %v15140_v1 = vld [vmem:[%s21902_s10 + $0x40c] sm:$0xf]  ;;  %v15264_v52 = vld [vmem:[%s21902_s10 + $0x7e4] sm:$0xf] }
 0xb7f   : > { %5770 = vmatpush.bf16.msra.mxu0 %v12426_v63 }
 0xb81   : > { %5794 = vmatpush.bf16.msrb.mxu2 %v12494_v9  ;;  %v15266_v9 = vld [vmem:[%s21902_s10 + $0x7ec] sm:$0xf0] }
 0xb82   : > { %v12970_v63 = vor.u32 %v15266_v9, %v12969_v17  ;;  %v12843_v9 = vld [vmem:[%s21902_s10 + $0x6f0] sm:$0xf0] }
 0xb83   : > { %v5249_v35 = vpop.f32.mrf.mxu3  ;;  %5771 = vmatpush.bf16.msra.mxu0 %v12410_v49  ;;  %v12938_v49 = vor.u32 %v15258_v31, %v12937_v44 }
 0xb85   : > { %5795 = vmatpush.bf16.msrb.mxu2 %v12478_v23  ;;  %v15230_v23 = vld [vmem:[%s21902_s10 + $0x6cc] sm:$0xf0] }
 0xb86   : > { %v12826_v61 = vor.u32 %v15230_v23, %v12825_v62  ;;  %v15238_v62 = vld [vmem:[%s21902_s10 + $0x70c] sm:$0xf0]  ;;  %v15228_v23 = vld [vmem:[%s21902_s10 + $0x6c4] sm:$0xf] }
 0xb87   : > { %v5263_v42 = vpop.f32.mrf.mxu0 }
 0xb88   : > { %v5264_v50 = vadd.f32 %v5263_v42, %v18786_v3  ;;  %v12539_v3 = vld [vmem:[%s21902_s10 + $0x518] sm:$0xf0]  ;;  %v15254_v42 = vld [vmem:[%s21902_s10 + $0x78c] sm:$0xf0] }
 0xb89   : > { %5796 = vmatpush.bf16.msrb.mxu2 %v12462_v41  ;;  %v12542_v16 = vor.u32 %v15172_v4, %v12539_v3  ;;  %v12922_v55 = vor.u32 %v15254_v42, %v12921_v32  ;;  %v12809_v4 = vld [vmem:[%s21902_s10 + $0x6a0] sm:$0xf]  ;;  %v15226_v3 = vld [vmem:[%s21902_s10 + $0x6ac] sm:$0xf0]  ;;  %v15267_v32 = vld [vmem:[%s21902_s10 + $0x7f4] sm:$0xf0] }
 0xb8a   : > { %v19095_v38 = vadd.f32 %v5277_v40, %v5264_v50  ;;  %v12971_v50 = vld [vmem:[%s21902_s10 + $0x7f0] sm:$0xf0]  ;;  %v12905_v40 = vld [vmem:[%s21902_s10 + $0x760] sm:$0xf] }
 0xb8b   : > { %v19100_v0 = vpop.f32.mrf.mxu3  ;;  %5813 = vmatpush.bf16.msra.mxu3 %v12542_v16  ;;  %v12974_v41 = vor.u32 %v15264_v52, %v12971_v50  ;;  %v12906_v14 = vor.u32 %v15250_v45, %v12905_v40  ;;  %v12810_v16 = vor.u32 %v15226_v3, %v12809_v4  ;;  %v15214_v52 = vld [vmem:[%s21902_s10 + $0x64c] sm:$0xf0]  ;;  %v15248_v50 = vld [vmem:[%s21902_s10 + $0x764] sm:$0xf]  ;;  %v12907_v40 = vld [vmem:[%s21902_s10 + $0x770] sm:$0xf0] }
 0xb8c   : > { %v15224_v45 = vld [vmem:[%s21902_s10 + $0x6a4] sm:$0xf]  ;;  %v12910_v4 = vor.u32 %v15248_v50, %v12907_v40  ;;  %v15265_v50 = vld [vmem:[%s21902_s10 + $0x7ec] sm:$0xf] }
 0xb8d   : > { %v5235_v37 = vpop.f32.mrf.mxu2  ;;  %5797 = vmatpush.bf16.msrb.mxu2 %v12446_v6  ;;  %v12889_v6 = vld [vmem:[%s21902_s10 + $0x740] sm:$0xf]  ;;  %v15212_v40 = vld [vmem:[%s21902_s10 + $0x644] sm:$0xf] }
 0xb8e   : > { %v5236_v5 = vadd.f32 %v5235_v37, %v18830_v33  ;;  %v12411_v33 = vld [vmem:[%s21902_s10 + $0x418] sm:$0xf0]  ;;  %v15246_v37 = vld [vmem:[%s21902_s10 + $0x74c] sm:$0xf0] }
 0xb8f   : > { %v12414_v13 = vor.u32 %v15140_v1, %v12411_v33  ;;  %v12890_v22 = vor.u32 %v15246_v37, %v12889_v6  ;;  %v12793_v1 = vld [vmem:[%s21902_s10 + $0x680] sm:$0xf]  ;;  %v15222_v33 = vld [vmem:[%s21902_s10 + $0x68c] sm:$0xf0]  ;;  %v12961_v6 = vld [vmem:[%s21902_s10 + $0x7c8] sm:$0xf] }
 0xb90   : > { %v19109_v47 = vadd.f32 %v5249_v35, %v5236_v5  ;;  %v12954_v35 = vor.u32 %v15262_v25, %v12953_v8  ;;  %v15260_v5 = vld [vmem:[%s21902_s10 + $0x7c4] sm:$0xf]  ;;  %v15218_v25 = vld [vmem:[%s21902_s10 + $0x66c] sm:$0xf0] }
 0xb91   : > { %5798 = vmatpush.bf16.msrb.mxu2 %v12430_v46  ;;  %v12958_v46 = vor.u32 %v15260_v5, %v12955_v7  ;;  %v12745_v5 = vld [vmem:[%s21902_s10 + $0x620] sm:$0xf]  ;;  %v15210_v7 = vld [vmem:[%s21902_s10 + $0x62c] sm:$0xf0] }
 0xb93   : > { %v5316_v54 = vpop.f32.mrf.mxu3 }
 0xb95   : > { %v19117_v59 = vpop.f32.mrf.mxu2  ;;  %5799 = vmatpush.bf16.msrb.mxu2 %v12414_v13  ;;  %v15256_v13 = vld [vmem:[%s21902_s10 + $0x7a4] sm:$0xf] }
 0xb9b   : > { %v5318_v48 = vpop.f32.mrf.mxu3 }
 0xb9c   : > { %v5322_v11 = vpack.c.bf16 %v5318_v48, %v5316_v54  ;;  %v12794_v54 = vor.u32 %v15222_v33, %v12793_v1  ;;  %v12939_v48 = vld [vmem:[%s21902_s10 + $0x7b0] sm:$0xf0]  ;;  %v15220_v33 = vld [vmem:[%s21902_s10 + $0x684] sm:$0xf] }
 0xb9d   : > { %v5302_v30 = vpop.f32.mrf.mxu2  ;;  %v12891_v1 = vld [vmem:[%s21902_s10 + $0x750] sm:$0xf0] }
 0xb9e   : > { %5730 = vmatmul.bf16.vlgmr.msrb.gmra.mxu1 %v5322_v11  ;;  %5758 = vmatmul.bf16.vlgmr.msrb.gmra.mxu3 %v5322_v11 }
 0xb9f   : > { %5860 = vmatpush.bf16.msrb.mxu1 %v17930_v28  ;;  %6268 = vmatpush.bf16.msrb.mxu3 %v12970_v63  ;;  %v12777_v63 = vld [vmem:[%s21902_s10 + $0x660] sm:$0xf] }
 0xba0   : > { %v12778_v43 = vor.u32 %v15218_v25, %v12777_v63  ;;  %v12849_v63 = vld [vmem:[%s21902_s10 + $0x6e8] sm:$0xf]  ;;  %v15235_v25 = vld [vmem:[%s21902_s10 + $0x6f4] sm:$0xf0] }
 0xba3   : > { %6269 = vmatpush.bf16.msrb.mxu3 %v12954_v35  ;;  %v12923_v35 = vld [vmem:[%s21902_s10 + $0x790] sm:$0xf0] }
 0xba4   : > { %v12926_v44 = vor.u32 %v15252_v15, %v12923_v35  ;;  %v12875_v15 = vld [vmem:[%s21902_s10 + $0x730] sm:$0xf0]  ;;  %v15216_v35 = vld [vmem:[%s21902_s10 + $0x664] sm:$0xf] }
 0xba5   : > { %v5304_v21 = vpop.f32.mrf.mxu2 }
 0xba6   : > { %v5321_v27 = vpack.c.bf16 %v5304_v21, %v5302_v30  ;;  %v12873_v30 = vld [vmem:[%s21902_s10 + $0x720] sm:$0xf]  ;;  %v15242_v21 = vld [vmem:[%s21902_s10 + $0x72c] sm:$0xf0] }
 0xba7   : > { %6270 = vmatpush.bf16.msrb.mxu3 %v12938_v49  ;;  %v12874_v17 = vor.u32 %v15242_v21, %v12873_v30  ;;  %v12977_v49 = vld [vmem:[%s21902_s10 + $0x7e8] sm:$0xf]  ;;  %v15259_v30 = vld [vmem:[%s21902_s10 + $0x7b4] sm:$0xf0] }
 0xba8   : > { %5716 = vmatmul.bf16.vlgmr.msrb.gmra.mxu0 %v5321_v27  ;;  %5744 = vmatmul.bf16.vlgmr.msra.gmra.mxu2 %v5321_v27 }
 0xba9   : > { %5846 = vmatpush.bf16.msrb.mxu0 %v17885_v39  ;;  %6254 = vmatpush.bf16.msra.mxu2 %v12842_v60  ;;  %v12857_v60 = vld [vmem:[%s21902_s10 + $0x700] sm:$0xf] }
 0xbaa   : > { %v12858_v31 = vor.u32 %v15238_v62, %v12857_v60  ;;  %v12779_v60 = vld [vmem:[%s21902_s10 + $0x670] sm:$0xf0] }
 0xbab   : > { %6271 = vmatpush.bf16.msrb.mxu3 %v12922_v55  ;;  %v12978_v55 = vor.u32 %v15267_v32, %v12977_v49  ;;  %v15236_v32 = vld [vmem:[%s21902_s10 + $0x704] sm:$0xf] }
 0xbad   : > { %6255 = vmatpush.bf16.msra.mxu2 %v12826_v61  ;;  %v12827_v61 = vld [vmem:[%s21902_s10 + $0x6d0] sm:$0xf0] }
 0xbae   : > { %5786 = vmatmul.bf16.vlgmr.msra.gmra.mxu1 %v5322_v11  ;;  %5814 = vmatmul.bf16.vlgmr.msra.gmra.mxu3 %v5322_v11  ;;  %v12942_v11 = vor.u32 %v15256_v13, %v12939_v48  ;;  %v12830_v42 = vor.u32 %v15228_v23, %v12827_v61  ;;  %v19318_v23 = vpop.f32.mrf.mxu1  ;;  %v15255_v61 = vld [vmem:[%s21902_s10 + $0x794] sm:$0xf0] }
 0xbaf   : > { %6296 = vmatpush.bf16.msra.mxu1 %v12974_v41  ;;  %6272 = vmatpush.bf16.msrb.mxu3 %v12906_v14  ;;  %v12811_v14 = vld [vmem:[%s21902_s10 + $0x6b0] sm:$0xf0]  ;;  %21911 = vst [vmem:[#allocation4_spill] sm:$0xff] %v19318_v23  ;;  %v14067_v23 = vld [vmem:[%s21902_s10 + $0xe38] sm:$0xf0] }
 0xbb0   : > { %v12814_v3 = vor.u32 %v15224_v45, %v12811_v14  ;;  %v12763_v45 = vld [vmem:[%s21902_s10 + $0x650] sm:$0xf0]  ;;  %v12979_v14 = vld [vmem:[%s21902_s10 + $0x7f8] sm:$0xf0] }
 0xbb1   : > { %6256 = vmatpush.bf16.msra.mxu2 %v12810_v16  ;;  %v15263_v16 = vld [vmem:[%s21902_s10 + $0x7d4] sm:$0xf0] }
 0xbb2   : > { %v12962_v37 = vor.u32 %v15263_v16, %v12961_v6  ;;  %v15251_v6 = vld [vmem:[%s21902_s10 + $0x774] sm:$0xf0]  ;;  %v12982_v16 = vor.u32 %v15265_v50, %v12979_v14 }
 0xbb3   : > { %6297 = vmatpush.bf16.msra.mxu1 %v12958_v46  ;;  %6273 = vmatpush.bf16.msrb.mxu3 %v12890_v22  ;;  %v15244_v22 = vld [vmem:[%s21902_s10 + $0x744] sm:$0xf]  ;;  %v12746_v46 = vor.u32 %v15210_v7, %v12745_v5  ;;  %v12817_v5 = vld [vmem:[%s21902_s10 + $0x6a8] sm:$0xf]  ;;  %v15227_v7 = vld [vmem:[%s21902_s10 + $0x6b4] sm:$0xf0] }
 0xbb4   : > { %v12894_v13 = vor.u32 %v15244_v22, %v12891_v1  ;;  %v15261_v22 = vld [vmem:[%s21902_s10 + $0x7cc] sm:$0xf]  ;;  %v15208_v1 = vld [vmem:[%s21902_s10 + $0x624] sm:$0xf]  ;;  %v15239_v14 = vld [vmem:[%s21902_s10 + $0x714] sm:$0xf0] }
 0xbb5   : > { %6257 = vmatpush.bf16.msra.mxu2 %v12794_v54  ;;  %v12795_v54 = vld [vmem:[%s21902_s10 + $0x690] sm:$0xf0] }
 0xbb6   : > { %v12798_v48 = vor.u32 %v15220_v33, %v12795_v54  ;;  %v12747_v33 = vld [vmem:[%s21902_s10 + $0x630] sm:$0xf0]  ;;  %v12963_v54 = vld [vmem:[%s21902_s10 + $0x7d8] sm:$0xf0] }
 0xbb7   : > { %6298 = vmatpush.bf16.msra.mxu1 %v12942_v11  ;;  %6274 = vmatpush.bf16.msrb.mxu3 %v12874_v17  ;;  %v12945_v11 = vld [vmem:[%s21902_s10 + $0x7a8] sm:$0xf]  ;;  %v15206_v17 = vld [vmem:[%s21902_s10 + $0x60c] sm:$0xf0] }
 0xbb8   : > { %5772 = vmatmul.bf16.vlgmr.msra.gmra.mxu0 %v5321_v27  ;;  %5800 = vmatmul.bf16.vlgmr.msrb.gmra.mxu2 %v5321_v27  ;;  %v15232_v27 = vld [vmem:[%s21902_s10 + $0x6e4] sm:$0xf]  ;;  %v12946_v21 = vor.u32 %v15259_v30, %v12945_v11  ;;  %v12897_v11 = vld [vmem:[%s21902_s10 + $0x748] sm:$0xf]  ;;  %v15247_v30 = vld [vmem:[%s21902_s10 + $0x754] sm:$0xf0] }
 0xbb9   : > { %v12846_v8 = vor.u32 %v15232_v27, %v12843_v9  ;;  %6258 = vmatpush.bf16.msra.mxu2 %v12778_v43  ;;  %v12729_v27 = vld [vmem:[%s21902_s10 + $0x600] sm:$0xf]  ;;  %v15240_v9 = vld [vmem:[%s21902_s10 + $0x724] sm:$0xf]  ;;  %v12850_v43 = vor.u32 %v15235_v25, %v12849_v63  ;;  %v15257_v63 = vld [vmem:[%s21902_s10 + $0x7ac] sm:$0xf] }
 0xbba   : > { %v12878_v62 = vor.u32 %v15240_v9, %v12875_v15  ;;  %v12801_v9 = vld [vmem:[%s21902_s10 + $0x688] sm:$0xf]  ;;  %v15204_v15 = vld [vmem:[%s21902_s10 + $0x604] sm:$0xf] }
 0xbbb   : > { %6282 = vmatpush.bf16.msra.mxu0 %v12846_v8  ;;  %6299 = vmatpush.bf16.msra.mxu1 %v12926_v44  ;;  %v12730_v8 = vor.u32 %v15206_v17, %v12729_v27  ;;  %v12782_v44 = vor.u32 %v15216_v35, %v12779_v60  ;;  %v12898_v27 = vor.u32 %v15247_v30, %v12897_v11  ;;  %v19380_v17 = vpop.f32.mrf.mxu0  ;;  %v12947_v35 = vld [vmem:[%s21902_s10 + $0x7b8] sm:$0xf0]  ;;  %v15225_v11 = vld [vmem:[%s21902_s10 + $0x6ac] sm:$0xf] }
 0xbbc   : > { %6275 = vmatpush.bf16.msrb.mxu3 %v12858_v31  ;;  %v12929_v31 = vld [vmem:[%s21902_s10 + $0x788] sm:$0xf]  ;;  %v12819_v30 = vld [vmem:[%s21902_s10 + $0x6b8] sm:$0xf0] }
 0xbbd   : > { %v12930_v49 = vor.u32 %v15255_v61, %v12929_v31  ;;  %v15233_v31 = vld [vmem:[%s21902_s10 + $0x6ec] sm:$0xf]  ;;  %v12950_v61 = vor.u32 %v15257_v63, %v12947_v35 }
 0xbbe   : > { %12662 = vmatmul.msk.bf16.vlgmr.msrb.gmra.mxu1 %vm4214_vm6, %v15203_v10 }
 0xbbf   : > { %6283 = vmatpush.bf16.msra.mxu0 %v12830_v42  ;;  %6300 = vmatpush.bf16.msra.mxu1 %v12910_v4  ;;  %v12859_v42 = vld [vmem:[%s21902_s10 + $0x710] sm:$0xf0]  ;;  %v12766_v4 = vor.u32 %v15212_v40, %v12763_v45  ;;  %v12865_v45 = vld [vmem:[%s21902_s10 + $0x708] sm:$0xf] }
 0xbc0   : > { %6324 = vmatpush.bf16.msra.mxu3 %v12978_v55  ;;  %v12833_v55 = vld [vmem:[%s21902_s10 + $0x6c8] sm:$0xf] }
 0xbc3   : > { %6284 = vmatpush.bf16.msra.mxu0 %v12814_v3  ;;  %6301 = vmatpush.bf16.msra.mxu1 %v12894_v13  ;;  %v12913_v3 = vld [vmem:[%s21902_s10 + $0x768] sm:$0xf] }
 0xbc4   : > { %6325 = vmatpush.bf16.msra.mxu3 %v12962_v37  ;;  %v12914_v37 = vor.u32 %v15251_v6, %v12913_v3  ;;  %v12866_v6 = vor.u32 %v15239_v14, %v12865_v45 }
 0xbc7   : > { %6285 = vmatpush.bf16.msra.mxu0 %v12798_v48  ;;  %6302 = vmatpush.bf16.msra.mxu1 %v12878_v62  ;;  %v12750_v48 = vor.u32 %v15208_v1, %v12747_v33  ;;  %v12881_v62 = vld [vmem:[%s21902_s10 + $0x728] sm:$0xf] }
 0xbc8   : > { %12661 = vmatmul.msk.bf16.vlgmr.msrb.gmra.mxu0 %vm4214_vm6, %v15203_v10  ;;  %v12761_v10 = vld [vmem:[%s21902_s10 + $0x640] sm:$0xf]  ;;  %6326 = vmatpush.bf16.msra.mxu3 %v12946_v21  ;;  %v12966_v21 = vor.u32 %v15261_v22, %v12963_v54  ;;  %v15215_v22 = vld [vmem:[%s21902_s10 + $0x654] sm:$0xf0] }
 0xbc9   : > { %v12762_v41 = vor.u32 %v15214_v52, %v12761_v10  ;;  %v15231_v10 = vld [vmem:[%s21902_s10 + $0x6d4] sm:$0xf0]  ;;  %v12862_v52 = vor.u32 %v15236_v32, %v12859_v42  ;;  %v12851_v32 = vld [vmem:[%s21902_s10 + $0x6f8] sm:$0xf0] }
 0xbca   : > { %v12854_v42 = vor.u32 %v15233_v31, %v12851_v32  ;;  %v15207_v32 = vld [vmem:[%s21902_s10 + $0x614] sm:$0xf0] }
 0xbcb   : > { %6259 = vmatpush.bf16.msra.mxu2 %v12762_v41  ;;  %6286 = vmatpush.bf16.msra.mxu0 %v12782_v44  ;;  %v12834_v41 = vor.u32 %v15231_v10, %v12833_v55  ;;  %v15243_v44 = vld [vmem:[%s21902_s10 + $0x734] sm:$0xf0]  ;;  %v12785_v55 = vld [vmem:[%s21902_s10 + $0x668] sm:$0xf] }
 0xbcc   : > { %6327 = vmatpush.bf16.msra.mxu3 %v12930_v49  ;;  %6303 = vmatpush.bf16.msra.mxu1 %v12862_v52  ;;  %v12882_v49 = vor.u32 %v15243_v44, %v12881_v62  ;;  %v15219_v10 = vld [vmem:[%s21902_s10 + $0x674] sm:$0xf0]  ;;  %v15253_v52 = vld [vmem:[%s21902_s10 + $0x78c] sm:$0xf]  ;;  %v12803_v62 = vld [vmem:[%s21902_s10 + $0x698] sm:$0xf0] }
 0xbcd   : > { %v12786_v50 = vor.u32 %v15219_v10, %v12785_v55 }
 0xbcf   : > { %6260 = vmatpush.bf16.msra.mxu2 %v12746_v46  ;;  %6287 = vmatpush.bf16.msra.mxu0 %v12766_v4  ;;  %v12818_v46 = vor.u32 %v15227_v7, %v12817_v5  ;;  %v15229_v4 = vld [vmem:[%s21902_s10 + $0x6cc] sm:$0xf]  ;;  %v12769_v7 = vld [vmem:[%s21902_s10 + $0x648] sm:$0xf] }
 0xbd0   : > { %6352 = vmatpush.bf16.msrb.mxu1 %v12982_v16  ;;  %6328 = vmatpush.bf16.msra.mxu3 %v12914_v37  ;;  %v12835_v16 = vld [vmem:[%s21902_s10 + $0x6d8] sm:$0xf0]  ;;  %v12770_v54 = vor.u32 %v15215_v22, %v12769_v7 }
 0xbd1   : > { %v12838_v5 = vor.u32 %v15229_v4, %v12835_v16  ;;  %v15213_v4 = vld [vmem:[%s21902_s10 + $0x64c] sm:$0xf]  ;;  %v12867_v16 = vld [vmem:[%s21902_s10 + $0x718] sm:$0xf0] }
 0xbd3   : > { %6261 = vmatpush.bf16.msra.mxu2 %v12730_v8  ;;  %v15223_v8 = vld [vmem:[%s21902_s10 + $0x694] sm:$0xf0]  ;;  %6288 = vmatpush.bf16.msra.mxu0 %v12750_v48  ;;  %v12915_v48 = vld [vmem:[%s21902_s10 + $0x778] sm:$0xf0] }
 0xbd4   : > { %6353 = vmatpush.bf16.msrb.mxu1 %v12966_v21  ;;  %6329 = vmatpush.bf16.msra.mxu3 %v12898_v27  ;;  %v12802_v25 = vor.u32 %v15223_v8, %v12801_v9  ;;  %v12822_v9 = vor.u32 %v15225_v11, %v12819_v30  ;;  %v15211_v8 = vld [vmem:[%s21902_s10 + $0x634] sm:$0xf0]  ;;  %v15205_v30 = vld [vmem:[%s21902_s10 + $0x60c] sm:$0xf] }
 0xbd7   : > { %6310 = vmatpush.bf16.msrb.mxu2 %v12850_v43  ;;  %v12731_v43 = vld [vmem:[%s21902_s10 + $0x610] sm:$0xf0] }
 0xbd8   : > { %v12734_v60 = vor.u32 %v15204_v15, %v12731_v43  ;;  %6354 = vmatpush.bf16.msrb.mxu1 %v12950_v61  ;;  %6330 = vmatpush.bf16.msra.mxu3 %v12882_v49  ;;  %v12899_v15 = vld [vmem:[%s21902_s10 + $0x758] sm:$0xf0]  ;;  %v12737_v49 = vld [vmem:[%s21902_s10 + $0x608] sm:$0xf] }
 0xbd9   : > { %v12738_v10 = vor.u32 %v15207_v32, %v12737_v49  ;;  %v15327_v32 = vld [vmem:[%s21902_s10 + $0x9cc] sm:$0xf0] }
 0xbda   : > { %6289 = vmatpush.bf16.msra.mxu0 %v12734_v60  ;;  %v15221_v60 = vld [vmem:[%s21902_s10 + $0x68c] sm:$0xf] }
 0xbdb   : > { %6311 = vmatpush.bf16.msrb.mxu2 %v12834_v41  ;;  %v12931_v41 = vld [vmem:[%s21902_s10 + $0x798] sm:$0xf0]  ;;  %v12806_v31 = vor.u32 %v15221_v60, %v12803_v62 }
 0xbdc   : > { %v12934_v3 = vor.u32 %v15253_v52, %v12931_v41  ;;  %6331 = vmatpush.bf16.msra.mxu3 %v12866_v6  ;;  %v12883_v52 = vld [vmem:[%s21902_s10 + $0x738] sm:$0xf0]  ;;  %v15237_v6 = vld [vmem:[%s21902_s10 + $0x70c] sm:$0xf] }
 0xbdd   : > { %v12787_v41 = vld [vmem:[%s21902_s10 + $0x678] sm:$0xf0]  ;;  %v12870_v22 = vor.u32 %v15237_v6, %v12867_v16  ;;  %v15319_v6 = vld [vmem:[%s21902_s10 + $0x98c] sm:$0xf0]  ;;  %v13153_v16 = vld [vmem:[%s21902_s10 + $0x8c0] sm:$0xf] }
 0xbde   : > { %6338 = vmatpush.bf16.msrb.mxu0 %v12854_v42  ;;  %6355 = vmatpush.bf16.msrb.mxu1 %v12934_v3  ;;  %v15241_v42 = vld [vmem:[%s21902_s10 + $0x72c] sm:$0xf]  ;;  %v12771_v3 = vld [vmem:[%s21902_s10 + $0x658] sm:$0xf0] }
 0xbdf   : > { %6312 = vmatpush.bf16.msrb.mxu2 %v12818_v46  ;;  %v15249_v46 = vld [vmem:[%s21902_s10 + $0x76c] sm:$0xf]  ;;  %v12886_v45 = vor.u32 %v15241_v42, %v12883_v52  ;;  %v12774_v7 = vor.u32 %v15213_v4, %v12771_v3  ;;  %v13169_v42 = vld [vmem:[%s21902_s10 + $0x8e0] sm:$0xf] }
 0xbe0   : > { %v12918_v21 = vor.u32 %v15249_v46, %v12915_v48  ;;  %v15268_v4 = vld [vmem:[%s21901_s9 + $0x20] sm:$0xff] }
 0xbe1   : > { %v13249_v3 = vld [vmem:[%s21902_s10 + $0x980] sm:$0xf] }
 0xbe2   : > { %6339 = vmatpush.bf16.msrb.mxu0 %v12838_v5  ;;  %6356 = vmatpush.bf16.msrb.mxu1 %v12918_v21  ;;  %v12739_v21 = vld [vmem:[%s21902_s10 + $0x618] sm:$0xf0] }
 0xbe3   : > { %6313 = vmatpush.bf16.msrb.mxu2 %v12802_v25  ;;  %v15245_v25 = vld [vmem:[%s21902_s10 + $0x74c] sm:$0xf] }
 0xbe4   : > { %v12902_v43 = vor.u32 %v15245_v25, %v12899_v15 }
 0xbe6   : > { %6340 = vmatpush.bf16.msrb.mxu0 %v12822_v9  ;;  %6357 = vmatpush.bf16.msrb.mxu1 %v12902_v43 }
 0xbe7   : > { %6314 = vmatpush.bf16.msrb.mxu2 %v12786_v50  ;;  %v15217_v50 = vld [vmem:[%s21902_s10 + $0x66c] sm:$0xf] }
 0xbea   : > { %6341 = vmatpush.bf16.msrb.mxu0 %v12806_v31  ;;  %6358 = vmatpush.bf16.msrb.mxu1 %v12886_v45  ;;  %v13281_v31 = vld [vmem:[%s21902_s10 + $0x9c0] sm:$0xf]  ;;  %v15323_v45 = vld [vmem:[%s21902_s10 + $0x9ac] sm:$0xf0] }
 0xbeb   : > { %6315 = vmatpush.bf16.msrb.mxu2 %v12770_v54  ;;  %v12755_v54 = vld [vmem:[%s21902_s10 + $0x638] sm:$0xf0]  ;;  %v13282_v52 = vor.u32 %v15327_v32, %v13281_v31  ;;  %v13201_v32 = vld [vmem:[%s21902_s10 + $0x920] sm:$0xf] }
 0xbee   : > { %6359 = vmatpush.bf16.msrb.mxu1 %v12870_v22  ;;  %v15295_v22 = vld [vmem:[%s21902_s10 + $0x8cc] sm:$0xf0] }
 0xc1b   : > { %v5731_v13 = vpop.f32.mrf.mxu1 }
 0xc21   : > { %v5759_v1 = vpop.f32.mrf.mxu3 }
 0xc23   : > { %v19424_v40 = vpop.f32.mrf.mxu1 }
 0xc25   : > { %v5717_v37 = vpop.f32.mrf.mxu0 }
 0xc26   : > { %v5732_v33 = vadd.f32 %v5731_v13, %v5717_v37  ;;  %v12753_v13 = vld [vmem:[%s21902_s10 + $0x628] sm:$0xf] }
 0xc27   : > { %v12754_v63 = vor.u32 %v15211_v8, %v12753_v13 }
 0xc28   : > { %v19460_v27 = vadd.f32 %v5732_v33, %v18961_v53  ;;  %v15209_v33 = vld [vmem:[%s21902_s10 + $0x62c] sm:$0xf] }
 0xc29   : > { %6316 = vmatpush.bf16.msrb.mxu2 %v12754_v63  ;;  %v19500_v14 = vpop.f32.mrf.mxu3  ;;  %v12758_v48 = vor.u32 %v15209_v33, %v12755_v54  ;;  %v12742_v63 = vor.u32 %v15205_v30, %v12739_v21  ;;  %v13299_v33 = vld [vmem:[%s21902_s10 + $0x9f0] sm:$0xf0]  ;;  %v15315_v30 = vld [vmem:[%s21902_s10 + $0x96c] sm:$0xf0] }
 0xc2b   : > { %v5745_v35 = vpop.f32.mrf.mxu2  ;;  %v5787_v53 = vpop.f32.mrf.mxu1 }
 0xc2c   : > { %v5760_v44 = vadd.f32 %v5759_v1, %v5745_v35 }
 0xc2d   : > { %v19477_v61 = vpop.f32.mrf.mxu0  ;;  %6317 = vmatpush.bf16.msrb.mxu2 %v12738_v10  ;;  %v15299_v10 = vld [vmem:[%s21902_s10 + $0x8ec] sm:$0xf0] }
 0xc2e   : > { %v19489_v55 = vadd.f32 %v5760_v44, %v18925_v26  ;;  %v12790_v26 = vor.u32 %v15217_v50, %v12787_v41  ;;  %v13297_v44 = vld [vmem:[%s21902_s10 + $0x9e0] sm:$0xf]  ;;  %v13170_v50 = vor.u32 %v15299_v10, %v13169_v42  ;;  %v15307_v42 = vld [vmem:[%s21902_s10 + $0x92c] sm:$0xf0]  ;;  %v15297_v10 = vld [vmem:[%s21902_s10 + $0x8e4] sm:$0xf] }
 0xc2f   : > { %v13265_v41 = vld [vmem:[%s21902_s10 + $0x9a0] sm:$0xf] }
 0xc30   : > { %6342 = vmatpush.bf16.msrb.mxu0 %v12790_v26  ;;  %v13266_v26 = vor.u32 %v15323_v45, %v13265_v41  ;;  %v13171_v41 = vld [vmem:[%s21902_s10 + $0x8f0] sm:$0xf0] }
 0xc31   : > { %v5815_v13 = vpop.f32.mrf.mxu3  ;;  %v13174_v45 = vor.u32 %v15297_v10, %v13171_v41  ;;  %v13123_v41 = vld [vmem:[%s21902_s10 + $0x890] sm:$0xf0] }
 0xc33   : > { %v19514_v37 = vpop.f32.mrf.mxu2  ;;  %v19516_v5 = vpop.f32.mrf.mxu1 }
 0xc34   : > { %6343 = vmatpush.bf16.msrb.mxu0 %v12774_v7  ;;  %v13250_v7 = vor.u32 %v15319_v6, %v13249_v3  ;;  %v15317_v3 = vld [vmem:[%s21902_s10 + $0x984] sm:$0xf] }
 0xc35   : > { %v5773_v46 = vpop.f32.mrf.mxu0 }
 0xc36   : > { %v5788_v1 = vadd.f32 %v5787_v53, %v5773_v46  ;;  %v13154_v46 = vor.u32 %v15295_v22, %v13153_v16  ;;  %v13251_v16 = vld [vmem:[%s21902_s10 + $0x990] sm:$0xf0]  ;;  %v15303_v22 = vld [vmem:[%s21902_s10 + $0x90c] sm:$0xf0] }
 0xc38   : > { %v19525_v11 = vadd.f32 %v5788_v1, %v19109_v47  ;;  %6344 = vmatpush.bf16.msrb.mxu0 %v12758_v48  ;;  %v15329_v1 = vld [vmem:[%s21902_s10 + $0x9e4] sm:$0xf]  ;;  %v13233_v48 = vld [vmem:[%s21902_s10 + $0x960] sm:$0xf] }
 0xc39   : > { %v13302_v54 = vor.u32 %v15329_v1, %v13299_v33  ;;  %v13234_v21 = vor.u32 %v15315_v30, %v13233_v48  ;;  %v13254_v1 = vor.u32 %v15317_v3, %v13251_v16  ;;  %v13305_v48 = vld [vmem:[%s21902_s10 + $0x9e8] sm:$0xf]  ;;  %v15332_v30 = vld [vmem:[%s21902_s10 + $0x9f4] sm:$0xf0]  ;;  %v13057_v16 = vld [vmem:[%s21902_s10 + $0x800] sm:$0xf] }
 0xc3a   : > { %v15324_v3 = vld [vmem:[%s21902_s10 + $0x9b4] sm:$0xf0] }
 0xc3b   : > { %v5801_v9 = vpop.f32.mrf.mxu2  ;;  %v5862_v8 = vpop.f32.mrf.mxu1 }
 0xc3c   : > { %v5816_v25 = vadd.f32 %v5815_v13, %v5801_v9  ;;  %6345 = vmatpush.bf16.msrb.mxu0 %v12742_v63  ;;  %v13137_v13 = vld [vmem:[%s21902_s10 + $0x8a0] sm:$0xf]  ;;  %v15291_v9 = vld [vmem:[%s21902_s10 + $0x8ac] sm:$0xf0]  ;;  %v15325_v63 = vld [vmem:[%s21902_s10 + $0x9c4] sm:$0xf] }
 0xc3d   : > { %v19533_v15 = vpop.f32.mrf.mxu0 }
 0xc3e   : > { %v19536_v43 = vadd.f32 %v5816_v25, %v19095_v38  ;;  %v15331_v38 = vld [vmem:[%s21902_s10 + $0x9ec] sm:$0xf0]  ;;  %v13283_v25 = vld [vmem:[%s21902_s10 + $0x9d0] sm:$0xf0] }
 0xc3f   : > { %v13298_v49 = vor.u32 %v15331_v38, %v13297_v44  ;;  %v15287_v44 = vld [vmem:[%s21902_s10 + $0x88c] sm:$0xf0]  ;;  %v15321_v38 = vld [vmem:[%s21902_s10 + $0x9a4] sm:$0xf] }
 0xc43   : > { %v5864_v47 = vpop.f32.mrf.mxu1 }
 0xc44   : > { %v5868_v35 = vpack.c.bf16 %v5864_v47, %v5862_v8  ;;  %v13138_v8 = vor.u32 %v15291_v9, %v13137_v13  ;;  %v13286_v47 = vor.u32 %v15325_v63, %v13283_v25  ;;  %v13306_v13 = vor.u32 %v15332_v30, %v13305_v48  ;;  %v13089_v9 = vld [vmem:[%s21902_s10 + $0x840] sm:$0xf]  ;;  %v15313_v63 = vld [vmem:[%s21902_s10 + $0x964] sm:$0xf] }
 0xc45   : > { %v5848_v53 = vpop.f32.mrf.mxu0  ;;  %v15281_v30 = vld [vmem:[%s21902_s10 + $0x864] sm:$0xf] }
 0xc46   : > { %6276 = vmatmul.bf16.vlgmr.msrb.gmra.mxu3 %v5868_v35  ;;  %6304 = vmatmul.bf16.vlgmr.msra.gmra.mxu1 %v5868_v35 }
 0xc47   : > { %6406 = vmatpush.bf16.msrb.mxu3 %v17930_v28  ;;  %6814 = vmatpush.bf16.msra.mxu1 %v13298_v49  ;;  %v13267_v49 = vld [vmem:[%s21902_s10 + $0x9b0] sm:$0xf0] }
 0xc4b   : > { %6815 = vmatpush.bf16.msra.mxu1 %v13282_v52  ;;  %v13270_v52 = vor.u32 %v15321_v38, %v13267_v49  ;;  %v15328_v38 = vld [vmem:[%s21902_s10 + $0x9d4] sm:$0xf0]  ;;  %v13073_v49 = vld [vmem:[%s21902_s10 + $0x820] sm:$0xf] }
 0xc4d   : > { %v5850_v60 = vpop.f32.mrf.mxu0 }
 0xc4e   : > { %v5867_v62 = vpack.c.bf16 %v5850_v60, %v5848_v53  ;;  %v15311_v53 = vld [vmem:[%s21902_s10 + $0x94c] sm:$0xf0] }
 0xc4f   : > { %6816 = vmatpush.bf16.msra.mxu1 %v13266_v26  ;;  %v13105_v26 = vld [vmem:[%s21902_s10 + $0x860] sm:$0xf] }
 0xc50   : > { %6262 = vmatmul.bf16.vlgmr.msra.gmra.mxu2 %v5867_v62  ;;  %6290 = vmatmul.bf16.vlgmr.msra.gmra.mxu0 %v5867_v62 }
 0xc51   : > { %6392 = vmatpush.bf16.msra.mxu2 %v17885_v39  ;;  %6800 = vmatpush.bf16.msra.mxu0 %v13170_v50  ;;  %v13202_v50 = vor.u32 %v15307_v42, %v13201_v32  ;;  %v15275_v32 = vld [vmem:[%s21902_s10 + $0x82c] sm:$0xf0]  ;;  %v15309_v42 = vld [vmem:[%s21902_s10 + $0x944] sm:$0xf] }
 0xc52   : > { %v13074_v10 = vor.u32 %v15275_v32, %v13073_v49  ;;  %v15277_v49 = vld [vmem:[%s21902_s10 + $0x844] sm:$0xf]  ;;  %v13091_v32 = vld [vmem:[%s21902_s10 + $0x850] sm:$0xf0] }
 0xc53   : > { %6817 = vmatpush.bf16.msra.mxu1 %v13250_v7  ;;  %v13185_v7 = vld [vmem:[%s21902_s10 + $0x900] sm:$0xf] }
 0xc54   : > { %v13186_v33 = vor.u32 %v15303_v22, %v13185_v7  ;;  %v15271_v7 = vld [vmem:[%s21902_s10 + $0x80c] sm:$0xf0]  ;;  %v15305_v22 = vld [vmem:[%s21902_s10 + $0x924] sm:$0xf] }
 0xc55   : > { %6801 = vmatpush.bf16.msra.mxu0 %v13154_v46  ;;  %v15293_v46 = vld [vmem:[%s21902_s10 + $0x8c4] sm:$0xf] }
 0xc56   : > { %6332 = vmatmul.bf16.vlgmr.msra.gmra.mxu3 %v5868_v35  ;;  %6360 = vmatmul.bf16.vlgmr.msrb.gmra.mxu1 %v5868_v35  ;;  %v13217_v35 = vld [vmem:[%s21902_s10 + $0x940] sm:$0xf] }
 0xc57   : > { %6842 = vmatpush.bf16.msra.mxu3 %v13302_v54  ;;  %6818 = vmatpush.bf16.msra.mxu1 %v13234_v21  ;;  %v13218_v60 = vor.u32 %v15311_v53, %v13217_v35  ;;  %v13155_v54 = vld [vmem:[%s21902_s10 + $0x8d0] sm:$0xf0]  ;;  %v15289_v35 = vld [vmem:[%s21902_s10 + $0x8a4] sm:$0xf] }
 0xc58   : > { %v13158_v21 = vor.u32 %v15293_v46, %v13155_v54  ;;  %v13139_v53 = vld [vmem:[%s21902_s10 + $0x8b0] sm:$0xf0]  ;;  %v13058_v46 = vor.u32 %v15271_v7, %v13057_v16  ;;  %v15273_v16 = vld [vmem:[%s21902_s10 + $0x824] sm:$0xf] }
 0xc59   : > { %6802 = vmatpush.bf16.msra.mxu0 %v13138_v8  ;;  %v15279_v8 = vld [vmem:[%s21902_s10 + $0x84c] sm:$0xf0]  ;;  %v13203_v54 = vld [vmem:[%s21902_s10 + $0x930] sm:$0xf0] }
 0xc5a   : > { %v13090_v25 = vor.u32 %v15279_v8, %v13089_v9  ;;  %v19737_v9 = vpop.f32.mrf.mxu3  ;;  %v13075_v7 = vld [vmem:[%s21902_s10 + $0x830] sm:$0xf0] }
 0xc5b   : > { %6843 = vmatpush.bf16.msra.mxu3 %v13286_v47  ;;  %6819 = vmatpush.bf16.msra.mxu1 %v13218_v60  ;;  %v13235_v47 = vld [vmem:[%s21902_s10 + $0x970] sm:$0xf0]  ;;  %21912 = vst [vmem:[#allocation5_spill] sm:$0xff] %v19737_v9 }
 0xc5c   : > { %v13238_v60 = vor.u32 %v15313_v63, %v13235_v47  ;;  %v13257_v63 = vld [vmem:[%s21902_s10 + $0x988] sm:$0xf] }
 0xc5f   : > { %6844 = vmatpush.bf16.msra.mxu3 %v13270_v52  ;;  %6820 = vmatpush.bf16.msra.mxu1 %v13202_v50  ;;  %v13219_v52 = vld [vmem:[%s21902_s10 + $0x950] sm:$0xf0]  ;;  %v15285_v50 = vld [vmem:[%s21902_s10 + $0x884] sm:$0xf] }
 0xc60   : > { %6318 = vmatmul.bf16.vlgmr.msrb.gmra.mxu2 %v5867_v62  ;;  %6346 = vmatmul.bf16.vlgmr.msrb.gmra.mxu0 %v5867_v62  ;;  %v13121_v62 = vld [vmem:[%s21902_s10 + $0x880] sm:$0xf] }
 0xc61   : > { %v13122_v31 = vor.u32 %v15287_v44, %v13121_v62  ;;  %6828 = vmatpush.bf16.msrb.mxu2 %v13174_v45  ;;  %v13142_v62 = vor.u32 %v15289_v35, %v13139_v53  ;;  %v13289_v44 = vld [vmem:[%s21902_s10 + $0x9c8] sm:$0xf]  ;;  %v13222_v45 = vor.u32 %v15309_v42, %v13219_v52  ;;  %v15301_v35 = vld [vmem:[%s21902_s10 + $0x904] sm:$0xf]  ;;  %v13187_v53 = vld [vmem:[%s21902_s10 + $0x910] sm:$0xf0] }
 0xc62   : > { %v13307_v42 = vld [vmem:[%s21902_s10 + $0x9f8] sm:$0xf0]  ;;  %v13241_v52 = vld [vmem:[%s21902_s10 + $0x968] sm:$0xf] }
 0xc63   : > { %6803 = vmatpush.bf16.msra.mxu0 %v13122_v31  ;;  %6845 = vmatpush.bf16.msra.mxu3 %v13254_v1  ;;  %v13290_v31 = vor.u32 %v15328_v38, %v13289_v44  ;;  %v13177_v1 = vld [vmem:[%s21902_s10 + $0x8e8] sm:$0xf]  ;;  %v13190_v44 = vor.u32 %v15301_v35, %v13187_v53  ;;  %v15330_v38 = vld [vmem:[%s21902_s10 + $0x9ec] sm:$0xf]  ;;  %v15269_v35 = vld [vmem:[%s21902_s10 + $0x804] sm:$0xf] }
 0xc64   : > { %6821 = vmatpush.bf16.msra.mxu1 %v13186_v33  ;;  %v15300_v33 = vld [vmem:[%s21902_s10 + $0x8f4] sm:$0xf0]  ;;  %v13059_v53 = vld [vmem:[%s21902_s10 + $0x810] sm:$0xf0] }
 0xc65   : > { %6829 = vmatpush.bf16.msrb.mxu2 %v13158_v21  ;;  %v13178_v48 = vor.u32 %v15300_v33, %v13177_v1  ;;  %v13107_v21 = vld [vmem:[%s21902_s10 + $0x870] sm:$0xf0]  ;;  %v13078_v33 = vor.u32 %v15273_v16, %v13075_v7  ;;  %v13193_v7 = vld [vmem:[%s21902_s10 + $0x908] sm:$0xf] }
 0xc66   : > { %12990 = vmatmul.msk.bf16.vlgmr.msrb.gmra.mxu3 %vm4214_vm6, %v15268_v4  ;;  %v13110_v8 = vor.u32 %v15281_v30, %v13107_v21 }
 0xc67   : > { %6846 = vmatpush.bf16.msra.mxu3 %v13238_v60  ;;  %v13161_v60 = vld [vmem:[%s21902_s10 + $0x8c8] sm:$0xf] }
 0xc68   : > { %6870 = vmatpush.bf16.msrb.mxu1 %v13306_v13  ;;  %v13206_v13 = vor.u32 %v15305_v22, %v13203_v54  ;;  %v13291_v22 = vld [vmem:[%s21902_s10 + $0x9d8] sm:$0xf0]  ;;  %v13225_v54 = vld [vmem:[%s21902_s10 + $0x948] sm:$0xf] }
 0xc69   : > { %6830 = vmatpush.bf16.msrb.mxu2 %v13142_v62  ;;  %v15296_v62 = vld [vmem:[%s21902_s10 + $0x8d4] sm:$0xf0] }
 0xc6b   : > { %6847 = vmatpush.bf16.msra.mxu3 %v13222_v45 }
 0xc6c   : > { %6871 = vmatpush.bf16.msrb.mxu1 %v13290_v31  ;;  %v13162_v31 = vor.u32 %v15296_v62, %v13161_v60  ;;  %v13275_v60 = vld [vmem:[%s21902_s10 + $0x9b8] sm:$0xf0] }
 0xc6f   : > { %6848 = vmatpush.bf16.msra.mxu3 %v13206_v13  ;;  %v19799_v13 = vpop.f32.mrf.mxu2 }
 0xc70   : > { %12989 = vmatmul.msk.bf16.vlgmr.msra.gmra.mxu2 %vm4214_vm6, %v15268_v4  ;;  %v15283_v4 = vld [vmem:[%s21902_s10 + $0x86c] sm:$0xf0]  ;;  %21913 = vst [vmem:[#allocation6_spill] sm:$0xff] %v19799_v13 }
 0xc71   : > { %v13106_v6 = vor.u32 %v15283_v4, %v13105_v26  ;;  %v13126_v26 = vor.u32 %v15285_v50, %v13123_v41  ;;  %v13273_v4 = vld [vmem:[%s21902_s10 + $0x9a8] sm:$0xf]  ;;  %v15316_v50 = vld [vmem:[%s21902_s10 + $0x974] sm:$0xf0]  ;;  %v13310_v41 = vor.u32 %v15330_v38, %v13307_v42 }
 0xc72   : > { %v13242_v45 = vor.u32 %v15316_v50, %v13241_v52  ;;  %v13209_v38 = vld [vmem:[%s21902_s10 + $0x928] sm:$0xf]  ;;  %v13179_v52 = vld [vmem:[%s21902_s10 + $0x8f8] sm:$0xf0] }
 0xc73   : > { %6804 = vmatpush.bf16.msra.mxu0 %v13106_v6  ;;  %v13274_v6 = vor.u32 %v15324_v3, %v13273_v4  ;;  %6831 = vmatpush.bf16.msrb.mxu2 %v13126_v26  ;;  %v13145_v26 = vld [vmem:[%s21902_s10 + $0x8a8] sm:$0xf]  ;;  %v15292_v4 = vld [vmem:[%s21902_s10 + $0x8b4] sm:$0xf0]  ;;  %v15326_v3 = vld [vmem:[%s21902_s10 + $0x9cc] sm:$0xf] }
 0xc74   : > { %6849 = vmatpush.bf16.msra.mxu3 %v13190_v44  ;;  %v13294_v30 = vor.u32 %v15326_v3, %v13291_v22  ;;  %v13062_v44 = vor.u32 %v15269_v35, %v13059_v53  ;;  %v15304_v22 = vld [vmem:[%s21902_s10 + $0x914] sm:$0xf0]  ;;  %v13243_v53 = vld [vmem:[%s21902_s10 + $0x978] sm:$0xf0] }
 0xc75   : > { %6872 = vmatpush.bf16.msrb.mxu1 %v13274_v6  ;;  %v13146_v6 = vor.u32 %v15292_v4, %v13145_v26  ;;  %v15318_v26 = vld [vmem:[%s21902_s10 + $0x98c] sm:$0xf] }
 0xc77   : > { %6805 = vmatpush.bf16.msra.mxu0 %v13090_v25  ;;  %v15320_v25 = vld [vmem:[%s21902_s10 + $0x994] sm:$0xf0]  ;;  %6832 = vmatpush.bf16.msrb.mxu2 %v13110_v8  ;;  %v13129_v8 = vld [vmem:[%s21902_s10 + $0x888] sm:$0xf] }
 0xc78   : > { %v13258_v47 = vor.u32 %v15320_v25, %v13257_v63  ;;  %6898 = vmatpush.bf16.msrb.mxu3 %v13310_v41  ;;  %v15288_v63 = vld [vmem:[%s21902_s10 + $0x894] sm:$0xf0]  ;;  %v15322_v25 = vld [vmem:[%s21902_s10 + $0x9ac] sm:$0xf]  ;;  %v13113_v41 = vld [vmem:[%s21902_s10 + $0x868] sm:$0xf] }
 0xc7a   : > { %6873 = vmatpush.bf16.msrb.mxu1 %v13258_v47  ;;  %v13130_v47 = vor.u32 %v15288_v63, %v13129_v8  ;;  %v13097_v8 = vld [vmem:[%s21902_s10 + $0x848] sm:$0xf]  ;;  %v15280_v63 = vld [vmem:[%s21902_s10 + $0x854] sm:$0xf0] }
 0xc7b   : > { %6806 = vmatpush.bf16.msra.mxu0 %v13074_v10  ;;  %v13094_v10 = vor.u32 %v15277_v49, %v13091_v32  ;;  %v15298_v49 = vld [vmem:[%s21902_s10 + $0x8ec] sm:$0xf]  ;;  %v13278_v32 = vor.u32 %v15322_v25, %v13275_v60  ;;  %v13098_v35 = vor.u32 %v15280_v63, %v13097_v8 }
 0xc7c   : > { %6899 = vmatpush.bf16.msrb.mxu3 %v13294_v30  ;;  %v13182_v50 = vor.u32 %v15298_v49, %v13179_v52  ;;  %v15314_v25 = vld [vmem:[%s21902_s10 + $0x96c] sm:$0xf]  ;;  %v13227_v52 = vld [vmem:[%s21902_s10 + $0x958] sm:$0xf0] }
 0xc7d   : > { %6833 = vmatpush.bf16.msrb.mxu2 %v13094_v10 }
 0xc7e   : > { %6874 = vmatpush.bf16.msrb.mxu1 %v13242_v45  ;;  %v15284_v45 = vld [vmem:[%s21902_s10 + $0x874] sm:$0xf0] }
 0xc7f   : > { %6807 = vmatpush.bf16.msra.mxu0 %v13058_v46  ;;  %v13114_v3 = vor.u32 %v15284_v45, %v13113_v41  ;;  %v13131_v45 = vld [vmem:[%s21902_s10 + $0x898] sm:$0xf0] }
 0xc80   : > { %6900 = vmatpush.bf16.msrb.mxu3 %v13278_v32  ;;  %v15276_v32 = vld [vmem:[%s21902_s10 + $0x834] sm:$0xf0] }
 0xc81   : > { %6834 = vmatpush.bf16.msrb.mxu2 %v13078_v33  ;;  %v13194_v33 = vor.u32 %v15304_v22, %v13193_v7  ;;  %v15272_v7 = vld [vmem:[%s21902_s10 + $0x814] sm:$0xf0]  ;;  %v15306_v22 = vld [vmem:[%s21902_s10 + $0x92c] sm:$0xf] }
 0xc83   : > { %6856 = vmatpush.bf16.msrb.mxu0 %v13178_v48  ;;  %v15312_v48 = vld [vmem:[%s21902_s10 + $0x954] sm:$0xf0] }
 0xc84   : > { %v13226_v21 = vor.u32 %v15312_v48, %v13225_v54  ;;  %v13163_v54 = vld [vmem:[%s21902_s10 + $0x8d8] sm:$0xf0] }
 0xc85   : > { %6835 = vmatpush.bf16.msrb.mxu2 %v13062_v44  ;;  %v13147_v44 = vld [vmem:[%s21902_s10 + $0x8b8] sm:$0xf0] }
 0xc86   : > { %6875 = vmatpush.bf16.msrb.mxu1 %v13226_v21 }
 0xc87   : > { %6857 = vmatpush.bf16.msrb.mxu0 %v13162_v31  ;;  %v15308_v31 = vld [vmem:[%s21902_s10 + $0x934] sm:$0xf0] }
 0xc88   : > { %v13210_v10 = vor.u32 %v15308_v31, %v13209_v38  ;;  %v13246_v38 = vor.u32 %v15314_v25, %v13243_v53  ;;  %v15302_v53 = vld [vmem:[%s21902_s10 + $0x90c] sm:$0xf] }
 0xc89   : > { %6884 = vmatpush.bf16.msra.mxu2 %v13182_v50 }
 0xc8a   : > { %6876 = vmatpush.bf16.msrb.mxu1 %v13210_v10  ;;  %v15310_v10 = vld [vmem:[%s21902_s10 + $0x94c] sm:$0xf] }
 0xc8b   : > { %6858 = vmatpush.bf16.msrb.mxu0 %v13146_v6  ;;  %v13259_v6 = vld [vmem:[%s21902_s10 + $0x998] sm:$0xf0]  ;;  %v13230_v50 = vor.u32 %v15310_v10, %v13227_v52  ;;  %v15274_v10 = vld [vmem:[%s21902_s10 + $0x82c] sm:$0xf] }
 0xc8e   : > { %6877 = vmatpush.bf16.msrb.mxu1 %v13194_v33 }
 0xc8f   : > { %6859 = vmatpush.bf16.msrb.mxu0 %v13130_v47 }
 0xc93   : > { %6860 = vmatpush.bf16.msrb.mxu0 %v13114_v3 }
 0xc97   : > { %6861 = vmatpush.bf16.msrb.mxu0 %v13098_v35  ;;  %v13099_v35 = vld [vmem:[%s21902_s10 + $0x858] sm:$0xf0] }
 0xcc3   : > { %v6305_v46 = vpop.f32.mrf.mxu1 }
 0xcc9   : > { %v6277_v1 = vpop.f32.mrf.mxu3 }
 0xccb   : > { %v19860_v48 = vpop.f32.mrf.mxu1 }
 0xccd   : > { %v6291_v62 = vpop.f32.mrf.mxu0 }
 0xcce   : > { %v6306_v42 = vadd.f32 %v6305_v46, %v6291_v62  ;;  %v13262_v46 = vor.u32 %v15318_v26, %v13259_v6  ;;  %v15290_v62 = vld [vmem:[%s21902_s10 + $0x8ac] sm:$0xf]  ;;  %v13065_v6 = vld [vmem:[%s21902_s10 + $0x808] sm:$0xf] }
 0xccf   : > { %v13150_v49 = vor.u32 %v15290_v62, %v13147_v44  ;;  %v13195_v44 = vld [vmem:[%s21902_s10 + $0x918] sm:$0xf0] }
 0xcd0   : > { %v19841_v4 = vadd.f32 %v6306_v42, %v19489_v55  ;;  %v15294_v55 = vld [vmem:[%s21902_s10 + $0x8cc] sm:$0xf]  ;;  %6901 = vmatpush.bf16.msrb.mxu3 %v13262_v46  ;;  %v13211_v46 = vld [vmem:[%s21902_s10 + $0x938] sm:$0xf0] }
 0xcd1   : > { %v19846_v16 = vpop.f32.mrf.mxu3  ;;  %v13166_v21 = vor.u32 %v15294_v55, %v13163_v54  ;;  %v13066_v55 = vor.u32 %v15272_v7, %v13065_v6  ;;  %v13214_v8 = vor.u32 %v15306_v22, %v13211_v46 }
 0xcd3   : > { %v6263_v30 = vpop.f32.mrf.mxu2  ;;  %6885 = vmatpush.bf16.msra.mxu2 %v13166_v21  ;;  %v6361_v33 = vpop.f32.mrf.mxu1  ;;  %v13115_v21 = vld [vmem:[%s21902_s10 + $0x878] sm:$0xf0] }
 0xcd4   : > { %v6278_v47 = vadd.f32 %v6277_v1, %v6263_v30  ;;  %v13081_v1 = vld [vmem:[%s21902_s10 + $0x828] sm:$0xf]  ;;  %6902 = vmatpush.bf16.msrb.mxu3 %v13246_v38  ;;  %v15282_v30 = vld [vmem:[%s21902_s10 + $0x86c] sm:$0xf] }
 0xcd5   : > { %v19874_v60 = vpop.f32.mrf.mxu0  ;;  %v13082_v42 = vor.u32 %v15276_v32, %v13081_v1  ;;  %v13118_v25 = vor.u32 %v15282_v30, %v13115_v21  ;;  %v13609_v30 = vld [vmem:[%s21902_s10 + $0xbc0] sm:$0xf] }
 0xcd6   : > { %v19886_v31 = vadd.f32 %v6278_v47, %v19460_v27  ;;  %v15286_v27 = vld [vmem:[%s21902_s10 + $0x88c] sm:$0xf] }
 0xcd7   : > { %6886 = vmatpush.bf16.msra.mxu2 %v13150_v49  ;;  %6862 = vmatpush.bf16.msrb.mxu0 %v13082_v42  ;;  %v13134_v26 = vor.u32 %v15286_v27, %v13131_v45  ;;  %v15278_v47 = vld [vmem:[%s21902_s10 + $0x84c] sm:$0xf]  ;;  %v13198_v49 = vor.u32 %v15302_v53, %v13195_v44  ;;  %v13481_v53 = vld [vmem:[%s21902_s10 + $0xac0] sm:$0xf]  ;;  %v15360_v44 = vld [vmem:[%s21902_s10 + $0xacc] sm:$0xf0] }
 0xcd8   : > { %6903 = vmatpush.bf16.msrb.mxu3 %v13230_v50  ;;  %v13102_v1 = vor.u32 %v15278_v47, %v13099_v35  ;;  %v15270_v27 = vld [vmem:[%s21902_s10 + $0x80c] sm:$0xf] }
 0xcd9   : > { %v6333_v41 = vpop.f32.mrf.mxu3 }
 0xcdb   : > { %v19903_v3 = vpop.f32.mrf.mxu2  ;;  %6887 = vmatpush.bf16.msra.mxu2 %v13134_v26  ;;  %6863 = vmatpush.bf16.msrb.mxu0 %v13066_v55 }
 0xcdc   : > { %6904 = vmatpush.bf16.msrb.mxu3 %v13214_v8  ;;  %v15392_v8 = vld [vmem:[%s21902_s10 + $0xbcc] sm:$0xf0] }
 0xcdd   : > { %v6347_v54 = vpop.f32.mrf.mxu0  ;;  %v13610_v47 = vor.u32 %v15392_v8, %v13609_v30  ;;  %v15376_v30 = vld [vmem:[%s21902_s10 + $0xb4c] sm:$0xf0]  ;;  %v13611_v8 = vld [vmem:[%s21902_s10 + $0xbd0] sm:$0xf0] }
 0xcde   : > { %v6362_v63 = vadd.f32 %v6361_v33, %v6347_v54  ;;  %v13625_v33 = vld [vmem:[%s21902_s10 + $0xbe0] sm:$0xf]  ;;  %v15396_v54 = vld [vmem:[%s21902_s10 + $0xbec] sm:$0xf0] }
 0xcdf   : > { %6888 = vmatpush.bf16.msra.mxu2 %v13118_v25  ;;  %v13626_v21 = vor.u32 %v15396_v54, %v13625_v33  ;;  %v15364_v25 = vld [vmem:[%s21902_s10 + $0xaec] sm:$0xf0]  ;;  %v13545_v33 = vld [vmem:[%s21902_s10 + $0xb40] sm:$0xf] }
 0xce0   : > { %v19933_v62 = vadd.f32 %v6362_v63, %v19536_v43  ;;  %6905 = vmatpush.bf16.msrb.mxu3 %v13198_v49  ;;  %v13083_v43 = vld [vmem:[%s21902_s10 + $0x838] sm:$0xf0]  ;;  %v13497_v63 = vld [vmem:[%s21902_s10 + $0xae0] sm:$0xf]  ;;  %v15388_v49 = vld [vmem:[%s21902_s10 + $0xbac] sm:$0xf0] }
 0xce1   : > { %v19938_v38 = vpop.f32.mrf.mxu3  ;;  %v13086_v52 = vor.u32 %v15274_v10, %v13083_v43  ;;  %v13498_v35 = vor.u32 %v15364_v25, %v13497_v63  ;;  %v13577_v10 = vld [vmem:[%s21902_s10 + $0xb80] sm:$0xf]  ;;  %v15384_v43 = vld [vmem:[%s21902_s10 + $0xb8c] sm:$0xf0]  ;;  %v13546_v63 = vor.u32 %v15376_v30, %v13545_v33  ;;  %v13483_v30 = vld [vmem:[%s21902_s10 + $0xad0] sm:$0xf0] }
 0xce3   : > { %v6319_v32 = vpop.f32.mrf.mxu2  ;;  %6889 = vmatpush.bf16.msra.mxu2 %v13102_v1  ;;  %v13593_v1 = vld [vmem:[%s21902_s10 + $0xba0] sm:$0xf] }
 0xce4   : > { %v6334_v42 = vadd.f32 %v6333_v41, %v6319_v32  ;;  %v13067_v41 = vld [vmem:[%s21902_s10 + $0x818] sm:$0xf0]  ;;  %v13482_v32 = vor.u32 %v15360_v44, %v13481_v53  ;;  %v15386_v44 = vld [vmem:[%s21902_s10 + $0xba4] sm:$0xf] }
 0xce5   : > { %v13070_v26 = vor.u32 %v15270_v27, %v13067_v41  ;;  %v15333_v27 = vld [vmem:[%s21901_s9 + $0x28] sm:$0xff]  ;;  %v15394_v41 = vld [vmem:[%s21902_s10 + $0xbe4] sm:$0xf] }
 0xce6   : > { %v19947_v50 = vadd.f32 %v6334_v42, %v19525_v11  ;;  %v13594_v42 = vor.u32 %v15388_v49, %v13593_v1  ;;  %v13595_v1 = vld [vmem:[%s21902_s10 + $0xbb0] sm:$0xf0] }
 0xce7   : > { %6890 = vmatpush.bf16.msra.mxu2 %v13086_v52  ;;  %v13578_v52 = vor.u32 %v15384_v43, %v13577_v10  ;;  %v13598_v49 = vor.u32 %v15386_v44, %v13595_v1  ;;  %v15362_v10 = vld [vmem:[%s21902_s10 + $0xae4] sm:$0xf]  ;;  %v13563_v1 = vld [vmem:[%s21902_s10 + $0xb70] sm:$0xf0] }
 0xce9   : > { %v6408_v45 = vpop.f32.mrf.mxu3 }
 0xceb   : > { %v19955_v6 = vpop.f32.mrf.mxu2  ;;  %6891 = vmatpush.bf16.msra.mxu2 %v13070_v26 }
 0xcf1   : > { %v6410_v7 = vpop.f32.mrf.mxu3 }
 0xcf2   : > { %v6414_v22 = vpack.c.bf16 %v6410_v7, %v6408_v45  ;;  %v13627_v45 = vld [vmem:[%s21902_s10 + $0xbf0] sm:$0xf0]  ;;  %v13561_v7 = vld [vmem:[%s21902_s10 + $0xb60] sm:$0xf] }
 0xcf3   : > { %v6394_v55 = vpop.f32.mrf.mxu2  ;;  %v13630_v26 = vor.u32 %v15394_v41, %v13627_v45  ;;  %v13433_v41 = vld [vmem:[%s21902_s10 + $0xa60] sm:$0xf]  ;;  %v15348_v45 = vld [vmem:[%s21902_s10 + $0xa6c] sm:$0xf0] }
 0xcf4   : > { %6822 = vmatmul.bf16.vlgmr.msra.gmra.mxu1 %v6414_v22  ;;  %6850 = vmatmul.bf16.vlgmr.msra.gmra.mxu3 %v6414_v22 }
 0xcf5   : > { %6952 = vmatpush.bf16.msra.mxu1 %v17930_v28  ;;  %7360 = vmatpush.bf16.msra.mxu3 %v13626_v21  ;;  %v15390_v21 = vld [vmem:[%s21902_s10 + $0xbc4] sm:$0xf] }
 0xcf6   : > { %v13614_v25 = vor.u32 %v15390_v21, %v13611_v8  ;;  %v13633_v21 = vld [vmem:[%s21902_s10 + $0xbe8] sm:$0xf]  ;;  %v15397_v8 = vld [vmem:[%s21902_s10 + $0xbf4] sm:$0xf0] }
 0xcf9   : > { %7361 = vmatpush.bf16.msra.mxu3 %v13610_v47  ;;  %v13449_v47 = vld [vmem:[%s21902_s10 + $0xa80] sm:$0xf] }
 0xcfb   : > { %v6396_v11 = vpop.f32.mrf.mxu2 }
 0xcfc   : > { %v6413_v46 = vpack.c.bf16 %v6396_v11, %v6394_v55  ;;  %v13465_v11 = vld [vmem:[%s21902_s10 + $0xaa0] sm:$0xf] }
 0xcfd   : > { %7362 = vmatpush.bf16.msra.mxu3 %v13594_v42  ;;  %v15372_v42 = vld [vmem:[%s21902_s10 + $0xb2c] sm:$0xf0] }
 0xcfe   : > { %6808 = vmatmul.bf16.vlgmr.msra.gmra.mxu0 %v6413_v46  ;;  %6836 = vmatmul.bf16.vlgmr.msrb.gmra.mxu2 %v6413_v46 }
 0xcff   : > { %6938 = vmatpush.bf16.msra.mxu0 %v17885_v39  ;;  %7346 = vmatpush.bf16.msrb.mxu2 %v13498_v35  ;;  %v15352_v35 = vld [vmem:[%s21902_s10 + $0xa8c] sm:$0xf0] }
 0xd00   : > { %v13450_v53 = vor.u32 %v15352_v35, %v13449_v47  ;;  %v13417_v47 = vld [vmem:[%s21902_s10 + $0xa40] sm:$0xf]  ;;  %v15344_v35 = vld [vmem:[%s21902_s10 + $0xa4c] sm:$0xf0] }
 0xd01   : > { %7363 = vmatpush.bf16.msra.mxu3 %v13578_v52  ;;  %v13499_v52 = vld [vmem:[%s21902_s10 + $0xaf0] sm:$0xf0]  ;;  %v13418_v44 = vor.u32 %v15344_v35, %v13417_v47  ;;  %v13505_v35 = vld [vmem:[%s21902_s10 + $0xae8] sm:$0xf] }
 0xd03   : > { %7347 = vmatpush.bf16.msrb.mxu2 %v13482_v32  ;;  %v13529_v32 = vld [vmem:[%s21902_s10 + $0xb20] sm:$0xf] }
 0xd04   : > { %6878 = vmatmul.bf16.vlgmr.msrb.gmra.mxu1 %v6414_v22  ;;  %6906 = vmatmul.bf16.vlgmr.msrb.gmra.mxu3 %v6414_v22  ;;  %v15380_v22 = vld [vmem:[%s21902_s10 + $0xb6c] sm:$0xf0]  ;;  %v13530_v43 = vor.u32 %v15372_v42, %v13529_v32  ;;  %v13467_v32 = vld [vmem:[%s21902_s10 + $0xab0] sm:$0xf0] }
 0xd05   : > { %v13562_v55 = vor.u32 %v15380_v22, %v13561_v7  ;;  %7388 = vmatpush.bf16.msrb.mxu1 %v13630_v26  ;;  %v15382_v26 = vld [vmem:[%s21902_s10 + $0xb84] sm:$0xf]  ;;  %v13434_v7 = vor.u32 %v15348_v45, %v13433_v41  ;;  %v13579_v22 = vld [vmem:[%s21902_s10 + $0xb90] sm:$0xf0]  ;;  %v13401_v41 = vld [vmem:[%s21902_s10 + $0xa20] sm:$0xf] }
 0xd06   : > { %v13582_v33 = vor.u32 %v15382_v26, %v13579_v22  ;;  %v15340_v45 = vld [vmem:[%s21902_s10 + $0xa2c] sm:$0xf0]  ;;  %v15374_v26 = vld [vmem:[%s21902_s10 + $0xb44] sm:$0xf]  ;;  %v13547_v22 = vld [vmem:[%s21902_s10 + $0xb50] sm:$0xf0] }
 0xd07   : > { %7364 = vmatpush.bf16.msra.mxu3 %v13562_v55  ;;  %v13513_v55 = vld [vmem:[%s21902_s10 + $0xb00] sm:$0xf] }
 0xd09   : > { %7389 = vmatpush.bf16.msrb.mxu1 %v13614_v25  ;;  %v13634_v25 = vor.u32 %v15397_v8, %v13633_v21  ;;  %v13385_v8 = vld [vmem:[%s21902_s10 + $0xa00] sm:$0xf] }
 0xd0b   : > { %7365 = vmatpush.bf16.msra.mxu3 %v13546_v63 }
 0xd0d   : > { %7390 = vmatpush.bf16.msrb.mxu1 %v13598_v49  ;;  %v15354_v49 = vld [vmem:[%s21902_s10 + $0xaa4] sm:$0xf] }
 0xd0e   : > { %6864 = vmatmul.bf16.vlgmr.msrb.gmra.mxu0 %v6413_v46  ;;  %6892 = vmatmul.bf16.vlgmr.msra.gmra.mxu2 %v6413_v46  ;;  %v15356_v46 = vld [vmem:[%s21902_s10 + $0xaac] sm:$0xf0] }
 0xd0f   : > { %v13466_v54 = vor.u32 %v15356_v46, %v13465_v11  ;;  %7366 = vmatpush.bf16.msra.mxu3 %v13530_v43  ;;  %v15368_v11 = vld [vmem:[%s21902_s10 + $0xb0c] sm:$0xf0]  ;;  %v15358_v46 = vld [vmem:[%s21902_s10 + $0xac4] sm:$0xf]  ;;  %v13617_v43 = vld [vmem:[%s21902_s10 + $0xbc8] sm:$0xf] }
 0xd10   : > { %v13486_v63 = vor.u32 %v15358_v46, %v13483_v30  ;;  %v13550_v46 = vor.u32 %v15374_v26, %v13547_v22  ;;  %v15389_v30 = vld [vmem:[%s21902_s10 + $0xbb4] sm:$0xf0]  ;;  %v13515_v26 = vld [vmem:[%s21902_s10 + $0xb10] sm:$0xf0] }
 0xd11   : > { %7348 = vmatpush.bf16.msrb.mxu2 %v13466_v54  ;;  %v13514_v54 = vor.u32 %v15368_v11, %v13513_v55  ;;  %7391 = vmatpush.bf16.msrb.mxu1 %v13582_v33  ;;  %v15350_v55 = vld [vmem:[%s21902_s10 + $0xa84] sm:$0xf]  ;;  %v13451_v11 = vld [vmem:[%s21902_s10 + $0xa90] sm:$0xf0]  ;;  %v15361_v22 = vld [vmem:[%s21902_s10 + $0xad4] sm:$0xf0] }
 0xd12   : > { %v13454_v33 = vor.u32 %v15350_v55, %v13451_v11  ;;  %v15395_v11 = vld [vmem:[%s21902_s10 + $0xbec] sm:$0xf] }
 0xd13   : > { %7367 = vmatpush.bf16.msra.mxu3 %v13514_v54  ;;  %v13601_v54 = vld [vmem:[%s21902_s10 + $0xba8] sm:$0xf] }
 0xd14   : > { %13318 = vmatmul.msk.bf16.vlgmr.msra.gmra.mxu1 %vm4214_vm6, %v15333_v27  ;;  %v13602_v21 = vor.u32 %v15389_v30, %v13601_v54  ;;  %v13419_v54 = vld [vmem:[%s21902_s10 + $0xa50] sm:$0xf0]  ;;  %v13635_v30 = vld [vmem:[%s21902_s10 + $0xbf8] sm:$0xf0] }
 0xd15   : > { %7349 = vmatpush.bf16.msrb.mxu2 %v13450_v53  ;;  %v15378_v53 = vld [vmem:[%s21902_s10 + $0xb64] sm:$0xf] }
 0xd16   : > { %v13566_v42 = vor.u32 %v15378_v53, %v13563_v1  ;;  %v15365_v53 = vld [vmem:[%s21902_s10 + $0xaf4] sm:$0xf0] }
 0xd17   : > { %7416 = vmatpush.bf16.msrb.mxu3 %v13634_v25  ;;  %v15370_v25 = vld [vmem:[%s21902_s10 + $0xb24] sm:$0xf]  ;;  %v13506_v1 = vor.u32 %v15365_v53, %v13505_v35  ;;  %v13473_v35 = vld [vmem:[%s21902_s10 + $0xaa8] sm:$0xf]  ;;  %v15357_v53 = vld [vmem:[%s21902_s10 + $0xab4] sm:$0xf0] }
 0xd18   : > { %7392 = vmatpush.bf16.msrb.mxu1 %v13566_v42 }
 0xd19   : > { %7350 = vmatpush.bf16.msrb.mxu2 %v13434_v7  ;;  %v13402_v7 = vor.u32 %v15340_v45, %v13401_v41  ;;  %v15366_v45 = vld [vmem:[%s21902_s10 + $0xb04] sm:$0xf] }
 0xd1a   : > { %v13518_v55 = vor.u32 %v15366_v45, %v13515_v26 }
 0xd1c   : > { %7393 = vmatpush.bf16.msrb.mxu1 %v13550_v46 }
 0xd1d   : > { %7351 = vmatpush.bf16.msrb.mxu2 %v13418_v44  ;;  %v13531_v44 = vld [vmem:[%s21902_s10 + $0xb30] sm:$0xf0] }
 0xd1e   : > { %13317 = vmatmul.msk.bf16.vlgmr.msra.gmra.mxu0 %vm4214_vm6, %v15333_v27  ;;  %v13502_v27 = vor.u32 %v15362_v10, %v13499_v52  ;;  %v13470_v10 = vor.u32 %v15354_v49, %v13467_v32  ;;  %v15393_v52 = vld [vmem:[%s21902_s10 + $0xbd4] sm:$0xf0]  ;;  %v15346_v49 = vld [vmem:[%s21902_s10 + $0xa64] sm:$0xf]  ;;  %v13435_v32 = vld [vmem:[%s21902_s10 + $0xa70] sm:$0xf0]  ;;  %v13534_v42 = vor.u32 %v15370_v25, %v13531_v44  ;;  %v13638_v25 = vor.u32 %v15395_v11, %v13635_v30 }
 0xd1f   : > { %v15391_v44 = vld [vmem:[%s21902_s10 + $0xbcc] sm:$0xf]  ;;  %v13603_v30 = vld [vmem:[%s21902_s10 + $0xbb8] sm:$0xf0] }
 0xd20   : > { %7374 = vmatpush.bf16.msrb.mxu0 %v13502_v27  ;;  %v13618_v27 = vor.u32 %v15393_v52, %v13617_v43  ;;  %v13438_v43 = vor.u32 %v15346_v49, %v13435_v32  ;;  %v13585_v52 = vld [vmem:[%s21902_s10 + $0xb88] sm:$0xf]  ;;  %7394 = vmatpush.bf16.msrb.mxu1 %v13534_v42  ;;  %v15338_v49 = vld [vmem:[%s21902_s10 + $0xa24] sm:$0xf]  ;;  %v13403_v32 = vld [vmem:[%s21902_s10 + $0xa30] sm:$0xf0] }
 0xd21   : > { %7352 = vmatpush.bf16.msrb.mxu2 %v13402_v7  ;;  %v13489_v7 = vld [vmem:[%s21902_s10 + $0xac8] sm:$0xf]  ;;  %v13619_v42 = vld [vmem:[%s21902_s10 + $0xbd8] sm:$0xf0]  ;;  %v15387_v11 = vld [vmem:[%s21902_s10 + $0xbac] sm:$0xf] }
 0xd22   : > { %7417 = vmatpush.bf16.msrb.mxu3 %v13618_v27  ;;  %v15385_v27 = vld [vmem:[%s21902_s10 + $0xb94] sm:$0xf0]  ;;  %v13490_v46 = vor.u32 %v15361_v22, %v13489_v7  ;;  %v13622_v45 = vor.u32 %v15391_v44, %v13619_v42  ;;  %v20218_v7 = vpop.f32.mrf.mxu0  ;;  %v13457_v22 = vld [vmem:[%s21902_s10 + $0xa88] sm:$0xf] }
 0xd23   : > { %v13586_v41 = vor.u32 %v15385_v27, %v13585_v52  ;;  %v13406_v52 = vor.u32 %v15338_v49, %v13403_v32  ;;  %v13553_v27 = vld [vmem:[%s21902_s10 + $0xb48] sm:$0xf]  ;;  %21915 = vst [vmem:[#allocation8_spill] sm:$0xff] %v20218_v7  ;;  %v15349_v49 = vld [vmem:[%s21902_s10 + $0xa74] sm:$0xf0] }
 0xd24   : > { %7375 = vmatpush.bf16.msrb.mxu0 %v13486_v63  ;;  %v15336_v63 = vld [vmem:[%s21902_s10 + $0xa0c] sm:$0xf0]  ;;  %7395 = vmatpush.bf16.msrb.mxu1 %v13518_v55  ;;  %v15353_v55 = vld [vmem:[%s21902_s10 + $0xa94] sm:$0xf0]  ;;  %v15383_v32 = vld [vmem:[%s21902_s10 + $0xb8c] sm:$0xf] }
 0xd25   : > { %v13386_v47 = vor.u32 %v15336_v63, %v13385_v8  ;;  %v13569_v8 = vld [vmem:[%s21902_s10 + $0xb68] sm:$0xf]  ;;  %v15381_v63 = vld [vmem:[%s21902_s10 + $0xb74] sm:$0xf0] }
 0xd26   : > { %7418 = vmatpush.bf16.msrb.mxu3 %v13602_v21 }
 0xd27   : > { %7353 = vmatpush.bf16.msrb.mxu2 %v13386_v47  ;;  %v13570_v47 = vor.u32 %v15381_v63, %v13569_v8  ;;  %v13537_v8 = vld [vmem:[%s21902_s10 + $0xb28] sm:$0xf]  ;;  %v15373_v63 = vld [vmem:[%s21902_s10 + $0xb34] sm:$0xf0] }
 0xd28   : > { %7376 = vmatpush.bf16.msrb.mxu0 %v13470_v10  ;;  %v20156_v10 = vpop.f32.mrf.mxu1  ;;  %7444 = vmatpush.bf16.msra.mxu1 %v13638_v25  ;;  %v15363_v25 = vld [vmem:[%s21902_s10 + $0xaec] sm:$0xf] }
 0xd29   : > { %21914 = vst [vmem:[#allocation7_spill] sm:$0xff] %v20156_v10  ;;  %v15475_v10 = vld [vmem:[%s21902_s10 + $0xe54] sm:$0xf0] }
 0xd2a   : > { %7419 = vmatpush.bf16.msrb.mxu3 %v13586_v41  ;;  %v15377_v41 = vld [vmem:[%s21902_s10 + $0xb54] sm:$0xf0] }
 0xd2b   : > { %7402 = vmatpush.bf16.msra.mxu2 %v13506_v1  ;;  %v13474_v1 = vor.u32 %v15357_v53, %v13473_v35  ;;  %v13554_v26 = vor.u32 %v15377_v41, %v13553_v27  ;;  %v13538_v35 = vor.u32 %v15373_v63, %v13537_v8  ;;  %v13507_v53 = vld [vmem:[%s21902_s10 + $0xaf8] sm:$0xf0]  ;;  %v13521_v41 = vld [vmem:[%s21902_s10 + $0xb08] sm:$0xf] }
 0xd2c   : > { %7377 = vmatpush.bf16.msrb.mxu0 %v13454_v33  ;;  %v15342_v33 = vld [vmem:[%s21902_s10 + $0xa44] sm:$0xf]  ;;  %7445 = vmatpush.bf16.msra.mxu1 %v13622_v45  ;;  %v13510_v44 = vor.u32 %v15363_v25, %v13507_v53  ;;  %v15369_v45 = vld [vmem:[%s21902_s10 + $0xb14] sm:$0xf0]  ;;  %v13475_v53 = vld [vmem:[%s21902_s10 + $0xab8] sm:$0xf0] }
 0xd2d   : > { %v13422_v21 = vor.u32 %v15342_v33, %v13419_v54  ;;  %v15334_v33 = vld [vmem:[%s21902_s10 + $0xa04] sm:$0xf]  ;;  %v13387_v54 = vld [vmem:[%s21902_s10 + $0xa10] sm:$0xf0] }
 0xd2e   : > { %7420 = vmatpush.bf16.msrb.mxu3 %v13570_v47  ;;  %v13606_v47 = vor.u32 %v15387_v11, %v13603_v30  ;;  %v13491_v11 = vld [vmem:[%s21902_s10 + $0xad8] sm:$0xf0]  ;;  %v15345_v30 = vld [vmem:[%s21902_s10 + $0xa54] sm:$0xf0] }
 0xd2f   : > { %7403 = vmatpush.bf16.msra.mxu2 %v13490_v46  ;;  %v13458_v46 = vor.u32 %v15353_v55, %v13457_v22  ;;  %v13522_v55 = vor.u32 %v15369_v45, %v13521_v41  ;;  %v13555_v41 = vld [vmem:[%s21902_s10 + $0xb58] sm:$0xf0] }
 0xd30   : > { %7378 = vmatpush.bf16.msrb.mxu0 %v13438_v43  ;;  %7446 = vmatpush.bf16.msra.mxu1 %v13606_v47  ;;  %v13571_v47 = vld [vmem:[%s21902_s10 + $0xb78] sm:$0xf0] }
 0xd32   : > { %7421 = vmatpush.bf16.msrb.mxu3 %v13554_v26  ;;  %v15359_v26 = vld [vmem:[%s21902_s10 + $0xacc] sm:$0xf] }
 0xd33   : > { %7404 = vmatpush.bf16.msra.mxu2 %v13474_v1  ;;  %v13441_v1 = vld [vmem:[%s21902_s10 + $0xa68] sm:$0xf] }
 0xd34   : > { %7379 = vmatpush.bf16.msrb.mxu0 %v13422_v21  ;;  %v13390_v21 = vor.u32 %v15334_v33, %v13387_v54  ;;  %v13442_v42 = vor.u32 %v15349_v49, %v13441_v1  ;;  %v13494_v33 = vor.u32 %v15359_v26, %v13491_v11  ;;  %v13425_v54 = vld [vmem:[%s21902_s10 + $0xa48] sm:$0xf] }
 0xd35   : > { %v13426_v25 = vor.u32 %v15345_v30, %v13425_v54  ;;  %v13393_v54 = vld [vmem:[%s21902_s10 + $0xa08] sm:$0xf]  ;;  %v15337_v30 = vld [vmem:[%s21902_s10 + $0xa14] sm:$0xf0] }
 0xd36   : > { %7422 = vmatpush.bf16.msrb.mxu3 %v13538_v35  ;;  %v15355_v35 = vld [vmem:[%s21902_s10 + $0xaac] sm:$0xf] }
 0xd37   : > { %7405 = vmatpush.bf16.msra.mxu2 %v13458_v46  ;;  %v13478_v49 = vor.u32 %v15355_v35, %v13475_v53  ;;  %v13443_v35 = vld [vmem:[%s21902_s10 + $0xa78] sm:$0xf0] }
 0xd38   : > { %7380 = vmatpush.bf16.msrb.mxu0 %v13406_v52  ;;  %v13587_v52 = vld [vmem:[%s21902_s10 + $0xb98] sm:$0xf0] }
 0xd39   : > { %v13590_v22 = vor.u32 %v15383_v32, %v13587_v52  ;;  %v15341_v32 = vld [vmem:[%s21902_s10 + $0xa34] sm:$0xf0]  ;;  %v15375_v52 = vld [vmem:[%s21902_s10 + $0xb4c] sm:$0xf] }
 0xd3a   : > { %7423 = vmatpush.bf16.msrb.mxu3 %v13522_v55  ;;  %v13558_v45 = vor.u32 %v15375_v52, %v13555_v41  ;;  %v13459_v55 = vld [vmem:[%s21902_s10 + $0xa98] sm:$0xf0] }
 0xd3b   : > { %7406 = vmatpush.bf16.msra.mxu2 %v13442_v42  ;;  %7447 = vmatpush.bf16.msra.mxu1 %v13590_v22  ;;  %v15351_v22 = vld [vmem:[%s21902_s10 + $0xa8c] sm:$0xf] }
 0xd3c   : > { %7381 = vmatpush.bf16.msrb.mxu0 %v13390_v21  ;;  %v15379_v21 = vld [vmem:[%s21902_s10 + $0xb6c] sm:$0xf] }
 0xd3f   : > { %7407 = vmatpush.bf16.msra.mxu2 %v13426_v25  ;;  %v13539_v25 = vld [vmem:[%s21902_s10 + $0xb38] sm:$0xf0] }
 0xd40   : > { %7430 = vmatpush.bf16.msra.mxu0 %v13510_v44  ;;  %v13574_v44 = vor.u32 %v15379_v21, %v13571_v47  ;;  %v15371_v21 = vld [vmem:[%s21902_s10 + $0xb2c] sm:$0xf] }
 0xd41   : > { %v15347_v47 = vld [vmem:[%s21902_s10 + $0xa6c] sm:$0xf]  ;;  %v13542_v53 = vor.u32 %v15371_v21, %v13539_v25 }
 0xd42   : > { %7448 = vmatpush.bf16.msra.mxu1 %v13574_v44  ;;  %v15335_v21 = vld [vmem:[%s21902_s10 + $0xa0c] sm:$0xf] }
 0xd44   : > { %7431 = vmatpush.bf16.msra.mxu0 %v13494_v33 }
 0xd46   : > { %7449 = vmatpush.bf16.msra.mxu1 %v13558_v45 }
 0xd48   : > { %7432 = vmatpush.bf16.msra.mxu0 %v13478_v49  ;;  %v13427_v49 = vld [vmem:[%s21902_s10 + $0xa58] sm:$0xf0] }
 0xd4a   : > { %7450 = vmatpush.bf16.msra.mxu1 %v13542_v53 }
 0xd71   : > { %v6823_v43 = vpop.f32.mrf.mxu1 }
 0xd77   : > { %v6851_v8 = vpop.f32.mrf.mxu3 }
 0xd79   : > { %v20262_v27 = vpop.f32.mrf.mxu1 }
 0xd7b   : > { %v6809_v46 = vpop.f32.mrf.mxu0 }
 0xd7c   : > { %v6824_v63 = vadd.f32 %v6823_v43, %v6809_v46  ;;  %v13409_v43 = vld [vmem:[%s21902_s10 + $0xa28] sm:$0xf]  ;;  %v13462_v46 = vor.u32 %v15351_v22, %v13459_v55 }
 0xd7d   : > { %v13410_v42 = vor.u32 %v15341_v32, %v13409_v43  ;;  %v15343_v43 = vld [vmem:[%s21902_s10 + $0xa4c] sm:$0xf] }
 0xd7e   : > { %v20298_v1 = vadd.f32 %v6824_v63, %v19886_v31  ;;  %7433 = vmatpush.bf16.msra.mxu0 %v13462_v46  ;;  %v15367_v32 = vld [vmem:[%s21902_s10 + $0xb0c] sm:$0xf]  ;;  %v13430_v45 = vor.u32 %v15343_v43, %v13427_v49  ;;  %v13411_v46 = vld [vmem:[%s21902_s10 + $0xa38] sm:$0xf0] }
 0xd7f   : > { %7408 = vmatpush.bf16.msra.mxu2 %v13410_v42  ;;  %v20338_v44 = vpop.f32.mrf.mxu3  ;;  %v13523_v42 = vld [vmem:[%s21902_s10 + $0xb18] sm:$0xf0] }
 0xd81   : > { %v6837_v26 = vpop.f32.mrf.mxu2  ;;  %v6879_v31 = vpop.f32.mrf.mxu1 }
 0xd82   : > { %v6852_v11 = vadd.f32 %v6851_v8, %v6837_v26  ;;  %v13394_v8 = vor.u32 %v15337_v30, %v13393_v54  ;;  %v13526_v26 = vor.u32 %v15367_v32, %v13523_v42 }
 0xd83   : > { %v20315_v33 = vpop.f32.mrf.mxu0 }
 0xd84   : > { %v20327_v63 = vadd.f32 %v6852_v11, %v19841_v4  ;;  %7409 = vmatpush.bf16.msra.mxu2 %v13394_v8  ;;  %v13446_v4 = vor.u32 %v15347_v47, %v13443_v35  ;;  %7451 = vmatpush.bf16.msra.mxu1 %v13526_v26  ;;  %v15339_v11 = vld [vmem:[%s21902_s10 + $0xa2c] sm:$0xf]  ;;  %v13953_v26 = vld [vmem:[%s21902_s10 + $0xde0] sm:$0xf] }
 0xd85   : > { %v13414_v54 = vor.u32 %v15339_v11, %v13411_v46  ;;  %v15457_v11 = vld [vmem:[%s21902_s10 + $0xdcc] sm:$0xf0]  ;;  %v13825_v46 = vld [vmem:[%s21902_s10 + $0xce0] sm:$0xf] }
 0xd86   : > { %7434 = vmatpush.bf16.msra.mxu0 %v13446_v4 }
 0xd87   : > { %v6907_v8 = vpop.f32.mrf.mxu3 }
 0xd89   : > { %v20352_v52 = vpop.f32.mrf.mxu2  ;;  %v20354_v41 = vpop.f32.mrf.mxu1 }
 0xd8a   : > { %7435 = vmatpush.bf16.msra.mxu0 %v13430_v45 }
 0xd8b   : > { %v6865_v22 = vpop.f32.mrf.mxu0 }
 0xd8c   : > { %v6880_v55 = vadd.f32 %v6879_v31, %v6865_v22  ;;  %v13395_v31 = vld [vmem:[%s21902_s10 + $0xa18] sm:$0xf0]  ;;  %v13937_v22 = vld [vmem:[%s21902_s10 + $0xdc0] sm:$0xf] }
 0xd8d   : > { %v13398_v35 = vor.u32 %v15335_v21, %v13395_v31  ;;  %v13938_v21 = vor.u32 %v15457_v11, %v13937_v22  ;;  %v15445_v11 = vld [vmem:[%s21902_s10 + $0xd6c] sm:$0xf0] }
 0xd8e   : > { %v20363_v30 = vadd.f32 %v6880_v55, %v19947_v50  ;;  %7436 = vmatpush.bf16.msra.mxu0 %v13414_v54  ;;  %v15429_v54 = vld [vmem:[%s21902_s10 + $0xcec] sm:$0xf0] }
 0xd8f   : > { %v13826_v31 = vor.u32 %v15429_v54, %v13825_v46  ;;  %v13793_v54 = vld [vmem:[%s21902_s10 + $0xca0] sm:$0xf] }
 0xd91   : > { %v6893_v25 = vpop.f32.mrf.mxu2  ;;  %v6954_v47 = vpop.f32.mrf.mxu1 }
 0xd92   : > { %v6908_v53 = vadd.f32 %v6907_v8, %v6893_v25  ;;  %7437 = vmatpush.bf16.msra.mxu0 %v13398_v35  ;;  %v13921_v8 = vld [vmem:[%s21902_s10 + $0xda0] sm:$0xf]  ;;  %v15453_v25 = vld [vmem:[%s21902_s10 + $0xdac] sm:$0xf0] }
 0xd93   : > { %v20371_v4 = vpop.f32.mrf.mxu0  ;;  %v15398_v35 = vld [vmem:[%s21901_s9 + $0x30] sm:$0xff] }
 0xd94   : > { %v20374_v43 = vadd.f32 %v6908_v53, %v19933_v62  ;;  %v15461_v62 = vld [vmem:[%s21902_s10 + $0xdec] sm:$0xf0]  ;;  %v13905_v53 = vld [vmem:[%s21902_s10 + $0xd80] sm:$0xf] }
 0xd95   : > { %v13954_v55 = vor.u32 %v15461_v62, %v13953_v26  ;;  %v15459_v26 = vld [vmem:[%s21902_s10 + $0xde4] sm:$0xf]  ;;  %v13955_v62 = vld [vmem:[%s21902_s10 + $0xdf0] sm:$0xf0] }
 0xd96   : > { %v13958_v22 = vor.u32 %v15459_v26, %v13955_v62  ;;  %v13923_v26 = vld [vmem:[%s21902_s10 + $0xdb0] sm:$0xf0]  ;;  %v13857_v62 = vld [vmem:[%s21902_s10 + $0xd20] sm:$0xf] }
 0xd99   : > { %v6956_v50 = vpop.f32.mrf.mxu1 }
 0xd9a   : > { %v6960_v49 = vpack.c.bf16 %v6956_v50, %v6954_v47  ;;  %v13922_v47 = vor.u32 %v15453_v25, %v13921_v8  ;;  %v15449_v50 = vld [vmem:[%s21902_s10 + $0xd8c] sm:$0xf0]  ;;  %v15455_v8 = vld [vmem:[%s21902_s10 + $0xdc4] sm:$0xf]  ;;  %v13939_v25 = vld [vmem:[%s21902_s10 + $0xdd0] sm:$0xf0] }
 0xd9b   : > { %v6940_v32 = vpop.f32.mrf.mxu0 }
 0xd9c   : > { %7368 = vmatmul.bf16.vlgmr.msra.gmra.mxu3 %v6960_v49  ;;  %7396 = vmatmul.bf16.vlgmr.msrb.gmra.mxu1 %v6960_v49 }
 0xd9d   : > { %7498 = vmatpush.bf16.msra.mxu3 %v17930_v28  ;;  %7906 = vmatpush.bf16.msrb.mxu1 %v13954_v55  ;;  %v13889_v55 = vld [vmem:[%s21902_s10 + $0xd60] sm:$0xf] }
 0xd9e   : > { %v13890_v46 = vor.u32 %v15445_v11, %v13889_v55  ;;  %v15427_v55 = vld [vmem:[%s21902_s10 + $0xce4] sm:$0xf] }
 0xda1   : > { %7907 = vmatpush.bf16.msrb.mxu1 %v13938_v21  ;;  %v15421_v21 = vld [vmem:[%s21902_s10 + $0xcac] sm:$0xf0] }
 0xda3   : > { %v6942_v42 = vpop.f32.mrf.mxu0 }
 0xda4   : > { %v6959_v45 = vpack.c.bf16 %v6942_v42, %v6940_v32  ;;  %v13906_v32 = vor.u32 %v15449_v50, %v13905_v53  ;;  %v15425_v42 = vld [vmem:[%s21902_s10 + $0xccc] sm:$0xf0] }
 0xda5   : > { %7908 = vmatpush.bf16.msrb.mxu1 %v13922_v47  ;;  %v13942_v47 = vor.u32 %v15455_v8, %v13939_v25  ;;  %v15441_v53 = vld [vmem:[%s21902_s10 + $0xd4c] sm:$0xf0]  ;;  %v15447_v25 = vld [vmem:[%s21902_s10 + $0xd84] sm:$0xf] }
 0xda6   : > { %7354 = vmatmul.bf16.vlgmr.msrb.gmra.mxu2 %v6959_v45  ;;  %7382 = vmatmul.bf16.vlgmr.msrb.gmra.mxu0 %v6959_v45  ;;  %v15413_v8 = vld [vmem:[%s21902_s10 + $0xc6c] sm:$0xf0] }
 0xda7   : > { %7484 = vmatpush.bf16.msrb.mxu2 %v17885_v39  ;;  %7892 = vmatpush.bf16.msrb.mxu0 %v13826_v31  ;;  %v13794_v31 = vor.u32 %v15421_v21, %v13793_v54  ;;  %v13827_v54 = vld [vmem:[%s21902_s10 + $0xcf0] sm:$0xf0] }
 0xda8   : > { %v13830_v21 = vor.u32 %v15427_v55, %v13827_v54  ;;  %v15443_v54 = vld [vmem:[%s21902_s10 + $0xd64] sm:$0xf] }
 0xda9   : > { %7909 = vmatpush.bf16.msrb.mxu1 %v13906_v32  ;;  %v15417_v32 = vld [vmem:[%s21902_s10 + $0xc8c] sm:$0xf0] }
 0xdac   : > { %7424 = vmatmul.bf16.vlgmr.msrb.gmra.mxu3 %v6960_v49  ;;  %7452 = vmatmul.bf16.vlgmr.msra.gmra.mxu1 %v6960_v49  ;;  %v13809_v49 = vld [vmem:[%s21902_s10 + $0xcc0] sm:$0xf] }
 0xdad   : > { %7934 = vmatpush.bf16.msrb.mxu3 %v13958_v22  ;;  %7910 = vmatpush.bf16.msrb.mxu1 %v13890_v46  ;;  %v15437_v22 = vld [vmem:[%s21902_s10 + $0xd2c] sm:$0xf0] }
 0xdae   : > { %v13858_v46 = vor.u32 %v15437_v22, %v13857_v62  ;;  %v15462_v62 = vld [vmem:[%s21902_s10 + $0xdf4] sm:$0xf0] }
 0xdb1   : > { %7935 = vmatpush.bf16.msrb.mxu3 %v13942_v47 }
 0xdb6   : > { %7410 = vmatmul.bf16.vlgmr.msra.gmra.mxu2 %v6959_v45  ;;  %7438 = vmatmul.bf16.vlgmr.msra.gmra.mxu0 %v6959_v45  ;;  %v13810_v45 = vor.u32 %v15425_v42, %v13809_v49  ;;  %v13777_v49 = vld [vmem:[%s21902_s10 + $0xc80] sm:$0xf]  ;;  %v15451_v42 = vld [vmem:[%s21902_s10 + $0xda4] sm:$0xf] }
 0xdb7   : > { %v13926_v11 = vor.u32 %v15451_v42, %v13923_v26  ;;  %7920 = vmatpush.bf16.msra.mxu2 %v13830_v21  ;;  %v13961_v26 = vld [vmem:[%s21902_s10 + $0xde8] sm:$0xf] }
 0xdb8   : > { %7893 = vmatpush.bf16.msrb.mxu0 %v13810_v45  ;;  %v13778_v45 = vor.u32 %v15417_v32, %v13777_v49  ;;  %v15423_v49 = vld [vmem:[%s21902_s10 + $0xcc4] sm:$0xf]  ;;  %v13962_v55 = vor.u32 %v15462_v62, %v13961_v26  ;;  %v13875_v62 = vld [vmem:[%s21902_s10 + $0xd50] sm:$0xf0] }
 0xdb9   : > { %7936 = vmatpush.bf16.msrb.mxu3 %v13926_v11  ;;  %v13745_v11 = vld [vmem:[%s21902_s10 + $0xc40] sm:$0xf] }
 0xdbc   : > { %13646 = vmatmul.msk.bf16.vlgmr.msra.gmra.mxu3 %vm4214_vm6, %v15398_v35  ;;  %7894 = vmatpush.bf16.msrb.mxu0 %v13794_v31  ;;  %v13761_v31 = vld [vmem:[%s21902_s10 + $0xc60] sm:$0xf] }
 0xdbd   : > { %v13762_v47 = vor.u32 %v15413_v8, %v13761_v31  ;;  %v13891_v31 = vld [vmem:[%s21902_s10 + $0xd70] sm:$0xf0]  ;;  %v15419_v8 = vld [vmem:[%s21902_s10 + $0xca4] sm:$0xf] }
 0xdc0   : > { %7895 = vmatpush.bf16.msrb.mxu0 %v13778_v45  ;;  %v13811_v45 = vld [vmem:[%s21902_s10 + $0xcd0] sm:$0xf0] }
 0xdc1   : > { %v13814_v22 = vor.u32 %v15423_v49, %v13811_v45  ;;  %v15439_v45 = vld [vmem:[%s21902_s10 + $0xd44] sm:$0xf] }
 0xdc3   : > { %7921 = vmatpush.bf16.msra.mxu2 %v13814_v22  ;;  %v15415_v22 = vld [vmem:[%s21902_s10 + $0xc84] sm:$0xf] }
 0xdc4   : > { %7896 = vmatpush.bf16.msrb.mxu0 %v13762_v47  ;;  %v13894_v47 = vor.u32 %v15443_v54, %v13891_v31  ;;  %v13929_v54 = vld [vmem:[%s21902_s10 + $0xda8] sm:$0xf] }
 0xdc6   : > { %13645 = vmatmul.msk.bf16.vlgmr.msrb.gmra.mxu2 %vm4214_vm6, %v15398_v35  ;;  %v13873_v35 = vld [vmem:[%s21902_s10 + $0xd40] sm:$0xf] }
 0xdc7   : > { %v13874_v50 = vor.u32 %v15441_v53, %v13873_v35  ;;  %v13907_v35 = vld [vmem:[%s21902_s10 + $0xd90] sm:$0xf0]  ;;  %v13841_v53 = vld [vmem:[%s21902_s10 + $0xd00] sm:$0xf] }
 0xdc8   : > { %v13910_v32 = vor.u32 %v15447_v25, %v13907_v35  ;;  %v13795_v25 = vld [vmem:[%s21902_s10 + $0xcb0] sm:$0xf0] }
 0xdc9   : > { %7911 = vmatpush.bf16.msrb.mxu1 %v13874_v50  ;;  %v15433_v50 = vld [vmem:[%s21902_s10 + $0xd0c] sm:$0xf0]  ;;  %v13798_v35 = vor.u32 %v15419_v8, %v13795_v25  ;;  %v13713_v8 = vld [vmem:[%s21902_s10 + $0xc00] sm:$0xf] }
 0xdca   : > { %v13842_v42 = vor.u32 %v15433_v50, %v13841_v53  ;;  %7937 = vmatpush.bf16.msrb.mxu3 %v13910_v32  ;;  %v13945_v53 = vld [vmem:[%s21902_s10 + $0xdc8] sm:$0xf]  ;;  %v15458_v50 = vld [vmem:[%s21902_s10 + $0xdd4] sm:$0xf0]  ;;  %v13729_v32 = vld [vmem:[%s21902_s10 + $0xc20] sm:$0xf] }
 0xdcb   : > { %v13946_v49 = vor.u32 %v15458_v50, %v13945_v53  ;;  %7922 = vmatpush.bf16.msra.mxu2 %v13798_v35  ;;  %v15401_v25 = vld [vmem:[%s21902_s10 + $0xc0c] sm:$0xf0]  ;;  %v13833_v53 = vld [vmem:[%s21902_s10 + $0xce8] sm:$0xf]  ;;  %v15430_v50 = vld [vmem:[%s21902_s10 + $0xcf4] sm:$0xf0] }
 0xdcc   : > { %v13714_v35 = vor.u32 %v15401_v25, %v13713_v8  ;;  %v15426_v8 = vld [vmem:[%s21902_s10 + $0xcd4] sm:$0xf0] }
 0xdcd   : > { %7912 = vmatpush.bf16.msrb.mxu1 %v13858_v46  ;;  %v15409_v46 = vld [vmem:[%s21902_s10 + $0xc4c] sm:$0xf0] }
 0xdce   : > { %v13746_v21 = vor.u32 %v15409_v46, %v13745_v11  ;;  %7938 = vmatpush.bf16.msrb.mxu3 %v13894_v47  ;;  %v13878_v11 = vor.u32 %v15439_v45, %v13875_v62  ;;  %v15435_v47 = vld [vmem:[%s21902_s10 + $0xd24] sm:$0xf]  ;;  %v13763_v45 = vld [vmem:[%s21902_s10 + $0xc70] sm:$0xf0]  ;;  %v20575_v62 = vpop.f32.mrf.mxu3 }
 0xdcf   : > { %21916 = vst [vmem:[#allocation9_spill] sm:$0xff] %v20575_v62 }
 0xdd0   : > { %7897 = vmatpush.bf16.msrb.mxu0 %v13746_v21  ;;  %v15454_v21 = vld [vmem:[%s21902_s10 + $0xdb4] sm:$0xf0] }
 0xdd1   : > { %7913 = vmatpush.bf16.msrb.mxu1 %v13842_v42  ;;  %v15405_v42 = vld [vmem:[%s21902_s10 + $0xc2c] sm:$0xf0]  ;;  %v13930_v31 = vor.u32 %v15454_v21, %v13929_v54  ;;  %v15431_v54 = vld [vmem:[%s21902_s10 + $0xd04] sm:$0xf]  ;;  %v13843_v21 = vld [vmem:[%s21902_s10 + $0xd10] sm:$0xf0] }
 0xdd2   : > { %v13730_v26 = vor.u32 %v15405_v42, %v13729_v32  ;;  %7939 = vmatpush.bf16.msrb.mxu3 %v13878_v11  ;;  %v13834_v32 = vor.u32 %v15430_v50, %v13833_v53  ;;  %v15411_v42 = vld [vmem:[%s21902_s10 + $0xc64] sm:$0xf]  ;;  %v15450_v11 = vld [vmem:[%s21902_s10 + $0xd94] sm:$0xf0]  ;;  %v13846_v25 = vor.u32 %v15431_v54, %v13843_v21  ;;  %v13747_v50 = vld [vmem:[%s21902_s10 + $0xc50] sm:$0xf0] }
 0xdd3   : > { %v15407_v53 = vld [vmem:[%s21902_s10 + $0xc44] sm:$0xf] }
 0xdd4   : > { %7898 = vmatpush.bf16.msrb.mxu0 %v13730_v26  ;;  %v15403_v21 = vld [vmem:[%s21902_s10 + $0xc24] sm:$0xf] }
 0xdd5   : > { %7962 = vmatpush.bf16.msra.mxu1 %v13962_v55  ;;  %v13779_v55 = vld [vmem:[%s21902_s10 + $0xc90] sm:$0xf0] }
 0xdd6   : > { %v13782_v46 = vor.u32 %v15415_v22, %v13779_v55  ;;  %v13766_v22 = vor.u32 %v15411_v42, %v13763_v45  ;;  %v13913_v55 = vld [vmem:[%s21902_s10 + $0xd88] sm:$0xf]  ;;  %v15446_v45 = vld [vmem:[%s21902_s10 + $0xd74] sm:$0xf0] }
 0xdd7   : > { %v13897_v42 = vld [vmem:[%s21902_s10 + $0xd68] sm:$0xf] }
 0xdd8   : > { %7923 = vmatpush.bf16.msra.mxu2 %v13782_v46  ;;  %7899 = vmatpush.bf16.msrb.mxu0 %v13714_v35  ;;  %v13914_v46 = vor.u32 %v15450_v11, %v13913_v55  ;;  %v13801_v55 = vld [vmem:[%s21902_s10 + $0xca8] sm:$0xf]  ;;  %v15422_v11 = vld [vmem:[%s21902_s10 + $0xcb4] sm:$0xf0] }
 0xdd9   : > { %7963 = vmatpush.bf16.msra.mxu1 %v13946_v49  ;;  %v13859_v49 = vld [vmem:[%s21902_s10 + $0xd30] sm:$0xf0]  ;;  %v13802_v54 = vor.u32 %v15422_v11, %v13801_v55  ;;  %v15399_v11 = vld [vmem:[%s21902_s10 + $0xc04] sm:$0xf] }
 0xdda   : > { %v13862_v26 = vor.u32 %v15435_v47, %v13859_v49  ;;  %v15460_v47 = vld [vmem:[%s21902_s10 + $0xdec] sm:$0xf]  ;;  %v13963_v49 = vld [vmem:[%s21902_s10 + $0xdf8] sm:$0xf0] }
 0xddc   : > { %7948 = vmatpush.bf16.msra.mxu0 %v13834_v32  ;;  %7940 = vmatpush.bf16.msrb.mxu3 %v13862_v26  ;;  %v13750_v32 = vor.u32 %v15407_v53, %v13747_v50  ;;  %v13966_v26 = vor.u32 %v15460_v47, %v13963_v49  ;;  %v13881_v53 = vld [vmem:[%s21902_s10 + $0xd48] sm:$0xf]  ;;  %v15442_v50 = vld [vmem:[%s21902_s10 + $0xd54] sm:$0xf0] }
 0xddd   : > { %7964 = vmatpush.bf16.msra.mxu1 %v13930_v31  ;;  %v13817_v31 = vld [vmem:[%s21902_s10 + $0xcc8] sm:$0xf]  ;;  %7924 = vmatpush.bf16.msra.mxu2 %v13766_v22  ;;  %v13898_v22 = vor.u32 %v15446_v45, %v13897_v42  ;;  %v20637_v42 = vpop.f32.mrf.mxu2 }
 0xdde   : > { %v13818_v35 = vor.u32 %v15426_v8, %v13817_v31  ;;  %v13731_v31 = vld [vmem:[%s21902_s10 + $0xc30] sm:$0xf0]  ;;  %v13947_v8 = vld [vmem:[%s21902_s10 + $0xdd8] sm:$0xf0]  ;;  %21917 = vst [vmem:[#allocation10_spill] sm:$0xff] %v20637_v42 }
 0xddf   : > { %v13785_v45 = vld [vmem:[%s21902_s10 + $0xc88] sm:$0xf] }
 0xde0   : > { %7949 = vmatpush.bf16.msra.mxu0 %v13818_v35  ;;  %7941 = vmatpush.bf16.msrb.mxu3 %v13846_v25  ;;  %v13734_v35 = vor.u32 %v15403_v21, %v13731_v31  ;;  %v14241_v42 = vld [vmem:[%s21902_s10 + $0xf88] sm:$0xf] }
 0xde1   : > { %7965 = vmatpush.bf16.msra.mxu1 %v13914_v46  ;;  %v15456_v46 = vld [vmem:[%s21902_s10 + $0xdcc] sm:$0xf]  ;;  %7925 = vmatpush.bf16.msra.mxu2 %v13750_v32  ;;  %v13882_v32 = vor.u32 %v15442_v50, %v13881_v53 }
 0xde2   : > { %v13950_v49 = vor.u32 %v15456_v46, %v13947_v8  ;;  %v13715_v46 = vld [vmem:[%s21902_s10 + $0xc10] sm:$0xf0]  ;;  %v13865_v8 = vld [vmem:[%s21902_s10 + $0xd28] sm:$0xf]  ;;  %v15428_v53 = vld [vmem:[%s21902_s10 + $0xcec] sm:$0xf] }
 0xde3   : > { %v13718_v31 = vor.u32 %v15399_v11, %v13715_v46  ;;  %v13769_v11 = vld [vmem:[%s21902_s10 + $0xc68] sm:$0xf]  ;;  %v15414_v46 = vld [vmem:[%s21902_s10 + $0xc74] sm:$0xf0] }
 0xde4   : > { %7990 = vmatpush.bf16.msra.mxu3 %v13966_v26  ;;  %7950 = vmatpush.bf16.msra.mxu0 %v13802_v54  ;;  %v15418_v26 = vld [vmem:[%s21902_s10 + $0xc94] sm:$0xf0]  ;;  %v13931_v54 = vld [vmem:[%s21902_s10 + $0xdb8] sm:$0xf0] }
 0xde5   : > { %7966 = vmatpush.bf16.msra.mxu1 %v13898_v22  ;;  %v15452_v22 = vld [vmem:[%s21902_s10 + $0xdac] sm:$0xf]  ;;  %7926 = vmatpush.bf16.msra.mxu2 %v13734_v35  ;;  %v13786_v55 = vor.u32 %v15418_v26, %v13785_v45  ;;  %v15438_v35 = vld [vmem:[%s21902_s10 + $0xd34] sm:$0xf0]  ;;  %v13835_v45 = vld [vmem:[%s21902_s10 + $0xcf8] sm:$0xf0] }
 0xde6   : > { %v13934_v50 = vor.u32 %v15452_v22, %v13931_v54  ;;  %v13838_v26 = vor.u32 %v15428_v53, %v13835_v45  ;;  %v13915_v54 = vld [vmem:[%s21902_s10 + $0xd98] sm:$0xf0] }
 0xde8   : > { %7991 = vmatpush.bf16.msra.mxu3 %v13950_v49  ;;  %7951 = vmatpush.bf16.msra.mxu0 %v13786_v55  ;;  %v13770_v55 = vor.u32 %v15414_v46, %v13769_v11  ;;  %v15410_v11 = vld [vmem:[%s21902_s10 + $0xc54] sm:$0xf0]  ;;  %v15444_v46 = vld [vmem:[%s21902_s10 + $0xd6c] sm:$0xf] }
 0xde9   : > { %7967 = vmatpush.bf16.msra.mxu1 %v13882_v32  ;;  %v13866_v32 = vor.u32 %v15438_v35, %v13865_v8  ;;  %7927 = vmatpush.bf16.msra.mxu2 %v13718_v31  ;;  %v13849_v8 = vld [vmem:[%s21902_s10 + $0xd08] sm:$0xf]  ;;  %v15434_v35 = vld [vmem:[%s21902_s10 + $0xd14] sm:$0xf0] }
 0xdea   : > { %v13850_v53 = vor.u32 %v15434_v35, %v13849_v8  ;;  %v15420_v35 = vld [vmem:[%s21902_s10 + $0xcac] sm:$0xf] }
 0xdec   : > { %7992 = vmatpush.bf16.msra.mxu3 %v13934_v50  ;;  %7952 = vmatpush.bf16.msra.mxu0 %v13770_v55  ;;  %v13819_v50 = vld [vmem:[%s21902_s10 + $0xcd8] sm:$0xf0] }
 0xded   : > { %7968 = vmatpush.bf16.msra.mxu1 %v13866_v32  ;;  %7976 = vmatpush.bf16.msrb.mxu2 %v13838_v26  ;;  %v13753_v26 = vld [vmem:[%s21902_s10 + $0xc48] sm:$0xf] }
 0xdee   : > { %v13754_v55 = vor.u32 %v15410_v11, %v13753_v26  ;;  %v15440_v26 = vld [vmem:[%s21902_s10 + $0xd4c] sm:$0xf]  ;;  %v13883_v11 = vld [vmem:[%s21902_s10 + $0xd58] sm:$0xf0] }
 0xdf0   : > { %7953 = vmatpush.bf16.msra.mxu0 %v13754_v55 }
 0xdf1   : > { %7969 = vmatpush.bf16.msra.mxu1 %v13850_v53 }
 0xe19   : > { %v7397_v25 = vpop.f32.mrf.mxu1 }
 0xe1f   : > { %v7369_v47 = vpop.f32.mrf.mxu3 }
 0xe23   : > { %v7383_v21 = vpop.f32.mrf.mxu0 }
 0xe24   : > { %v7398_v49 = vadd.f32 %v7397_v25, %v7383_v21  ;;  %v15448_v25 = vld [vmem:[%s21902_s10 + $0xd8c] sm:$0xf] }
 0xe25   : > { %v13918_v31 = vor.u32 %v15448_v25, %v13915_v54  ;;  %v13899_v54 = vld [vmem:[%s21902_s10 + $0xd78] sm:$0xf0] }
 0xe26   : > { %v20679_v22 = vadd.f32 %v7398_v49, %v20327_v63  ;;  %v15424_v63 = vld [vmem:[%s21902_s10 + $0xccc] sm:$0xf]  ;;  %v20698_v49 = vpop.f32.mrf.mxu1 }
 0xe27   : > { %v20684_v21 = vpop.f32.mrf.mxu3  ;;  %v13822_v45 = vor.u32 %v15424_v63, %v13819_v50  ;;  %7993 = vmatpush.bf16.msra.mxu3 %v13918_v31  ;;  %v13803_v63 = vld [vmem:[%s21902_s10 + $0xcb8] sm:$0xf0]  ;;  %v13902_v31 = vor.u32 %v15444_v46, %v13899_v54  ;;  %v13886_v46 = vor.u32 %v15440_v26, %v13883_v11  ;;  %v15412_v11 = vld [vmem:[%s21902_s10 + $0xc6c] sm:$0xf] }
 0xe28   : > { %v13806_v50 = vor.u32 %v15420_v35, %v13803_v63  ;;  %v13721_v63 = vld [vmem:[%s21902_s10 + $0xc08] sm:$0xf] }
 0xe29   : > { %v7355_v32 = vpop.f32.mrf.mxu2  ;;  %7977 = vmatpush.bf16.msrb.mxu2 %v13822_v45 }
 0xe2a   : > { %v7370_v25 = vadd.f32 %v7369_v47, %v7355_v32  ;;  %v13737_v47 = vld [vmem:[%s21902_s10 + $0xc28] sm:$0xf]  ;;  %v15406_v32 = vld [vmem:[%s21902_s10 + $0xc34] sm:$0xf0] }
 0xe2b   : > { %v20712_v8 = vpop.f32.mrf.mxu0  ;;  %7994 = vmatpush.bf16.msra.mxu3 %v13902_v31  ;;  %v13738_v45 = vor.u32 %v15406_v32, %v13737_v47  ;;  %v15402_v31 = vld [vmem:[%s21902_s10 + $0xc14] sm:$0xf0]  ;;  %v15436_v47 = vld [vmem:[%s21902_s10 + $0xd2c] sm:$0xf]  ;;  %v13867_v32 = vld [vmem:[%s21902_s10 + $0xd38] sm:$0xf0] }
 0xe2c   : > { %v20724_v53 = vadd.f32 %v7370_v25, %v20298_v1  ;;  %v15416_v1 = vld [vmem:[%s21902_s10 + $0xc8c] sm:$0xf]  ;;  %v13787_v25 = vld [vmem:[%s21902_s10 + $0xc98] sm:$0xf0] }
 0xe2d   : > { %7978 = vmatpush.bf16.msrb.mxu2 %v13806_v50  ;;  %7954 = vmatpush.bf16.msra.mxu0 %v13738_v45  ;;  %v13790_v55 = vor.u32 %v15416_v1, %v13787_v25  ;;  %v13722_v50 = vor.u32 %v15402_v31, %v13721_v63  ;;  %v13870_v1 = vor.u32 %v15436_v47, %v13867_v32  ;;  %v15408_v63 = vld [vmem:[%s21902_s10 + $0xc4c] sm:$0xf]  ;;  %v13851_v47 = vld [vmem:[%s21902_s10 + $0xd18] sm:$0xf0] }
 0xe2e   : > { %v7453_v45 = vpop.f32.mrf.mxu1  ;;  %v15432_v31 = vld [vmem:[%s21902_s10 + $0xd0c] sm:$0xf] }
 0xe2f   : > { %v7425_v54 = vpop.f32.mrf.mxu3  ;;  %7995 = vmatpush.bf16.msra.mxu3 %v13886_v46  ;;  %v13771_v46 = vld [vmem:[%s21902_s10 + $0xc78] sm:$0xf0] }
 0xe30   : > { %v13774_v2 = vor.u32 %v15412_v11, %v13771_v46  ;;  %v15404_v46 = vld [vmem:[%s21902_s10 + $0xc2c] sm:$0xf] }
 0xe31   : > { %v20741_v35 = vpop.f32.mrf.mxu2  ;;  %7979 = vmatpush.bf16.msrb.mxu2 %v13790_v55  ;;  %7955 = vmatpush.bf16.msra.mxu0 %v13722_v50  ;;  %v13755_v55 = vld [vmem:[%s21902_s10 + $0xc58] sm:$0xf0] }
 0xe32   : > { %v13758_v32 = vor.u32 %v15408_v63, %v13755_v55 }
 0xe33   : > { %v7439_v26 = vpop.f32.mrf.mxu0  ;;  %7996 = vmatpush.bf16.msra.mxu3 %v13870_v1 }
 0xe34   : > { %v7454_v25 = vadd.f32 %v7453_v45, %v7439_v26  ;;  %v13854_v45 = vor.u32 %v15432_v31, %v13851_v47 }
 0xe35   : > { %7980 = vmatpush.bf16.msrb.mxu2 %v13774_v2  ;;  %v15400_v2 = vld [vmem:[%s21902_s10 + $0xc0c] sm:$0xf] }
 0xe36   : > { %v20771_v62 = vadd.f32 %v7454_v25, %v20374_v43  ;;  %v13739_v43 = vld [vmem:[%s21902_s10 + $0xc38] sm:$0xf0] }
 0xe37   : > { %v20776_v50 = vpop.f32.mrf.mxu3  ;;  %7997 = vmatpush.bf16.msra.mxu3 %v13854_v45  ;;  %v13742_v1 = vor.u32 %v15404_v46, %v13739_v43  ;;  %v15526_v46 = vld [vmem:[%s21902_s10 + $0xfec] sm:$0xf0]  ;;  %v14265_v43 = vld [vmem:[%s21902_s10 + $0xfc0] sm:$0xf] }
 0xe39   : > { %v7411_v26 = vpop.f32.mrf.mxu2  ;;  %7981 = vmatpush.bf16.msrb.mxu2 %v13758_v32 }
 0xe3a   : > { %v7426_v11 = vadd.f32 %v7425_v54, %v7411_v26  ;;  %v13723_v54 = vld [vmem:[%s21902_s10 + $0xc18] sm:$0xf0] }
 0xe3b   : > { %v13726_v55 = vor.u32 %v15400_v2, %v13723_v54  ;;  %v15522_v2 = vld [vmem:[%s21902_s10 + $0xfcc] sm:$0xf0]  ;;  %v14153_v54 = vld [vmem:[%s21902_s10 + $0xee0] sm:$0xf] }
 0xe3c   : > { %v20785_v25 = vadd.f32 %v7426_v11, %v20363_v30  ;;  %v14281_v11 = vld [vmem:[%s21902_s10 + $0xfe0] sm:$0xf] }
 0xe3d   : > { %7982 = vmatpush.bf16.msrb.mxu2 %v13742_v1  ;;  %v14282_v1 = vor.u32 %v15526_v46, %v14281_v11  ;;  %v14249_v11 = vld [vmem:[%s21902_s10 + $0xfa0] sm:$0xf]  ;;  %v15518_v46 = vld [vmem:[%s21902_s10 + $0xfac] sm:$0xf0] }
 0xe3f   : > { %v7500_v63 = vpop.f32.mrf.mxu3 }
 0xe41   : > { %v20793_v31 = vpop.f32.mrf.mxu2  ;;  %7983 = vmatpush.bf16.msrb.mxu2 %v13726_v55  ;;  %v14266_v55 = vor.u32 %v15522_v2, %v14265_v43  ;;  %v14250_v43 = vor.u32 %v15518_v46, %v14249_v11  ;;  %v14233_v2 = vld [vmem:[%s21902_s10 + $0xf80] sm:$0xf] }
 0xe42   : > { %v14121_v46 = vld [vmem:[%s21902_s10 + $0xea0] sm:$0xf] }
 0xe47   : > { %v7502_v47 = vpop.f32.mrf.mxu3 }
 0xe48   : > { %v7506_v32 = vpack.c.bf16 %v7502_v47, %v7500_v63  ;;  %v15494_v63 = vld [vmem:[%s21902_s10 + $0xeec] sm:$0xf0] }
 0xe49   : > { %v7486_v45 = vpop.f32.mrf.mxu2  ;;  %v14154_v47 = vor.u32 %v15494_v63, %v14153_v54  ;;  %v15514_v54 = vld [vmem:[%s21902_s10 + $0xf8c] sm:$0xf0] }
 0xe4a   : > { %7914 = vmatmul.bf16.vlgmr.msrb.gmra.mxu1 %v7506_v32  ;;  %7942 = vmatmul.bf16.vlgmr.msrb.gmra.mxu3 %v7506_v32  ;;  %v14234_v63 = vor.u32 %v15514_v54, %v14233_v2  ;;  %v15506_v54 = vld [vmem:[%s21902_s10 + $0xf4c] sm:$0xf0] }
 0xe4b   : > { %8044 = vmatpush.bf16.msrb.mxu1 %v17930_v28  ;;  %8452 = vmatpush.bf16.msrb.mxu3 %v14282_v1 }
 0xe4f   : > { %8453 = vmatpush.bf16.msrb.mxu3 %v14266_v55  ;;  %v15524_v55 = vld [vmem:[%s21902_s10 + $0xfe4] sm:$0xf] }
 0xe51   : > { %v7488_v30 = vpop.f32.mrf.mxu2 }
 0xe52   : > { %v7505_v26 = vpack.c.bf16 %v7488_v30, %v7486_v45  ;;  %v14137_v45 = vld [vmem:[%s21902_s10 + $0xec0] sm:$0xf]  ;;  %v15490_v30 = vld [vmem:[%s21902_s10 + $0xecc] sm:$0xf0] }
 0xe53   : > { %v14138_v1 = vor.u32 %v15490_v30, %v14137_v45  ;;  %8454 = vmatpush.bf16.msrb.mxu3 %v14250_v43  ;;  %v15510_v30 = vld [vmem:[%s21902_s10 + $0xf6c] sm:$0xf0]  ;;  %v14201_v43 = vld [vmem:[%s21902_s10 + $0xf40] sm:$0xf] }
 0xe54   : > { %7900 = vmatmul.bf16.vlgmr.msrb.gmra.mxu0 %v7505_v26  ;;  %7928 = vmatmul.bf16.vlgmr.msra.gmra.mxu2 %v7505_v26 }
 0xe55   : > { %8030 = vmatpush.bf16.msrb.mxu0 %v17885_v39  ;;  %8438 = vmatpush.bf16.msra.mxu2 %v14154_v47  ;;  %v14283_v47 = vld [vmem:[%s21902_s10 + $0xff0] sm:$0xf0] }
 0xe56   : > { %v14286_v45 = vor.u32 %v15524_v55, %v14283_v47  ;;  %v14202_v55 = vor.u32 %v15506_v54, %v14201_v43  ;;  %v14185_v43 = vld [vmem:[%s21902_s10 + $0xf20] sm:$0xf]  ;;  %v15492_v54 = vld [vmem:[%s21902_s10 + $0xee4] sm:$0xf] }
 0xe57   : > { %8455 = vmatpush.bf16.msrb.mxu3 %v14234_v63  ;;  %v15520_v63 = vld [vmem:[%s21902_s10 + $0xfc4] sm:$0xf] }
 0xe59   : > { %8439 = vmatpush.bf16.msra.mxu2 %v14138_v1  ;;  %v15486_v1 = vld [vmem:[%s21902_s10 + $0xeac] sm:$0xf0] }
 0xe5a   : > { %7970 = vmatmul.bf16.vlgmr.msra.gmra.mxu1 %v7506_v32  ;;  %7998 = vmatmul.bf16.vlgmr.msra.gmra.mxu3 %v7506_v32  ;;  %v15463_v32 = vld [vmem:[%s21901_s9 + $0x38] sm:$0xff]  ;;  %v14122_v2 = vor.u32 %v15486_v1, %v14121_v46  ;;  %v15516_v46 = vld [vmem:[%s21902_s10 + $0xfa4] sm:$0xf] }
 0xe5b   : > { %8480 = vmatpush.bf16.msra.mxu1 %v14286_v45  ;;  %v14105_v45 = vld [vmem:[%s21902_s10 + $0xe80] sm:$0xf] }
 0xe5d   : > { %8440 = vmatpush.bf16.msra.mxu2 %v14122_v2  ;;  %v15502_v2 = vld [vmem:[%s21902_s10 + $0xf2c] sm:$0xf0] }
 0xe64   : > { %7956 = vmatmul.bf16.vlgmr.msra.gmra.mxu0 %v7505_v26  ;;  %7984 = vmatmul.bf16.vlgmr.msrb.gmra.mxu2 %v7505_v26  ;;  %v14217_v26 = vld [vmem:[%s21902_s10 + $0xf60] sm:$0xf] }
 0xe65   : > { %v14218_v11 = vor.u32 %v15510_v30, %v14217_v26  ;;  %v15482_v26 = vld [vmem:[%s21902_s10 + $0xe8c] sm:$0xf0] }
 0xe66   : > { %v14106_v30 = vor.u32 %v15482_v26, %v14105_v45  ;;  %v15478_v45 = vld [vmem:[%s21902_s10 + $0xe6c] sm:$0xf0]  ;;  %v15512_v26 = vld [vmem:[%s21902_s10 + $0xf84] sm:$0xf] }
 0xe67   : > { %8456 = vmatpush.bf16.msrb.mxu3 %v14218_v11  ;;  %v14251_v11 = vld [vmem:[%s21902_s10 + $0xfb0] sm:$0xf0] }
 0xe68   : > { %v14254_v1 = vor.u32 %v15516_v46, %v14251_v11  ;;  %8441 = vmatpush.bf16.msra.mxu2 %v14106_v30  ;;  %v14235_v46 = vld [vmem:[%s21902_s10 + $0xf90] sm:$0xf0]  ;;  %v14169_v11 = vld [vmem:[%s21902_s10 + $0xf00] sm:$0xf] }
 0xe6a   : > { %13974 = vmatmul.msk.bf16.vlgmr.msrb.gmra.mxu1 %vm4214_vm6, %v15463_v32 }
 0xe6b   : > { %8457 = vmatpush.bf16.msrb.mxu3 %v14202_v55 }
 0xe74   : > { %13973 = vmatmul.msk.bf16.vlgmr.msrb.gmra.mxu0 %vm4214_vm6, %v15463_v32  ;;  %v14267_v32 = vld [vmem:[%s21902_s10 + $0xfd0] sm:$0xf0] }
 0xe75   : > { %v14270_v47 = vor.u32 %v15520_v63, %v14267_v32  ;;  %v14186_v63 = vor.u32 %v15502_v2, %v14185_v43  ;;  %v14155_v32 = vld [vmem:[%s21902_s10 + $0xef0] sm:$0xf0]  ;;  %v15488_v43 = vld [vmem:[%s21902_s10 + $0xec4] sm:$0xf]  ;;  %v14238_v2 = vor.u32 %v15512_v26, %v14235_v46  ;;  %v14073_v26 = vld [vmem:[%s21902_s10 + $0xe40] sm:$0xf] }
 0xe76   : > { %v14158_v55 = vor.u32 %v15492_v54, %v14155_v32  ;;  %v14289_v32 = vld [vmem:[%s21902_s10 + $0xfe8] sm:$0xf]  ;;  %v15508_v46 = vld [vmem:[%s21902_s10 + $0xf64] sm:$0xf] }
 0xe77   : > { %8481 = vmatpush.bf16.msra.mxu1 %v14270_v47  ;;  %v14089_v47 = vld [vmem:[%s21902_s10 + $0xe60] sm:$0xf]  ;;  %8458 = vmatpush.bf16.msrb.mxu3 %v14186_v63  ;;  %v14139_v63 = vld [vmem:[%s21902_s10 + $0xed0] sm:$0xf0] }
 0xe78   : > { %v14090_v30 = vor.u32 %v15478_v45, %v14089_v47  ;;  %8466 = vmatpush.bf16.msra.mxu0 %v14158_v55  ;;  %v15527_v55 = vld [vmem:[%s21902_s10 + $0xff4] sm:$0xf0]  ;;  %v14142_v47 = vor.u32 %v15488_v43, %v14139_v63  ;;  %v15484_v43 = vld [vmem:[%s21902_s10 + $0xea4] sm:$0xf] }
 0xe79   : > { %v14290_v45 = vor.u32 %v15527_v55, %v14289_v32  ;;  %v15523_v55 = vld [vmem:[%s21902_s10 + $0xfd4] sm:$0xf0] }
 0xe7a   : > { %8442 = vmatpush.bf16.msra.mxu2 %v14090_v30  ;;  %v15474_v30 = vld [vmem:[%s21902_s10 + $0xe4c] sm:$0xf0] }
 0xe7b   : > { %8482 = vmatpush.bf16.msra.mxu1 %v14254_v1  ;;  %v15498_v1 = vld [vmem:[%s21902_s10 + $0xf0c] sm:$0xf0] }
 0xe7c   : > { %v14170_v54 = vor.u32 %v15498_v1, %v14169_v11  ;;  %v14074_v11 = vor.u32 %v15474_v30, %v14073_v26  ;;  %v14219_v1 = vld [vmem:[%s21902_s10 + $0xf70] sm:$0xf0]  ;;  %8467 = vmatpush.bf16.msra.mxu0 %v14142_v47  ;;  %v15470_v26 = vld [vmem:[%s21902_s10 + $0xe2c] sm:$0xf0]  ;;  %v15504_v30 = vld [vmem:[%s21902_s10 + $0xf44] sm:$0xf] }
 0xe7d   : > { %v14222_v63 = vor.u32 %v15508_v46, %v14219_v1  ;;  %v15480_v1 = vld [vmem:[%s21902_s10 + $0xe84] sm:$0xf] }
 0xe7e   : > { %8459 = vmatpush.bf16.msrb.mxu3 %v14170_v54  ;;  %8443 = vmatpush.bf16.msra.mxu2 %v14074_v11  ;;  %v14273_v54 = vld [vmem:[%s21902_s10 + $0xfc8] sm:$0xf]  ;;  %v14203_v11 = vld [vmem:[%s21902_s10 + $0xf50] sm:$0xf0] }
 0xe7f   : > { %8483 = vmatpush.bf16.msra.mxu1 %v14238_v2  ;;  %v14123_v2 = vld [vmem:[%s21902_s10 + $0xeb0] sm:$0xf0]  ;;  %v14274_v47 = vor.u32 %v15523_v55, %v14273_v54  ;;  %v14257_v54 = vld [vmem:[%s21902_s10 + $0xfa8] sm:$0xf] }
 0xe80   : > { %v14126_v32 = vor.u32 %v15484_v43, %v14123_v2  ;;  %v14107_v43 = vld [vmem:[%s21902_s10 + $0xe90] sm:$0xf0]  ;;  %v14206_v2 = vor.u32 %v15504_v30, %v14203_v11  ;;  %v15495_v11 = vld [vmem:[%s21902_s10 + $0xef4] sm:$0xf0] }
 0xe82   : > { %8508 = vmatpush.bf16.msra.mxu3 %v14290_v45  ;;  %v14057_v45 = vld [vmem:[%s21902_s10 + $0xe20] sm:$0xf]  ;;  %8468 = vmatpush.bf16.msra.mxu0 %v14126_v32  ;;  %v15519_v32 = vld [vmem:[%s21902_s10 + $0xfb4] sm:$0xf0] }
 0xe83   : > { %8484 = vmatpush.bf16.msra.mxu1 %v14222_v63  ;;  %v14058_v46 = vor.u32 %v15470_v26, %v14057_v45  ;;  %v14110_v63 = vor.u32 %v15480_v1, %v14107_v43  ;;  %v14258_v55 = vor.u32 %v15519_v32, %v14257_v54  ;;  %v15466_v45 = vld [vmem:[%s21902_s10 + $0xe0c] sm:$0xf0]  ;;  %v15500_v26 = vld [vmem:[%s21902_s10 + $0xf24] sm:$0xf]  ;;  %v14187_v1 = vld [vmem:[%s21902_s10 + $0xf30] sm:$0xf0] }
 0xe84   : > { %v14091_v54 = vld [vmem:[%s21902_s10 + $0xe70] sm:$0xf0]  ;;  %v14190_v32 = vor.u32 %v15500_v26, %v14187_v1 }
 0xe85   : > { %8444 = vmatpush.bf16.msra.mxu2 %v14058_v46  ;;  %v14161_v46 = vld [vmem:[%s21902_s10 + $0xee8] sm:$0xf]  ;;  %v14171_v26 = vld [vmem:[%s21902_s10 + $0xf10] sm:$0xf0] }
 0xe86   : > { %8509 = vmatpush.bf16.msra.mxu3 %v14274_v47  ;;  %v14041_v47 = vld [vmem:[%s21902_s10 + $0xe00] sm:$0xf]  ;;  %8469 = vmatpush.bf16.msra.mxu0 %v14110_v63  ;;  %v14162_v43 = vor.u32 %v15495_v11, %v14161_v46  ;;  %v15515_v63 = vld [vmem:[%s21902_s10 + $0xf94] sm:$0xf0]  ;;  %v15496_v46 = vld [vmem:[%s21902_s10 + $0xf04] sm:$0xf] }
 0xe87   : > { %8485 = vmatpush.bf16.msra.mxu1 %v14206_v2  ;;  %v14042_v30 = vor.u32 %v15466_v45, %v14041_v47  ;;  %v15476_v2 = vld [vmem:[%s21902_s10 + $0xe64] sm:$0xf]  ;;  %v20994_v47 = vpop.f32.mrf.mxu1  ;;  %v15491_v11 = vld [vmem:[%s21902_s10 + $0xed4] sm:$0xf0]  ;;  %v14174_v1 = vor.u32 %v15496_v46, %v14171_v26  ;;  %v14225_v46 = vld [vmem:[%s21902_s10 + $0xf68] sm:$0xf] }
 0xe88   : > { %21918 = vst [vmem:[#allocation11_spill] sm:$0xff] %v20994_v47  ;;  %v14094_v45 = vor.u32 %v15476_v2, %v14091_v54  ;;  %v15472_v2 = vld [vmem:[%s21902_s10 + $0xe44] sm:$0xf]  ;;  %v14075_v54 = vld [vmem:[%s21902_s10 + $0xe50] sm:$0xf0] }
 0xe89   : > { %8445 = vmatpush.bf16.msra.mxu2 %v14042_v30  ;;  %v14145_v30 = vld [vmem:[%s21902_s10 + $0xec8] sm:$0xf]  ;;  %v14163_v47 = vld [vmem:[%s21902_s10 + $0xef8] sm:$0xf0] }
 0xe8a   : > { %8510 = vmatpush.bf16.msra.mxu3 %v14258_v55  ;;  %v14242_v55 = vor.u32 %v15515_v63, %v14241_v42  ;;  %v15525_v42 = vld [vmem:[%s21902_s10 + $0xfec] sm:$0xf]  ;;  %8470 = vmatpush.bf16.msra.mxu0 %v14094_v45  ;;  %v14078_v63 = vor.u32 %v15472_v2, %v14075_v54  ;;  %v15511_v45 = vld [vmem:[%s21902_s10 + $0xf74] sm:$0xf0] }
 0xe8b   : > { %8486 = vmatpush.bf16.msra.mxu1 %v14190_v32  ;;  %v14291_v32 = vld [vmem:[%s21902_s10 + $0xff8] sm:$0xf0]  ;;  %v14226_v26 = vor.u32 %v15511_v45, %v14225_v46  ;;  %v15521_v2 = vld [vmem:[%s21902_s10 + $0xfcc] sm:$0xf]  ;;  %v15507_v45 = vld [vmem:[%s21902_s10 + $0xf54] sm:$0xf0] }
 0xe8d   : > { %8494 = vmatpush.bf16.msrb.mxu2 %v14162_v43  ;;  %v14146_v43 = vor.u32 %v15491_v11, %v14145_v30  ;;  %v14129_v30 = vld [vmem:[%s21902_s10 + $0xea8] sm:$0xf]  ;;  %v15487_v11 = vld [vmem:[%s21902_s10 + $0xeb4] sm:$0xf0] }
 0xe8e   : > { %8511 = vmatpush.bf16.msra.mxu3 %v14242_v55  ;;  %v14294_v55 = vor.u32 %v15525_v42, %v14291_v32  ;;  %8471 = vmatpush.bf16.msra.mxu0 %v14078_v63  ;;  %v14130_v54 = vor.u32 %v15487_v11, %v14129_v30  ;;  %v14059_v42 = vld [vmem:[%s21902_s10 + $0xe30] sm:$0xf0]  ;;  %v14209_v63 = vld [vmem:[%s21902_s10 + $0xf48] sm:$0xf]  ;;  %v21056_v30 = vpop.f32.mrf.mxu0 }
 0xe8f   : > { %8487 = vmatpush.bf16.msra.mxu1 %v14174_v1  ;;  %v15468_v1 = vld [vmem:[%s21902_s10 + $0xe24] sm:$0xf]  ;;  %21919 = vst [vmem:[#allocation12_spill] sm:$0xff] %v21056_v30  ;;  %v14113_v11 = vld [vmem:[%s21902_s10 + $0xe88] sm:$0xf] }
 0xe90   : > { %v14062_v46 = vor.u32 %v15468_v1, %v14059_v42  ;;  %v15483_v1 = vld [vmem:[%s21902_s10 + $0xe94] sm:$0xf0]  ;;  %v15517_v42 = vld [vmem:[%s21902_s10 + $0xfac] sm:$0xf] }
 0xe91   : > { %8495 = vmatpush.bf16.msrb.mxu2 %v14146_v43  ;;  %v14275_v43 = vld [vmem:[%s21902_s10 + $0xfd8] sm:$0xf0]  ;;  %v15479_v30 = vld [vmem:[%s21902_s10 + $0xe74] sm:$0xf0] }
 0xe92   : > { %8512 = vmatpush.bf16.msra.mxu3 %v14226_v26  ;;  %v14210_v26 = vor.u32 %v15507_v45, %v14209_v63  ;;  %8472 = vmatpush.bf16.msra.mxu0 %v14062_v46  ;;  %v14259_v63 = vld [vmem:[%s21902_s10 + $0xfb8] sm:$0xf0]  ;;  %v15503_v46 = vld [vmem:[%s21902_s10 + $0xf34] sm:$0xf0] }
 0xe93   : > { %8536 = vmatpush.bf16.msrb.mxu1 %v14294_v55  ;;  %v14278_v55 = vor.u32 %v15521_v2, %v14275_v43  ;;  %v14114_v2 = vor.u32 %v15483_v1, %v14113_v11  ;;  %v14043_v43 = vld [vmem:[%s21902_s10 + $0xe10] sm:$0xf0]  ;;  %v14262_v11 = vor.u32 %v15517_v42, %v14259_v63  ;;  %v15513_v42 = vld [vmem:[%s21902_s10 + $0xf8c] sm:$0xf] }
 0xe95   : > { %8496 = vmatpush.bf16.msrb.mxu2 %v14130_v54  ;;  %v15464_v54 = vld [vmem:[%s21902_s10 + $0xe04] sm:$0xf] }
 0xe96   : > { %8513 = vmatpush.bf16.msra.mxu3 %v14210_v26  ;;  %v14046_v45 = vor.u32 %v15464_v54, %v14043_v43  ;;  %v15493_v26 = vld [vmem:[%s21902_s10 + $0xeec] sm:$0xf]  ;;  %v14097_v43 = vld [vmem:[%s21902_s10 + $0xe68] sm:$0xf] }
 0xe97   : > { %8537 = vmatpush.bf16.msrb.mxu1 %v14278_v55  ;;  %v14193_v55 = vld [vmem:[%s21902_s10 + $0xf28] sm:$0xf]  ;;  %v14166_v54 = vor.u32 %v15493_v26, %v14163_v47  ;;  %v14243_v47 = vld [vmem:[%s21902_s10 + $0xf98] sm:$0xf0] }
 0xe98   : > { %v14194_v1 = vor.u32 %v15503_v46, %v14193_v55  ;;  %8473 = vmatpush.bf16.msra.mxu0 %v14046_v45  ;;  %v14177_v55 = vld [vmem:[%s21902_s10 + $0xf08] sm:$0xf]  ;;  %v15499_v46 = vld [vmem:[%s21902_s10 + $0xf14] sm:$0xf0]  ;;  %v15489_v45 = vld [vmem:[%s21902_s10 + $0xecc] sm:$0xf] }
 0xe99   : > { %8497 = vmatpush.bf16.msrb.mxu2 %v14114_v2  ;;  %v14098_v2 = vor.u32 %v15479_v30, %v14097_v43  ;;  %v14246_v30 = vor.u32 %v15513_v42, %v14243_v47  ;;  %v14178_v26 = vor.u32 %v15499_v46, %v14177_v55  ;;  %v14081_v43 = vld [vmem:[%s21902_s10 + $0xe48] sm:$0xf]  ;;  %v15509_v42 = vld [vmem:[%s21902_s10 + $0xf6c] sm:$0xf]  ;;  %v14227_v46 = vld [vmem:[%s21902_s10 + $0xf78] sm:$0xf0] }
 0xe9a   : > { %8514 = vmatpush.bf16.msra.mxu3 %v14194_v1  ;;  %v14082_v55 = vor.u32 %v15475_v10, %v14081_v43  ;;  %v15505_v43 = vld [vmem:[%s21902_s10 + $0xf4c] sm:$0xf] }
 0xe9b   : > { %8538 = vmatpush.bf16.msrb.mxu1 %v14262_v11  ;;  %v14147_v11 = vld [vmem:[%s21902_s10 + $0xed8] sm:$0xf0] }
 0xe9c   : > { %8522 = vmatpush.bf16.msrb.mxu0 %v14166_v54  ;;  %v14150_v54 = vor.u32 %v15489_v45, %v14147_v11  ;;  %v15485_v45 = vld [vmem:[%s21902_s10 + $0xeac] sm:$0xf]  ;;  %v14230_v11 = vor.u32 %v15509_v42, %v14227_v46  ;;  %v14211_v42 = vld [vmem:[%s21902_s10 + $0xf58] sm:$0xf0] }
 0xe9d   : > { %8498 = vmatpush.bf16.msrb.mxu2 %v14098_v2  ;;  %v14214_v46 = vor.u32 %v15505_v43, %v14211_v42  ;;  %v14099_v42 = vld [vmem:[%s21902_s10 + $0xe78] sm:$0xf0] }
 0xe9e   : > { %8515 = vmatpush.bf16.msra.mxu3 %v14178_v26 }
 0xe9f   : > { %8539 = vmatpush.bf16.msrb.mxu1 %v14246_v30  ;;  %v14131_v30 = vld [vmem:[%s21902_s10 + $0xeb8] sm:$0xf0] }
 0xea0   : > { %8523 = vmatpush.bf16.msrb.mxu0 %v14150_v54  ;;  %v14134_v26 = vor.u32 %v15485_v45, %v14131_v30 }
 0xea1   : > { %8499 = vmatpush.bf16.msrb.mxu2 %v14082_v55  ;;  %v14115_v55 = vld [vmem:[%s21902_s10 + $0xe98] sm:$0xf0] }
 0xea3   : > { %8540 = vmatpush.bf16.msrb.mxu1 %v14230_v11 }
 0xea4   : > { %8524 = vmatpush.bf16.msrb.mxu0 %v14134_v26  ;;  %v15467_v26 = vld [vmem:[%s21902_s10 + $0xe14] sm:$0xf0] }
 0xea7   : > { %8541 = vmatpush.bf16.msrb.mxu1 %v14214_v46 }
 0xec7   : > { %v7915_v32 = vpop.f32.mrf.mxu1 }
 0xecd   : > { %v7943_v2 = vpop.f32.mrf.mxu3 }
 0xecf   : > { %v21100_v63 = vpop.f32.mrf.mxu1 }
 0xed1   : > { %v7901_v1 = vpop.f32.mrf.mxu0 }
 0xed2   : > { %v7916_v47 = vadd.f32 %v7915_v32, %v7901_v1  ;;  %v14065_v32 = vld [vmem:[%s21902_s10 + $0xe28] sm:$0xf]  ;;  %v15471_v1 = vld [vmem:[%s21902_s10 + $0xe34] sm:$0xf0] }
 0xed3   : > { %v14066_v54 = vor.u32 %v15471_v1, %v14065_v32  ;;  %v14049_v32 = vld [vmem:[%s21902_s10 + $0xe08] sm:$0xf]  ;;  %v15501_v1 = vld [vmem:[%s21902_s10 + $0xf2c] sm:$0xf] }
 0xed4   : > { %v21136_v10 = vadd.f32 %v7916_v47, %v20724_v53  ;;  %v15481_v47 = vld [vmem:[%s21902_s10 + $0xe8c] sm:$0xf] }
 0xed5   : > { %8500 = vmatpush.bf16.msrb.mxu2 %v14066_v54  ;;  %v14118_v30 = vor.u32 %v15481_v47, %v14115_v55  ;;  %v15477_v54 = vld [vmem:[%s21902_s10 + $0xe6c] sm:$0xf]  ;;  %v21176_v47 = vpop.f32.mrf.mxu3 }
 0xed6   : > { %v15473_v55 = vld [vmem:[%s21902_s10 + $0xe4c] sm:$0xf] }
 0xed7   : > { %v7929_v7 = vpop.f32.mrf.mxu2  ;;  %v7971_v53 = vpop.f32.mrf.mxu1  ;;  %8525 = vmatpush.bf16.msrb.mxu0 %v14118_v30  ;;  %v15497_v30 = vld [vmem:[%s21902_s10 + $0xf0c] sm:$0xf] }
 0xed8   : > { %v7944_v45 = vadd.f32 %v7943_v2, %v7929_v7  ;;  %v14050_v7 = vor.u32 %v15467_v26, %v14049_v32  ;;  %v14195_v2 = vld [vmem:[%s21902_s10 + $0xf38] sm:$0xf0] }
 0xed9   : > { %v21153_v11 = vpop.f32.mrf.mxu0  ;;  %v14198_v46 = vor.u32 %v15501_v1, %v14195_v2  ;;  %v14179_v32 = vld [vmem:[%s21902_s10 + $0xf18] sm:$0xf0] }
 0xeda   : > { %v21165_v43 = vadd.f32 %v7944_v45, %v20679_v22  ;;  %8501 = vmatpush.bf16.msrb.mxu2 %v14050_v7  ;;  %v14102_v22 = vor.u32 %v15477_v54, %v14099_v42  ;;  %v14083_v45 = vld [vmem:[%s21902_s10 + $0xe58] sm:$0xf0]  ;;  %v14182_v2 = vor.u32 %v15497_v30, %v14179_v32 }
 0xedb   : > { %8542 = vmatpush.bf16.msrb.mxu1 %v14198_v46  ;;  %v14086_v7 = vor.u32 %v15473_v55, %v14083_v45  ;;  %v15469_v46 = vld [vmem:[%s21902_s10 + $0xe2c] sm:$0xf] }
 0xedc   : > { %8526 = vmatpush.bf16.msrb.mxu0 %v14102_v22  ;;  %v14070_v9 = vor.u32 %v15469_v46, %v14067_v23  ;;  %v15465_v22 = vld [vmem:[%s21902_s10 + $0xe0c] sm:$0xf] }
 0xedd   : > { %v7999_v55 = vpop.f32.mrf.mxu3 }
 0xedf   : > { %v21190_v26 = vpop.f32.mrf.mxu2  ;;  %v21192_v1 = vpop.f32.mrf.mxu1  ;;  %8543 = vmatpush.bf16.msrb.mxu1 %v14182_v2 }
 0xee0   : > { %21920 = vst [vmem:[#allocation13_spill] sm:$0xff] %v21192_v1  ;;  %8527 = vmatpush.bf16.msrb.mxu0 %v14086_v7 }
 0xee1   : > { %v7957_v54 = vpop.f32.mrf.mxu0 }
 0xee2   : > { %v7972_v42 = vadd.f32 %v7971_v53, %v7957_v54  ;;  %v14051_v53 = vld [vmem:[%s21902_s10 + $0xe18] sm:$0xf0] }
 0xee3   : > { %v14054_v32 = vor.u32 %v15465_v22, %v14051_v53  ;;  %v14611_v22 = vld [vmem:[%s21902_s10 + $0x11f0] sm:$0xf0] }
 0xee4   : > { %v21201_v13 = vadd.f32 %v7972_v42, %v20785_v25  ;;  %8528 = vmatpush.bf16.msrb.mxu0 %v14070_v9  ;;  %v15528_v9 = vld [vmem:[%s21901_s9 + $0x40] sm:$0xff] }
 0xee7   : > { %v7985_v45 = vpop.f32.mrf.mxu2  ;;  %v8046_v30 = vpop.f32.mrf.mxu1 }
 0xee8   : > { %v8000_v2 = vadd.f32 %v7999_v55, %v7985_v45  ;;  %8529 = vmatpush.bf16.msrb.mxu0 %v14054_v32  ;;  %v14593_v55 = vld [vmem:[%s21902_s10 + $0x11c0] sm:$0xf]  ;;  %v15587_v45 = vld [vmem:[%s21902_s10 + $0x11cc] sm:$0xf0] }
 0xee9   : > { %v21209_v54 = vpop.f32.mrf.mxu0  ;;  %v14594_v32 = vor.u32 %v15587_v45, %v14593_v55  ;;  %v14483_v55 = vld [vmem:[%s21902_s10 + $0x10f0] sm:$0xf0] }
 0xeea   : > { %21921 = vst [vmem:[#allocation14_spill] sm:$0xff] %v21209_v54  ;;  %v21212_v23 = vadd.f32 %v8000_v2, %v20771_v62  ;;  %v15589_v62 = vld [vmem:[%s21902_s10 + $0x11e4] sm:$0xf]  ;;  %v14595_v2 = vld [vmem:[%s21902_s10 + $0x11d0] sm:$0xf0] }
 0xeeb   : > { %v14614_v53 = vor.u32 %v15589_v62, %v14611_v22  ;;  %v15559_v62 = vld [vmem:[%s21902_s10 + $0x10ec] sm:$0xf0] }
 0xeec   : > { %21922 = vst [vmem:[#allocation15_spill] sm:$0xff] %v21212_v23 }
 0xeef   : > { %v8048_v25 = vpop.f32.mrf.mxu1 }
 0xef0   : > { %v8052_v7 = vpack.c.bf16 %v8048_v25, %v8046_v30  ;;  %v15585_v30 = vld [vmem:[%s21902_s10 + $0x11c4] sm:$0xf] }
 0xef1   : > { %v8032_v42 = vpop.f32.mrf.mxu0  ;;  %v14598_v25 = vor.u32 %v15585_v30, %v14595_v2  ;;  %v14561_v30 = vld [vmem:[%s21902_s10 + $0x1180] sm:$0xf]  ;;  %v15577_v2 = vld [vmem:[%s21902_s10 + $0x1184] sm:$0xf] }
 0xef2   : > { %8460 = vmatmul.bf16.vlgmr.msrb.gmra.mxu3 %v8052_v7  ;;  %8488 = vmatmul.bf16.vlgmr.msra.gmra.mxu1 %v8052_v7 }
 0xef3   : > { %8590 = vmatpush.bf16.msrb.mxu3 %v17930_v28  ;;  %v14609_v28 = vld [vmem:[%s21902_s10 + $0x11e0] sm:$0xf] }
 0xef9   : > { %v8034_v46 = vpop.f32.mrf.mxu0 }
 0xefa   : > { %v8051_v1 = vpack.c.bf16 %v8034_v46, %v8032_v42  ;;  %v15583_v42 = vld [vmem:[%s21902_s10 + $0x11ac] sm:$0xf0]  ;;  %v15581_v46 = vld [vmem:[%s21902_s10 + $0x11a4] sm:$0xf] }
 0xefc   : > { %8446 = vmatmul.bf16.vlgmr.msra.gmra.mxu2 %v8051_v1  ;;  %8474 = vmatmul.bf16.vlgmr.msra.gmra.mxu0 %v8051_v1 }
 0xefd   : > { %8576 = vmatpush.bf16.msra.mxu2 %v17885_v39  ;;  %v15591_v39 = vld [vmem:[%s21902_s10 + $0x11ec] sm:$0xf0] }
 0xf02   : > { %8516 = vmatmul.bf16.vlgmr.msra.gmra.mxu3 %v8052_v7  ;;  %8544 = vmatmul.bf16.vlgmr.msrb.gmra.mxu1 %v8052_v7  ;;  %v14577_v7 = vld [vmem:[%s21902_s10 + $0x11a0] sm:$0xf] }
 0xf03   : > { %9026 = vmatpush.bf16.msra.mxu3 %v14614_v53 }
 0xf07   : > { %9027 = vmatpush.bf16.msra.mxu3 %v14598_v25 }
 0xf0c   : > { %8502 = vmatmul.bf16.vlgmr.msrb.gmra.mxu2 %v8051_v1  ;;  %8530 = vmatmul.bf16.vlgmr.msrb.gmra.mxu0 %v8051_v1  ;;  %v14610_v1 = vor.u32 %v15591_v39, %v14609_v28  ;;  %v14579_v28 = vld [vmem:[%s21902_s10 + $0x11b0] sm:$0xf0]  ;;  %v14481_v39 = vld [vmem:[%s21902_s10 + $0x10e0] sm:$0xf] }
 0xf0d   : > { %v14582_v22 = vor.u32 %v15581_v46, %v14579_v28  ;;  %v14482_v53 = vor.u32 %v15559_v62, %v14481_v39  ;;  %v15555_v46 = vld [vmem:[%s21902_s10 + $0x10cc] sm:$0xf0]  ;;  %v14467_v62 = vld [vmem:[%s21902_s10 + $0x10d0] sm:$0xf0] }
 0xf0e   : > { %8998 = vmatpush.bf16.msra.mxu1 %v14610_v1  ;;  %v15557_v1 = vld [vmem:[%s21902_s10 + $0x10e4] sm:$0xf] }
 0xf0f   : > { %v14486_v45 = vor.u32 %v15557_v1, %v14483_v55  ;;  %9028 = vmatpush.bf16.msra.mxu3 %v14582_v22  ;;  %8984 = vmatpush.bf16.msra.mxu0 %v14482_v53  ;;  %v14545_v22 = vld [vmem:[%s21902_s10 + $0x1160] sm:$0xf]  ;;  %v15575_v53 = vld [vmem:[%s21902_s10 + $0x116c] sm:$0xf0]  ;;  %v15573_v55 = vld [vmem:[%s21902_s10 + $0x1164] sm:$0xf] }
 0xf11   : > { %9012 = vmatpush.bf16.msrb.mxu2 %v14486_v45  ;;  %v14546_v45 = vor.u32 %v15575_v53, %v14545_v22  ;;  %v14531_v22 = vld [vmem:[%s21902_s10 + $0x1150] sm:$0xf0]  ;;  %v14433_v53 = vld [vmem:[%s21902_s10 + $0x1080] sm:$0xf] }
 0xf12   : > { %14302 = vmatmul.msk.bf16.vlgmr.msrb.gmra.mxu3 %vm4214_vm6, %v15528_v9  ;;  %8999 = vmatpush.bf16.msra.mxu1 %v14594_v32  ;;  %v15579_v32 = vld [vmem:[%s21902_s10 + $0x118c] sm:$0xf0] }
 0xf13   : > { %v14562_v25 = vor.u32 %v15579_v32, %v14561_v30  ;;  %v14547_v30 = vld [vmem:[%s21902_s10 + $0x1170] sm:$0xf0]  ;;  %v14449_v32 = vld [vmem:[%s21902_s10 + $0x10a0] sm:$0xf] }
 0xf1c   : > { %14301 = vmatmul.msk.bf16.vlgmr.msra.gmra.mxu2 %vm4214_vm6, %v15528_v9  ;;  %v14578_v9 = vor.u32 %v15583_v42, %v14577_v7  ;;  %v14563_v7 = vld [vmem:[%s21902_s10 + $0x1190] sm:$0xf0]  ;;  %v14465_v42 = vld [vmem:[%s21902_s10 + $0x10c0] sm:$0xf] }
 0xf1d   : > { %v14566_v28 = vor.u32 %v15577_v2, %v14563_v7  ;;  %v14466_v39 = vor.u32 %v15555_v46, %v14465_v42  ;;  %v15551_v2 = vld [vmem:[%s21902_s10 + $0x10ac] sm:$0xf0]  ;;  %v14550_v7 = vor.u32 %v15573_v55, %v14547_v30  ;;  %v14451_v46 = vld [vmem:[%s21902_s10 + $0x10b0] sm:$0xf0] }
 0xf1e   : > { %9000 = vmatpush.bf16.msra.mxu1 %v14578_v9  ;;  %v15553_v9 = vld [vmem:[%s21902_s10 + $0x10c4] sm:$0xf]  ;;  %v14450_v42 = vor.u32 %v15551_v2, %v14449_v32  ;;  %v15547_v55 = vld [vmem:[%s21902_s10 + $0x108c] sm:$0xf0]  ;;  %v14435_v2 = vld [vmem:[%s21902_s10 + $0x1090] sm:$0xf0] }
 0xf1f   : > { %v14470_v1 = vor.u32 %v15553_v9, %v14467_v62  ;;  %9029 = vmatpush.bf16.msra.mxu3 %v14566_v28  ;;  %8985 = vmatpush.bf16.msra.mxu0 %v14466_v39  ;;  %v14529_v28 = vld [vmem:[%s21902_s10 + $0x1140] sm:$0xf]  ;;  %v15571_v39 = vld [vmem:[%s21902_s10 + $0x114c] sm:$0xf0]  ;;  %v15569_v62 = vld [vmem:[%s21902_s10 + $0x1144] sm:$0xf]  ;;  %v14434_v32 = vor.u32 %v15547_v55, %v14433_v53  ;;  %v21362_v53 = vpop.f32.mrf.mxu3 }
 0xf20   : > { %v14534_v30 = vor.u32 %v15569_v62, %v14531_v22  ;;  %v15543_v62 = vld [vmem:[%s21902_s10 + $0x106c] sm:$0xf0]  ;;  %21923 = vst [vmem:[#allocation16_spill] sm:$0xff] %v21362_v53  ;;  %v14505_v53 = vld [vmem:[%s21902_s10 + $0x1108] sm:$0xf] }
 0xf21   : > { %9013 = vmatpush.bf16.msrb.mxu2 %v14470_v1  ;;  %v14530_v1 = vor.u32 %v15571_v39, %v14529_v28  ;;  %v14515_v28 = vld [vmem:[%s21902_s10 + $0x1130] sm:$0xf0]  ;;  %v14417_v39 = vld [vmem:[%s21902_s10 + $0x1060] sm:$0xf] }
 0xf22   : > { %9001 = vmatpush.bf16.msra.mxu1 %v14562_v25  ;;  %v15549_v25 = vld [vmem:[%s21902_s10 + $0x10a4] sm:$0xf]  ;;  %v14418_v55 = vor.u32 %v15543_v62, %v14417_v39  ;;  %v15539_v39 = vld [vmem:[%s21902_s10 + $0x104c] sm:$0xf0] }
 0xf23   : > { %v14454_v9 = vor.u32 %v15549_v25, %v14451_v46  ;;  %9030 = vmatpush.bf16.msra.mxu3 %v14550_v7  ;;  %8986 = vmatpush.bf16.msra.mxu0 %v14450_v42  ;;  %v14513_v7 = vld [vmem:[%s21902_s10 + $0x1120] sm:$0xf]  ;;  %v15567_v42 = vld [vmem:[%s21902_s10 + $0x112c] sm:$0xf0]  ;;  %v15565_v46 = vld [vmem:[%s21902_s10 + $0x1124] sm:$0xf] }
 0xf24   : > { %v14518_v22 = vor.u32 %v15565_v46, %v14515_v28  ;;  %v14617_v46 = vld [vmem:[%s21902_s10 + $0x11e8] sm:$0xf]  ;;  %v14401_v28 = vld [vmem:[%s21902_s10 + $0x1040] sm:$0xf]  ;;  %v15537_v62 = vld [vmem:[%s21902_s10 + $0x1044] sm:$0xf] }
 0xf25   : > { %9014 = vmatpush.bf16.msrb.mxu2 %v14454_v9  ;;  %v14514_v9 = vor.u32 %v15567_v42, %v14513_v7  ;;  %v14499_v42 = vld [vmem:[%s21902_s10 + $0x1110] sm:$0xf0] }
 0xf26   : > { %9002 = vmatpush.bf16.msra.mxu1 %v14546_v45  ;;  %v15545_v45 = vld [vmem:[%s21902_s10 + $0x1084] sm:$0xf] }
 0xf27   : > { %v14438_v25 = vor.u32 %v15545_v45, %v14435_v2  ;;  %9031 = vmatpush.bf16.msra.mxu3 %v14534_v30  ;;  %8987 = vmatpush.bf16.msra.mxu0 %v14434_v32  ;;  %v14419_v45 = vld [vmem:[%s21902_s10 + $0x1070] sm:$0xf0]  ;;  %v14497_v32 = vld [vmem:[%s21902_s10 + $0x1100] sm:$0xf]  ;;  %v15563_v2 = vld [vmem:[%s21902_s10 + $0x110c] sm:$0xf0] }
 0xf28   : > { %v14498_v7 = vor.u32 %v15563_v2, %v14497_v32  ;;  %v14619_v32 = vld [vmem:[%s21902_s10 + $0x11f8] sm:$0xf0] }
 0xf29   : > { %9015 = vmatpush.bf16.msrb.mxu2 %v14438_v25  ;;  %v15561_v25 = vld [vmem:[%s21902_s10 + $0x1104] sm:$0xf] }
 0xf2a   : > { %9003 = vmatpush.bf16.msra.mxu1 %v14530_v1  ;;  %v15541_v1 = vld [vmem:[%s21902_s10 + $0x1064] sm:$0xf] }
 0xf2b   : > { %v14422_v30 = vor.u32 %v15541_v1, %v14419_v45  ;;  %9032 = vmatpush.bf16.msra.mxu3 %v14518_v22  ;;  %8988 = vmatpush.bf16.msra.mxu0 %v14418_v55  ;;  %v14502_v1 = vor.u32 %v15561_v25, %v14499_v42  ;;  %v14402_v55 = vor.u32 %v15539_v39, %v14401_v28  ;;  %v14403_v45 = vld [vmem:[%s21902_s10 + $0x1050] sm:$0xf0]  ;;  %v14601_v25 = vld [vmem:[%s21902_s10 + $0x11c8] sm:$0xf]  ;;  %v15586_v42 = vld [vmem:[%s21902_s10 + $0x11cc] sm:$0xf] }
 0xf2c   : > { %v14406_v2 = vor.u32 %v15537_v62, %v14403_v45  ;;  %v15533_v28 = vld [vmem:[%s21902_s10 + $0x1024] sm:$0xf] }
 0xf2d   : > { %9016 = vmatpush.bf16.msrb.mxu2 %v14422_v30  ;;  %v15590_v30 = vld [vmem:[%s21902_s10 + $0x11ec] sm:$0xf] }
 0xf2e   : > { %9004 = vmatpush.bf16.msra.mxu1 %v14514_v9  ;;  %v15592_v9 = vld [vmem:[%s21902_s10 + $0x11f4] sm:$0xf0]  ;;  %v14622_v23 = vor.u32 %v15590_v30, %v14619_v32  ;;  %v21427_v30 = vpop.f32.mrf.mxu2  ;;  %v14585_v32 = vld [vmem:[%s21902_s10 + $0x11a8] sm:$0xf] }
 0xf2f   : > { %v14618_v22 = vor.u32 %v15592_v9, %v14617_v46  ;;  %9033 = vmatpush.bf16.msra.mxu3 %v14502_v1  ;;  %8989 = vmatpush.bf16.msra.mxu0 %v14402_v55  ;;  %v14385_v46 = vld [vmem:[%s21902_s10 + $0x1020] sm:$0xf]  ;;  %v15535_v9 = vld [vmem:[%s21902_s10 + $0x102c] sm:$0xf0]  ;;  %21924 = vst [vmem:[#allocation17_spill] sm:$0xff] %v21427_v30 }
 0xf30   : > { %v14386_v1 = vor.u32 %v15535_v9, %v14385_v46  ;;  %v15529_v46 = vld [vmem:[%s21902_s10 + $0x1004] sm:$0xf] }
 0xf31   : > { %9017 = vmatpush.bf16.msrb.mxu2 %v14406_v2  ;;  %v15584_v2 = vld [vmem:[%s21902_s10 + $0x11b4] sm:$0xf0] }
 0xf32   : > { %9005 = vmatpush.bf16.msra.mxu1 %v14498_v7  ;;  %v15588_v7 = vld [vmem:[%s21902_s10 + $0x11d4] sm:$0xf0]  ;;  %v14586_v9 = vor.u32 %v15584_v2, %v14585_v32  ;;  %v14491_v32 = vld [vmem:[%s21902_s10 + $0x10f8] sm:$0xf0] }
 0xf33   : > { %9082 = vmatpush.bf16.msrb.mxu3 %v14622_v23  ;;  %v14602_v39 = vor.u32 %v15588_v7, %v14601_v25  ;;  %v14603_v23 = vld [vmem:[%s21902_s10 + $0x11d8] sm:$0xf0]  ;;  %8990 = vmatpush.bf16.msra.mxu0 %v14386_v1  ;;  %v15582_v25 = vld [vmem:[%s21902_s10 + $0x11ac] sm:$0xf]  ;;  %v14369_v7 = vld [vmem:[%s21902_s10 + $0x1000] sm:$0xf] }
 0xf34   : > { %v14606_v45 = vor.u32 %v15586_v42, %v14603_v23  ;;  %v15531_v42 = vld [vmem:[%s21902_s10 + $0x100c] sm:$0xf0]  ;;  %v14489_v1 = vld [vmem:[%s21902_s10 + $0x10e8] sm:$0xf]  ;;  %v14587_v2 = vld [vmem:[%s21902_s10 + $0x11b8] sm:$0xf0] }
 0xf36   : > { %9054 = vmatpush.bf16.msrb.mxu1 %v14618_v22  ;;  %v14387_v22 = vld [vmem:[%s21902_s10 + $0x1030] sm:$0xf0] }
 0xf37   : > { %v14390_v55 = vor.u32 %v15533_v28, %v14387_v22  ;;  %9083 = vmatpush.bf16.msrb.mxu3 %v14606_v45  ;;  %v14370_v28 = vor.u32 %v15531_v42, %v14369_v7  ;;  %v15560_v22 = vld [vmem:[%s21902_s10 + $0x10f4] sm:$0xf0]  ;;  %v15558_v45 = vld [vmem:[%s21902_s10 + $0x10ec] sm:$0xf]  ;;  %v14590_v42 = vor.u32 %v15582_v25, %v14587_v2  ;;  %v14475_v2 = vld [vmem:[%s21902_s10 + $0x10d8] sm:$0xf0] }
 0xf38   : > { %v14494_v7 = vor.u32 %v15558_v45, %v14491_v32  ;;  %v15556_v45 = vld [vmem:[%s21902_s10 + $0x10d4] sm:$0xf0] }
 0xf39   : > { %9018 = vmatpush.bf16.msrb.mxu2 %v14390_v55  ;;  %v14490_v55 = vor.u32 %v15560_v22, %v14489_v1  ;;  %8991 = vmatpush.bf16.msra.mxu0 %v14370_v28  ;;  %v14571_v28 = vld [vmem:[%s21902_s10 + $0x1198] sm:$0xf0]  ;;  %v14473_v22 = vld [vmem:[%s21902_s10 + $0x10c8] sm:$0xf] }
 0xf3a   : > { %9055 = vmatpush.bf16.msrb.mxu1 %v14602_v39  ;;  %v14371_v39 = vld [vmem:[%s21902_s10 + $0x1010] sm:$0xf0]  ;;  %v14474_v32 = vor.u32 %v15556_v45, %v14473_v22  ;;  %v15552_v22 = vld [vmem:[%s21902_s10 + $0x10b4] sm:$0xf0] }
 0xf3b   : > { %v14374_v23 = vor.u32 %v15529_v46, %v14371_v39  ;;  %v14569_v46 = vld [vmem:[%s21902_s10 + $0x1188] sm:$0xf]  ;;  %v15578_v39 = vld [vmem:[%s21902_s10 + $0x118c] sm:$0xf]  ;;  %9084 = vmatpush.bf16.msrb.mxu3 %v14590_v42 }
 0xf3d   : > { %9019 = vmatpush.bf16.msrb.mxu2 %v14374_v23  ;;  %9040 = vmatpush.bf16.msrb.mxu0 %v14490_v55  ;;  %v15554_v23 = vld [vmem:[%s21902_s10 + $0x10cc] sm:$0xf]  ;;  %v14574_v55 = vor.u32 %v15578_v39, %v14571_v28 }
 0xf3e   : > { %9056 = vmatpush.bf16.msrb.mxu1 %v14586_v9  ;;  %v15580_v9 = vld [vmem:[%s21902_s10 + $0x1194] sm:$0xf0]  ;;  %v14478_v42 = vor.u32 %v15554_v23, %v14475_v2  ;;  %v15574_v39 = vld [vmem:[%s21902_s10 + $0x116c] sm:$0xf] }
 0xf3f   : > { %v14570_v1 = vor.u32 %v15580_v9, %v14569_v46  ;;  %v14553_v46 = vld [vmem:[%s21902_s10 + $0x1168] sm:$0xf]  ;;  %v15576_v9 = vld [vmem:[%s21902_s10 + $0x1174] sm:$0xf0]  ;;  %v15550_v23 = vld [vmem:[%s21902_s10 + $0x10ac] sm:$0xf]  ;;  %9085 = vmatpush.bf16.msrb.mxu3 %v14574_v55 }
 0xf40   : > { %v14554_v45 = vor.u32 %v15576_v9, %v14553_v46  ;;  %v15572_v55 = vld [vmem:[%s21902_s10 + $0x1154] sm:$0xf0] }
 0xf41   : > { %9068 = vmatpush.bf16.msra.mxu2 %v14494_v7  ;;  %9041 = vmatpush.bf16.msrb.mxu0 %v14474_v32  ;;  %v14555_v32 = vld [vmem:[%s21902_s10 + $0x1178] sm:$0xf0] }
 0xf42   : > { %9057 = vmatpush.bf16.msrb.mxu1 %v14570_v1  ;;  %v14457_v1 = vld [vmem:[%s21902_s10 + $0x10a8] sm:$0xf]  ;;  %v14558_v9 = vor.u32 %v15574_v39, %v14555_v32  ;;  %v14443_v32 = vld [vmem:[%s21902_s10 + $0x1098] sm:$0xf0] }
 0xf43   : > { %v14458_v2 = vor.u32 %v15552_v22, %v14457_v1  ;;  %v15570_v1 = vld [vmem:[%s21902_s10 + $0x114c] sm:$0xf]  ;;  %v14441_v39 = vld [vmem:[%s21902_s10 + $0x1088] sm:$0xf] }
 0xf44   : > { %9086 = vmatpush.bf16.msrb.mxu3 %v14558_v9 }
 0xf45   : > { %9069 = vmatpush.bf16.msra.mxu2 %v14478_v42  ;;  %v14537_v42 = vld [vmem:[%s21902_s10 + $0x1148] sm:$0xf]  ;;  %9042 = vmatpush.bf16.msrb.mxu0 %v14458_v2 }
 0xf46   : > { %9058 = vmatpush.bf16.msrb.mxu1 %v14554_v45  ;;  %v14538_v22 = vor.u32 %v15572_v55, %v14537_v42  ;;  %v15548_v45 = vld [vmem:[%s21902_s10 + $0x1094] sm:$0xf0]  ;;  %v14521_v42 = vld [vmem:[%s21902_s10 + $0x1128] sm:$0xf] }
 0xf47   : > { %v15568_v55 = vld [vmem:[%s21902_s10 + $0x1134] sm:$0xf0] }
 0xf4a   : > { %9059 = vmatpush.bf16.msrb.mxu1 %v14538_v22  ;;  %v14522_v22 = vor.u32 %v15568_v55, %v14521_v42  ;;  %v15540_v42 = vld [vmem:[%s21902_s10 + $0x1054] sm:$0xf0] }
 0xf4e   : > { %9060 = vmatpush.bf16.msrb.mxu1 %v14522_v22  ;;  %v15538_v22 = vld [vmem:[%s21902_s10 + $0x104c] sm:$0xf] }
 0xf75   : > { %v8461_v62 = vpop.f32.mrf.mxu3 }
 0xf7d   : > { %v21477_v25 = vpop.f32.mrf.mxu3 }
 0xf7f   : > { %v8447_v7 = vpop.f32.mrf.mxu2 }
 0xf80   : > { %v8462_v28 = vadd.f32 %v8461_v62, %v8447_v7  ;;  %v14459_v62 = vld [vmem:[%s21902_s10 + $0x10b8] sm:$0xf0] }
 0xf81   : > { %v14462_v46 = vor.u32 %v15550_v23, %v14459_v62  ;;  %v15546_v23 = vld [vmem:[%s21902_s10 + $0x108c] sm:$0xf]  ;;  %v14442_v62 = vor.u32 %v15548_v45, %v14441_v39  ;;  %v14425_v39 = vld [vmem:[%s21902_s10 + $0x1068] sm:$0xf]  ;;  %v15544_v45 = vld [vmem:[%s21902_s10 + $0x1074] sm:$0xf0] }
 0xf82   : > { %v21516_v7 = vadd.f32 %v8462_v28, %v21136_v10  ;;  %v14539_v10 = vld [vmem:[%s21902_s10 + $0x1158] sm:$0xf0]  ;;  %v14446_v9 = vor.u32 %v15546_v23, %v14443_v32  ;;  %v15542_v23 = vld [vmem:[%s21902_s10 + $0x106c] sm:$0xf]  ;;  %v14426_v32 = vor.u32 %v15544_v45, %v14425_v39 }
 0xf83   : > { %9070 = vmatpush.bf16.msra.mxu2 %v14462_v46  ;;  %v14542_v2 = vor.u32 %v15570_v1, %v14539_v10  ;;  %v15566_v1 = vld [vmem:[%s21902_s10 + $0x112c] sm:$0xf]  ;;  %9043 = vmatpush.bf16.msrb.mxu0 %v14442_v62  ;;  %v14523_v10 = vld [vmem:[%s21902_s10 + $0x1138] sm:$0xf0] }
 0xf84   : > { %v14526_v62 = vor.u32 %v15566_v1, %v14523_v10  ;;  %v15564_v1 = vld [vmem:[%s21902_s10 + $0x1114] sm:$0xf0]  ;;  %v14411_v45 = vld [vmem:[%s21902_s10 + $0x1058] sm:$0xf0] }
 0xf85   : > { %v8517_v28 = vpop.f32.mrf.mxu3  ;;  %9087 = vmatpush.bf16.msrb.mxu3 %v14542_v2  ;;  %v14409_v2 = vld [vmem:[%s21902_s10 + $0x1048] sm:$0xf]  ;;  %v14506_v39 = vor.u32 %v15564_v1, %v14505_v53  ;;  %v14414_v54 = vor.u32 %v15538_v22, %v14411_v45  ;;  %v15536_v1 = vld [vmem:[%s21902_s10 + $0x1034] sm:$0xf0]  ;;  %v14379_v45 = vld [vmem:[%s21902_s10 + $0x1018] sm:$0xf0] }
 0xf86   : > { %v14410_v10 = vor.u32 %v15540_v42, %v14409_v2  ;;  %v14393_v42 = vld [vmem:[%s21902_s10 + $0x1028] sm:$0xf]  ;;  %v15532_v22 = vld [vmem:[%s21902_s10 + $0x1014] sm:$0xf0] }
 0xf87   : > { %v21542_v46 = vpop.f32.mrf.mxu2  ;;  %9071 = vmatpush.bf16.msra.mxu2 %v14446_v9  ;;  %v14427_v9 = vld [vmem:[%s21902_s10 + $0x1078] sm:$0xf0]  ;;  %9044 = vmatpush.bf16.msrb.mxu0 %v14426_v32 }
 0xf88   : > { %v14430_v55 = vor.u32 %v15542_v23, %v14427_v9  ;;  %v15562_v23 = vld [vmem:[%s21902_s10 + $0x110c] sm:$0xf]  ;;  %v14507_v9 = vld [vmem:[%s21902_s10 + $0x1118] sm:$0xf0]  ;;  %9061 = vmatpush.bf16.msrb.mxu1 %v14506_v39 }
 0xf89   : > { %9088 = vmatpush.bf16.msrb.mxu3 %v14526_v62  ;;  %v14510_v32 = vor.u32 %v15562_v23, %v14507_v9  ;;  %v14394_v62 = vor.u32 %v15536_v1, %v14393_v42 }
 0xf8b   : > { %9072 = vmatpush.bf16.msra.mxu2 %v14430_v55  ;;  %9045 = vmatpush.bf16.msrb.mxu0 %v14410_v10  ;;  %v14377_v55 = vld [vmem:[%s21902_s10 + $0x1008] sm:$0xf] }
 0xf8c   : > { %v14378_v23 = vor.u32 %v15532_v22, %v14377_v55 }
 0xf8d   : > { %v21592_v30 = vpop.f32.mrf.mxu3  ;;  %9089 = vmatpush.bf16.msrb.mxu3 %v14510_v32 }
 0xf8e   : > { %21925 = vst [vmem:[#allocation18_spill] sm:$0xff] %v21592_v30  ;;  %v15534_v30 = vld [vmem:[%s21902_s10 + $0x102c] sm:$0xf] }
 0xf8f   : > { %v8503_v53 = vpop.f32.mrf.mxu2  ;;  %9073 = vmatpush.bf16.msra.mxu2 %v14414_v54  ;;  %v15530_v54 = vld [vmem:[%s21902_s10 + $0x100c] sm:$0xf]  ;;  %9046 = vmatpush.bf16.msrb.mxu0 %v14394_v62  ;;  %v8489_v62 = vpop.f32.mrf.mxu1 }
 0xf90   : > { %v8518_v2 = vadd.f32 %v8517_v28, %v8503_v53  ;;  %v14395_v28 = vld [vmem:[%s21902_s10 + $0x1038] sm:$0xf0]  ;;  %v14382_v32 = vor.u32 %v15530_v54, %v14379_v45 }
 0xf91   : > { %v14398_v39 = vor.u32 %v15534_v30, %v14395_v28  ;;  %v8475_v28 = vpop.f32.mrf.mxu0 }
 0xf92   : > { %v21613_v10 = vadd.f32 %v8518_v2, %v21201_v13 }
 0xf93   : > { %9074 = vmatpush.bf16.msra.mxu2 %v14398_v39  ;;  %9047 = vmatpush.bf16.msrb.mxu0 %v14378_v23  ;;  %v4764_v23 = vadd.f32 %v18752_v24, %v18763_v12  ;;  %v6826_v24 = vadd.f32 %v20262_v27, %v20315_v33  ;;  %v5762_v12 = vadd.f32 %v19500_v14, %v19514_v37 }
 0xf94   : > { %v8464_v27 = vadd.f32 %v21477_v25, %v21542_v46  ;;  %v8490_v25 = vadd.f32 %v8489_v62, %v8475_v28 }
 0xf95   : > { %v8592_v9 = vpop.f32.mrf.mxu3 }
 0xf96   : > { %v8551_v62 = vadd.f32 %v8490_v25, %v21165_v43 }
 0xf97   : > { %v21621_v53 = vpop.f32.mrf.mxu2  ;;  %9075 = vmatpush.bf16.msra.mxu2 %v14382_v32  ;;  %v8491_v55 = vpop.f32.mrf.mxu1  ;;  %v5182_v32 = vadd.f32 %v19065_v51, %v4764_v23 }
 0xf99   : > { %v8477_v22 = vpop.f32.mrf.mxu0 }
 0xf9d   : > { %v8594_v13 = vpop.f32.mrf.mxu3 }
 0xf9e   : > { %v8598_v2 = vpack.c.bf16 %v8594_v13, %v8592_v9 }
 0xf9f   : > { %v8578_v30 = vpop.f32.mrf.mxu2  ;;  %v21623_v39 = vpop.f32.mrf.mxu1 }
 0xfa0   : > { %9006 = vmatmul.bf16.vlgmr.msra.gmra.mxu1 %v8598_v2  ;;  %9034 = vmatmul.bf16.vlgmr.msra.gmra.mxu3 %v8598_v2  ;;  %21926 = vst [vmem:[#allocation19_spill] sm:$0xff] %v21623_v39 }
 0xfa1   : > { %v21625_v54 = vpop.f32.mrf.mxu0 }
 0xfa7   : > { %v8580_v42 = vpop.f32.mrf.mxu2  ;;  %v21627_v45 = vpop.f32.mrf.mxu1 }
 0xfa8   : > { %v8597_v1 = vpack.c.bf16 %v8580_v42, %v8578_v30  ;;  %21927 = vst [vmem:[#allocation20_spill] sm:$0xff] %v21627_v45  ;;  %v4792_v30 = vadd.f32 %v18719_v18, %v18735_v57  ;;  %v5196_v42 = vadd.f32 %v19011_v34, %v5182_v32  ;;  %v6308_v34 = vadd.f32 %v19860_v48, %v19874_v60  ;;  %v21664_v60 = vld [vmem:[%s21903_s11] sm:$0xf] }
 0xfa9   : > { %v21631_v9 = vpop.f32.mrf.mxu0  ;;  %v7400_v48 = vadd.f32 %v20698_v49, %v20712_v8  ;;  %v9106_v49 = vperm.slane %v21664_v60, 0  ;;  %v8492_v32 = vadd.f32 %v8491_v55, %v8477_v22  ;;  %v6882_v55 = vadd.f32 %v20354_v41, %v20371_v4  ;;  %v21928_v41 = vld [vmem:[#allocation6_spill] sm:$0xff]  ;;  %v21929_v4 = vld [vmem:[#allocation5_spill] sm:$0xff] }
 0xfaa   : > { %8992 = vmatmul.bf16.vlgmr.msra.gmra.mxu0 %v8597_v1  ;;  %9020 = vmatmul.bf16.vlgmr.msrb.gmra.mxu2 %v8597_v1  ;;  %v5210_v45 = vadd.f32 %v19037_v58, %v4792_v30  ;;  %v7918_v58 = vadd.f32 %v21100_v63, %v21153_v11  ;;  %v7946_v11 = vadd.f32 %v21176_v47, %v21190_v26 }
 0xfab   : > { %v6336_v47 = vadd.f32 %v19938_v38, %v19955_v6  ;;  %v9107_v38 = vperm.slane %v21664_v60, 1 }
 0xfac   : > { %v5224_v57 = vadd.f32 %v19051_v20, %v5210_v45  ;;  %v4820_v20 = vadd.f32 %v18886_v56, %v18875_v19 }
 0xfb0   : > { %9062 = vmatmul.bf16.vlgmr.msrb.gmra.mxu1 %v8598_v2  ;;  %9090 = vmatmul.bf16.vlgmr.msrb.gmra.mxu3 %v8598_v2  ;;  %v5734_v2 = vadd.f32 %v19424_v40, %v19477_v61  ;;  %v7372_v40 = vadd.f32 %v20684_v21, %v20741_v35 }
 0xfb2   : > { %v5824_v39 = vadd.f32 %v5734_v2, %v5196_v42 }
 0xfba   : > { %9048 = vmatmul.bf16.vlgmr.msrb.gmra.mxu0 %v8597_v1  ;;  %9076 = vmatmul.bf16.vlgmr.msra.gmra.mxu2 %v8597_v1  ;;  %v6280_v1 = vadd.f32 %v19846_v16, %v19903_v3  ;;  %v5825_v16 = vadd.f32 %v5762_v12, %v5224_v57  ;;  %v6854_v3 = vadd.f32 %v20338_v44, %v20352_v52  ;;  %v21930_v57 = vld [vmem:[#allocation14_spill] sm:$0xff] }
 0xfbb   : > { %v5238_v52 = vadd.f32 %v19117_v59, %v4820_v20 }
 0xfbc   : > { %v6370_v23 = vadd.f32 %v6280_v1, %v5824_v39  ;;  %v6371_v21 = vadd.f32 %v6308_v34, %v5825_v16  ;;  %v5790_v39 = vadd.f32 %v19516_v5, %v19533_v15  ;;  %v4848_v5 = vadd.f32 %v18861_v36, %v18835_v29  ;;  %v21931_v34 = vld [vmem:[#allocation13_spill] sm:$0xff] }
 0xfbd   : > { %v5252_v30 = vadd.f32 %v19100_v0, %v5238_v52  ;;  %v7428_v29 = vadd.f32 %v20776_v50, %v20793_v31  ;;  %v21935_v31 = vld [vmem:[#allocation18_spill] sm:$0xff] }
 0xfbe   : > { %v6916_v61 = vadd.f32 %v6826_v24, %v6370_v23  ;;  %v6917_v63 = vadd.f32 %v6854_v3, %v6371_v21  ;;  %v5266_v24 = vadd.f32 %v19380_v17, %v4848_v5  ;;  %v8520_v20 = vadd.f32 %v21935_v31, %v21621_v53 }
 0xfbf   : > { %v5826_v15 = vadd.f32 %v5790_v39, %v5252_v30  ;;  %v21938_v39 = vld [vmem:[#allocation12_spill] sm:$0xff]  ;;  %v9108_v53 = vperm.slane %v21664_v60, 2 }
 0xfc0   : > { %v7462_v37 = vadd.f32 %v7372_v40, %v6916_v61  ;;  %v7463_v45 = vadd.f32 %v7400_v48, %v6917_v63  ;;  %v5818_v40 = vadd.f32 %v21929_v4, %v21928_v41  ;;  %v7974_v61 = vadd.f32 %v21931_v34, %v21930_v57  ;;  %v21936_v63 = vld [vmem:[#allocation10_spill] sm:$0xff] }
 0xfc1   : > { %v6372_v12 = vadd.f32 %v6336_v47, %v5826_v15  ;;  %v21940_v15 = vld [vmem:[#allocation17_spill] sm:$0xff] }
 0xfc2   : > { %v8008_v44 = vadd.f32 %v7918_v58, %v7462_v37  ;;  %v8009_v26 = vadd.f32 %v7946_v11, %v7463_v45  ;;  %v21933_v37 = vld [vmem:[#allocation8_spill] sm:$0xff]  ;;  %v21937_v11 = vld [vmem:[#allocation9_spill] sm:$0xff]  ;;  %v21939_v45 = vld [vmem:[#allocation11_spill] sm:$0xff] }
 0xfc3   : > { %v6910_v25 = vadd.f32 %v21937_v11, %v21936_v63 }
 0xfc4   : > { %v8554_v19 = vadd.f32 %v8464_v27, %v8008_v44  ;;  %v8555_v22 = vadd.f32 %v8492_v32, %v8009_v26  ;;  %v21934_v27 = vld [vmem:[#allocation7_spill] sm:$0xff]  ;;  %v7456_v32 = vadd.f32 %v21939_v45, %v21938_v39 }
0x101d   : > { %v9007_v13 = vpop.f32.mrf.mxu1 }
0x1023   : > { %v9035_v18 = vpop.f32.mrf.mxu3 }
0x1025   : > { %v9009_v14 = vpop.f32.mrf.mxu1 }
0x1027   : > { %v8993_v51 = vpop.f32.mrf.mxu0 }
0x1028   : > { %v9008_v33 = vadd.f32 %v9007_v13, %v8993_v51 }
0x102a   : > { %v9096_v56 = vadd.f32 %v9008_v33, %v21516_v7  ;;  %v6364_v33 = vadd.f32 %v21934_v27, %v21933_v37  ;;  %v9109_v37 = vperm.slane %v21664_v60, 3 }
0x102b   : > { %v9037_v2 = vpop.f32.mrf.mxu3 }
0x102c   : > { %v21677_v7 = vadd.f32 %v9106_v49, %v9096_v56 }
0x102d   : > { %v9021_v35 = vpop.f32.mrf.mxu2  ;;  %v9063_v42 = vpop.f32.mrf.mxu1 }
0x102e   : > { %v9036_v13 = vadd.f32 %v9035_v18, %v9021_v35  ;;  %v6918_v18 = vadd.f32 %v6882_v55, %v6372_v12  ;;  %v21941_v55 = vld [vmem:[#allocation16_spill] sm:$0xff] }
0x102f   : > { %v8995_v46 = vpop.f32.mrf.mxu0 }
0x1030   : > { %v9010_v8 = vadd.f32 %v9009_v14, %v8995_v46  ;;  %v9097_v1 = vadd.f32 %v9036_v13, %v8551_v62  ;;  %v21932_v14 = vld [vmem:[#allocation4_spill] sm:$0xff]  ;;  %v7464_v50 = vadd.f32 %v7428_v29, %v6918_v18 }
0x1031   : > { %v5280_v17 = vadd.f32 %v21932_v14, %v5266_v24  ;;  %v21943_v24 = vld [vmem:[#allocation20_spill] sm:$0xff] }
0x1032   : > { %v9100_v59 = vadd.f32 %v9010_v8, %v8554_v19  ;;  %v21695_v58 = vadd.f32 %v9107_v38, %v9097_v1  ;;  %v8010_v46 = vadd.f32 %v7974_v61, %v7464_v50  ;;  %v8548_v12 = vadd.f32 %v21943_v24, %v21631_v9 }
0x1033   : > { %v9091_v35 = vpop.f32.mrf.mxu3  ;;  %v5827_v52 = vadd.f32 %v5818_v40, %v5280_v17  ;;  %v21945_v40 = vld [vmem:[#allocation15_spill] sm:$0xff] }
0x1034   : > { %v21679_v28 = vadd.f32 %v9106_v49, %v9100_v59  ;;  %v8556_v13 = vadd.f32 %v8520_v20, %v8010_v46 }
0x1035   : > { %v9023_v0 = vpop.f32.mrf.mxu2  ;;  %v6373_v8 = vadd.f32 %v6364_v33, %v5827_v52 }
0x1036   : > { %v9122_v6 = vadd.f32 %v21679_v28, %v21677_v7  ;;  %v9038_v43 = vadd.f32 %v9037_v2, %v9023_v0  ;;  %v9065_v2 = vpop.f32.mrf.mxu1 }
0x1037   : > { %v9049_v36 = vpop.f32.mrf.mxu0  ;;  %v6919_v5 = vadd.f32 %v6910_v25, %v6373_v8 }
0x1038   : > { %v9123_v51 = vrot.slane %v9122_v6, 4  ;;  %v9101_v23 = vadd.f32 %v9038_v43, %v8555_v22  ;;  %v9064_v44 = vadd.f32 %v9063_v42, %v9049_v36  ;;  %v8002_v22 = vadd.f32 %v21941_v55, %v21940_v15  ;;  %v21942_v42 = vld [vmem:[#allocation19_spill] sm:$0xff] }
0x1039   : > { %v8546_v0 = vadd.f32 %v21942_v42, %v21625_v54  ;;  %v7465_v43 = vadd.f32 %v7456_v32, %v6919_v5  ;;  %v21944_v36 = vld [vmem:[#allocation3_spill] sm:$0xff] }
0x103a   : > { %v9124_v16 = vadd.f32 %v9123_v51, %v9122_v6  ;;  %v9119_v3 = vadd.f32 %v9107_v38, %v9101_v23  ;;  %v9098_v26 = vadd.f32 %v9064_v44, %v21613_v10 }
0x103b   : > { %v8011_v4 = vadd.f32 %v8002_v22, %v7465_v43  ;;  %v8553_v18 = vadd.f32 %v8546_v0, %v21945_v40 }
0x103c   : > { %v9125_v21 = vrot.slane %v9124_v16, 2  ;;  %v9129_v48 = vadd.f32 %v9119_v3, %v21695_v58  ;;  %v9116_v10 = vadd.f32 %v9108_v53, %v9098_v26 }
0x103d   : > { %v9077_v19 = vpop.f32.mrf.mxu2  ;;  %v8557_v9 = vadd.f32 %v8548_v12, %v8011_v4 }
0x103e   : > { %v9126_v56 = vadd.f32 %v9125_v21, %v9124_v16  ;;  %v9130_v49 = vrot.slane %v9129_v48, 4  ;;  %v9092_v29 = vadd.f32 %v9091_v35, %v9077_v19  ;;  %v9093_v16 = vpop.f32.mrf.mxu3 }
0x103f   : > { %v9051_v59 = vpop.f32.mrf.mxu0 }
0x1040   : > { %v9127_v30 = vrot.slane %v9126_v56, 1  ;;  %v9131_v47 = vadd.f32 %v9130_v49, %v9129_v48  ;;  %v9066_v62 = vadd.f32 %v9065_v2, %v9051_v59  ;;  %v9099_v17 = vadd.f32 %v9092_v29, %v8553_v18 }
0x1042   : > { %v9128_v1 = vadd.f32 %v9127_v30, %v9126_v56  ;;  %v9132_v38 = vrot.slane %v9131_v47, 2  ;;  %v9102_v6 = vadd.f32 %v9066_v62, %v8556_v13  ;;  %v9117_v35 = vadd.f32 %v9109_v37, %v9099_v17 }
0x1044   : > { %v9150_v51 = vmul.f32 %v9128_v1, %v21944_v36  ;;  %v9133_v23 = vadd.f32 %v9132_v38, %v9131_v47  ;;  %v9120_v41 = vadd.f32 %v9108_v53, %v9102_v6 }
0x1045   : > { %v9079_v57 = vpop.f32.mrf.mxu2 }
0x1046   : > { %v21718_v34 = vsub.f32 %v21677_v7, %v9150_v51  ;;  %v21721_v54 = vsub.f32 %v21679_v28, %v9150_v51  ;;  %v9134_v61 = vrot.slane %v9133_v23, 1  ;;  %v9136_v14 = vadd.f32 %v9120_v41, %v9116_v10 }
0x1047   : > { %v9094_v27 = vadd.f32 %v9093_v16, %v9079_v57 }
0x1048   : > { %v9162_v33 = vmul.f32 %v21718_v34, %v21718_v34  ;;  %v9166_v50 = vmul.f32 %v21721_v54, %v21721_v54  ;;  %v9135_v31 = vadd.f32 %v9134_v61, %v9133_v23  ;;  %v9137_v7 = vrot.slane %v9136_v14, 4 }
0x1049   : > { %v9103_v20 = vadd.f32 %v9094_v27, %v8557_v9 }
0x104a   : > { %v9170_v21 = vadd.f32 %v9166_v50, %v9162_v33  ;;  %v9151_v28 = vmul.f32 %v9135_v31, %v21944_v36  ;;  %v9138_v48 = vadd.f32 %v9137_v7, %v9136_v14 }
0x104b   : > { %v9121_v44 = vadd.f32 %v9109_v37, %v9103_v20 }
0x104c   : > { %v9171_v52 = vrot.slane %v9170_v21, 4  ;;  %v21730_v63 = vsub.f32 %v21695_v58, %v9151_v28  ;;  %v21732_v60 = vsub.f32 %v9119_v3, %v9151_v28  ;;  %v9139_v11 = vrot.slane %v9138_v48, 2 }
0x104d   : > { %v9143_v25 = vadd.f32 %v9121_v44, %v9117_v35 }
0x104e   : > { %v9172_v46 = vadd.f32 %v9171_v52, %v9170_v21  ;;  %v9163_v19 = vmul.f32 %v21730_v63, %v21730_v63  ;;  %v9167_v56 = vmul.f32 %v21732_v60, %v21732_v60  ;;  %v9140_v49 = vadd.f32 %v9139_v11, %v9138_v48 }
0x104f   : > { %v9144_v8 = vrot.slane %v9143_v25, 4 }
0x1050   : > { %v9173_v39 = vrot.slane %v9172_v46, 2  ;;  %v9177_v45 = vadd.f32 %v9167_v56, %v9163_v19  ;;  %v9141_v32 = vrot.slane %v9140_v49, 1 }
0x1051   : > { %v9145_v13 = vadd.f32 %v9144_v8, %v9143_v25 }
0x1052   : > { %v9174_v53 = vadd.f32 %v9173_v39, %v9172_v46  ;;  %v9178_v58 = vrot.slane %v9177_v45, 4  ;;  %v9142_v2 = vadd.f32 %v9141_v32, %v9140_v49 }
0x1053   : > { %v9146_v3 = vrot.slane %v9145_v13, 2 }
0x1054   : > { %v9175_v59 = vrot.slane %v9174_v53, 1  ;;  %v9179_v30 = vadd.f32 %v9178_v58, %v9177_v45  ;;  %v9152_v47 = vmul.f32 %v9142_v2, %v21944_v36 }
0x1055   : > { %v9147_v26 = vadd.f32 %v9146_v3, %v9145_v13 }
0x1056   : > { %v9176_v62 = vadd.f32 %v9175_v59, %v9174_v53  ;;  %v9180_v5 = vrot.slane %v9179_v30, 2  ;;  %v21739_v15 = vsub.f32 %v9116_v10, %v9152_v47  ;;  %v21741_v55 = vsub.f32 %v9120_v41, %v9152_v47 }
0x1057   : > { %v9148_v22 = vrot.slane %v9147_v26, 1 }
0x1058   : > { %v9198_v42 = vmul.f32 %v9176_v62, %v21944_v36  ;;  %v9181_v0 = vadd.f32 %v9180_v5, %v9179_v30  ;;  %v9164_v1 = vmul.f32 %v21739_v15, %v21739_v15  ;;  %v9168_v38 = vmul.f32 %v21741_v55, %v21741_v55 }
0x1059   : > { %v9149_v6 = vadd.f32 %v9148_v22, %v9147_v26 }
0x105a   : > { %v9202_v43 = vadd.f32 1e-05, %v9198_v42  ;;  %v9182_v24 = vrot.slane %v9181_v0, 1  ;;  %v9184_v12 = vadd.f32 %v9168_v38, %v9164_v1 }
0x105b   : > { %v9153_v29 = vmul.f32 %v9149_v6, %v21944_v36 }
0x105c   : > { %15625 = vrsqrt.f32 %v9202_v43  ;;  %v9183_v51 = vadd.f32 %v9182_v24, %v9181_v0  ;;  %v9185_v23 = vrot.slane %v9184_v12, 4  ;;  %vm9212_vm10 = vweird.f32 %v9202_v43 }
0x105d   : > { %v21749_v10 = vsub.f32 %v9117_v35, %v9153_v29  ;;  %v21751_v41 = vsub.f32 %v9121_v44, %v9153_v29 }
0x105e   : > { %v9199_v4 = vmul.f32 %v9183_v51, %v21944_v36  ;;  %v9186_v40 = vadd.f32 %v9185_v23, %v9184_v12 }
0x105f   : > { %v9165_v18 = vmul.f32 %v21749_v10, %v21749_v10  ;;  %v9169_v57 = vmul.f32 %v21751_v41, %v21751_v41 }
0x1060   : > { %v9203_v61 = vadd.f32 1e-05, %v9199_v4  ;;  %v9187_v16 = vrot.slane %v9186_v40, 2 }
0x1061   : > { %v9191_v14 = vadd.f32 %v9169_v57, %v9165_v18 }
0x1062   : > { %v15626_v9 = vpop.eup %15625  ;;  %15627 = vrsqrt.f32 %v9203_v61  ;;  %v9188_v17 = vadd.f32 %v9187_v16, %v9186_v40  ;;  %vm9222_vm15 = vweird.f32 %v9203_v61 }
0x1063   : > { %v9207_v37 = vmul.f32 %v15626_v9, %v9202_v43  ;;  %v9192_v27 = vrot.slane %v9191_v14, 4  ;;  %vm9213_vm9 = vweird.f32 %v15626_v9 }
0x1064   : > { %v9189_v33 = vrot.slane %v9188_v17, 1  ;;  %vm9214_vm11 = vmor %vm9212_vm10, %vm9213_vm9 }
0x1065   : > { %v9208_v50 = vmul.f32 %v15626_v9, %v9207_v37  ;;  %v9193_v31 = vadd.f32 %v9192_v27, %v9191_v14 }
0x1066   : > { %v9190_v7 = vadd.f32 %v9189_v33, %v9188_v17 }
0x1067   : > { %v9209_v20 = vmul.f32 0.5, %v9208_v50  ;;  %v9194_v21 = vrot.slane %v9193_v31, 2 }
0x1068   : > { %v15628_v28 = vpop.eup %15627  ;;  %v9200_v48 = vmul.f32 %v9190_v7, %v21944_v36 }
0x1069   : > { %v9210_v35 = vsub.f32 1.5, %v9209_v20  ;;  %v9217_v44 = vmul.f32 %v15628_v28, %v9203_v61  ;;  %v9195_v52 = vadd.f32 %v9194_v21, %v9193_v31  ;;  %vm9223_vm12 = vweird.f32 %v15628_v28  ;;  %v15596_v20 = vld [vmem:[%s21904_s12 + $0x18] sm:$0xff]  ;;  %v15597_v21 = vld [vmem:[%s21904_s12 + $0x20] sm:$0xff] }
0x106a   : > { %v9204_v11 = vadd.f32 1e-05, %v9200_v48  ;;  %vm9224_vm0 = vmor %vm9222_vm15, %vm9223_vm12  ;;  %v15599_v48 = vld [vmem:[%s21904_s12 + $0x30] sm:$0xff] }
0x106b   : > { %v9211_v25 = vmul.f32 %v15626_v9, %v9210_v35  ;;  %v9218_v46 = vmul.f32 %v15628_v28, %v9217_v44  ;;  %v9196_v19 = vrot.slane %v9195_v52, 1  ;;  %v15600_v35 = vld [vmem:[%s21904_s12 + $0x38] sm:$0xff]  ;;  %v15601_v44 = vld [vmem:[%s21904_s12 + $0x40] sm:$0xff] }
0x106c   : > { %15629 = vrsqrt.f32 %v9204_v11  ;;  %vm9232_vm4 = vweird.f32 %v9204_v11 }
0x106d   : > { %v9215_v56 = vsel %vm9214_vm11, %v15626_v9, %v9211_v25  ;;  %v9219_v49 = vmul.f32 0.5, %v9218_v46  ;;  %v9197_v8 = vadd.f32 %v9196_v19, %v9195_v52 }
0x106e   : > { %v9246_v39 = vmul.f32 %v9215_v56, %v21718_v34  ;;  %v9250_v45 = vmul.f32 %v9215_v56, %v21721_v54 }
0x106f   : > { %v9220_v32 = vsub.f32 1.5, %v9219_v49  ;;  %v9201_v13 = vmul.f32 %v9197_v8, %v21944_v36  ;;  %v21769_v36 = vld [vmem:[%s21904_s12] sm:$0xff] }
0x1070   : > { %vm9254_vm13 = vcmp.ge.f32.partialorder %v9246_v39, 0.0  ;;  %vm9258_vm14 = vcmp.ge.f32.partialorder %v9250_v45, 0.0  ;;  %v9262_v53 = vmul.f32 0.2, %v9246_v39  ;;  %v9266_v58 = vmul.f32 0.2, %v9250_v45 }
0x1071   : > { %v9221_v2 = vmul.f32 %v15628_v28, %v9220_v32  ;;  %v9205_v3 = vadd.f32 1e-05, %v9201_v13 }
0x1072   : > { %v15630_v59 = vpop.eup %15629  ;;  %v9270_v30 = vsel %vm9254_vm13, %v9246_v39, %v9262_v53  ;;  %v9274_v47 = vsel %vm9258_vm14, %v9250_v45, %v9266_v58 }
0x1073   : > { %v21762_v26 = vpack.c.bf16 %v9274_v47, %v9270_v30  ;;  %v9225_v34 = vsel %vm9224_vm0, %v15628_v28, %v9221_v2  ;;  %v9227_v62 = vmul.f32 %v15630_v59, %v9204_v11  ;;  %15631 = vrsqrt.f32 %v9205_v3  ;;  %v15598_v28 = vld [vmem:[%s21904_s12 + $0x28] sm:$0xff]  ;;  %v9348_v11 = vld [vmem:[%s21905_s13] sm:$0xff]  }
0x1074   : > { %v9247_v54 = vmul.f32 %v9225_v34, %v21730_v63  ;;  %v9251_v5 = vmul.f32 %v9225_v34, %v21732_v60  ;;  %vm9233_vm3 = vweird.f32 %v15630_v59  ;;  %vm9242_vm10 = vweird.f32 %v9205_v3 }
0x1075   : > { %v9228_v22 = vmul.f32 %v15630_v59, %v9227_v62  ;;  %9299 = vmatpush.bf16.msra.mxu0 %v21762_v26  ;;  %vm9234_vm5 = vmor %vm9232_vm4, %vm9233_vm3  ;;  %v9349_v19 = vunpack.c.l.bf16 %v9348_v11  ;;  %v9452_v62 = vunpack.c.h.bf16 %v9348_v11 }
0x1076   : > { %vm9255_vm1 = vcmp.ge.f32.partialorder %v9247_v54, 0.0  ;;  %vm9259_vm2 = vcmp.ge.f32.partialorder %v9251_v5, 0.0  ;;  %v9263_v42 = vmul.f32 0.2, %v9247_v54  ;;  %v9267_v0 = vmul.f32 0.2, %v9251_v5 }
0x1077   : > { %v9229_v1 = vmul.f32 0.5, %v9228_v22  ;;  %v9351_v56 = vperm.slane %v9349_v19, 0  ;;  %v9352_v49 = vperm.slane %v9349_v19, 2  ;;  %v9353_v13 = vperm.slane %v9349_v19, 4 }
0x1078   : > { %v9271_v38 = vsel %vm9255_vm1, %v9247_v54, %v9263_v42  ;;  %v9275_v63 = vsel %vm9259_vm2, %v9251_v5, %v9267_v0  ;;  %14627 = vmatmul.msk.bf16.vlgmr.msra.gmra.mxu0 %vm4214_vm6, %v21769_v36  ;;  %v9354_v30 = vperm.slane %v9349_v19, 6  ;;  %v9454_v5 = vperm.slane %v9452_v62, 0 }
0x1079   : > { %9401 = vmatpush.bf16.msrb.mxu0 %v21762_v26  ;;  %v21775_v60 = vpack.c.bf16 %v9275_v63, %v9271_v38  ;;  %v9230_v6 = vsub.f32 1.5, %v9229_v1  ;;  %v15632_v43 = vpop.eup %15631  ;;  %v9359_v45 = vperm.slane %v9351_v56, 0  ;;  %v9360_v32 = vperm.slane %v9352_v49, 0 }
0x107a   : > { %v9237_v12 = vmul.f32 %v15632_v43, %v9205_v3  ;;  %vm9243_vm9 = vweird.f32 %v15632_v43  ;;  %v9361_v2 = vperm.slane %v9353_v13, 0  ;;  %v9362_v54 = vperm.slane %v9354_v30, 0 }
0x107b   : > { %v9231_v24 = vmul.f32 %v15630_v59, %v9230_v6  ;;  %9313 = vmatpush.bf16.msra.mxu1 %v21775_v60  ;;  %vm9244_vm11 = vmor %vm9242_vm10, %vm9243_vm9 }
0x107c   : > { %v9238_v51 = vmul.f32 %v15632_v43, %v9237_v12 }
0x107d   : > { %9504 = vmatpush.bf16.msra.mxu0 %v21762_v26  ;;  %v9235_v29 = vsel %vm9234_vm5, %v15630_v59, %v9231_v24  ;;  %v9462_v24 = vperm.slane %v9454_v5, 0 }
0x107e   : > { %v9248_v23 = vmul.f32 %v9235_v29, %v21739_v15  ;;  %v9252_v4 = vmul.f32 %v9235_v29, %v21741_v55  ;;  %14628 = vmatmul.msk.bf16.vlgmr.msra.gmra.mxu1 %vm4214_vm6, %v21769_v36  ;;  %v9239_v40 = vmul.f32 0.5, %v9238_v51  ;;  %v15594_v15 = vld [vmem:[%s21904_s12 + $0x8] sm:$0xff] }
0x107f   : > { %9415 = vmatpush.bf16.msrb.mxu1 %v21775_v60 }
0x1080   : > { %vm9256_vm7 = vcmp.ge.f32.partialorder %v9248_v23, 0.0  ;;  %vm9260_vm8 = vcmp.ge.f32.partialorder %v9252_v4, 0.0  ;;  %v9264_v18 = vmul.f32 0.2, %v9248_v23  ;;  %v9268_v57 = vmul.f32 0.2, %v9252_v4 }
0x1081   : > { %v9240_v61 = vsub.f32 1.5, %v9239_v40 }
0x1082   : > { %v9272_v16 = vsel %vm9256_vm7, %v9248_v23, %v9264_v18  ;;  %v9276_v14 = vsel %vm9260_vm8, %v9252_v4, %v9268_v57 }
0x1083   : > { %9518 = vmatpush.bf16.msra.mxu1 %v21775_v60  ;;  %v21785_v9 = vpack.c.bf16 %v9276_v14, %v9272_v16  ;;  %v9241_v17 = vmul.f32 %v15632_v43, %v9240_v61  ;;  %v14652_v16 = vld [vmem:[%s21905_s13 + $0x8] sm:$0xff]  }
0x1085   : > { %v9245_v55 = vsel %vm9244_vm11, %v15632_v43, %v9241_v17  ;;  %9327 = vmatpush.bf16.msrb.mxu2 %v21785_v9  ;;  %v9457_v17 = vperm.slane %v9452_v62, 6 }
0x1086   : > { %v9249_v37 = vmul.f32 %v9245_v55, %v21749_v10  ;;  %v9253_v27 = vmul.f32 %v9245_v55, %v21751_v41  ;;  %v15595_v41 = vld [vmem:[%s21904_s12 + $0x10] sm:$0xff] }
0x1088   : > { %vm9257_vm12 = vcmp.ge.f32.partialorder %v9249_v37, 0.0  ;;  %vm9261_vm13 = vcmp.ge.f32.partialorder %v9253_v27, 0.0  ;;  %v9265_v33 = vmul.f32 0.2, %v9249_v37  ;;  %v9269_v50 = vmul.f32 0.2, %v9253_v27  ;;  %14629 = vmatmul.msk.bf16.vlgmr.msrb.gmra.mxu2 %vm4214_vm6, %v21769_v36  ;;  %14637 = vmatmul.msk.bf16.vlgmr.msrb.gmra.mxu0 %vm4214_vm6, %v15594_v15 }
0x1089   : > { %9429 = vmatpush.bf16.msra.mxu2 %v21785_v9  ;;  %9607 = vmatpush.bf16.msrb.mxu0 %v21762_v26 }
0x108a   : > { %v9273_v31 = vsel %vm9257_vm12, %v9249_v37, %v9265_v33  ;;  %v9277_v7 = vsel %vm9261_vm13, %v9253_v27, %v9269_v50  ;;  %v9555_v33 = vunpack.c.l.bf16 %v14652_v16 }
0x108b   : > { %v9281_v10 = vpack.c.bf16 %v9277_v7, %v9273_v31  ;;  %v9465_v31 = vperm.slane %v9457_v17, 0 }
0x108c   : > { %v9557_v7 = vperm.slane %v9555_v33, 0 }
0x108d   : > { %9532 = vmatpush.bf16.msrb.mxu2 %v21785_v9  ;;  %9341 = vmatpush.bf16.msra.mxu3 %v9281_v10 }
0x108e   : > { %14638 = vmatmul.msk.bf16.vlgmr.msrb.gmra.mxu1 %vm4214_vm6, %v15594_v15 }
0x108f   : > { %9621 = vmatpush.bf16.msrb.mxu1 %v21775_v60 }
0x1090   : > { %14630 = vmatmul.msk.bf16.vlgmr.msra.gmra.mxu3 %vm4214_vm6, %v21769_v36  ;;  %v9455_v36 = vperm.slane %v9452_v62, 2 }
0x1091   : > { %9443 = vmatpush.bf16.msrb.mxu3 %v9281_v10 }
0x1092   : > { %v9463_v12 = vperm.slane %v9455_v36, 0 }
0x1095   : > { %9546 = vmatpush.bf16.msra.mxu3 %v9281_v10 }
0x1098   : > { %14639 = vmatmul.msk.bf16.vlgmr.msra.gmra.mxu2 %vm4214_vm6, %v15594_v15  ;;  %14648 = vmatmul.msk.bf16.vlgmr.msra.gmra.mxu0 %vm4214_vm6, %v15595_v41 }
0x1099   : > { %9635 = vmatpush.bf16.msra.mxu2 %v21785_v9  ;;  %9710 = vmatpush.bf16.msra.mxu0 %v21762_v26 }
0x109e   : > { %14649 = vmatmul.msk.bf16.vlgmr.msra.gmra.mxu1 %vm4214_vm6, %v15595_v41 }
0x109f   : > { %9724 = vmatpush.bf16.msra.mxu1 %v21775_v60 }
0x10a0   : > { %14640 = vmatmul.msk.bf16.vlgmr.msrb.gmra.mxu3 %vm4214_vm6, %v15594_v15 }
0x10a1   : > { %9649 = vmatpush.bf16.msrb.mxu3 %v9281_v10 }
0x10a8   : > { %14650 = vmatmul.msk.bf16.vlgmr.msrb.gmra.mxu2 %vm4214_vm6, %v15595_v41  ;;  %14659 = vmatmul.msk.bf16.vlgmr.msrb.gmra.mxu0 %vm4214_vm6, %v15596_v20 }
0x10a9   : > { %9738 = vmatpush.bf16.msrb.mxu2 %v21785_v9  ;;  %9813 = vmatpush.bf16.msrb.mxu0 %v21762_v26 }
0x10ae   : > { %14660 = vmatmul.msk.bf16.vlgmr.msrb.gmra.mxu1 %vm4214_vm6, %v15596_v20 }
0x10af   : > { %9827 = vmatpush.bf16.msrb.mxu1 %v21775_v60 }
0x10b0   : > { %14651 = vmatmul.msk.bf16.vlgmr.msra.gmra.mxu3 %vm4214_vm6, %v15595_v41 }
0x10b1   : > { %9752 = vmatpush.bf16.msra.mxu3 %v9281_v10 }
0x10b8   : > { %14661 = vmatmul.msk.bf16.vlgmr.msra.gmra.mxu2 %vm4214_vm6, %v15596_v20  ;;  %14670 = vmatmul.msk.bf16.vlgmr.msra.gmra.mxu0 %vm4214_vm6, %v15597_v21 }
0x10b9   : > { %9841 = vmatpush.bf16.msra.mxu2 %v21785_v9  ;;  %9916 = vmatpush.bf16.msra.mxu0 %v21762_v26 }
0x10be   : > { %14671 = vmatmul.msk.bf16.vlgmr.msra.gmra.mxu1 %vm4214_vm6, %v15597_v21 }
0x10bf   : > { %9930 = vmatpush.bf16.msra.mxu1 %v21775_v60 }
0x10c0   : > { %14662 = vmatmul.msk.bf16.vlgmr.msrb.gmra.mxu3 %vm4214_vm6, %v15596_v20 }
0x10c1   : > { %9855 = vmatpush.bf16.msrb.mxu3 %v9281_v10 }
0x10c8   : > { %14672 = vmatmul.msk.bf16.vlgmr.msrb.gmra.mxu2 %vm4214_vm6, %v15597_v21  ;;  %14681 = vmatmul.msk.bf16.vlgmr.msrb.gmra.mxu0 %vm4214_vm6, %v15598_v28 }
0x10c9   : > { %9944 = vmatpush.bf16.msrb.mxu2 %v21785_v9  ;;  %10019 = vmatpush.bf16.msrb.mxu0 %v21762_v26 }
0x10ce   : > { %14682 = vmatmul.msk.bf16.vlgmr.msrb.gmra.mxu1 %vm4214_vm6, %v15598_v28 }
0x10cf   : > { %10033 = vmatpush.bf16.msrb.mxu1 %v21775_v60 }
0x10d0   : > { %14673 = vmatmul.msk.bf16.vlgmr.msra.gmra.mxu3 %vm4214_vm6, %v15597_v21 }
0x10d1   : > { %9958 = vmatpush.bf16.msra.mxu3 %v9281_v10 }
0x10d8   : > { %14683 = vmatmul.msk.bf16.vlgmr.msra.gmra.mxu2 %vm4214_vm6, %v15598_v28  ;;  %14692 = vmatmul.msk.bf16.vlgmr.msra.gmra.mxu0 %vm4214_vm6, %v15599_v48 }
0x10d9   : > { %10047 = vmatpush.bf16.msra.mxu2 %v21785_v9  ;;  %10122 = vmatpush.bf16.msra.mxu0 %v21762_v26 }
0x10de   : > { %14693 = vmatmul.msk.bf16.vlgmr.msra.gmra.mxu1 %vm4214_vm6, %v15599_v48 }
0x10df   : > { %10136 = vmatpush.bf16.msra.mxu1 %v21775_v60  ;;  %v9456_v60 = vperm.slane %v9452_v62, 4 }
0x10e0   : > { %14684 = vmatmul.msk.bf16.vlgmr.msrb.gmra.mxu3 %vm4214_vm6, %v15598_v28 }
0x10e1   : > { %10061 = vmatpush.bf16.msrb.mxu3 %v9281_v10  ;;  %v9464_v18 = vperm.slane %v9456_v60, 0 }
0x10e8   : > { %14694 = vmatmul.msk.bf16.vlgmr.msrb.gmra.mxu2 %vm4214_vm6, %v15599_v48  ;;  %14703 = vmatmul.msk.bf16.vlgmr.msrb.gmra.mxu0 %vm4214_vm6, %v15600_v35 }
0x10e9   : > { %10150 = vmatpush.bf16.msrb.mxu2 %v21785_v9 }
0x10ee   : > { %14704 = vmatmul.msk.bf16.vlgmr.msrb.gmra.mxu1 %vm4214_vm6, %v15600_v35 }
0x10f0   : > { %14695 = vmatmul.msk.bf16.vlgmr.msra.gmra.mxu3 %vm4214_vm6, %v15599_v48 }
0x10f1   : > { %10164 = vmatpush.bf16.msra.mxu3 %v9281_v10  ;;  %v9558_v10 = vperm.slane %v9555_v33, 2 }
0x10f5   : > { %v9301_v52 = vpop.f32.mrf.mxu0 }
0x10f6   : > { %v9363_v53 = vmul.f32 %v9359_v45, %v9301_v52 }
0x10f8   : > { %14705 = vmatmul.msk.bf16.vlgmr.msra.gmra.mxu2 %vm4214_vm6, %v15600_v35  ;;  %14714 = vmatmul.msk.bf16.vlgmr.msra.gmra.mxu0 %vm4214_vm6, %v15601_v44 }
0x10fb   : > { %v9315_v25 = vpop.f32.mrf.mxu1 }
0x10fc   : > { %v9364_v58 = vmul.f32 %v9360_v32, %v9315_v25  ;;  %v9565_v25 = vperm.slane %v9557_v7, 0 }
0x10fd   : > { %v9303_v46 = vpop.f32.mrf.mxu0 }
0x10fe   : > { %14715 = vmatmul.msk.bf16.vlgmr.msra.gmra.mxu1 %vm4214_vm6, %v15601_v44  ;;  %v9371_v26 = vadd.f32 %v9364_v58, %v9363_v53  ;;  %v9367_v63 = vmul.f32 %v9359_v45, %v9303_v46  ;;  %v9566_v46 = vperm.slane %v9558_v10, 0 }
0x1100   : > { %14706 = vmatmul.msk.bf16.vlgmr.msrb.gmra.mxu3 %vm4214_vm6, %v15600_v35 }
0x1103   : > { %v9317_v8 = vpop.f32.mrf.mxu1 }
0x1104   : > { %v9368_v43 = vmul.f32 %v9360_v32, %v9317_v8 }
0x1105   : > { %v9403_v39 = vpop.f32.mrf.mxu0 }
0x1106   : > { %v9376_v23 = vadd.f32 %v9368_v43, %v9367_v63  ;;  %v9466_v4 = vmul.f32 %v9462_v24, %v9403_v39 }
0x1108   : > { %14716 = vmatmul.msk.bf16.vlgmr.msrb.gmra.mxu2 %vm4214_vm6, %v15601_v44 }
0x110b   : > { %v9329_v3 = vpop.f32.mrf.mxu2  ;;  %v9417_v59 = vpop.f32.mrf.mxu1 }
0x110c   : > { %v9365_v34 = vmul.f32 %v9361_v2, %v9329_v3  ;;  %v9467_v40 = vmul.f32 %v9463_v12, %v9417_v59  ;;  %v9658_v59 = vunpack.c.h.bf16 %v14652_v16 }
0x110d   : > { %v9405_v47 = vpop.f32.mrf.mxu0 }
0x110e   : > { %v9372_v22 = vadd.f32 %v9371_v26, %v9365_v34  ;;  %v9474_v37 = vadd.f32 %v9467_v40, %v9466_v4  ;;  %v9470_v35 = vmul.f32 %v9462_v24, %v9405_v47  ;;  %v9661_v36 = vperm.slane %v9658_v59, 2 }
0x110f   : > { %v9662_v24 = vperm.slane %v9658_v59, 4 }
0x1110   : > { %14717 = vmatmul.msk.bf16.vlgmr.msra.gmra.mxu3 %vm4214_vm6, %v15601_v44  ;;  %v9559_v44 = vperm.slane %v9555_v33, 4  ;;  %v9669_v43 = vperm.slane %v9661_v36, 0  ;;  %vm10213_vm6 = vcmask 7168  }
0x1111   : > { %v9670_v40 = vperm.slane %v9662_v24, 0 }
0x1112   : > { %v9567_v45 = vperm.slane %v9559_v44, 0 }
0x1113   : > { %v9343_v42 = vpop.f32.mrf.mxu3  ;;  %v9331_v0 = vpop.f32.mrf.mxu2 }
0x1114   : > { %v9366_v1 = vmul.f32 %v9362_v54, %v9343_v42  ;;  %v9419_v38 = vpop.f32.mrf.mxu1  ;;  %v9369_v51 = vmul.f32 %v9361_v2, %v9331_v0  ;;  %v9560_v2 = vperm.slane %v9555_v33, 6 }
0x1115   : > { %v9506_v6 = vpop.f32.mrf.mxu0  ;;  %v9471_v11 = vmul.f32 %v9463_v12, %v9419_v38 }
0x1116   : > { %v9373_v29 = vadd.f32 %v9372_v22, %v9366_v1  ;;  %v9377_v14 = vadd.f32 %v9376_v23, %v9369_v51  ;;  %v9569_v8 = vmul.f32 %v9565_v25, %v9506_v6  ;;  %v9568_v62 = vperm.slane %v9560_v2, 0 }
0x1117   : > { %v9479_v49 = vadd.f32 %v9471_v11, %v9470_v35 }
0x1118   : > { %9374 = vadd.xlane.f32.xlu0 %v9373_v29 }
0x111b   : > { %v9345_v57 = vpop.f32.mrf.mxu3  ;;  %v9431_v61 = vpop.f32.mrf.mxu2 }
0x111c   : > { %v9370_v9 = vmul.f32 %v9362_v54, %v9345_v57  ;;  %v9520_v15 = vpop.f32.mrf.mxu1  ;;  %v9468_v27 = vmul.f32 %v9464_v18, %v9431_v61  ;;  %v9660_v54 = vperm.slane %v9658_v59, 0 }
0x111d   : > { %v9508_v55 = vpop.f32.mrf.mxu0  ;;  %v9570_v39 = vmul.f32 %v9566_v46, %v9520_v15 }
0x111e   : > { %v9378_v50 = vadd.f32 %v9377_v14, %v9370_v9  ;;  %v9475_v41 = vadd.f32 %v9474_v37, %v9468_v27  ;;  %v9573_v38 = vmul.f32 %v9565_v25, %v9508_v55  ;;  %v9668_v63 = vperm.slane %v9660_v54, 0 }
0x111f   : > { %v9577_v30 = vadd.f32 %v9570_v39, %v9569_v8  ;;  %v9663_v9 = vperm.slane %v9658_v59, 6 }
0x1120   : > { %9379 = vadd.xlane.f32.xlu0 %v9378_v50 }
0x1121   : > { %v9671_v33 = vperm.slane %v9663_v9, 0 }
0x1123   : > { %v9445_v20 = vpop.f32.mrf.mxu3  ;;  %v9433_v21 = vpop.f32.mrf.mxu2 }
0x1124   : > { %v9469_v28 = vmul.f32 %v9465_v31, %v9445_v20  ;;  %v9522_v48 = vpop.f32.mrf.mxu1  ;;  %v9472_v56 = vmul.f32 %v9464_v18, %v9433_v21  ;;  %v14674_v18 = vld [vmem:[%s21905_s13 + $0x10] sm:$0xff]  }
0x1125   : > { %v9609_v52 = vpop.f32.mrf.mxu0  ;;  %v9574_v60 = vmul.f32 %v9566_v46, %v9522_v48  ;;  %v9761_v15 = vunpack.c.l.bf16 %v14674_v18 }
0x1126   : > { %v9476_v19 = vadd.f32 %v9475_v41, %v9469_v28  ;;  %v9480_v53 = vadd.f32 %v9479_v49, %v9472_v56  ;;  %v9672_v23 = vmul.f32 %v9668_v63, %v9609_v52 }
0x1127   : > { %v9582_v51 = vadd.f32 %v9574_v60, %v9573_v38  ;;  %v9763_v50 = vperm.slane %v9761_v15, 0  ;;  %v9764_v7 = vperm.slane %v9761_v15, 2  ;;  %v9765_v25 = vperm.slane %v9761_v15, 4 }
0x1128   : > { %9477 = vadd.xlane.f32.xlu1 %v9476_v19 }
0x1129   : > { %v9771_v35 = vperm.slane %v9763_v50, 0  ;;  %v9772_v11 = vperm.slane %v9764_v7, 0  ;;  %v9773_v8 = vperm.slane %v9765_v25, 0 }
0x112b   : > { %v9447_v32 = vpop.f32.mrf.mxu3  ;;  %v9534_v13 = vpop.f32.mrf.mxu2 }
0x112c   : > { %v9473_v58 = vmul.f32 %v9465_v31, %v9447_v32  ;;  %v9623_v3 = vpop.f32.mrf.mxu1  ;;  %v9571_v47 = vmul.f32 %v9567_v45, %v9534_v13 }
0x112d   : > { %v9611_v34 = vpop.f32.mrf.mxu0  ;;  %v9673_v4 = vmul.f32 %v9669_v43, %v9623_v3  ;;  %v9864_v3 = vunpack.c.h.bf16 %v14674_v18 }
0x112e   : > { %v9481_v26 = vadd.f32 %v9480_v53, %v9473_v58  ;;  %v9578_v5 = vadd.f32 %v9577_v30, %v9571_v47  ;;  %v9676_v48 = vmul.f32 %v9668_v63, %v9611_v34  ;;  %v9766_v53 = vperm.slane %v9761_v15, 6 }
0x112f   : > { %v9680_v55 = vadd.f32 %v9673_v4, %v9672_v23  ;;  %v9866_v34 = vperm.slane %v9864_v3, 0  ;;  %v9867_v54 = vperm.slane %v9864_v3, 2  ;;  %v9868_v60 = vperm.slane %v9864_v3, 4  ;;  %v14696_v4 = vld [vmem:[%s21905_s13 + $0x18] sm:$0xff]  }
0x1130   : > { %9482 = vadd.xlane.f32.xlu1 %v9481_v26  ;;  %v9774_v26 = vperm.slane %v9766_v53, 0  ;;  %v10070_v53 = vunpack.c.h.bf16 %v14696_v4 }
0x1131   : > { %v9875_v63 = vperm.slane %v9867_v54, 0  ;;  %v9876_v23 = vperm.slane %v9868_v60, 0 }
0x1133   : > { %v9548_v22 = vpop.f32.mrf.mxu3  ;;  %v9536_v42 = vpop.f32.mrf.mxu2 }
0x1134   : > { %v9572_v0 = vmul.f32 %v9568_v62, %v9548_v22  ;;  %v9625_v1 = vpop.f32.mrf.mxu1  ;;  %v9575_v12 = vmul.f32 %v9567_v45, %v9536_v42 }
0x1135   : > { %v9712_v29 = vpop.f32.mrf.mxu0  ;;  %v9677_v44 = vmul.f32 %v9669_v43, %v9625_v1 }
0x1136   : > { %v9579_v6 = vadd.f32 %v9578_v5, %v9572_v0  ;;  %v9583_v16 = vadd.f32 %v9582_v51, %v9575_v12  ;;  %v9775_v56 = vmul.f32 %v9771_v35, %v9712_v29  ;;  %v9874_v0 = vperm.slane %v9866_v34, 0 }
0x1137   : > { %v9685_v19 = vadd.f32 %v9677_v44, %v9676_v48 }
0x1138   : > { %9580 = vadd.xlane.f32.xlu2 %v9579_v6 }
0x113b   : > { %v9550_v57 = vpop.f32.mrf.mxu3  ;;  %v9637_v61 = vpop.f32.mrf.mxu2 }
0x113c   : > { %v9576_v14 = vmul.f32 %v9568_v62, %v9550_v57  ;;  %v9726_v17 = vpop.f32.mrf.mxu1  ;;  %v9674_v27 = vmul.f32 %v9670_v40, %v9637_v61 }
0x113d   : > { %v9714_v10 = vpop.f32.mrf.mxu0  ;;  %v9776_v49 = vmul.f32 %v9772_v11, %v9726_v17 }
0x113e   : > { %v9584_v37 = vadd.f32 %v9583_v16, %v9576_v14  ;;  %v9681_v31 = vadd.f32 %v9680_v55, %v9674_v27  ;;  %v9779_v42 = vmul.f32 %v9771_v35, %v9714_v10  ;;  %v9869_v16 = vperm.slane %v9864_v3, 6 }
0x113f   : > { %v9783_v59 = vadd.f32 %v9776_v49, %v9775_v56  ;;  %v9967_v14 = vunpack.c.l.bf16 %v14696_v4 }
0x1140   : > { %9585 = vadd.xlane.f32.xlu2 %v9584_v37  ;;  %v9877_v55 = vperm.slane %v9869_v16, 0 }
0x1141   : > { %v9971_v44 = vperm.slane %v9967_v14, 4 }
0x1143   : > { %v9651_v41 = vpop.f32.mrf.mxu3  ;;  %v9639_v20 = vpop.f32.mrf.mxu2 }
0x1144   : > { %v9675_v21 = vmul.f32 %v9671_v33, %v9651_v41  ;;  %v9728_v28 = vpop.f32.mrf.mxu1  ;;  %v9678_v46 = vmul.f32 %v9670_v40, %v9639_v20 }
0x1145   : > { %v9815_v58 = vpop.f32.mrf.mxu0  ;;  %v9780_v1 = vmul.f32 %v9772_v11, %v9728_v28 }
0x1146   : > { %v9682_v52 = vadd.f32 %v9681_v31, %v9675_v21  ;;  %v9686_v32 = vadd.f32 %v9685_v19, %v9678_v46  ;;  %v9878_v29 = vmul.f32 %v9874_v0, %v9815_v58  ;;  %v9970_v31 = vperm.slane %v9967_v14, 2 }
0x1147   : > { %v9788_v12 = vadd.f32 %v9780_v1, %v9779_v42  ;;  %v9979_v19 = vperm.slane %v9971_v44, 0 }
0x1148   : > { %9683 = vadd.xlane.f32.xlu0 %v9682_v52  ;;  %v9978_v35 = vperm.slane %v9970_v31, 0 }
0x114b   : > { %v9653_v39 = vpop.f32.mrf.mxu3  ;;  %v9740_v45 = vpop.f32.mrf.mxu2 }
0x114c   : > { %v9679_v13 = vmul.f32 %v9671_v33, %v9653_v39  ;;  %v9829_v2 = vpop.f32.mrf.mxu1  ;;  %v9777_v47 = vmul.f32 %v9773_v8, %v9740_v45  ;;  %v9969_v33 = vperm.slane %v9967_v14, 0 }
0x114d   : > { %v9817_v6 = vpop.f32.mrf.mxu0  ;;  %v9879_v51 = vmul.f32 %v9875_v63, %v9829_v2 }
0x114e   : > { %v9687_v30 = vadd.f32 %v9686_v32, %v9679_v13  ;;  %v9784_v62 = vadd.f32 %v9783_v59, %v9777_v47  ;;  %v9882_v20 = vmul.f32 %v9874_v0, %v9817_v6  ;;  %v9977_v21 = vperm.slane %v9969_v33, 0 }
0x114f   : > { %v9886_v9 = vadd.f32 %v9879_v51, %v9878_v29  ;;  %v9972_v13 = vperm.slane %v9967_v14, 6  ;;  %v14718_v29 = vld [vmem:[%s21905_s13 + $0x20] sm:$0xf] }
0x1150   : > { %9688 = vadd.xlane.f32.xlu1 %v9687_v30  ;;  %v10072_v30 = vperm.slane %v10070_v53, 0 }
0x1151   : > { %v9980_v59 = vperm.slane %v9972_v13, 0 }
0x1153   : > { %v9754_v5 = vpop.f32.mrf.mxu3  ;;  %v9742_v36 = vpop.f32.mrf.mxu2 }
0x1154   : > { %v9778_v22 = vmul.f32 %v9774_v26, %v9754_v5  ;;  %v9831_v43 = vpop.f32.mrf.mxu1  ;;  %v9781_v24 = vmul.f32 %v9773_v8, %v9742_v36 }
0x1155   : > { %v9918_v37 = vpop.f32.mrf.mxu0  ;;  %v9883_v28 = vmul.f32 %v9875_v63, %v9831_v43  ;;  %v10074_v63 = vperm.slane %v10070_v53, 4 }
0x1156   : > { %v9785_v38 = vadd.f32 %v9784_v62, %v9778_v22  ;;  %v9789_v57 = vadd.f32 %v9788_v12, %v9781_v24  ;;  %v9981_v25 = vmul.f32 %v9977_v21, %v9918_v37  ;;  %v10080_v22 = vperm.slane %v10072_v30, 0 }
0x1157   : > { %v9891_v11 = vadd.f32 %v9883_v28, %v9882_v20  ;;  %v10082_v12 = vperm.slane %v10074_v63, 0 }
0x1158   : > { %9786 = vadd.xlane.f32.xlu2 %v9785_v38 }
0x115b   : > { %v9756_v40 = vpop.f32.mrf.mxu3  ;;  %v9843_v18 = vpop.f32.mrf.mxu2 }
0x115c   : > { %v9782_v61 = vmul.f32 %v9774_v26, %v9756_v40  ;;  %v9880_v15 = vmul.f32 %v9876_v23, %v9843_v18  ;;  %v9932_v27 = vpop.f32.mrf.mxu1  ;;  %v10073_v26 = vperm.slane %v10070_v53, 2  ;;  %v10075_v18 = vperm.slane %v10070_v53, 6 }
0x115d   : > { %v9982_v46 = vmul.f32 %v9978_v35, %v9932_v27  ;;  %v9920_v56 = vpop.f32.mrf.mxu0 }
0x115e   : > { %v9790_v17 = vadd.f32 %v9789_v57, %v9782_v61  ;;  %v9887_v50 = vadd.f32 %v9886_v9, %v9880_v15  ;;  %v9985_v36 = vmul.f32 %v9977_v21, %v9920_v56  ;;  %v10081_v38 = vperm.slane %v10073_v26, 0 }
0x115f   : > { %v9989_v58 = vadd.f32 %v9982_v46, %v9981_v25  ;;  %v10173_v57 = vunpack.c.l.bf16 %v14718_v29  ;;  %v10083_v15 = vperm.slane %v10075_v18, 0 }
0x1160   : > { %9791 = vadd.xlane.f32.xlu0 %v9790_v17 }
0x1161   : > { %v10176_v27 = vperm.slane %v10173_v57, 2  ;;  %v10177_v28 = vperm.slane %v10173_v57, 4 }
0x1163   : > { %v9857_v7 = vpop.f32.mrf.mxu3  ;;  %v9845_v10 = vpop.f32.mrf.mxu2  ;;  %v10184_v21 = vperm.slane %v10176_v27, 0  ;;  %v10185_v46 = vperm.slane %v10177_v28, 0 }
0x1164   : > { %v9881_v41 = vmul.f32 %v9877_v55, %v9857_v7  ;;  %v9884_v52 = vmul.f32 %v9876_v23, %v9845_v10  ;;  %v9934_v49 = vpop.f32.mrf.mxu1 }
0x1165   : > { %v10021_v5 = vpop.f32.mrf.mxu0  ;;  %v9986_v0 = vmul.f32 %v9978_v35, %v9934_v49 }
0x1166   : > { %v9888_v48 = vadd.f32 %v9887_v50, %v9881_v41  ;;  %v9892_v45 = vadd.f32 %v9891_v11, %v9884_v52  ;;  %v10084_v43 = vmul.f32 %v10080_v22, %v10021_v5 }
0x1167   : > { %v9994_v6 = vadd.f32 %v9986_v0, %v9985_v36 }
0x1168   : > { %9889 = vadd.xlane.f32.xlu1 %v9888_v48 }
0x116b   : > { %v9859_v8 = vpop.f32.mrf.mxu3  ;;  %v9946_v39 = vpop.f32.mrf.mxu2 }
0x116c   : > { %v9885_v32 = vmul.f32 %v9877_v55, %v9859_v8  ;;  %v9983_v3 = vmul.f32 %v9979_v19, %v9946_v39  ;;  %v10035_v42 = vpop.f32.mrf.mxu1  ;;  %v10175_v55 = vperm.slane %v10173_v57, 0  ;;  %v10178_v39 = vperm.slane %v10173_v57, 6 }
0x116d   : > { %v10085_v24 = vmul.f32 %v10081_v38, %v10035_v42  ;;  %v10023_v9 = vpop.f32.mrf.mxu0 }
0x116e   : > { %v9893_v2 = vadd.f32 %v9892_v45, %v9885_v32  ;;  %v9990_v47 = vadd.f32 %v9989_v58, %v9983_v3  ;;  %v10088_v7 = vmul.f32 %v10080_v22, %v10023_v9  ;;  %v10183_v10 = vperm.slane %v10175_v55, 0 }
0x116f   : > { %v10092_v61 = vadd.f32 %v10085_v24, %v10084_v43  ;;  %v10186_v53 = vperm.slane %v10178_v39, 0 }
0x1170   : > { %9894 = vadd.xlane.f32.xlu2 %v9893_v2 }
0x1173   : > { %v9960_v34 = vpop.f32.mrf.mxu3  ;;  %v9948_v62 = vpop.f32.mrf.mxu2 }
0x1174   : > { %v9984_v54 = vmul.f32 %v9980_v59, %v9960_v34  ;;  %v9987_v60 = vmul.f32 %v9979_v19, %v9948_v62  ;;  %v10037_v17 = vpop.f32.mrf.mxu1 }
0x1175   : > { %v10089_v41 = vmul.f32 %v10081_v38, %v10037_v17  ;;  %v10124_v35 = vpop.f32.mrf.mxu0 }
0x1176   : > { %v9991_v1 = vadd.f32 %v9990_v47, %v9984_v54  ;;  %v9995_v4 = vadd.f32 %v9994_v6, %v9987_v60  ;;  %v10187_v11 = vmul.f32 %v10183_v10, %v10124_v35 }
0x1177   : > { %v10097_v52 = vadd.f32 %v10089_v41, %v10088_v7 }
0x1178   : > { %9992 = vadd.xlane.f32.xlu0 %v9991_v1 }
0x117b   : > { %v9962_v51 = vpop.f32.mrf.mxu3  ;;  %v10049_v23 = vpop.f32.mrf.mxu2 }
0x117c   : > { %v9988_v40 = vmul.f32 %v9980_v59, %v9962_v51  ;;  %v10086_v14 = vmul.f32 %v10082_v12, %v10049_v23  ;;  %v10138_v44 = vpop.f32.mrf.mxu1 }
0x117d   : > { %v10188_v25 = vmul.f32 %v10184_v21, %v10138_v44  ;;  %v10126_v2 = vpop.f32.mrf.mxu0 }
0x117e   : > { %v9996_v16 = vadd.f32 %v9995_v4, %v9988_v40  ;;  %v10093_v37 = vadd.f32 %v10092_v61, %v10086_v14  ;;  %v10191_v26 = vmul.f32 %v10183_v10, %v10126_v2 }
0x117f   : > { %v10195_v45 = vadd.f32 %v10188_v25, %v10187_v11 }
0x1180   : > { %9997 = vadd.xlane.f32.xlu1 %v9996_v16 }
0x1183   : > { %v10063_v33 = vpop.f32.mrf.mxu3  ;;  %v10051_v50 = vpop.f32.mrf.mxu2 }
0x1184   : > { %v10087_v31 = vmul.f32 %v10083_v15, %v10063_v33  ;;  %v10090_v48 = vmul.f32 %v10082_v12, %v10051_v50  ;;  %v10140_v59 = vpop.f32.mrf.mxu1  ;;  %v15614_v50 = vld [vmem:[#allocation2] ss:$0 sm:$0xff] }
0x1185   : > { %v10192_v34 = vmul.f32 %v10184_v21, %v10140_v59 }
0x1186   : > { %v10094_v20 = vadd.f32 %v10093_v37, %v10087_v31  ;;  %v10098_v49 = vadd.f32 %v10097_v52, %v10090_v48 }
0x1187   : > { %v10200_v5 = vadd.f32 %v10192_v34, %v10191_v26 }
0x1188   : > { %10095 = vadd.xlane.f32.xlu2 %v10094_v20 }
0x118b   : > { %v10065_v19 = vpop.f32.mrf.mxu3  ;;  %v10152_v56 = vpop.f32.mrf.mxu2 }
0x118c   : > { %v10091_v8 = vmul.f32 %v10083_v15, %v10065_v19  ;;  %v10189_v13 = vmul.f32 %v10185_v46, %v10152_v56  ;;  %v9375_v38 = vpop.xlane.xlu0 %9374 }
0x118e   : > { %v10099_v32 = vadd.f32 %v10098_v49, %v10091_v8  ;;  %v10196_v58 = vadd.f32 %v10195_v45, %v10189_v13 }
0x1190   : > { %10100 = vadd.xlane.f32.xlu0 %v10099_v32 }
0x1193   : > { %v10166_v3 = vpop.f32.mrf.mxu3  ;;  %v10154_v47 = vpop.f32.mrf.mxu2 }
0x1194   : > { %v10190_v30 = vmul.f32 %v10186_v53, %v10166_v3  ;;  %v10193_v54 = vmul.f32 %v10185_v46, %v10154_v47  ;;  %v9380_v6 = vpop.xlane.xlu0 %9379 }
0x1196   : > { %v10197_v62 = vadd.f32 %v10196_v58, %v10190_v30  ;;  %v10201_v22 = vadd.f32 %v10200_v5, %v10193_v54 }
0x1198   : > { %10198 = vadd.xlane.f32.xlu1 %v10197_v62 }
0x119b   : > { %v10168_v36 = vpop.f32.mrf.mxu3  ;;  %v9478_v1 = vpop.xlane.xlu1 %9477 }
0x119c   : > { %v10194_v42 = vmul.f32 %v10186_v53, %v10168_v36  ;;  %v9484_v4 = vadd.f32 %v9478_v1, %v9375_v38 }
0x119e   : > { %v10202_v0 = vadd.f32 %v10201_v22, %v10194_v42 }
0x11a0   : > { %10203 = vadd.xlane.f32.xlu2 %v10202_v0 }
0x11a3   : > { %v9483_v60 = vpop.xlane.xlu1 %9482 }
0x11a4   : > { %v9485_v9 = vadd.f32 %v9483_v60, %v9380_v6 }
0x11ab   : > { %v9581_v63 = vpop.xlane.xlu2 %9580 }
0x11ac   : > { %v9587_v18 = vadd.f32 %v9581_v63, %v9484_v4 }
0x11b3   : > { %v9586_v43 = vpop.xlane.xlu2 %9585 }
0x11b4   : > { %v9588_v55 = vadd.f32 %v9586_v43, %v9485_v9 }
0x11bb   : > { %v9684_v12 = vpop.xlane.xlu0 %9683 }
0x11bc   : > { %v9690_v57 = vadd.f32 %v9684_v12, %v9587_v18 }
0x11c3   : > { %v9689_v24 = vpop.xlane.xlu1 %9688 }
0x11c4   : > { %v9691_v27 = vadd.f32 %v9689_v24, %v9588_v55 }
0x11cb   : > { %v9787_v29 = vpop.xlane.xlu2 %9786 }
0x11cc   : > { %v9793_v16 = vadd.f32 %v9787_v29, %v9690_v57 }
0x11d3   : > { %v9792_v23 = vpop.xlane.xlu0 %9791 }
0x11d4   : > { %v9794_v7 = vadd.f32 %v9792_v23, %v9691_v27 }
0x11db   : > { %v9890_v51 = vpop.xlane.xlu1 %9889 }
0x11dc   : > { %v9896_v17 = vadd.f32 %v9890_v51, %v9793_v16 }
0x11e3   : > { %v9895_v40 = vpop.xlane.xlu2 %9894 }
0x11e4   : > { %v9897_v41 = vadd.f32 %v9895_v40, %v9794_v7 }
0x11eb   : > { %v9993_v14 = vpop.xlane.xlu0 %9992 }
0x11ec   : > { %v9999_v37 = vadd.f32 %v9993_v14, %v9896_v17 }
0x11f3   : > { %v9998_v61 = vpop.xlane.xlu1 %9997 }
0x11f4   : > { %v10000_v28 = vadd.f32 %v9998_v61, %v9897_v41 }
0x11fb   : > { %v10096_v15 = vpop.xlane.xlu2 %10095 }
0x11fc   : > { %v10102_v33 = vadd.f32 %v10096_v15, %v9999_v37 }
0x1203   : > { %v10101_v21 = vpop.xlane.xlu0 %10100 }
0x1204   : > { %v10103_v48 = vadd.f32 %v10101_v21, %v10000_v28 }
0x120b   : > { %v10199_v31 = vpop.xlane.xlu1 %10198 }
0x120c   : > { %v10205_v10 = vadd.f32 %v10199_v31, %v10102_v33 }
0x120e   : > { %v10211_v20 = vadd.f32 %v15614_v50, %v10205_v10 }
0x1210   : > { %10214 = vst.msk [vmem:[%s496_s24] sm:$0xff] %vm10213_vm6, %v10211_v20 }
0x1213   : > { %v10204_v35 = vpop.xlane.xlu2 %10203 }
0x1214   : > { %v10206_v44 = vadd.f32 %v10204_v35, %v10103_v48 }
0x1216   : > { %v10212_v52 = vadd.f32 %v15614_v50, %v10206_v44 }
0x1218   : > { %10215 = vst.msk [vmem:[%s496_s24 + $0x8] sm:$0xff] %vm10213_vm6, %v10212_v52 }
0x1219 PF: > { %s27_s20 = sadd.s32 1, %s15639_s20  }
0x121a   : > { %p24_p4 = scmp.ge.s32.totalorder %s27_s20, 4  }
0x121c   :  { %26 = sbr.rel (!%p24_p4) target bundleno = 3 (0x3), region = 174 }

</bundles_post_ra>
